<compile_context>
chip_gen: v6e
topology: v6e:2x2x1
jax: 0.10.0
libtpu: 0.0.40
codegen_flags: <defaults>
</compile_context>

<pallas_src>
import functools
import numpy as np
import jax
import jax.numpy as jnp
from jax import lax
from jax.experimental import pallas as pl
from jax.experimental.pallas import tpu as pltpu

NUM_GROUPS = 32
EPS = 1e-5


def _residual_block_kernel(
    x_ref, cond_ref, masks_ref,
    a1_ref, g1_ref, bn1_ref, w1_ref,
    a2_ref, g2_ref, bn2_ref, w2_ref, b2_ref,
    o_ref,
    slab1_ref, slab2_ref,
    *, H, W):
  HW = H * W
  B_blk = x_ref.shape[0]
  Cin = x_ref.shape[1]
  Cout = o_ref.shape[1]

  masks = masks_ref[...]                               # (9, HW) f32, loaded once

  def group_norm_silu(h, a, gamma, beta):
    # Per-channel spatial sums (lane reduce), then group averaging of the
    # stacked [sum | sum_sq] with a single (C,C)@(C,2) MXU matmul.
    s1 = jnp.sum(h, axis=1, keepdims=True)             # (C, 1)
    s2 = jnp.sum(h * h, axis=1, keepdims=True)         # (C, 1)
    stats = jnp.dot(a, jnp.concatenate([s1, s2], axis=1),
                    preferred_element_type=jnp.float32)  # (C, 2)
    mean = stats[:, 0:1]
    var = jnp.maximum(stats[:, 1:2] - mean * mean, 0.0)  # clamp f32 cancellation
    hn = (h - mean) * lax.rsqrt(var + EPS)
    hn = hn * gamma + beta
    return hn * jax.nn.sigmoid(hn)                     # SiLU

  def write_taps(slab_ref, h, lane_off):
    # 3x3 pad=1 im2col: 9 lane-rolled, border-masked copies of h, cast to bf16
    # per tap and written straight into the fat-K slab scratch (no f32 slab,
    # no concat copies).  Mask multiply stays in f32 (v5e-safe).
    C = h.shape[0]
    k = 0
    for dy in (-1, 0, 1):
      for dx in (-1, 0, 1):
        s = dy * W + dx
        if s == 0:
          tap = h                                      # center tap, mask == 1
        else:
          rolled = pltpu.roll(h, shift=(-s) % HW, axis=1)  # rolled[:,n]=h[:,n+s]
          tap = rolled * masks[k:k + 1, :]             # zero out-of-image taps
        slab_ref[k * C:(k + 1) * C,
                 lane_off:lane_off + HW] = tap.astype(jnp.bfloat16)
        k += 1

  a1 = a1_ref[...]; g1 = g1_ref[...]; bn1 = bn1_ref[...]
  a2 = a2_ref[...]; g2 = g2_ref[...]; bn2 = bn2_ref[...]

  # ---- norm1 -> SiLU -> im2col (per image) -> ONE fat-K conv1 matmul -------
  for b in range(B_blk):
    h = group_norm_silu(x_ref[b], a1, g1, bn1)
    write_taps(slab1_ref, h, b * HW)
  out1 = jnp.dot(w1_ref[...], slab1_ref[...],
                 preferred_element_type=jnp.float32)   # (Cout, B_blk*HW)

  # ---- + fused (conv1 bias + time bias + class bias) column,
  #      norm2 -> SiLU -> dropout(identity, eval) -> im2col ------------------
  for b in range(B_blk):
    hb = out1[:, b * HW:(b + 1) * HW] + cond_ref[b]    # one broadcast add
    h2 = group_norm_silu(hb, a2, g2, bn2)
    write_taps(slab2_ref, h2, b * HW)
    # residual 1x1 conv fused into conv2's matmul as Cin extra K rows (= x)
    slab2_ref[9 * Cout:9 * Cout + Cin,
              b * HW:(b + 1) * HW] = x_ref[b].astype(jnp.bfloat16)

  # ---- conv2 (+ fused residual) as ONE matmul; bias = conv2_b + res_b ------
  out2 = jnp.dot(w2_ref[...], slab2_ref[...],
                 preferred_element_type=jnp.float32) + b2_ref[...]
  for b in range(B_blk):
    o_ref[b] = out2[:, b * HW:(b + 1) * HW].astype(o_ref.dtype)


def residual_block_forward(x_nchw, time_emb, y, params, *, H, W,
                           batch_block=None, out_dtype=jnp.float32,
                           vmem_limit_bytes=32 * 1024 * 1024):
  B, Cin = x_nchw.shape[0], x_nchw.shape[1]
  Cout = params['conv1_w'].shape[0]
  HW = H * W
  assert Cin % NUM_GROUPS == 0 and Cout % NUM_GROUPS == 0

  # Batch blocking: stream several images through each conv matmul
  # (N = batch_block*HW) to amortize MXU / per-grid-step overhead.  Falls back
  # to 1 image per step if HW is not lane-tile aligned; tries to keep the grid
  # length >= 2 when B allows it so both v7x TensorCores stay fed.
  if batch_block is None:
    batch_block = 1
    if HW % 128 == 0:
      limit = min(8, B if B < 4 else B // 2)
      for cand in range(2, limit + 1):
        if B % cand == 0:
          batch_block = cand
  assert B % batch_block == 0
  n_blocks = B // batch_block

  f32 = jnp.float32
  x_flat = x_nchw.reshape(B, Cin, HW).astype(f32)

  # Fused per-(batch, channel) conditioning column:
  #   conv1 bias + Linear(silu(time_emb)) + class embedding gather.
  tb = (jax.nn.silu(time_emb.astype(f32)) @ params['time_w'].T.astype(f32)
        + params['time_b'].astype(f32))                       # (B, Cout)
  cond = (tb + params['class_emb'][y].astype(f32)
          + params['conv1_b'][None, :].astype(f32))
  cond_col = cond.reshape(B, Cout, 1)

  # Border-validity masks for the 9 conv taps (static H, W -> computed once).
  ii = jnp.arange(HW, dtype=jnp.int32) // W
  jj = jnp.arange(HW, dtype=jnp.int32) % W
  masks = jnp.stack(
      [((ii + dy >= 0) & (ii + dy < H) & (jj + dx >= 0) & (jj + dx < W))
       for dy in (-1, 0, 1) for dx in (-1, 0, 1)],
      axis=0).astype(f32)                              # (9, HW)

  def group_avg(C):
    gs = C // NUM_GROUPS
    gid = jnp.arange(C) // gs
    return (gid[:, None] == gid[None, :]).astype(f32) / (gs * HW)

  a1, a2 = group_avg(Cin), group_avg(Cout)

  # Conv weights packed tap-major for a single fat-K matmul, cast to bf16;
  # the residual 1x1 conv is appended as Cin extra K columns of conv2 and its
  # bias folded into conv2's bias.
  w1p = jnp.transpose(params['conv1_w'], (0, 2, 3, 1)
                      ).reshape(Cout, 9 * Cin).astype(jnp.bfloat16)
  w2p = jnp.transpose(params['conv2_w'], (0, 2, 3, 1)
                      ).reshape(Cout, 9 * Cout).astype(jnp.bfloat16)
  wr = params['res_w'][:, :, 0, 0].astype(jnp.bfloat16)        # (Cout, Cin)
  w2r = jnp.concatenate([w2p, wr], axis=1)                     # (Cout, 9*Cout+Cin)
  b2 = (params['conv2_b'] + params['res_b']).reshape(-1, 1).astype(f32)

  col = lambda v: v.reshape(-1, 1).astype(f32)

  kernel = functools.partial(_residual_block_kernel, H=H, W=W)
  vmem = pl.BlockSpec(memory_space=pltpu.MemorySpace.VMEM)

  out_flat = pl.pallas_call(
      kernel,
      out_shape=jax.ShapeDtypeStruct((B, Cout, HW), out_dtype),
      grid_spec=pltpu.PrefetchScalarGridSpec(
          num_scalar_prefetch=0,
          grid=(n_blocks,),
          in_specs=[
              pl.BlockSpec((batch_block, Cin, HW), lambda g: (g, 0, 0)),   # x
              pl.BlockSpec((batch_block, Cout, 1), lambda g: (g, 0, 0)),   # cond
              vmem,                                    # tap masks (9, HW)
              vmem, vmem, vmem,                        # a1, gamma1, beta1
              vmem,                                    # w1 packed (bf16)
              vmem, vmem, vmem,                        # a2, gamma2, beta2
              vmem, vmem,                              # w2+res packed, fused bias
          ],
          out_specs=pl.BlockSpec((batch_block, Cout, HW), lambda g: (g, 0, 0)),
          scratch_shapes=[
              pltpu.VMEM((9 * Cin, batch_block * HW), jnp.bfloat16),        # slab1
              pltpu.VMEM((9 * Cout + Cin, batch_block * HW), jnp.bfloat16), # slab2
          ]),
      compiler_params=pltpu.CompilerParams(
          dimension_semantics=("parallel",),
          vmem_limit_bytes=vmem_limit_bytes),
  )(x_flat, cond_col, masks,
    a1, col(params['norm1_g']), col(params['norm1_b']), w1p,
    a2, col(params['norm2_g']), col(params['norm2_b']), w2r, b2)

  return out_flat.reshape(B, Cout, H, W)


# ---------------- pure-JAX reference (mirrors the PyTorch module) -----------
def ref_forward(x, temb, y, params):
  def gn(v, gamma, beta):
    B, C, H, W = v.shape
    gs = C // NUM_GROUPS
    vg = v.reshape(B, NUM_GROUPS, gs, H, W)
    mean = vg.mean(axis=(2, 3, 4), keepdims=True)
    var = vg.var(axis=(2, 3, 4), keepdims=True)
    vn = ((vg - mean) / jnp.sqrt(var + EPS)).reshape(B, C, H, W)
    return vn * gamma[None, :, None, None] + beta[None, :, None, None]

  silu = lambda v: v * jax.nn.sigmoid(v)

  def conv(v, w, b, pad):
    out = lax.conv_general_dilated(v, w, (1, 1), ((pad, pad), (pad, pad)),
                                   dimension_numbers=('NCHW', 'OIHW', 'NCHW'))
    return out + b[None, :, None, None]

  h = conv(silu(gn(x, params['norm1_g'], params['norm1_b'])),
           params['conv1_w'], params['conv1_b'], 1)
  tb = silu(temb) @ params['time_w'].T + params['time_b']
  h = h + tb[:, :, None, None]
  h = h + params['class_emb'][y][:, :, None, None]
  h = conv(silu(gn(h, params['norm2_g'], params['norm2_b'])),
           params['conv2_w'], params['conv2_b'], 1)
  res = conv(x, params['res_w'], params['res_b'], 0)
  return h + res


if __name__ == "__main__":
  B, Cin, Cout = 2, 32, 64          # GroupNorm(32) requires channels % 32 == 0
  H = W = 16                        # HW = 256 -> lane-dense spatial dim
  Dt, NC = 16, 10

  key = jax.random.PRNGKey(0)
  ks = jax.random.split(key, 16)
  params = dict(
      norm1_g=1.0 + 0.1 * jax.random.normal(ks[0], (Cin,)),
      norm1_b=0.1 * jax.random.normal(ks[1], (Cin,)),
      conv1_w=0.1 * jax.random.normal(ks[2], (Cout, Cin, 3, 3)),
      conv1_b=0.1 * jax.random.normal(ks[3], (Cout,)),
      time_w=0.1 * jax.random.normal(ks[4], (Cout, Dt)),
      time_b=0.1 * jax.random.normal(ks[5], (Cout,)),
      class_emb=0.1 * jax.random.normal(ks[6], (NC, Cout)),
      norm2_g=1.0 + 0.1 * jax.random.normal(ks[7], (Cout,)),
      norm2_b=0.1 * jax.random.normal(ks[8], (Cout,)),
      conv2_w=0.1 * jax.random.normal(ks[9], (Cout, Cout, 3, 3)),
      conv2_b=0.1 * jax.random.normal(ks[10], (Cout,)),
      res_w=0.1 * jax.random.normal(ks[11], (Cout, Cin, 1, 1)),
      res_b=0.1 * jax.random.normal(ks[12], (Cout,)),
  )
  params = jax.tree.map(lambda a: a.astype(jnp.float32), params)

  x = jax.random.normal(ks[13], (B, Cin, H, W), jnp.float32)
  temb = jax.random.normal(ks[14], (B, Dt), jnp.float32)
  y = jax.random.randint(ks[15], (B,), 0, NC)

  out = residual_block_forward(x, temb, y, params, H=H, W=W)
  out = jax.block_until_ready(out)

  ref = ref_forward(x, temb, y, params)
  # tolerance accounts for bf16 MXU operands (f32 accumulation) in both convs
  # and the fused residual 1x1; structural bugs would show O(0.3+) errors.
  np.testing.assert_allclose(np.asarray(out), np.asarray(ref),
                             rtol=5e-2, atol=5e-2)
  print("KERNEL_OK")
</pallas_src>

<mosaic_0001>
module attributes {stable_mosaic.version = 11 : i64} {
  func.func @_residual_block_kernel(%arg0: i32, %arg1: memref<2x32x256xf32, #tpu.memory_space<vmem>>, %arg2: memref<2x64x1xf32, #tpu.memory_space<vmem>>, %arg3: memref<9x256xf32, #tpu.memory_space<vmem>>, %arg4: memref<32x32xf32, #tpu.memory_space<vmem>>, %arg5: memref<32x1xf32, #tpu.memory_space<vmem>>, %arg6: memref<32x1xf32, #tpu.memory_space<vmem>>, %arg7: memref<64x288xbf16, #tpu.memory_space<vmem>>, %arg8: memref<64x64xf32, #tpu.memory_space<vmem>>, %arg9: memref<64x1xf32, #tpu.memory_space<vmem>>, %arg10: memref<64x1xf32, #tpu.memory_space<vmem>>, %arg11: memref<64x608xbf16, #tpu.memory_space<vmem>>, %arg12: memref<64x1xf32, #tpu.memory_space<vmem>>, %arg13: memref<2x64x256xf32, #tpu.memory_space<vmem>>, %arg14: memref<288x512xbf16, #tpu.memory_space<vmem>>, %arg15: memref<608x512xbf16, #tpu.memory_space<vmem>>) attributes {dimension_semantics = [#tpu.dimension_semantics<parallel>], iteration_bounds = array<i64: 1>, scalar_prefetch = 0 : i64, scratch_operands = 2 : i64, tpu.core_type = #tpu.core_type<tc>, window_params = [{transform_indices = @transform_0, window_bounds = array<i64: 2, 32, 256>}, {transform_indices = @transform_1, window_bounds = array<i64: 2, 64, 1>}, {pipeline_mode = #tpu.pipeline_mode<synchronous>, transform_indices = @transform_2, window_bounds = array<i64: 9, 256>}, {pipeline_mode = #tpu.pipeline_mode<synchronous>, transform_indices = @transform_3, window_bounds = array<i64: 32, 32>}, {pipeline_mode = #tpu.pipeline_mode<synchronous>, transform_indices = @transform_4, window_bounds = array<i64: 32, 1>}, {pipeline_mode = #tpu.pipeline_mode<synchronous>, transform_indices = @transform_5, window_bounds = array<i64: 32, 1>}, {pipeline_mode = #tpu.pipeline_mode<synchronous>, transform_indices = @transform_6, window_bounds = array<i64: 64, 288>}, {pipeline_mode = #tpu.pipeline_mode<synchronous>, transform_indices = @transform_7, window_bounds = array<i64: 64, 64>}, {pipeline_mode = #tpu.pipeline_mode<synchronous>, transform_indices = @transform_8, window_bounds = array<i64: 64, 1>}, {pipeline_mode = #tpu.pipeline_mode<synchronous>, transform_indices = @transform_9, window_bounds = array<i64: 64, 1>}, {pipeline_mode = #tpu.pipeline_mode<synchronous>, transform_indices = @transform_10, window_bounds = array<i64: 64, 608>}, {pipeline_mode = #tpu.pipeline_mode<synchronous>, transform_indices = @transform_11, window_bounds = array<i64: 64, 1>}, {transform_indices = @transform_12, window_bounds = array<i64: 2, 64, 256>}]} {
    %c0 = arith.constant 0 : index
    %c0_0 = arith.constant 0 : index
    %0 = vector.load %arg3[%c0, %c0_0] : memref<9x256xf32, #tpu.memory_space<vmem>>, vector<9x256xf32>
    %c0_1 = arith.constant 0 : index
    %c0_2 = arith.constant 0 : index
    %1 = vector.load %arg4[%c0_1, %c0_2] : memref<32x32xf32, #tpu.memory_space<vmem>>, vector<32x32xf32>
    %c0_3 = arith.constant 0 : index
    %c0_4 = arith.constant 0 : index
    %2 = vector.load %arg5[%c0_3, %c0_4] : memref<32x1xf32, #tpu.memory_space<vmem>>, vector<32x1xf32>
    %c0_5 = arith.constant 0 : index
    %c0_6 = arith.constant 0 : index
    %3 = vector.load %arg6[%c0_5, %c0_6] : memref<32x1xf32, #tpu.memory_space<vmem>>, vector<32x1xf32>
    %c0_7 = arith.constant 0 : index
    %c0_8 = arith.constant 0 : index
    %4 = vector.load %arg8[%c0_7, %c0_8] : memref<64x64xf32, #tpu.memory_space<vmem>>, vector<64x64xf32>
    %c0_9 = arith.constant 0 : index
    %c0_10 = arith.constant 0 : index
    %5 = vector.load %arg9[%c0_9, %c0_10] : memref<64x1xf32, #tpu.memory_space<vmem>>, vector<64x1xf32>
    %c0_11 = arith.constant 0 : index
    %c0_12 = arith.constant 0 : index
    %6 = vector.load %arg10[%c0_11, %c0_12] : memref<64x1xf32, #tpu.memory_space<vmem>>, vector<64x1xf32>
    %c0_13 = arith.constant 0 : index
    %c0_14 = arith.constant 0 : index
    %c0_15 = arith.constant 0 : index
    %7 = vector.load %arg1[%c0_13, %c0_14, %c0_15] : memref<2x32x256xf32, #tpu.memory_space<vmem>>, vector<1x32x256xf32>
    %8 = vector.shape_cast %7 : vector<1x32x256xf32> to vector<32x256xf32>
    %cst = arith.constant dense<0.000000e+00> : vector<32xf32>
    %9 = vector.multi_reduction <add>, %8, %cst [1] : vector<32x256xf32> to vector<32xf32>
    %10 = vector.shape_cast %9 : vector<32xf32> to vector<32x1xf32>
    %11 = arith.mulf %8, %8 : vector<32x256xf32>
    %cst_16 = arith.constant dense<0.000000e+00> : vector<32xf32>
    %12 = vector.multi_reduction <add>, %11, %cst_16 [1] : vector<32x256xf32> to vector<32xf32>
    %13 = vector.shape_cast %12 : vector<32xf32> to vector<32x1xf32>
    %14 = tpu.concatenate %10, %13 in 1 : vector<32x1xf32>, vector<32x1xf32> -> vector<32x2xf32>
    %cst_17 = arith.constant dense<0.000000e+00> : vector<32x2xf32>
    %15 = tpu.matmul %1, %14, %cst_17 {dimension_numbers = #tpu.dot_dimension_numbers<[1], [0], [0], [1], [0, 0, 1, 1], [], []>} : vector<32x32xf32>, vector<32x2xf32>, vector<32x2xf32> -> vector<32x2xf32>
    %16 = vector.extract_strided_slice %15 {offsets = [0, 0], sizes = [32, 1], strides = [1, 1]} : vector<32x2xf32> to vector<32x1xf32>
    %17 = vector.extract_strided_slice %15 {offsets = [0, 1], sizes = [32, 1], strides = [1, 1]} : vector<32x2xf32> to vector<32x1xf32>
    %18 = arith.mulf %16, %16 : vector<32x1xf32>
    %19 = arith.subf %17, %18 : vector<32x1xf32>
    %cst_18 = arith.constant 0.000000e+00 : f32
    %20 = vector.broadcast %cst_18 : f32 to vector<32x1xf32>
    %21 = arith.maximumf %19, %20 : vector<32x1xf32>
    %22 = vector.broadcast %16 : vector<32x1xf32> to vector<32x256xf32>
    %23 = arith.subf %8, %22 : vector<32x256xf32>
    %cst_19 = arith.constant 9.99999974E-6 : f32
    %24 = vector.broadcast %cst_19 : f32 to vector<32x1xf32>
    %25 = arith.addf %21, %24 : vector<32x1xf32>
    %26 = math.rsqrt %25 : vector<32x1xf32>
    %27 = vector.broadcast %26 : vector<32x1xf32> to vector<32x256xf32>
    %28 = arith.mulf %23, %27 : vector<32x256xf32>
    %29 = vector.broadcast %2 : vector<32x1xf32> to vector<32x256xf32>
    %30 = arith.mulf %28, %29 : vector<32x256xf32>
    %31 = vector.broadcast %3 : vector<32x1xf32> to vector<32x256xf32>
    %32 = arith.addf %30, %31 : vector<32x256xf32>
    %33 = arith.negf %32 : vector<32x256xf32>
    %34 = math.exp %33 : vector<32x256xf32>
    %cst_20 = arith.constant 1.000000e+00 : f32
    %35 = vector.broadcast %cst_20 : f32 to vector<32x256xf32>
    %36 = arith.addf %35, %34 : vector<32x256xf32>
    %37 = arith.divf %35, %36 : vector<32x256xf32>
    %38 = arith.mulf %32, %37 : vector<32x256xf32>
    %c17_i32 = arith.constant 17 : i32
    %39 = tpu.dynamic_rotate %38 by %c17_i32 dim 1 : vector<32x256xf32>, i32 -> vector<32x256xf32>
    %40 = vector.extract_strided_slice %0 {offsets = [0, 0], sizes = [1, 256], strides = [1, 1]} : vector<9x256xf32> to vector<1x256xf32>
    %41 = vector.broadcast %40 : vector<1x256xf32> to vector<32x256xf32>
    %42 = arith.mulf %39, %41 : vector<32x256xf32>
    %43 = arith.truncf %42 : vector<32x256xf32> to vector<32x256xbf16>
    %c0_21 = arith.constant 0 : index
    %c0_22 = arith.constant 0 : index
    %44 = vector.load %arg14[%c0_21, %c0_22] : memref<288x512xbf16, #tpu.memory_space<vmem>>, vector<32x256xbf16>
    tpu.vector_store %arg14[%c0_21, %c0_22], %43 {strides = array<i32>} : memref<288x512xbf16, #tpu.memory_space<vmem>>, vector<32x256xbf16>,
    %c16_i32 = arith.constant 16 : i32
    %45 = tpu.dynamic_rotate %38 by %c16_i32 dim 1 : vector<32x256xf32>, i32 -> vector<32x256xf32>
    %46 = vector.extract_strided_slice %0 {offsets = [1, 0], sizes = [1, 256], strides = [1, 1]} : vector<9x256xf32> to vector<1x256xf32>
    %47 = vector.broadcast %46 : vector<1x256xf32> to vector<32x256xf32>
    %48 = arith.mulf %45, %47 : vector<32x256xf32>
    %49 = arith.truncf %48 : vector<32x256xf32> to vector<32x256xbf16>
    %c32 = arith.constant 32 : index
    %c0_23 = arith.constant 0 : index
    %50 = vector.load %arg14[%c32, %c0_23] : memref<288x512xbf16, #tpu.memory_space<vmem>>, vector<32x256xbf16>
    tpu.vector_store %arg14[%c32, %c0_23], %49 {strides = array<i32>} : memref<288x512xbf16, #tpu.memory_space<vmem>>, vector<32x256xbf16>,
    %c15_i32 = arith.constant 15 : i32
    %51 = tpu.dynamic_rotate %38 by %c15_i32 dim 1 : vector<32x256xf32>, i32 -> vector<32x256xf32>
    %52 = vector.extract_strided_slice %0 {offsets = [2, 0], sizes = [1, 256], strides = [1, 1]} : vector<9x256xf32> to vector<1x256xf32>
    %53 = vector.broadcast %52 : vector<1x256xf32> to vector<32x256xf32>
    %54 = arith.mulf %51, %53 : vector<32x256xf32>
    %55 = arith.truncf %54 : vector<32x256xf32> to vector<32x256xbf16>
    %c64 = arith.constant 64 : index
    %c0_24 = arith.constant 0 : index
    %56 = vector.load %arg14[%c64, %c0_24] : memref<288x512xbf16, #tpu.memory_space<vmem>>, vector<32x256xbf16>
    tpu.vector_store %arg14[%c64, %c0_24], %55 {strides = array<i32>} : memref<288x512xbf16, #tpu.memory_space<vmem>>, vector<32x256xbf16>,
    %c1_i32 = arith.constant 1 : i32
    %57 = tpu.dynamic_rotate %38 by %c1_i32 dim 1 : vector<32x256xf32>, i32 -> vector<32x256xf32>
    %58 = vector.extract_strided_slice %0 {offsets = [3, 0], sizes = [1, 256], strides = [1, 1]} : vector<9x256xf32> to vector<1x256xf32>
    %59 = vector.broadcast %58 : vector<1x256xf32> to vector<32x256xf32>
    %60 = arith.mulf %57, %59 : vector<32x256xf32>
    %61 = arith.truncf %60 : vector<32x256xf32> to vector<32x256xbf16>
    %c96 = arith.constant 96 : index
    %c0_25 = arith.constant 0 : index
    %62 = vector.load %arg14[%c96, %c0_25] : memref<288x512xbf16, #tpu.memory_space<vmem>>, vector<32x256xbf16>
    tpu.vector_store %arg14[%c96, %c0_25], %61 {strides = array<i32>} : memref<288x512xbf16, #tpu.memory_space<vmem>>, vector<32x256xbf16>,
    %63 = arith.truncf %38 : vector<32x256xf32> to vector<32x256xbf16>
    %c128 = arith.constant 128 : index
    %c0_26 = arith.constant 0 : index
    %64 = vector.load %arg14[%c128, %c0_26] : memref<288x512xbf16, #tpu.memory_space<vmem>>, vector<32x256xbf16>
    tpu.vector_store %arg14[%c128, %c0_26], %63 {strides = array<i32>} : memref<288x512xbf16, #tpu.memory_space<vmem>>, vector<32x256xbf16>,
    %c255_i32 = arith.constant 255 : i32
    %65 = tpu.dynamic_rotate %38 by %c255_i32 dim 1 : vector<32x256xf32>, i32 -> vector<32x256xf32>
    %66 = vector.extract_strided_slice %0 {offsets = [5, 0], sizes = [1, 256], strides = [1, 1]} : vector<9x256xf32> to vector<1x256xf32>
    %67 = vector.broadcast %66 : vector<1x256xf32> to vector<32x256xf32>
    %68 = arith.mulf %65, %67 : vector<32x256xf32>
    %69 = arith.truncf %68 : vector<32x256xf32> to vector<32x256xbf16>
    %c160 = arith.constant 160 : index
    %c0_27 = arith.constant 0 : index
    %70 = vector.load %arg14[%c160, %c0_27] : memref<288x512xbf16, #tpu.memory_space<vmem>>, vector<32x256xbf16>
    tpu.vector_store %arg14[%c160, %c0_27], %69 {strides = array<i32>} : memref<288x512xbf16, #tpu.memory_space<vmem>>, vector<32x256xbf16>,
    %c241_i32 = arith.constant 241 : i32
    %71 = tpu.dynamic_rotate %38 by %c241_i32 dim 1 : vector<32x256xf32>, i32 -> vector<32x256xf32>
    %72 = vector.extract_strided_slice %0 {offsets = [6, 0], sizes = [1, 256], strides = [1, 1]} : vector<9x256xf32> to vector<1x256xf32>
    %73 = vector.broadcast %72 : vector<1x256xf32> to vector<32x256xf32>
    %74 = arith.mulf %71, %73 : vector<32x256xf32>
    %75 = arith.truncf %74 : vector<32x256xf32> to vector<32x256xbf16>
    %c192 = arith.constant 192 : index
    %c0_28 = arith.constant 0 : index
    %76 = vector.load %arg14[%c192, %c0_28] : memref<288x512xbf16, #tpu.memory_space<vmem>>, vector<32x256xbf16>
    tpu.vector_store %arg14[%c192, %c0_28], %75 {strides = array<i32>} : memref<288x512xbf16, #tpu.memory_space<vmem>>, vector<32x256xbf16>,
    %c240_i32 = arith.constant 240 : i32
    %77 = tpu.dynamic_rotate %38 by %c240_i32 dim 1 : vector<32x256xf32>, i32 -> vector<32x256xf32>
    %78 = vector.extract_strided_slice %0 {offsets = [7, 0], sizes = [1, 256], strides = [1, 1]} : vector<9x256xf32> to vector<1x256xf32>
    %79 = vector.broadcast %78 : vector<1x256xf32> to vector<32x256xf32>
    %80 = arith.mulf %77, %79 : vector<32x256xf32>
    %81 = arith.truncf %80 : vector<32x256xf32> to vector<32x256xbf16>
    %c224 = arith.constant 224 : index
    %c0_29 = arith.constant 0 : index
    %82 = vector.load %arg14[%c224, %c0_29] : memref<288x512xbf16, #tpu.memory_space<vmem>>, vector<32x256xbf16>
    tpu.vector_store %arg14[%c224, %c0_29], %81 {strides = array<i32>} : memref<288x512xbf16, #tpu.memory_space<vmem>>, vector<32x256xbf16>,
    %c239_i32 = arith.constant 239 : i32
    %83 = tpu.dynamic_rotate %38 by %c239_i32 dim 1 : vector<32x256xf32>, i32 -> vector<32x256xf32>
    %84 = vector.extract_strided_slice %0 {offsets = [8, 0], sizes = [1, 256], strides = [1, 1]} : vector<9x256xf32> to vector<1x256xf32>
    %85 = vector.broadcast %84 : vector<1x256xf32> to vector<32x256xf32>
    %86 = arith.mulf %83, %85 : vector<32x256xf32>
    %87 = arith.truncf %86 : vector<32x256xf32> to vector<32x256xbf16>
    %c256 = arith.constant 256 : index
    %c0_30 = arith.constant 0 : index
    %88 = vector.load %arg14[%c256, %c0_30] : memref<288x512xbf16, #tpu.memory_space<vmem>>, vector<32x256xbf16>
    tpu.vector_store %arg14[%c256, %c0_30], %87 {strides = array<i32>} : memref<288x512xbf16, #tpu.memory_space<vmem>>, vector<32x256xbf16>,
    %c1 = arith.constant 1 : index
    %c0_31 = arith.constant 0 : index
    %c0_32 = arith.constant 0 : index
    %89 = vector.load %arg1[%c1, %c0_31, %c0_32] : memref<2x32x256xf32, #tpu.memory_space<vmem>>, vector<1x32x256xf32>
    %90 = vector.shape_cast %89 : vector<1x32x256xf32> to vector<32x256xf32>
    %cst_33 = arith.constant dense<0.000000e+00> : vector<32xf32>
    %91 = vector.multi_reduction <add>, %90, %cst_33 [1] : vector<32x256xf32> to vector<32xf32>
    %92 = vector.shape_cast %91 : vector<32xf32> to vector<32x1xf32>
    %93 = arith.mulf %90, %90 : vector<32x256xf32>
    %cst_34 = arith.constant dense<0.000000e+00> : vector<32xf32>
    %94 = vector.multi_reduction <add>, %93, %cst_34 [1] : vector<32x256xf32> to vector<32xf32>
    %95 = vector.shape_cast %94 : vector<32xf32> to vector<32x1xf32>
    %96 = tpu.concatenate %92, %95 in 1 : vector<32x1xf32>, vector<32x1xf32> -> vector<32x2xf32>
    %cst_35 = arith.constant dense<0.000000e+00> : vector<32x2xf32>
    %97 = tpu.matmul %1, %96, %cst_35 {dimension_numbers = #tpu.dot_dimension_numbers<[1], [0], [0], [1], [0, 0, 1, 1], [], []>} : vector<32x32xf32>, vector<32x2xf32>, vector<32x2xf32> -> vector<32x2xf32>
    %98 = vector.extract_strided_slice %97 {offsets = [0, 0], sizes = [32, 1], strides = [1, 1]} : vector<32x2xf32> to vector<32x1xf32>
    %99 = vector.extract_strided_slice %97 {offsets = [0, 1], sizes = [32, 1], strides = [1, 1]} : vector<32x2xf32> to vector<32x1xf32>
    %100 = arith.mulf %98, %98 : vector<32x1xf32>
    %101 = arith.subf %99, %100 : vector<32x1xf32>
    %cst_36 = arith.constant 0.000000e+00 : f32
    %102 = vector.broadcast %cst_36 : f32 to vector<32x1xf32>
    %103 = arith.maximumf %101, %102 : vector<32x1xf32>
    %104 = vector.broadcast %98 : vector<32x1xf32> to vector<32x256xf32>
    %105 = arith.subf %90, %104 : vector<32x256xf32>
    %cst_37 = arith.constant 9.99999974E-6 : f32
    %106 = vector.broadcast %cst_37 : f32 to vector<32x1xf32>
    %107 = arith.addf %103, %106 : vector<32x1xf32>
    %108 = math.rsqrt %107 : vector<32x1xf32>
    %109 = vector.broadcast %108 : vector<32x1xf32> to vector<32x256xf32>
    %110 = arith.mulf %105, %109 : vector<32x256xf32>
    %111 = vector.broadcast %2 : vector<32x1xf32> to vector<32x256xf32>
    %112 = arith.mulf %110, %111 : vector<32x256xf32>
    %113 = vector.broadcast %3 : vector<32x1xf32> to vector<32x256xf32>
    %114 = arith.addf %112, %113 : vector<32x256xf32>
    %115 = arith.negf %114 : vector<32x256xf32>
    %116 = math.exp %115 : vector<32x256xf32>
    %cst_38 = arith.constant 1.000000e+00 : f32
    %117 = vector.broadcast %cst_38 : f32 to vector<32x256xf32>
    %118 = arith.addf %117, %116 : vector<32x256xf32>
    %119 = arith.divf %117, %118 : vector<32x256xf32>
    %120 = arith.mulf %114, %119 : vector<32x256xf32>
    %c17_i32_39 = arith.constant 17 : i32
    %121 = tpu.dynamic_rotate %120 by %c17_i32_39 dim 1 : vector<32x256xf32>, i32 -> vector<32x256xf32>
    %122 = vector.extract_strided_slice %0 {offsets = [0, 0], sizes = [1, 256], strides = [1, 1]} : vector<9x256xf32> to vector<1x256xf32>
    %123 = vector.broadcast %122 : vector<1x256xf32> to vector<32x256xf32>
    %124 = arith.mulf %121, %123 : vector<32x256xf32>
    %125 = arith.truncf %124 : vector<32x256xf32> to vector<32x256xbf16>
    %c0_40 = arith.constant 0 : index
    %c256_41 = arith.constant 256 : index
    %126 = vector.load %arg14[%c0_40, %c256_41] : memref<288x512xbf16, #tpu.memory_space<vmem>>, vector<32x256xbf16>
    tpu.vector_store %arg14[%c0_40, %c256_41], %125 {strides = array<i32>} : memref<288x512xbf16, #tpu.memory_space<vmem>>, vector<32x256xbf16>,
    %c16_i32_42 = arith.constant 16 : i32
    %127 = tpu.dynamic_rotate %120 by %c16_i32_42 dim 1 : vector<32x256xf32>, i32 -> vector<32x256xf32>
    %128 = vector.extract_strided_slice %0 {offsets = [1, 0], sizes = [1, 256], strides = [1, 1]} : vector<9x256xf32> to vector<1x256xf32>
    %129 = vector.broadcast %128 : vector<1x256xf32> to vector<32x256xf32>
    %130 = arith.mulf %127, %129 : vector<32x256xf32>
    %131 = arith.truncf %130 : vector<32x256xf32> to vector<32x256xbf16>
    %c32_43 = arith.constant 32 : index
    %c256_44 = arith.constant 256 : index
    %132 = vector.load %arg14[%c32_43, %c256_44] : memref<288x512xbf16, #tpu.memory_space<vmem>>, vector<32x256xbf16>
    tpu.vector_store %arg14[%c32_43, %c256_44], %131 {strides = array<i32>} : memref<288x512xbf16, #tpu.memory_space<vmem>>, vector<32x256xbf16>,
    %c15_i32_45 = arith.constant 15 : i32
    %133 = tpu.dynamic_rotate %120 by %c15_i32_45 dim 1 : vector<32x256xf32>, i32 -> vector<32x256xf32>
    %134 = vector.extract_strided_slice %0 {offsets = [2, 0], sizes = [1, 256], strides = [1, 1]} : vector<9x256xf32> to vector<1x256xf32>
    %135 = vector.broadcast %134 : vector<1x256xf32> to vector<32x256xf32>
    %136 = arith.mulf %133, %135 : vector<32x256xf32>
    %137 = arith.truncf %136 : vector<32x256xf32> to vector<32x256xbf16>
    %c64_46 = arith.constant 64 : index
    %c256_47 = arith.constant 256 : index
    %138 = vector.load %arg14[%c64_46, %c256_47] : memref<288x512xbf16, #tpu.memory_space<vmem>>, vector<32x256xbf16>
    tpu.vector_store %arg14[%c64_46, %c256_47], %137 {strides = array<i32>} : memref<288x512xbf16, #tpu.memory_space<vmem>>, vector<32x256xbf16>,
    %c1_i32_48 = arith.constant 1 : i32
    %139 = tpu.dynamic_rotate %120 by %c1_i32_48 dim 1 : vector<32x256xf32>, i32 -> vector<32x256xf32>
    %140 = vector.extract_strided_slice %0 {offsets = [3, 0], sizes = [1, 256], strides = [1, 1]} : vector<9x256xf32> to vector<1x256xf32>
    %141 = vector.broadcast %140 : vector<1x256xf32> to vector<32x256xf32>
    %142 = arith.mulf %139, %141 : vector<32x256xf32>
    %143 = arith.truncf %142 : vector<32x256xf32> to vector<32x256xbf16>
    %c96_49 = arith.constant 96 : index
    %c256_50 = arith.constant 256 : index
    %144 = vector.load %arg14[%c96_49, %c256_50] : memref<288x512xbf16, #tpu.memory_space<vmem>>, vector<32x256xbf16>
    tpu.vector_store %arg14[%c96_49, %c256_50], %143 {strides = array<i32>} : memref<288x512xbf16, #tpu.memory_space<vmem>>, vector<32x256xbf16>,
    %145 = arith.truncf %120 : vector<32x256xf32> to vector<32x256xbf16>
    %c128_51 = arith.constant 128 : index
    %c256_52 = arith.constant 256 : index
    %146 = vector.load %arg14[%c128_51, %c256_52] : memref<288x512xbf16, #tpu.memory_space<vmem>>, vector<32x256xbf16>
    tpu.vector_store %arg14[%c128_51, %c256_52], %145 {strides = array<i32>} : memref<288x512xbf16, #tpu.memory_space<vmem>>, vector<32x256xbf16>,
    %c255_i32_53 = arith.constant 255 : i32
    %147 = tpu.dynamic_rotate %120 by %c255_i32_53 dim 1 : vector<32x256xf32>, i32 -> vector<32x256xf32>
    %148 = vector.extract_strided_slice %0 {offsets = [5, 0], sizes = [1, 256], strides = [1, 1]} : vector<9x256xf32> to vector<1x256xf32>
    %149 = vector.broadcast %148 : vector<1x256xf32> to vector<32x256xf32>
    %150 = arith.mulf %147, %149 : vector<32x256xf32>
    %151 = arith.truncf %150 : vector<32x256xf32> to vector<32x256xbf16>
    %c160_54 = arith.constant 160 : index
    %c256_55 = arith.constant 256 : index
    %152 = vector.load %arg14[%c160_54, %c256_55] : memref<288x512xbf16, #tpu.memory_space<vmem>>, vector<32x256xbf16>
    tpu.vector_store %arg14[%c160_54, %c256_55], %151 {strides = array<i32>} : memref<288x512xbf16, #tpu.memory_space<vmem>>, vector<32x256xbf16>,
    %c241_i32_56 = arith.constant 241 : i32
    %153 = tpu.dynamic_rotate %120 by %c241_i32_56 dim 1 : vector<32x256xf32>, i32 -> vector<32x256xf32>
    %154 = vector.extract_strided_slice %0 {offsets = [6, 0], sizes = [1, 256], strides = [1, 1]} : vector<9x256xf32> to vector<1x256xf32>
    %155 = vector.broadcast %154 : vector<1x256xf32> to vector<32x256xf32>
    %156 = arith.mulf %153, %155 : vector<32x256xf32>
    %157 = arith.truncf %156 : vector<32x256xf32> to vector<32x256xbf16>
    %c192_57 = arith.constant 192 : index
    %c256_58 = arith.constant 256 : index
    %158 = vector.load %arg14[%c192_57, %c256_58] : memref<288x512xbf16, #tpu.memory_space<vmem>>, vector<32x256xbf16>
    tpu.vector_store %arg14[%c192_57, %c256_58], %157 {strides = array<i32>} : memref<288x512xbf16, #tpu.memory_space<vmem>>, vector<32x256xbf16>,
    %c240_i32_59 = arith.constant 240 : i32
    %159 = tpu.dynamic_rotate %120 by %c240_i32_59 dim 1 : vector<32x256xf32>, i32 -> vector<32x256xf32>
    %160 = vector.extract_strided_slice %0 {offsets = [7, 0], sizes = [1, 256], strides = [1, 1]} : vector<9x256xf32> to vector<1x256xf32>
    %161 = vector.broadcast %160 : vector<1x256xf32> to vector<32x256xf32>
    %162 = arith.mulf %159, %161 : vector<32x256xf32>
    %163 = arith.truncf %162 : vector<32x256xf32> to vector<32x256xbf16>
    %c224_60 = arith.constant 224 : index
    %c256_61 = arith.constant 256 : index
    %164 = vector.load %arg14[%c224_60, %c256_61] : memref<288x512xbf16, #tpu.memory_space<vmem>>, vector<32x256xbf16>
    tpu.vector_store %arg14[%c224_60, %c256_61], %163 {strides = array<i32>} : memref<288x512xbf16, #tpu.memory_space<vmem>>, vector<32x256xbf16>,
    %c239_i32_62 = arith.constant 239 : i32
    %165 = tpu.dynamic_rotate %120 by %c239_i32_62 dim 1 : vector<32x256xf32>, i32 -> vector<32x256xf32>
    %166 = vector.extract_strided_slice %0 {offsets = [8, 0], sizes = [1, 256], strides = [1, 1]} : vector<9x256xf32> to vector<1x256xf32>
    %167 = vector.broadcast %166 : vector<1x256xf32> to vector<32x256xf32>
    %168 = arith.mulf %165, %167 : vector<32x256xf32>
    %169 = arith.truncf %168 : vector<32x256xf32> to vector<32x256xbf16>
    %c256_63 = arith.constant 256 : index
    %c256_64 = arith.constant 256 : index
    %170 = vector.load %arg14[%c256_63, %c256_64] : memref<288x512xbf16, #tpu.memory_space<vmem>>, vector<32x256xbf16>
    tpu.vector_store %arg14[%c256_63, %c256_64], %169 {strides = array<i32>} : memref<288x512xbf16, #tpu.memory_space<vmem>>, vector<32x256xbf16>,
    %c0_65 = arith.constant 0 : index
    %c0_66 = arith.constant 0 : index
    %171 = vector.load %arg7[%c0_65, %c0_66] : memref<64x288xbf16, #tpu.memory_space<vmem>>, vector<64x288xbf16>
    %c0_67 = arith.constant 0 : index
    %c0_68 = arith.constant 0 : index
    %172 = vector.load %arg14[%c0_67, %c0_68] : memref<288x512xbf16, #tpu.memory_space<vmem>>, vector<288x512xbf16>
    %cst_69 = arith.constant dense<0.000000e+00> : vector<64x512xf32>
    %173 = tpu.matmul %171, %172, %cst_69 {dimension_numbers = #tpu.dot_dimension_numbers<[1], [0], [0], [1], [0, 0, 1, 1], [], []>} : vector<64x288xbf16>, vector<288x512xbf16>, vector<64x512xf32> -> vector<64x512xf32>
    %174 = vector.extract_strided_slice %173 {offsets = [0, 0], sizes = [64, 256], strides = [1, 1]} : vector<64x512xf32> to vector<64x256xf32>
    %c0_70 = arith.constant 0 : index
    %c0_71 = arith.constant 0 : index
    %c0_72 = arith.constant 0 : index
    %175 = vector.load %arg2[%c0_70, %c0_71, %c0_72] : memref<2x64x1xf32, #tpu.memory_space<vmem>>, vector<1x64x1xf32>
    %176 = vector.shape_cast %175 : vector<1x64x1xf32> to vector<64x1xf32>
    %177 = vector.broadcast %176 : vector<64x1xf32> to vector<64x256xf32>
    %178 = arith.addf %174, %177 : vector<64x256xf32>
    %cst_73 = arith.constant dense<0.000000e+00> : vector<64xf32>
    %179 = vector.multi_reduction <add>, %178, %cst_73 [1] : vector<64x256xf32> to vector<64xf32>
    %180 = vector.shape_cast %179 : vector<64xf32> to vector<64x1xf32>
    %181 = arith.mulf %178, %178 : vector<64x256xf32>
    %cst_74 = arith.constant dense<0.000000e+00> : vector<64xf32>
    %182 = vector.multi_reduction <add>, %181, %cst_74 [1] : vector<64x256xf32> to vector<64xf32>
    %183 = vector.shape_cast %182 : vector<64xf32> to vector<64x1xf32>
    %184 = tpu.concatenate %180, %183 in 1 : vector<64x1xf32>, vector<64x1xf32> -> vector<64x2xf32>
    %cst_75 = arith.constant dense<0.000000e+00> : vector<64x2xf32>
    %185 = tpu.matmul %4, %184, %cst_75 {dimension_numbers = #tpu.dot_dimension_numbers<[1], [0], [0], [1], [0, 0, 1, 1], [], []>} : vector<64x64xf32>, vector<64x2xf32>, vector<64x2xf32> -> vector<64x2xf32>
    %186 = vector.extract_strided_slice %185 {offsets = [0, 0], sizes = [64, 1], strides = [1, 1]} : vector<64x2xf32> to vector<64x1xf32>
    %187 = vector.extract_strided_slice %185 {offsets = [0, 1], sizes = [64, 1], strides = [1, 1]} : vector<64x2xf32> to vector<64x1xf32>
    %188 = arith.mulf %186, %186 : vector<64x1xf32>
    %189 = arith.subf %187, %188 : vector<64x1xf32>
    %cst_76 = arith.constant 0.000000e+00 : f32
    %190 = vector.broadcast %cst_76 : f32 to vector<64x1xf32>
    %191 = arith.maximumf %189, %190 : vector<64x1xf32>
    %192 = vector.broadcast %186 : vector<64x1xf32> to vector<64x256xf32>
    %193 = arith.subf %178, %192 : vector<64x256xf32>
    %cst_77 = arith.constant 9.99999974E-6 : f32
    %194 = vector.broadcast %cst_77 : f32 to vector<64x1xf32>
    %195 = arith.addf %191, %194 : vector<64x1xf32>
    %196 = math.rsqrt %195 : vector<64x1xf32>
    %197 = vector.broadcast %196 : vector<64x1xf32> to vector<64x256xf32>
    %198 = arith.mulf %193, %197 : vector<64x256xf32>
    %199 = vector.broadcast %5 : vector<64x1xf32> to vector<64x256xf32>
    %200 = arith.mulf %198, %199 : vector<64x256xf32>
    %201 = vector.broadcast %6 : vector<64x1xf32> to vector<64x256xf32>
    %202 = arith.addf %200, %201 : vector<64x256xf32>
    %203 = arith.negf %202 : vector<64x256xf32>
    %204 = math.exp %203 : vector<64x256xf32>
    %cst_78 = arith.constant 1.000000e+00 : f32
    %205 = vector.broadcast %cst_78 : f32 to vector<64x256xf32>
    %206 = arith.addf %205, %204 : vector<64x256xf32>
    %207 = arith.divf %205, %206 : vector<64x256xf32>
    %208 = arith.mulf %202, %207 : vector<64x256xf32>
    %c17_i32_79 = arith.constant 17 : i32
    %209 = tpu.dynamic_rotate %208 by %c17_i32_79 dim 1 : vector<64x256xf32>, i32 -> vector<64x256xf32>
    %210 = vector.extract_strided_slice %0 {offsets = [0, 0], sizes = [1, 256], strides = [1, 1]} : vector<9x256xf32> to vector<1x256xf32>
    %211 = vector.broadcast %210 : vector<1x256xf32> to vector<64x256xf32>
    %212 = arith.mulf %209, %211 : vector<64x256xf32>
    %213 = arith.truncf %212 : vector<64x256xf32> to vector<64x256xbf16>
    %c0_80 = arith.constant 0 : index
    %c0_81 = arith.constant 0 : index
    %214 = vector.load %arg15[%c0_80, %c0_81] : memref<608x512xbf16, #tpu.memory_space<vmem>>, vector<64x256xbf16>
    tpu.vector_store %arg15[%c0_80, %c0_81], %213 {strides = array<i32>} : memref<608x512xbf16, #tpu.memory_space<vmem>>, vector<64x256xbf16>,
    %c16_i32_82 = arith.constant 16 : i32
    %215 = tpu.dynamic_rotate %208 by %c16_i32_82 dim 1 : vector<64x256xf32>, i32 -> vector<64x256xf32>
    %216 = vector.extract_strided_slice %0 {offsets = [1, 0], sizes = [1, 256], strides = [1, 1]} : vector<9x256xf32> to vector<1x256xf32>
    %217 = vector.broadcast %216 : vector<1x256xf32> to vector<64x256xf32>
    %218 = arith.mulf %215, %217 : vector<64x256xf32>
    %219 = arith.truncf %218 : vector<64x256xf32> to vector<64x256xbf16>
    %c64_83 = arith.constant 64 : index
    %c0_84 = arith.constant 0 : index
    %220 = vector.load %arg15[%c64_83, %c0_84] : memref<608x512xbf16, #tpu.memory_space<vmem>>, vector<64x256xbf16>
    tpu.vector_store %arg15[%c64_83, %c0_84], %219 {strides = array<i32>} : memref<608x512xbf16, #tpu.memory_space<vmem>>, vector<64x256xbf16>,
    %c15_i32_85 = arith.constant 15 : i32
    %221 = tpu.dynamic_rotate %208 by %c15_i32_85 dim 1 : vector<64x256xf32>, i32 -> vector<64x256xf32>
    %222 = vector.extract_strided_slice %0 {offsets = [2, 0], sizes = [1, 256], strides = [1, 1]} : vector<9x256xf32> to vector<1x256xf32>
    %223 = vector.broadcast %222 : vector<1x256xf32> to vector<64x256xf32>
    %224 = arith.mulf %221, %223 : vector<64x256xf32>
    %225 = arith.truncf %224 : vector<64x256xf32> to vector<64x256xbf16>
    %c128_86 = arith.constant 128 : index
    %c0_87 = arith.constant 0 : index
    %226 = vector.load %arg15[%c128_86, %c0_87] : memref<608x512xbf16, #tpu.memory_space<vmem>>, vector<64x256xbf16>
    tpu.vector_store %arg15[%c128_86, %c0_87], %225 {strides = array<i32>} : memref<608x512xbf16, #tpu.memory_space<vmem>>, vector<64x256xbf16>,
    %c1_i32_88 = arith.constant 1 : i32
    %227 = tpu.dynamic_rotate %208 by %c1_i32_88 dim 1 : vector<64x256xf32>, i32 -> vector<64x256xf32>
    %228 = vector.extract_strided_slice %0 {offsets = [3, 0], sizes = [1, 256], strides = [1, 1]} : vector<9x256xf32> to vector<1x256xf32>
    %229 = vector.broadcast %228 : vector<1x256xf32> to vector<64x256xf32>
    %230 = arith.mulf %227, %229 : vector<64x256xf32>
    %231 = arith.truncf %230 : vector<64x256xf32> to vector<64x256xbf16>
    %c192_89 = arith.constant 192 : index
    %c0_90 = arith.constant 0 : index
    %232 = vector.load %arg15[%c192_89, %c0_90] : memref<608x512xbf16, #tpu.memory_space<vmem>>, vector<64x256xbf16>
    tpu.vector_store %arg15[%c192_89, %c0_90], %231 {strides = array<i32>} : memref<608x512xbf16, #tpu.memory_space<vmem>>, vector<64x256xbf16>,
    %233 = arith.truncf %208 : vector<64x256xf32> to vector<64x256xbf16>
    %c256_91 = arith.constant 256 : index
    %c0_92 = arith.constant 0 : index
    %234 = vector.load %arg15[%c256_91, %c0_92] : memref<608x512xbf16, #tpu.memory_space<vmem>>, vector<64x256xbf16>
    tpu.vector_store %arg15[%c256_91, %c0_92], %233 {strides = array<i32>} : memref<608x512xbf16, #tpu.memory_space<vmem>>, vector<64x256xbf16>,
    %c255_i32_93 = arith.constant 255 : i32
    %235 = tpu.dynamic_rotate %208 by %c255_i32_93 dim 1 : vector<64x256xf32>, i32 -> vector<64x256xf32>
    %236 = vector.extract_strided_slice %0 {offsets = [5, 0], sizes = [1, 256], strides = [1, 1]} : vector<9x256xf32> to vector<1x256xf32>
    %237 = vector.broadcast %236 : vector<1x256xf32> to vector<64x256xf32>
    %238 = arith.mulf %235, %237 : vector<64x256xf32>
    %239 = arith.truncf %238 : vector<64x256xf32> to vector<64x256xbf16>
    %c320 = arith.constant 320 : index
    %c0_94 = arith.constant 0 : index
    %240 = vector.load %arg15[%c320, %c0_94] : memref<608x512xbf16, #tpu.memory_space<vmem>>, vector<64x256xbf16>
    tpu.vector_store %arg15[%c320, %c0_94], %239 {strides = array<i32>} : memref<608x512xbf16, #tpu.memory_space<vmem>>, vector<64x256xbf16>,
    %c241_i32_95 = arith.constant 241 : i32
    %241 = tpu.dynamic_rotate %208 by %c241_i32_95 dim 1 : vector<64x256xf32>, i32 -> vector<64x256xf32>
    %242 = vector.extract_strided_slice %0 {offsets = [6, 0], sizes = [1, 256], strides = [1, 1]} : vector<9x256xf32> to vector<1x256xf32>
    %243 = vector.broadcast %242 : vector<1x256xf32> to vector<64x256xf32>
    %244 = arith.mulf %241, %243 : vector<64x256xf32>
    %245 = arith.truncf %244 : vector<64x256xf32> to vector<64x256xbf16>
    %c384 = arith.constant 384 : index
    %c0_96 = arith.constant 0 : index
    %246 = vector.load %arg15[%c384, %c0_96] : memref<608x512xbf16, #tpu.memory_space<vmem>>, vector<64x256xbf16>
    tpu.vector_store %arg15[%c384, %c0_96], %245 {strides = array<i32>} : memref<608x512xbf16, #tpu.memory_space<vmem>>, vector<64x256xbf16>,
    %c240_i32_97 = arith.constant 240 : i32
    %247 = tpu.dynamic_rotate %208 by %c240_i32_97 dim 1 : vector<64x256xf32>, i32 -> vector<64x256xf32>
    %248 = vector.extract_strided_slice %0 {offsets = [7, 0], sizes = [1, 256], strides = [1, 1]} : vector<9x256xf32> to vector<1x256xf32>
    %249 = vector.broadcast %248 : vector<1x256xf32> to vector<64x256xf32>
    %250 = arith.mulf %247, %249 : vector<64x256xf32>
    %251 = arith.truncf %250 : vector<64x256xf32> to vector<64x256xbf16>
    %c448 = arith.constant 448 : index
    %c0_98 = arith.constant 0 : index
    %252 = vector.load %arg15[%c448, %c0_98] : memref<608x512xbf16, #tpu.memory_space<vmem>>, vector<64x256xbf16>
    tpu.vector_store %arg15[%c448, %c0_98], %251 {strides = array<i32>} : memref<608x512xbf16, #tpu.memory_space<vmem>>, vector<64x256xbf16>,
    %c239_i32_99 = arith.constant 239 : i32
    %253 = tpu.dynamic_rotate %208 by %c239_i32_99 dim 1 : vector<64x256xf32>, i32 -> vector<64x256xf32>
    %254 = vector.extract_strided_slice %0 {offsets = [8, 0], sizes = [1, 256], strides = [1, 1]} : vector<9x256xf32> to vector<1x256xf32>
    %255 = vector.broadcast %254 : vector<1x256xf32> to vector<64x256xf32>
    %256 = arith.mulf %253, %255 : vector<64x256xf32>
    %257 = arith.truncf %256 : vector<64x256xf32> to vector<64x256xbf16>
    %c512 = arith.constant 512 : index
    %c0_100 = arith.constant 0 : index
    %258 = vector.load %arg15[%c512, %c0_100] : memref<608x512xbf16, #tpu.memory_space<vmem>>, vector<64x256xbf16>
    tpu.vector_store %arg15[%c512, %c0_100], %257 {strides = array<i32>} : memref<608x512xbf16, #tpu.memory_space<vmem>>, vector<64x256xbf16>,
    %c0_101 = arith.constant 0 : index
    %c0_102 = arith.constant 0 : index
    %c0_103 = arith.constant 0 : index
    %259 = vector.load %arg1[%c0_101, %c0_102, %c0_103] : memref<2x32x256xf32, #tpu.memory_space<vmem>>, vector<1x32x256xf32>
    %260 = vector.shape_cast %259 : vector<1x32x256xf32> to vector<32x256xf32>
    %261 = arith.truncf %260 : vector<32x256xf32> to vector<32x256xbf16>
    %c576 = arith.constant 576 : index
    %c0_104 = arith.constant 0 : index
    %262 = vector.load %arg15[%c576, %c0_104] : memref<608x512xbf16, #tpu.memory_space<vmem>>, vector<32x256xbf16>
    tpu.vector_store %arg15[%c576, %c0_104], %261 {strides = array<i32>} : memref<608x512xbf16, #tpu.memory_space<vmem>>, vector<32x256xbf16>,
    %263 = vector.extract_strided_slice %173 {offsets = [0, 256], sizes = [64, 256], strides = [1, 1]} : vector<64x512xf32> to vector<64x256xf32>
    %c1_105 = arith.constant 1 : index
    %c0_106 = arith.constant 0 : index
    %c0_107 = arith.constant 0 : index
    %264 = vector.load %arg2[%c1_105, %c0_106, %c0_107] : memref<2x64x1xf32, #tpu.memory_space<vmem>>, vector<1x64x1xf32>
    %265 = vector.shape_cast %264 : vector<1x64x1xf32> to vector<64x1xf32>
    %266 = vector.broadcast %265 : vector<64x1xf32> to vector<64x256xf32>
    %267 = arith.addf %263, %266 : vector<64x256xf32>
    %cst_108 = arith.constant dense<0.000000e+00> : vector<64xf32>
    %268 = vector.multi_reduction <add>, %267, %cst_108 [1] : vector<64x256xf32> to vector<64xf32>
    %269 = vector.shape_cast %268 : vector<64xf32> to vector<64x1xf32>
    %270 = arith.mulf %267, %267 : vector<64x256xf32>
    %cst_109 = arith.constant dense<0.000000e+00> : vector<64xf32>
    %271 = vector.multi_reduction <add>, %270, %cst_109 [1] : vector<64x256xf32> to vector<64xf32>
    %272 = vector.shape_cast %271 : vector<64xf32> to vector<64x1xf32>
    %273 = tpu.concatenate %269, %272 in 1 : vector<64x1xf32>, vector<64x1xf32> -> vector<64x2xf32>
    %cst_110 = arith.constant dense<0.000000e+00> : vector<64x2xf32>
    %274 = tpu.matmul %4, %273, %cst_110 {dimension_numbers = #tpu.dot_dimension_numbers<[1], [0], [0], [1], [0, 0, 1, 1], [], []>} : vector<64x64xf32>, vector<64x2xf32>, vector<64x2xf32> -> vector<64x2xf32>
    %275 = vector.extract_strided_slice %274 {offsets = [0, 0], sizes = [64, 1], strides = [1, 1]} : vector<64x2xf32> to vector<64x1xf32>
    %276 = vector.extract_strided_slice %274 {offsets = [0, 1], sizes = [64, 1], strides = [1, 1]} : vector<64x2xf32> to vector<64x1xf32>
    %277 = arith.mulf %275, %275 : vector<64x1xf32>
    %278 = arith.subf %276, %277 : vector<64x1xf32>
    %cst_111 = arith.constant 0.000000e+00 : f32
    %279 = vector.broadcast %cst_111 : f32 to vector<64x1xf32>
    %280 = arith.maximumf %278, %279 : vector<64x1xf32>
    %281 = vector.broadcast %275 : vector<64x1xf32> to vector<64x256xf32>
    %282 = arith.subf %267, %281 : vector<64x256xf32>
    %cst_112 = arith.constant 9.99999974E-6 : f32
    %283 = vector.broadcast %cst_112 : f32 to vector<64x1xf32>
    %284 = arith.addf %280, %283 : vector<64x1xf32>
    %285 = math.rsqrt %284 : vector<64x1xf32>
    %286 = vector.broadcast %285 : vector<64x1xf32> to vector<64x256xf32>
    %287 = arith.mulf %282, %286 : vector<64x256xf32>
    %288 = vector.broadcast %5 : vector<64x1xf32> to vector<64x256xf32>
    %289 = arith.mulf %287, %288 : vector<64x256xf32>
    %290 = vector.broadcast %6 : vector<64x1xf32> to vector<64x256xf32>
    %291 = arith.addf %289, %290 : vector<64x256xf32>
    %292 = arith.negf %291 : vector<64x256xf32>
    %293 = math.exp %292 : vector<64x256xf32>
    %cst_113 = arith.constant 1.000000e+00 : f32
    %294 = vector.broadcast %cst_113 : f32 to vector<64x256xf32>
    %295 = arith.addf %294, %293 : vector<64x256xf32>
    %296 = arith.divf %294, %295 : vector<64x256xf32>
    %297 = arith.mulf %291, %296 : vector<64x256xf32>
    %c17_i32_114 = arith.constant 17 : i32
    %298 = tpu.dynamic_rotate %297 by %c17_i32_114 dim 1 : vector<64x256xf32>, i32 -> vector<64x256xf32>
    %299 = vector.extract_strided_slice %0 {offsets = [0, 0], sizes = [1, 256], strides = [1, 1]} : vector<9x256xf32> to vector<1x256xf32>
    %300 = vector.broadcast %299 : vector<1x256xf32> to vector<64x256xf32>
    %301 = arith.mulf %298, %300 : vector<64x256xf32>
    %302 = arith.truncf %301 : vector<64x256xf32> to vector<64x256xbf16>
    %c0_115 = arith.constant 0 : index
    %c256_116 = arith.constant 256 : index
    %303 = vector.load %arg15[%c0_115, %c256_116] : memref<608x512xbf16, #tpu.memory_space<vmem>>, vector<64x256xbf16>
    tpu.vector_store %arg15[%c0_115, %c256_116], %302 {strides = array<i32>} : memref<608x512xbf16, #tpu.memory_space<vmem>>, vector<64x256xbf16>,
    %c16_i32_117 = arith.constant 16 : i32
    %304 = tpu.dynamic_rotate %297 by %c16_i32_117 dim 1 : vector<64x256xf32>, i32 -> vector<64x256xf32>
    %305 = vector.extract_strided_slice %0 {offsets = [1, 0], sizes = [1, 256], strides = [1, 1]} : vector<9x256xf32> to vector<1x256xf32>
    %306 = vector.broadcast %305 : vector<1x256xf32> to vector<64x256xf32>
    %307 = arith.mulf %304, %306 : vector<64x256xf32>
    %308 = arith.truncf %307 : vector<64x256xf32> to vector<64x256xbf16>
    %c64_118 = arith.constant 64 : index
    %c256_119 = arith.constant 256 : index
    %309 = vector.load %arg15[%c64_118, %c256_119] : memref<608x512xbf16, #tpu.memory_space<vmem>>, vector<64x256xbf16>
    tpu.vector_store %arg15[%c64_118, %c256_119], %308 {strides = array<i32>} : memref<608x512xbf16, #tpu.memory_space<vmem>>, vector<64x256xbf16>,
    %c15_i32_120 = arith.constant 15 : i32
    %310 = tpu.dynamic_rotate %297 by %c15_i32_120 dim 1 : vector<64x256xf32>, i32 -> vector<64x256xf32>
    %311 = vector.extract_strided_slice %0 {offsets = [2, 0], sizes = [1, 256], strides = [1, 1]} : vector<9x256xf32> to vector<1x256xf32>
    %312 = vector.broadcast %311 : vector<1x256xf32> to vector<64x256xf32>
    %313 = arith.mulf %310, %312 : vector<64x256xf32>
    %314 = arith.truncf %313 : vector<64x256xf32> to vector<64x256xbf16>
    %c128_121 = arith.constant 128 : index
    %c256_122 = arith.constant 256 : index
    %315 = vector.load %arg15[%c128_121, %c256_122] : memref<608x512xbf16, #tpu.memory_space<vmem>>, vector<64x256xbf16>
    tpu.vector_store %arg15[%c128_121, %c256_122], %314 {strides = array<i32>} : memref<608x512xbf16, #tpu.memory_space<vmem>>, vector<64x256xbf16>,
    %c1_i32_123 = arith.constant 1 : i32
    %316 = tpu.dynamic_rotate %297 by %c1_i32_123 dim 1 : vector<64x256xf32>, i32 -> vector<64x256xf32>
    %317 = vector.extract_strided_slice %0 {offsets = [3, 0], sizes = [1, 256], strides = [1, 1]} : vector<9x256xf32> to vector<1x256xf32>
    %318 = vector.broadcast %317 : vector<1x256xf32> to vector<64x256xf32>
    %319 = arith.mulf %316, %318 : vector<64x256xf32>
    %320 = arith.truncf %319 : vector<64x256xf32> to vector<64x256xbf16>
    %c192_124 = arith.constant 192 : index
    %c256_125 = arith.constant 256 : index
    %321 = vector.load %arg15[%c192_124, %c256_125] : memref<608x512xbf16, #tpu.memory_space<vmem>>, vector<64x256xbf16>
    tpu.vector_store %arg15[%c192_124, %c256_125], %320 {strides = array<i32>} : memref<608x512xbf16, #tpu.memory_space<vmem>>, vector<64x256xbf16>,
    %322 = arith.truncf %297 : vector<64x256xf32> to vector<64x256xbf16>
    %c256_126 = arith.constant 256 : index
    %c256_127 = arith.constant 256 : index
    %323 = vector.load %arg15[%c256_126, %c256_127] : memref<608x512xbf16, #tpu.memory_space<vmem>>, vector<64x256xbf16>
    tpu.vector_store %arg15[%c256_126, %c256_127], %322 {strides = array<i32>} : memref<608x512xbf16, #tpu.memory_space<vmem>>, vector<64x256xbf16>,
    %c255_i32_128 = arith.constant 255 : i32
    %324 = tpu.dynamic_rotate %297 by %c255_i32_128 dim 1 : vector<64x256xf32>, i32 -> vector<64x256xf32>
    %325 = vector.extract_strided_slice %0 {offsets = [5, 0], sizes = [1, 256], strides = [1, 1]} : vector<9x256xf32> to vector<1x256xf32>
    %326 = vector.broadcast %325 : vector<1x256xf32> to vector<64x256xf32>
    %327 = arith.mulf %324, %326 : vector<64x256xf32>
    %328 = arith.truncf %327 : vector<64x256xf32> to vector<64x256xbf16>
    %c320_129 = arith.constant 320 : index
    %c256_130 = arith.constant 256 : index
    %329 = vector.load %arg15[%c320_129, %c256_130] : memref<608x512xbf16, #tpu.memory_space<vmem>>, vector<64x256xbf16>
    tpu.vector_store %arg15[%c320_129, %c256_130], %328 {strides = array<i32>} : memref<608x512xbf16, #tpu.memory_space<vmem>>, vector<64x256xbf16>,
    %c241_i32_131 = arith.constant 241 : i32
    %330 = tpu.dynamic_rotate %297 by %c241_i32_131 dim 1 : vector<64x256xf32>, i32 -> vector<64x256xf32>
    %331 = vector.extract_strided_slice %0 {offsets = [6, 0], sizes = [1, 256], strides = [1, 1]} : vector<9x256xf32> to vector<1x256xf32>
    %332 = vector.broadcast %331 : vector<1x256xf32> to vector<64x256xf32>
    %333 = arith.mulf %330, %332 : vector<64x256xf32>
    %334 = arith.truncf %333 : vector<64x256xf32> to vector<64x256xbf16>
    %c384_132 = arith.constant 384 : index
    %c256_133 = arith.constant 256 : index
    %335 = vector.load %arg15[%c384_132, %c256_133] : memref<608x512xbf16, #tpu.memory_space<vmem>>, vector<64x256xbf16>
    tpu.vector_store %arg15[%c384_132, %c256_133], %334 {strides = array<i32>} : memref<608x512xbf16, #tpu.memory_space<vmem>>, vector<64x256xbf16>,
    %c240_i32_134 = arith.constant 240 : i32
    %336 = tpu.dynamic_rotate %297 by %c240_i32_134 dim 1 : vector<64x256xf32>, i32 -> vector<64x256xf32>
    %337 = vector.extract_strided_slice %0 {offsets = [7, 0], sizes = [1, 256], strides = [1, 1]} : vector<9x256xf32> to vector<1x256xf32>
    %338 = vector.broadcast %337 : vector<1x256xf32> to vector<64x256xf32>
    %339 = arith.mulf %336, %338 : vector<64x256xf32>
    %340 = arith.truncf %339 : vector<64x256xf32> to vector<64x256xbf16>
    %c448_135 = arith.constant 448 : index
    %c256_136 = arith.constant 256 : index
    %341 = vector.load %arg15[%c448_135, %c256_136] : memref<608x512xbf16, #tpu.memory_space<vmem>>, vector<64x256xbf16>
    tpu.vector_store %arg15[%c448_135, %c256_136], %340 {strides = array<i32>} : memref<608x512xbf16, #tpu.memory_space<vmem>>, vector<64x256xbf16>,
    %c239_i32_137 = arith.constant 239 : i32
    %342 = tpu.dynamic_rotate %297 by %c239_i32_137 dim 1 : vector<64x256xf32>, i32 -> vector<64x256xf32>
    %343 = vector.extract_strided_slice %0 {offsets = [8, 0], sizes = [1, 256], strides = [1, 1]} : vector<9x256xf32> to vector<1x256xf32>
    %344 = vector.broadcast %343 : vector<1x256xf32> to vector<64x256xf32>
    %345 = arith.mulf %342, %344 : vector<64x256xf32>
    %346 = arith.truncf %345 : vector<64x256xf32> to vector<64x256xbf16>
    %c512_138 = arith.constant 512 : index
    %c256_139 = arith.constant 256 : index
    %347 = vector.load %arg15[%c512_138, %c256_139] : memref<608x512xbf16, #tpu.memory_space<vmem>>, vector<64x256xbf16>
    tpu.vector_store %arg15[%c512_138, %c256_139], %346 {strides = array<i32>} : memref<608x512xbf16, #tpu.memory_space<vmem>>, vector<64x256xbf16>,
    %c1_140 = arith.constant 1 : index
    %c0_141 = arith.constant 0 : index
    %c0_142 = arith.constant 0 : index
    %348 = vector.load %arg1[%c1_140, %c0_141, %c0_142] : memref<2x32x256xf32, #tpu.memory_space<vmem>>, vector<1x32x256xf32>
    %349 = vector.shape_cast %348 : vector<1x32x256xf32> to vector<32x256xf32>
    %350 = arith.truncf %349 : vector<32x256xf32> to vector<32x256xbf16>
    %c576_143 = arith.constant 576 : index
    %c256_144 = arith.constant 256 : index
    %351 = vector.load %arg15[%c576_143, %c256_144] : memref<608x512xbf16, #tpu.memory_space<vmem>>, vector<32x256xbf16>
    tpu.vector_store %arg15[%c576_143, %c256_144], %350 {strides = array<i32>} : memref<608x512xbf16, #tpu.memory_space<vmem>>, vector<32x256xbf16>,
    %c0_145 = arith.constant 0 : index
    %c0_146 = arith.constant 0 : index
    %352 = vector.load %arg11[%c0_145, %c0_146] : memref<64x608xbf16, #tpu.memory_space<vmem>>, vector<64x608xbf16>
    %c0_147 = arith.constant 0 : index
    %c0_148 = arith.constant 0 : index
    %353 = vector.load %arg15[%c0_147, %c0_148] : memref<608x512xbf16, #tpu.memory_space<vmem>>, vector<608x512xbf16>
    %cst_149 = arith.constant dense<0.000000e+00> : vector<64x512xf32>
    %354 = tpu.matmul %352, %353, %cst_149 {dimension_numbers = #tpu.dot_dimension_numbers<[1], [0], [0], [1], [0, 0, 1, 1], [], []>} : vector<64x608xbf16>, vector<608x512xbf16>, vector<64x512xf32> -> vector<64x512xf32>
    %c0_150 = arith.constant 0 : index
    %c0_151 = arith.constant 0 : index
    %355 = vector.load %arg12[%c0_150, %c0_151] : memref<64x1xf32, #tpu.memory_space<vmem>>, vector<64x1xf32>
    %356 = vector.broadcast %355 : vector<64x1xf32> to vector<64x512xf32>
    %357 = arith.addf %354, %356 : vector<64x512xf32>
    %358 = vector.extract_strided_slice %357 {offsets = [0, 0], sizes = [64, 256], strides = [1, 1]} : vector<64x512xf32> to vector<64x256xf32>
    %c0_152 = arith.constant 0 : index
    %c0_153 = arith.constant 0 : index
    %c0_154 = arith.constant 0 : index
    %359 = vector.load %arg13[%c0_152, %c0_153, %c0_154] : memref<2x64x256xf32, #tpu.memory_space<vmem>>, vector<1x64x256xf32>
    %360 = vector.shape_cast %359 : vector<1x64x256xf32> to vector<64x256xf32>
    %361 = vector.shape_cast %358 : vector<64x256xf32> to vector<1x64x256xf32>
    tpu.vector_store %arg13[%c0_152, %c0_153, %c0_154], %361 {strides = array<i32>} : memref<2x64x256xf32, #tpu.memory_space<vmem>>, vector<1x64x256xf32>,
    %362 = vector.extract_strided_slice %357 {offsets = [0, 256], sizes = [64, 256], strides = [1, 1]} : vector<64x512xf32> to vector<64x256xf32>
    %c1_155 = arith.constant 1 : index
    %c0_156 = arith.constant 0 : index
    %c0_157 = arith.constant 0 : index
    %363 = vector.load %arg13[%c1_155, %c0_156, %c0_157] : memref<2x64x256xf32, #tpu.memory_space<vmem>>, vector<1x64x256xf32>
    %364 = vector.shape_cast %363 : vector<1x64x256xf32> to vector<64x256xf32>
    %365 = vector.shape_cast %362 : vector<64x256xf32> to vector<1x64x256xf32>
    tpu.vector_store %arg13[%c1_155, %c0_156, %c0_157], %365 {strides = array<i32>} : memref<2x64x256xf32, #tpu.memory_space<vmem>>, vector<1x64x256xf32>,
    return
  }
  func.func @transform_0(%arg0: i32) -> (i32, i32, i32) {
    %c0_i32 = arith.constant 0 : i32
    %c0_i32_0 = arith.constant 0 : i32
    %c0_i32_1 = arith.constant 0 : i32
    return %arg0, %c0_i32, %c0_i32_0 : i32, i32, i32
  }
  func.func @transform_1(%arg0: i32) -> (i32, i32, i32) {
    %c0_i32 = arith.constant 0 : i32
    %c0_i32_0 = arith.constant 0 : i32
    %c0_i32_1 = arith.constant 0 : i32
    return %arg0, %c0_i32, %c0_i32_0 : i32, i32, i32
  }
  func.func @transform_2(%arg0: i32) -> (i32, i32) {
    %c0_i32 = arith.constant 0 : i32
    %c0_i32_0 = arith.constant 0 : i32
    %c0_i32_1 = arith.constant 0 : i32
    return %c0_i32, %c0_i32_0 : i32, i32
  }
  func.func @transform_3(%arg0: i32) -> (i32, i32) {
    %c0_i32 = arith.constant 0 : i32
    %c0_i32_0 = arith.constant 0 : i32
    %c0_i32_1 = arith.constant 0 : i32
    return %c0_i32, %c0_i32_0 : i32, i32
  }
  func.func @transform_4(%arg0: i32) -> (i32, i32) {
    %c0_i32 = arith.constant 0 : i32
    %c0_i32_0 = arith.constant 0 : i32
    %c0_i32_1 = arith.constant 0 : i32
    return %c0_i32, %c0_i32_0 : i32, i32
  }
  func.func @transform_5(%arg0: i32) -> (i32, i32) {
    %c0_i32 = arith.constant 0 : i32
    %c0_i32_0 = arith.constant 0 : i32
    %c0_i32_1 = arith.constant 0 : i32
    return %c0_i32, %c0_i32_0 : i32, i32
  }
  func.func @transform_6(%arg0: i32) -> (i32, i32) {
    %c0_i32 = arith.constant 0 : i32
    %c0_i32_0 = arith.constant 0 : i32
    %c0_i32_1 = arith.constant 0 : i32
    return %c0_i32, %c0_i32_0 : i32, i32
  }
  func.func @transform_7(%arg0: i32) -> (i32, i32) {
    %c0_i32 = arith.constant 0 : i32
    %c0_i32_0 = arith.constant 0 : i32
    %c0_i32_1 = arith.constant 0 : i32
    return %c0_i32, %c0_i32_0 : i32, i32
  }
  func.func @transform_8(%arg0: i32) -> (i32, i32) {
    %c0_i32 = arith.constant 0 : i32
    %c0_i32_0 = arith.constant 0 : i32
    %c0_i32_1 = arith.constant 0 : i32
    return %c0_i32, %c0_i32_0 : i32, i32
  }
  func.func @transform_9(%arg0: i32) -> (i32, i32) {
    %c0_i32 = arith.constant 0 : i32
    %c0_i32_0 = arith.constant 0 : i32
    %c0_i32_1 = arith.constant 0 : i32
    return %c0_i32, %c0_i32_0 : i32, i32
  }
  func.func @transform_10(%arg0: i32) -> (i32, i32) {
    %c0_i32 = arith.constant 0 : i32
    %c0_i32_0 = arith.constant 0 : i32
    %c0_i32_1 = arith.constant 0 : i32
    return %c0_i32, %c0_i32_0 : i32, i32
  }
  func.func @transform_11(%arg0: i32) -> (i32, i32) {
    %c0_i32 = arith.constant 0 : i32
    %c0_i32_0 = arith.constant 0 : i32
    %c0_i32_1 = arith.constant 0 : i32
    return %c0_i32, %c0_i32_0 : i32, i32
  }
  func.func @transform_12(%arg0: i32) -> (i32, i32, i32) {
    %c0_i32 = arith.constant 0 : i32
    %c0_i32_0 = arith.constant 0 : i32
    %c0_i32_1 = arith.constant 0 : i32
    return %arg0, %c0_i32, %c0_i32_0 : i32, i32, i32
  }
}

</mosaic_0001>

<bundles_post_ra>
// kernel: tpu_custom_call.1
= control target key start
LH: loop header
LB: loop body
LE: loop exit
PB: predicated region body
PF: predicated region fallthrough
CT: control target
= control target key end

     0   :  { %17 = vsyncpa [#allocation5], 0  ;;  %s14218_s0 = inlined_call_operand.vmem [shape: f32[2,32,256], index: 0, kind: input, shape index: {}]   ;;  %s14219_s1 = inlined_call_operand.vmem [shape: f32[2,64,1], index: 1, kind: input, shape index: {}]   ;;  %s14220_s2 = inlined_call_operand.hbm [shape: f32[9,256], index: 2, kind: input, shape index: {}]   ;;  %s14221_s3 = inlined_call_operand.hbm [shape: f32[32,32], index: 3, kind: input, shape index: {}]   ;;  %s14222_s4 = inlined_call_operand.vmem [shape: f32[32,1], index: 4, kind: input, shape index: {}]   ;;  %s14223_s5 = inlined_call_operand.vmem [shape: f32[32,1], index: 5, kind: input, shape index: {}]   ;;  %s14224_s6 = inlined_call_operand.vmem [shape: bf16[64,288], index: 6, kind: input, shape index: {}]   ;;  %s14225_s7 = inlined_call_operand.hbm [shape: f32[64,64], index: 7, kind: input, shape index: {}]   ;;  %s14226_s8 = inlined_call_operand.vmem [shape: f32[64,1], index: 8, kind: input, shape index: {}]   ;;  %s14227_s9 = inlined_call_operand.vmem [shape: f32[64,1], index: 9, kind: input, shape index: {}]   ;;  %s14228_s10 = inlined_call_operand.vmem [shape: bf16[64,608], index: 10, kind: input, shape index: {}]   ;;  %s14229_s11 = inlined_call_operand.vmem [shape: f32[64,1], index: 11, kind: input, shape index: {}]   ;;  %s14230_s12 = inlined_call_operand.hbm [shape: f32[2,64,256], index: 12, kind: output, shape index: {}]  }
   0x1   :  { %18 = vsyncpa [#allocation8], 0 }
   0x2   :  { %19 = vsyncpa [#allocation6], 0  ;;  %s9195_s21 = smov [#allocation7]  }
   0x3   :  { %s41_s22 = sshll.u32 %s9195_s21, 4  ;;  %s42_s22 = int_to_ptr.vmem [resolvable:$true] %s41_s22 }
   0x4   :  { %s9117_s23 = scalar_lea.vmem %s42_s22, 512  ;;  %p9122_p1 = scmp.lt.s32.totalorder %s42_s22, %s42_s22 }
   0x5   :  { %p9118_p0 = scmp.ne.s32.totalorder %s42_s22, %s9117_s23  ;;  %p9123_p2 = scmp.lt.s32.totalorder %s9117_s23, %s9117_s23 }
   0x7   :  { %p9124_p3 = por %p9123_p2, %p9122_p1 }
   0x9   :  { %p9125_p4 = pnand %p9124_p3, %p9118_p0 }
   0xb   :  { %9128 = shalt.err (!%p9125_p4)
}
   0xc   :  { %s9196_s24 = smov 128   ;;  %s9197_s25 = smov 8  }
   0xd   :  { %47 = dma.hbm_to_vmem [thread:$0]  %s14221_s3, 512, %s42_s22, [#allocation8], %s9196_s24, %s9196_s24, %s9197_s25  }
   0xe   :  { %s9198_s28 = smov [#allocation4]  }
   0xf   :  { %s29_s29 = sshll.u32 %s9198_s28, 4  ;;  %s30_s29 = int_to_ptr.vmem [resolvable:$true] %s29_s29 }
  0x10   :  { %s9137_s30 = scalar_lea.vmem %s30_s29, 512  ;;  %p9142_p6 = scmp.lt.s32.totalorder %s30_s29, %s30_s29 }
  0x11   :  { %p9138_p5 = scmp.ne.s32.totalorder %s30_s29, %s9137_s30  ;;  %p9143_p7 = scmp.lt.s32.totalorder %s9137_s30, %s9137_s30 }
  0x13   :  { %p9144_p8 = por %p9143_p7, %p9142_p6 }
  0x15   :  { %p9145_p9 = pnand %p9144_p8, %p9138_p5 }
  0x17   :  { %9148 = shalt.err (!%p9145_p9)
}
  0x18   :  { %s9199_s13 = smov 256   ;;  %s9200_s14 = smov 16  }
  0x19   :  { %35 = dma.hbm_to_vmem [thread:$0]  %s14220_s2, 512, %s30_s29, [#allocation5], %s9199_s13, %s9199_s13, %s9200_s14  }
  0x1a   :  { %s9201_s3 = smov [#allocation9]  }
  0x1b   :  { %s59_s17 = sshll.u32 %s9201_s3, 4  ;;  %s60_s17 = int_to_ptr.vmem [resolvable:$true] %s59_s17 }
  0x1c   :  { %s9157_s18 = scalar_lea.vmem %s60_s17, 1024  ;;  %p9162_p11 = scmp.lt.s32.totalorder %s60_s17, %s60_s17 }
  0x1d   :  { %p9158_p10 = scmp.ne.s32.totalorder %s60_s17, %s9157_s18  ;;  %p9163_p12 = scmp.lt.s32.totalorder %s9157_s18, %s9157_s18 }
  0x1f   :  { %p9164_p13 = por %p9163_p12, %p9162_p11 }
  0x21   :  { %p9165_p0 = pnand %p9164_p13, %p9158_p10 }
  0x23   :  { %9168 = shalt.err (!%p9165_p0)
}
  0x24   :  { %65 = dma.hbm_to_vmem [thread:$0]  %s14225_s7, 1024, %s60_s17, [#allocation8], %s9196_s24, %s9196_s24, %s9197_s25  }
  0x25   :  { %9189 = dma.done.wait [#allocation5], 512  }
  0x26   :  { %9190 = vsyncadd [#allocation5], 4294966784 }
  0x27   :  { %9191 = dma.done.wait [#allocation8], 1536  }
  0x28   :  { %9192 = vsyncadd [#allocation8], 4294965760  ;;  %v9292_v0 = vld [vmem:[%s14218_s0 + $0x30] sm:$0xff]  ;;  %v9297_v1 = vld [vmem:[%s14218_s0 + $0x38] sm:$0xff]  ;;  %vm169_vm0 = vcmask 261120   ;;  %vm164_vm1 = vcmask 7168  }
  0x29   :  { %v9302_v2 = vld [vmem:[%s14218_s0 + $0x20] sm:$0xff]  ;;  %v141_v3 = vadd.f32 %v9297_v1, %v9292_v0  ;;  %v9309_v4 = vld [vmem:[%s14218_s0 + $0x28] sm:$0xff]  ;;  %v150_v5 = vmul.f32 %v9292_v0, %v9292_v0  ;;  %v151_v6 = vmul.f32 %v9297_v1, %v9297_v1  ;;  %v9320_v8 = vld [vmem:[%s14218_s0 + $0x10] sm:$0xff]  ;;  %s9203_s16 = smov 1   ;;  %s9207_s30 = smov 112   ;;  %vm2803_vm10 = vcmask 523264  }
  0x2a   :  { %v148_v7 = vmul.f32 %v9302_v2, %v9302_v2  ;;  %v9325_v9 = vld [vmem:[%s14218_s0 + $0x18] sm:$0xff]  ;;  %v138_v10 = vadd.f32 %v9309_v4, %v9302_v2  ;;  %v149_v11 = vmul.f32 %v9309_v4, %v9309_v4  ;;  %v146_v14 = vmul.f32 %v9320_v8, %v9320_v8  ;;  %v9338_v16 = vld [vmem:[%s14218_s0] sm:$0xff]  ;;  %v9343_v17 = vld [vmem:[%s14218_s0 + $0x8] sm:$0xff]  ;;  %s9208_s15 = smov 113   ;;  %s9209_s3 = smov 127  }
  0x2b   :  { %142 = vadd.xlane.f32.xlu0 %v141_v3  ;;  %v161_v12 = vadd.f32 %v151_v6, %v150_v5  ;;  %v147_v15 = vmul.f32 %v9325_v9, %v9325_v9  ;;  %v135_v18 = vadd.f32 %v9325_v9, %v9320_v8  ;;  %v9350_v19 = vld [vmem:[%s14218_s0 + $0x70] sm:$0xff]  ;;  %v9355_v20 = vld [vmem:[%s14218_s0 + $0x78] sm:$0xff]  ;;  %v144_v22 = vmul.f32 %v9338_v16, %v9338_v16  ;;  %v9366_v25 = vld [vmem:[%s14218_s0 + $0x60] sm:$0xff]  ;;  %s9210_s17 = smov 111  }
  0x2c   :  { %139 = vadd.xlane.f32.xlu1 %v138_v10  ;;  %v158_v13 = vadd.f32 %v149_v11, %v148_v7  ;;  %v145_v23 = vmul.f32 %v9343_v17, %v9343_v17  ;;  %v132_v24 = vadd.f32 %v9343_v17, %v9338_v16  ;;  %v9371_v26 = vld [vmem:[%s14218_s0 + $0x68] sm:$0xff]  ;;  %v1080_v28 = vmul.f32 %v9350_v19, %v9350_v19  ;;  %v9382_v31 = vld [vmem:[%s14218_s0 + $0x50] sm:$0xff]  ;;  %v9387_v32 = vld [vmem:[%s14218_s0 + $0x58] sm:$0xff] }
  0x2d   :  { %v155_v21 = vadd.f32 %v147_v15, %v146_v14  ;;  %v1081_v29 = vmul.f32 %v9355_v20, %v9355_v20  ;;  %v1071_v30 = vadd.f32 %v9355_v20, %v9350_v19  ;;  %v1078_v34 = vmul.f32 %v9366_v25, %v9366_v25  ;;  %v9402_v40 = vld [vmem:[%s14218_s0 + $0x40] sm:$0xff]  ;;  %v9407_v41 = vld [vmem:[%s14218_s0 + $0x48] sm:$0xff]  ;;  %v90_v62 = vld [vmem:[#allocation7 + $0x10] sm:$0xff] }
  0x2e   :  { %v152_v27 = vadd.f32 %v145_v23, %v144_v22  ;;  %v1079_v35 = vmul.f32 %v9371_v26, %v9371_v26  ;;  %v1068_v36 = vadd.f32 %v9371_v26, %v9366_v25  ;;  %v1076_v38 = vmul.f32 %v9382_v31, %v9382_v31  ;;  %v88_v47 = vld [vmem:[#allocation7] sm:$0xff]  ;;  %v89_v61 = vld [vmem:[#allocation7 + $0x8] sm:$0xff]  ;;  %v91_v5 = vld [vmem:[#allocation7 + $0x18] sm:$0xff] }
  0x2f   :  { %162 = vadd.xlane.f32.xlu0 %v161_v12  ;;  %v1091_v33 = vadd.f32 %v1081_v29, %v1080_v28  ;;  %v1077_v39 = vmul.f32 %v9387_v32, %v9387_v32  ;;  %v1065_v42 = vadd.f32 %v9387_v32, %v9382_v31  ;;  %v1074_v44 = vmul.f32 %v9402_v40, %v9402_v40 }
  0x30   :  { %159 = vadd.xlane.f32.xlu1 %v158_v13  ;;  %v1088_v37 = vadd.f32 %v1079_v35, %v1078_v34  ;;  %v1075_v45 = vmul.f32 %v9407_v41, %v9407_v41  ;;  %v1062_v46 = vadd.f32 %v9407_v41, %v9402_v40  ;;  %8699 = vmatprep.mubr.msk.f32.mxu0 %vm169_vm0, %v88_v47  ;;  %v14233_v22 = vmov 0   ;;  %v94_v35 = vld [vmem:[%s14222_s4 + $0x10] sm:$0xff] }
  0x31   :  { %v1085_v43 = vadd.f32 %v1077_v39, %v1076_v38  ;;  %8792 = vset.pattern.permute.xlu0 %v14233_v22  ;;  %8793 = vset.pattern.permute.xlu1 %v14233_v22  ;;  %v97_v38 = vld [vmem:[%s14223_s5 + $0x8] sm:$0xff]  ;;  %vm7099_vm11 = vcmask 785408  }
  0x32   :  { %v1082_v48 = vadd.f32 %v1075_v45, %v1074_v44  ;;  %2480 = vmatprep.mubr.bf16.mxu1 %v14233_v22  ;;  %v98_v44 = vld [vmem:[%s14223_s5 + $0x10] sm:$0xff] }
  0x33   :  { %136 = vadd.xlane.f32.xlu0 %v135_v18 }
  0x34   :  { %156 = vadd.xlane.f32.xlu1 %v155_v21 }
  0x37   :  { %133 = vadd.xlane.f32.xlu0 %v132_v24 }
  0x38   :  { %153 = vadd.xlane.f32.xlu1 %v152_v27 }
  0x3b   :  { %1072 = vadd.xlane.f32.xlu0 %v1071_v30 }
  0x3c   :  { %1092 = vadd.xlane.f32.xlu1 %v1091_v33 }
  0x3f   :  { %1069 = vadd.xlane.f32.xlu0 %v1068_v36  ;;  %v92_v36 = vld [vmem:[%s14222_s4] sm:$0xff] }
  0x40   :  { %1089 = vadd.xlane.f32.xlu1 %v1088_v37 }
  0x43   :  { %1066 = vadd.xlane.f32.xlu0 %v1065_v42  ;;  %v95_v42 = vld [vmem:[%s14222_s4 + $0x18] sm:$0xff] }
  0x44   :  { %1086 = vadd.xlane.f32.xlu1 %v1085_v43 }
  0x47   :  { %1063 = vadd.xlane.f32.xlu0 %v1062_v46 }
  0x48   :  { %1083 = vadd.xlane.f32.xlu1 %v1082_v48 }
  0xb4   :  { %v143_v49 = vpop.xlane.xlu0 %142 }
  0xb5   :  { %v140_v50 = vpop.xlane.xlu1 %139 }
  0xb8   :  { %v163_v51 = vpop.xlane.xlu0 %162 }
  0xb9   :  { %v160_v52 = vpop.xlane.xlu1 %159  ;;  %v168_v53 = vsel %vm164_vm1, %v143_v49, %v163_v51  ;;  %v93_v49 = vld [vmem:[%s14222_s4 + $0x8] sm:$0xff]  ;;  %v96_v51 = vld [vmem:[%s14223_s5] sm:$0xff]  ;;  %s9205_s4 = smov 15  }
  0xba   :  { %8691 = vmatprep.subr.mxu0 %v168_v53  ;;  %v167_v54 = vsel %vm164_vm1, %v140_v50, %v160_v52  ;;  %v14231_v50 = vmov 1  }
  0xbb   :  { %8692 = vmatpush3.msra.mxu0 %v168_v53 }
  0xbc   :  { %8693 = vmatprep.subr.mxu0 %v167_v54  ;;  %v137_v55 = vpop.xlane.xlu0 %136 }
  0xbd   :  { %v157_v56 = vpop.xlane.xlu1 %156  ;;  %8694 = vmatpush3.msra.mxu0 %v167_v54 }
  0xbe   :  { %v166_v57 = vsel %vm164_vm1, %v137_v55, %v157_v56 }
  0xbf   :  { %8695 = vmatprep.subr.mxu0 %v166_v57 }
  0xc0   :  { %8696 = vmatpush3.msra.mxu0 %v166_v57  ;;  %v134_v58 = vpop.xlane.xlu0 %133 }
  0xc1   :  { %v154_v59 = vpop.xlane.xlu1 %153 }
  0xc2   :  { %v165_v60 = vsel %vm164_vm1, %v134_v58, %v154_v59 }
  0xc3   :  { %8697 = vmatprep.subr.mxu0 %v165_v60 }
  0xc4   :  { %8698 = vmatpush3.msra.mxu0 %v165_v60  ;;  %v1073_v63 = vpop.xlane.xlu0 %1072 }
  0xc5   :  { %8700 = vmatmul.mubr.msk.f32.vlgmr.msra.gmra.mxu0 %vm169_vm0, %v89_v61  ;;  %v1093_v3 = vpop.xlane.xlu1 %1092 }
  0xc6   :  { %8702 = vmatprep.mubr.msk.f32.mxu0 %vm169_vm0, %v90_v62  ;;  %v1097_v6 = vsel %vm164_vm1, %v1073_v63, %v1093_v3 }
  0xc7   :  { %8705 = vmatprep.subr.mxu0 %v1097_v6 }
  0xc8   :  { %v1070_v7 = vpop.xlane.xlu0 %1069  ;;  %8706 = vmatpush3.msra.mxu0 %v1097_v6 }
  0xc9   :  { %8703 = vmatmul.mubr.msk.f32.gmra.mxu0 %vm169_vm0, %v91_v5  ;;  %v1090_v10 = vpop.xlane.xlu1 %1089 }
  0xca   :  { %v1096_v11 = vsel %vm164_vm1, %v1070_v7, %v1090_v10  ;;  %8713 = vmatprep.mubr.msk.f32.mxu0 %vm169_vm0, %v88_v47  ;;  %v99_v47 = vld [vmem:[%s14223_s5 + $0x18] sm:$0xff]  ;;  %s9206_s5 = smov 17  }
  0xcb   :  { %8707 = vmatprep.subr.mxu0 %v1096_v11 }
  0xcc   :  { %v1067_v12 = vpop.xlane.xlu0 %1066  ;;  %8708 = vmatpush3.msra.mxu0 %v1096_v11 }
  0xcd   :  { %v1087_v13 = vpop.xlane.xlu1 %1086 }
  0xce   :  { %v1095_v14 = vsel %vm164_vm1, %v1067_v12, %v1087_v13 }
  0xcf   :  { %8709 = vmatprep.subr.mxu0 %v1095_v14 }
  0xd0   :  { %v1064_v15 = vpop.xlane.xlu0 %1063  ;;  %8710 = vmatpush3.msra.mxu0 %v1095_v14 }
  0xd1   :  { %v1084_v18 = vpop.xlane.xlu1 %1083 }
  0xd2   :  { %v1094_v21 = vsel %vm164_vm1, %v1064_v15, %v1084_v18 }
  0xd3   :  { %8711 = vmatprep.subr.mxu0 %v1094_v21 }
  0xd4   :  { %8712 = vmatpush3.msra.mxu0 %v1094_v21 }
  0xd5   :  { %8714 = vmatmul.mubr.msk.f32.vlgmr.msra.gmra.mxu0 %vm169_vm0, %v89_v61 }
  0xd6   :  { %8716 = vmatprep.mubr.msk.f32.mxu0 %vm169_vm0, %v90_v62 }
  0xd9   :  { %8717 = vmatmul.mubr.msk.f32.gmra.mxu0 %vm169_vm0, %v91_v5 }
 0x185   :  { %v8701_v23 = vpop.f32.mrf.mxu0 }
 0x186   :  { %v268_v24 = vmul.f32 %v8701_v23, %v8701_v23 }
 0x187   :  { %v248_v27 = vpop.f32.mrf.mxu0 }
 0x188   :  { %277 = vrot.lane.b32.xlu1 %v268_v24, %s9203_s16  ;;  %v267_v29 = vmul.f32 %v248_v27, %v248_v27 }
 0x189   :  { %v9437_v28 = vpop.f32.mrf.mxu0 }
 0x18a   :  { %v270_v33 = vmul.f32 %v9437_v28, %v9437_v28 }
 0x18b   :  { %v258_v30 = vpop.f32.mrf.mxu0 }
 0x18c   :  { %v269_v34 = vmul.f32 %v258_v30, %v258_v30  ;;  %275 = vrot.lane.b32.xlu1 %v267_v29, %s9203_s16 }
 0x18e   :  { %279 = vrot.lane.b32.xlu0 %v269_v34, %s9203_s16 }
 0x190   :  { %281 = vrot.lane.b32.xlu1 %v270_v33, %s9203_s16 }
 0x192   :  { %307 = vperm.xlu0 %8792, %v258_v30  }
 0x194   :  { %312 = vperm.xlu1 %8793, %v9437_v28  }
 0x195   :  { %v9451_v37 = vpop.f32.mrf.mxu0 }
 0x196   :  { %371 = vperm.xlu0 %8792, %v94_v35   ;;  %v1184_v52 = vmul.f32 %v9451_v37, %v9451_v37 }
 0x197   :  { %v9456_v39 = vpop.f32.mrf.mxu0 }
 0x198   :  { %297 = vperm.xlu1 %8793, %v248_v27   ;;  %v1183_v43 = vmul.f32 %v9456_v39, %v9456_v39 }
 0x199   :  { %v9466_v45 = vpop.f32.mrf.mxu0 }
 0x19a   :  { %361 = vperm.xlu0 %8792, %v92_v36   ;;  %v1186_v53 = vmul.f32 %v9466_v45, %v9466_v45 }
 0x19b   :  { %v9469_v46 = vpop.f32.mrf.mxu0 }
 0x19c   :  { %302 = vperm.xlu1 %8793, %v8701_v23   ;;  %v1185_v48 = vmul.f32 %v9469_v46, %v9469_v46 }
 0x19e   :  { %394 = vperm.xlu0 %8792, %v97_v38  }
 0x1a0   :  { %376 = vperm.xlu1 %8793, %v95_v42  }
 0x1a2   :  { %1191 = vrot.lane.b32.xlu0 %v1183_v43, %s9203_s16 }
 0x1a4   :  { %399 = vperm.xlu1 %8793, %v98_v44  }
 0x1a6   :  { %1228 = vperm.xlu0 %8792, %v9466_v45  }
 0x1a8   :  { %404 = vperm.xlu1 %8793, %v99_v47  }
 0x1aa   :  { %1195 = vrot.lane.b32.xlu0 %v1185_v48, %s9203_s16 }
 0x1ab   :  { %8794 = vset.pattern.permute.xlu0 %v14231_v50 }
 0x1ac   :  { %366 = vperm.xlu1 %8793, %v93_v49  }
 0x1b0   :  { %389 = vperm.xlu1 %8793, %v96_v51  }
 0x1b4   :  { %1218 = vperm.xlu1 %8793, %v9451_v37  }
 0x1b8   :  { %1193 = vrot.lane.b32.xlu1 %v1184_v52, %s9203_s16 }
 0x1bc   :  { %1213 = vperm.xlu1 %8793, %v9456_v39  }
 0x1c0   :  { %1197 = vrot.lane.b32.xlu1 %v1186_v53, %s9203_s16 }
 0x1c4   :  { %1223 = vperm.xlu1 %8793, %v9469_v46  }
 0x1c8   :  { %8795 = vset.pattern.permute.xlu1 %v14231_v50 }
 0x1fa   :  { %v278_v54 = vpop.permute.xlu1 %277 }
 0x1fb   :  { %v288_v55 = vsub.f32 %v8701_v23, %v278_v54 }
 0x1fd   :  { %v292_v56 = vmax.f32 %v288_v55, 0.0 }
 0x1fe   :  { %v276_v57 = vpop.permute.xlu1 %275 }
 0x1ff   :  { %v324_v58 = vadd.f32 1e-05, %v292_v56  ;;  %v287_v59 = vsub.f32 %v248_v27, %v276_v57 }
 0x200   :  { %v280_v60 = vpop.permute.xlu0 %279 }
 0x201   :  { %8846 = vrsqrt.f32 %v324_v58  ;;  %v291_v61 = vmax.f32 %v287_v59, 0.0  ;;  %v289_v62 = vsub.f32 %v258_v30, %v280_v60 }
 0x202   :  { %v282_v63 = vpop.permute.xlu1 %281 }
 0x203   :  { %v323_v3 = vadd.f32 1e-05, %v291_v61  ;;  %v293_v5 = vmax.f32 %v289_v62, 0.0  ;;  %v290_v6 = vsub.f32 %v9437_v28, %v282_v63 }
 0x205   :  { %8848 = vrsqrt.f32 %v323_v3  ;;  %v325_v7 = vadd.f32 1e-05, %v293_v5  ;;  %v294_v10 = vmax.f32 %v290_v6, 0.0 }
 0x207   :  { %v326_v11 = vadd.f32 1e-05, %v294_v10  ;;  %8850 = vrsqrt.f32 %v325_v7 }
 0x209   :  { %8852 = vrsqrt.f32 %v326_v11 }
 0x20d   :  { %v9496_v12 = vpop.permute.xlu0 %307 }
 0x20e   :  { %v8847_v13 = vpop.eup %8846 }
 0x20f   :  { %v9498_v14 = vpop.permute.xlu1 %312  ;;  %338 = vperm.xlu0 %8794, %v8847_v13  }
 0x211   :  { %v9500_v15 = vpop.permute.xlu0 %371 }
 0x212   :  { %v8849_v18 = vpop.eup %8848 }
 0x213   :  { %v298_v21 = vpop.permute.xlu1 %297  ;;  %333 = vperm.xlu1 %8795, %v8849_v18  }
 0x214   :  { %v8851_v23 = vpop.eup %8850  ;;  %v315_v11 = vsub.f32 %v9338_v16, %v298_v21  ;;  %v316_v13 = vsub.f32 %v9343_v17, %v298_v21 }
 0x215   :  { %v9502_v24 = vpop.permute.xlu0 %361 }
 0x216   :  { %v8853_v27 = vpop.eup %8852 }
 0x217   :  { %v303_v28 = vpop.permute.xlu1 %302  ;;  %348 = vperm.xlu0 %8794, %v8853_v27   ;;  %343 = vperm.xlu1 %8795, %v8851_v23  }
 0x218   :  { %v318_v5 = vsub.f32 %v9325_v9, %v303_v28 }
 0x219   :  { %v9504_v29 = vpop.permute.xlu0 %394 }
 0x21b   :  { %v9506_v30 = vpop.permute.xlu1 %376 }
 0x21d   :  { %v1192_v33 = vpop.permute.xlu0 %1191 }
 0x21e   :  { %v1203_v34 = vsub.f32 %v9456_v39, %v1192_v33 }
 0x21f   :  { %v9509_v35 = vpop.permute.xlu1 %399 }
 0x220   :  { %v1207_v36 = vmax.f32 %v1203_v34, 0.0 }
 0x221   :  { %v9515_v44 = vpop.permute.xlu0 %1228 }
 0x222   :  { %v1239_v38 = vadd.f32 1e-05, %v1207_v36 }
 0x223   :  { %v9511_v42 = vpop.permute.xlu1 %404 }
 0x224   :  { %8854 = vrsqrt.f32 %v1239_v38 }
 0x225   :  { %v1196_v48 = vpop.permute.xlu0 %1195 }
 0x226   :  { %v1205_v52 = vsub.f32 %v9469_v46, %v1196_v48 }
 0x227   :  { %v9513_v43 = vpop.permute.xlu1 %366 }
 0x228   :  { %v1209_v54 = vmax.f32 %v1205_v52, 0.0 }
 0x22a   :  { %v1241_v58 = vadd.f32 1e-05, %v1209_v54 }
 0x22b   :  { %v9517_v47 = vpop.permute.xlu1 %389 }
 0x22f   :  { %v9519_v49 = vpop.permute.xlu1 %1218 }
 0x231   :  { %v8855_v51 = vpop.eup %8854 }
 0x232   :  { %1249 = vperm.xlu0 %8794, %v8855_v51  }
 0x233   :  { %v1194_v39 = vpop.permute.xlu1 %1193 }
 0x234   :  { %v1204_v53 = vsub.f32 %v9451_v37, %v1194_v39  ;;  %v317_v37 = vsub.f32 %v9320_v8, %v303_v28 }
 0x236   :  { %v1208_v55 = vmax.f32 %v1204_v53, 0.0 }
 0x237   :  { %v9523_v56 = vpop.permute.xlu1 %1213 }
 0x238   :  { %v1240_v57 = vadd.f32 1e-05, %v1208_v55 }
 0x23a   :  { %8856 = vrsqrt.f32 %v1240_v57 }
 0x23b   :  { %v1198_v59 = vpop.permute.xlu1 %1197  ;;  %8858 = vrsqrt.f32 %v1241_v58 }
 0x23c   :  { %v1206_v60 = vsub.f32 %v9466_v45, %v1198_v59 }
 0x23e   :  { %v1210_v61 = vmax.f32 %v1206_v60, 0.0 }
 0x23f   :  { %v9530_v6 = vpop.permute.xlu1 %1223 }
 0x240   :  { %v1242_v62 = vadd.f32 1e-05, %v1210_v61 }
 0x242   :  { %8860 = vrsqrt.f32 %v1242_v62 }
 0x247   :  { %v8857_v63 = vpop.eup %8856 }
 0x248   :  { %1254 = vperm.xlu1 %8795, %v8857_v63   ;;  %v8859_v46 = vpop.eup %8858 }
 0x24c   :  { %1259 = vperm.xlu1 %8795, %v8859_v46  }
 0x24f   :  { %v8861_v3 = vpop.eup %8860 }
 0x250   :  { %1264 = vperm.xlu0 %8794, %v8861_v3   ;;  %8797 = vset.pattern.permute.xlu1 %v14233_v22 }
 0x254   :  { %8796 = vset.pattern.permute.xlu0 %v14233_v22 }
 0x28a   :  { %v339_v45 = vpop.permute.xlu0 %338 }
 0x28b   :  { %v353_v7 = vmul.f32 %v339_v45, %v317_v37  ;;  %v354_v10 = vmul.f32 %v339_v45, %v318_v5 }
 0x28d   :  { %v381_v18 = vmul.f32 %v9513_v43, %v353_v7  ;;  %v382_v23 = vmul.f32 %v9513_v43, %v354_v10 }
 0x28e   :  { %v334_v27 = vpop.permute.xlu1 %333 }
 0x28f   :  { %v409_v33 = vadd.f32 %v9504_v29, %v381_v18  ;;  %v410_v8 = vadd.f32 %v9504_v29, %v382_v23  ;;  %v351_v34 = vmul.f32 %v334_v27, %v315_v11  ;;  %v352_v9 = vmul.f32 %v334_v27, %v316_v13 }
 0x290   :  { %v321_v11 = vsub.f32 %v9292_v0, %v9498_v14  ;;  %v319_v23 = vsub.f32 %v9302_v2, %v9496_v12  ;;  %v322_v27 = vsub.f32 %v9297_v1, %v9498_v14 }
 0x291   :  { %v7607_v28 = vmul.f32 -1.442695, %v409_v33  ;;  %v7608_v36 = vmul.f32 -1.442695, %v410_v8  ;;  %v379_v38 = vmul.f32 %v9502_v24, %v351_v34  ;;  %v380_v48 = vmul.f32 %v9502_v24, %v352_v9 }
 0x292   :  { %v349_v10 = vpop.permute.xlu0 %348  ;;  %v344_v13 = vpop.permute.xlu1 %343  ;;  %v320_v34 = vsub.f32 %v9309_v4, %v9496_v12 }
 0x293   :  { %8862 = vpow2.f32 %v7607_v28  ;;  %v407_v16 = vadd.f32 %v9517_v47, %v379_v38  ;;  %v408_v17 = vadd.f32 %v9517_v47, %v380_v48  ;;  %v357_v18 = vmul.f32 %v349_v10, %v321_v11 }
 0x294   :  { %8864 = vpow2.f32 %v7608_v36  ;;  %v355_v0 = vmul.f32 %v344_v13, %v319_v23  ;;  %v356_v2 = vmul.f32 %v344_v13, %v320_v34 }
 0x295   :  { %v7605_v21 = vmul.f32 -1.442695, %v407_v16  ;;  %v7606_v51 = vmul.f32 -1.442695, %v408_v17 }
 0x296   :  { %v383_v1 = vmul.f32 %v9500_v15, %v355_v0  ;;  %v384_v12 = vmul.f32 %v9500_v15, %v356_v2  ;;  %v1231_v0 = vsub.f32 %v9402_v40, %v9523_v56 }
 0x297   :  { %8866 = vpow2.f32 %v7605_v21 }
 0x298   :  { %8868 = vpow2.f32 %v7606_v51  ;;  %v411_v4 = vadd.f32 %v9509_v35, %v383_v1  ;;  %v412_v48 = vadd.f32 %v9509_v35, %v384_v12  ;;  %v1232_v1 = vsub.f32 %v9407_v41, %v9523_v56 }
 0x29a   :  { %v7609_v38 = vmul.f32 -1.442695, %v411_v4 }
 0x2a0   :  { %v8863_v52 = vpop.eup %8862 }
 0x2a1   :  { %v8865_v39 = vpop.eup %8864  ;;  %v441_v53 = vadd.f32 1.0, %v8863_v52 }
 0x2a2   :  { %v442_v54 = vadd.f32 1.0, %v8865_v39 }
 0x2a3   :  { %8870 = vrcp.f32 %v441_v53 }
 0x2a4   :  { %v8867_v55 = vpop.eup %8866  ;;  %8872 = vrcp.f32 %v442_v54 }
 0x2a5   :  { %v8869_v57 = vpop.eup %8868  ;;  %v439_v58 = vadd.f32 1.0, %v8867_v55 }
 0x2a6   :  { %v440_v59 = vadd.f32 1.0, %v8869_v57 }
 0x2a7   :  { %8874 = vrcp.f32 %v439_v58 }
 0x2a8   :  { %8876 = vrcp.f32 %v440_v59 }
 0x2ad   :  { %v1250_v23 = vpop.permute.xlu0 %1249 }
 0x2ae   :  { %v1268_v40 = vmul.f32 %v1250_v23, %v1232_v1 }
 0x2b0   :  { %v8871_v60 = vpop.eup %8870  ;;  %v1276_v56 = vmul.f32 %v1268_v40, %v9502_v24 }
 0x2b1   :  { %v9542_v61 = vmul.f32 %v8871_v60, %v409_v33  ;;  %v8873_v62 = vpop.eup %8872  ;;  %v358_v33 = vmul.f32 %v349_v10, %v322_v27 }
 0x2b2   :  { %v9546_v3 = vmul.f32 %v8873_v62, %v410_v8  ;;  %v385_v8 = vmul.f32 %v9506_v30, %v357_v18  ;;  %v1233_v18 = vsub.f32 %v9382_v31, %v9519_v49  ;;  %v1267_v31 = vmul.f32 %v1250_v23, %v1231_v0 }
 0x2b3   :  { %14484 = vst [vmem:[#allocation14_spill] sm:$0xff] %v9542_v61  ;;  %682 = vrot.lane.b32.xlu1 %v9542_v61, %s9203_s16  ;;  %v386_v14 = vmul.f32 %v9506_v30, %v358_v33  ;;  %v1234_v33 = vsub.f32 %v9387_v32, %v9519_v49 }
 0x2b4   :  { %v8875_v63 = vpop.eup %8874  ;;  %14485 = vst [vmem:[#allocation15_spill] sm:$0xff] %v9546_v3  ;;  %v413_v9 = vadd.f32 %v9511_v42, %v385_v8  ;;  %v1275_v32 = vmul.f32 %v1267_v31, %v9502_v24 }
 0x2b5   :  { %v8877_v46 = vpop.eup %8876  ;;  %v9548_v37 = vmul.f32 %v8875_v63, %v407_v16  ;;  %v414_v28 = vadd.f32 %v9511_v42, %v386_v14 }
 0x2b6   :  { %v9550_v5 = vmul.f32 %v8877_v46, %v408_v17  ;;  %v7611_v36 = vmul.f32 -1.442695, %v413_v9  ;;  %v7610_v17 = vmul.f32 -1.442695, %v412_v48  ;;  %v1283_v41 = vadd.f32 %v1275_v32, %v9517_v47 }
 0x2b7   :  { %14486 = vst [vmem:[#allocation16_spill] sm:$0xff] %v9548_v37  ;;  %680 = vrot.lane.b32.xlu0 %v9548_v37, %s9203_s16  ;;  %690 = vrot.lane.b32.xlu1 %v9546_v3, %s9203_s16  ;;  %v7612_v16 = vmul.f32 -1.442695, %v414_v28 }
 0x2b8   :  { %14487 = vst [vmem:[#allocation17_spill] sm:$0xff] %v9550_v5  ;;  %8878 = vpow2.f32 %v7611_v36 }
 0x2b9   :  { %8880 = vpow2.f32 %v7609_v38 }
 0x2ba   :  { %8882 = vpow2.f32 %v7612_v16 }
 0x2bb   :  { %688 = vrot.lane.b32.xlu0 %v9550_v5, %s9203_s16  ;;  %613 = vrot.lane.b32.xlu1 %v9542_v61, %s9205_s4  ;;  %8884 = vpow2.f32 %v7610_v17 }
 0x2bf   :  { %611 = vrot.lane.b32.xlu0 %v9548_v37, %s9205_s4  ;;  %621 = vrot.lane.b32.xlu1 %v9546_v3, %s9205_s4 }
 0x2c3   :  { %619 = vrot.lane.b32.xlu0 %v9550_v5, %s9205_s4  ;;  %544 = vrot.lane.b32.xlu1 %v9542_v61, %s9200_s14  ;;  %v1255_v13 = vpop.permute.xlu1 %1254 }
 0x2c4   :  { %v1269_v27 = vmul.f32 %v1255_v13, %v1233_v18  ;;  %v1270_v8 = vmul.f32 %v1255_v13, %v1234_v33  ;;  %v9743_v18 = vld [vmem:[%s14224_s6 + $0x4] ss:$12 sps:$4 sm:$0xff]  }
 0x2c5   :  { %v8879_v21 = vpop.eup %8878  ;;  %14489 = vst [vmem:[#allocation19_spill] sm:$0xff] %v9743_v18  ;;  %2407 = vmatprep.mubr.bf16.mxu0 %v9743_v18 }
 0x2c6   :  { %v8881_v51 = vpop.eup %8880  ;;  %v445_v52 = vadd.f32 1.0, %v8879_v21  ;;  %v1277_v34 = vmul.f32 %v1269_v27, %v9513_v43  ;;  %v1278_v49 = vmul.f32 %v1270_v8, %v9513_v43  ;;  %v7663_v43 = vmul.f32 -1.442695, %v1283_v41 }
 0x2c7   :  { %542 = vrot.lane.b32.xlu0 %v9548_v37, %s9200_s14  ;;  %552 = vrot.lane.b32.xlu1 %v9546_v3, %s9200_s14  ;;  %v8883_v39 = vpop.eup %8882  ;;  %v443_v53 = vadd.f32 1.0, %v8881_v51  ;;  %v1260_v16 = vpop.permute.xlu1 %1259  ;;  %v1237_v8 = vsub.f32 %v9350_v19, %v9515_v44 }
 0x2c8   :  { %v446_v54 = vadd.f32 1.0, %v8883_v39  ;;  %8886 = vrcp.f32 %v445_v52  ;;  %v8885_v55 = vpop.eup %8884  ;;  %v1285_v2 = vadd.f32 %v1277_v34, %v9504_v29  ;;  %v1286_v14 = vadd.f32 %v1278_v49, %v9504_v29 }
 0x2c9   :  { %8888 = vrcp.f32 %v443_v53  ;;  %v444_v57 = vadd.f32 1.0, %v8885_v55  ;;  %v1235_v49 = vsub.f32 %v9366_v25, %v9530_v6  ;;  %v1236_v25 = vsub.f32 %v9371_v26, %v9530_v6 }
 0x2ca   :  { %8890 = vrcp.f32 %v446_v54  ;;  %v7666_v12 = vmul.f32 -1.442695, %v1286_v14 }
 0x2cb   :  { %550 = vrot.lane.b32.xlu0 %v9550_v5, %s9200_s14  ;;  %473 = vrot.lane.b32.xlu1 %v9542_v61, %s9206_s5  ;;  %8892 = vrcp.f32 %v444_v57  ;;  %v1265_v51 = vpop.permute.xlu0 %1264  ;;  %v1271_v19 = vmul.f32 %v1260_v16, %v1235_v49 }
 0x2cc   :  { %v1273_v1 = vmul.f32 %v1265_v51, %v1237_v8 }
 0x2cf   :  { %471 = vrot.lane.b32.xlu0 %v9548_v37, %s9206_s5  ;;  %481 = vrot.lane.b32.xlu1 %v9546_v3, %s9206_s5 }
 0x2d3   :  { %479 = vrot.lane.b32.xlu0 %v9550_v5, %s9206_s5  ;;  %917 = vrot.lane.b32.xlu1 %v9542_v61, %s9207_s30 }
 0x2d5   :  { %v8887_v58 = vpop.eup %8886 }
 0x2d6   :  { %v8889_v59 = vpop.eup %8888  ;;  %v9632_v60 = vmul.f32 %v8887_v58, %v413_v9  ;;  %v7665_v9 = vmul.f32 -1.442695, %v1285_v2 }
 0x2d7   :  { %915 = vrot.lane.b32.xlu0 %v9548_v37, %s9207_s30  ;;  %925 = vrot.lane.b32.xlu1 %v9546_v3, %s9207_s30  ;;  %v8891_v62 = vpop.eup %8890  ;;  %v9638_v63 = vmul.f32 %v8889_v59, %v411_v4  ;;  %v1284_v4 = vadd.f32 %v1276_v56, %v9517_v47  ;;  %v1281_v56 = vmul.f32 %v1273_v1, %v9506_v30 }
 0x2d8   :  { %v9640_v46 = vmul.f32 %v8891_v62, %v414_v28  ;;  %v8893_v10 = vpop.eup %8892  ;;  %8894 = vpow2.f32 %v7665_v9 }
 0x2d9   :  { %v9646_v11 = vmul.f32 %v8893_v10, %v412_v48  ;;  %8896 = vpow2.f32 %v7663_v43  ;;  %v7664_v24 = vmul.f32 -1.442695, %v1284_v4 }
 0x2da   :  { %8898 = vpow2.f32 %v7666_v12 }
 0x2db   :  { %923 = vrot.lane.b32.xlu0 %v9550_v5, %s9207_s30  ;;  %848 = vrot.lane.b32.xlu1 %v9542_v61, %s9208_s15  ;;  %8900 = vpow2.f32 %v7664_v24 }
 0x2df   :  { %846 = vrot.lane.b32.xlu0 %v9548_v37, %s9208_s15  ;;  %856 = vrot.lane.b32.xlu1 %v9546_v3, %s9208_s15 }
 0x2e3   :  { %854 = vrot.lane.b32.xlu0 %v9550_v5, %s9208_s15  ;;  %779 = vrot.lane.b32.xlu1 %v9542_v61, %s9209_s3 }
 0x2e5   :  { %v8895_v29 = vpop.eup %8894 }
 0x2e6   :  { %v8897_v47 = vpop.eup %8896  ;;  %v1317_v28 = vadd.f32 1.0, %v8895_v29 }
 0x2e7   :  { %777 = vrot.lane.b32.xlu0 %v9548_v37, %s9209_s3  ;;  %787 = vrot.lane.b32.xlu1 %v9546_v3, %s9209_s3  ;;  %v8899_v36 = vpop.eup %8898  ;;  %v1315_v38 = vadd.f32 1.0, %v8897_v47 }
 0x2e8   :  { %v1318_v48 = vadd.f32 1.0, %v8899_v36  ;;  %8902 = vrcp.f32 %v1317_v28  ;;  %v8901_v17 = vpop.eup %8900 }
 0x2e9   :  { %8904 = vrcp.f32 %v1315_v38  ;;  %v1316_v21 = vadd.f32 1.0, %v8901_v17 }
 0x2ea   :  { %8906 = vrcp.f32 %v1318_v48 }
 0x2eb   :  { %785 = vrot.lane.b32.xlu0 %v9550_v5, %s9209_s3  ;;  %986 = vrot.lane.b32.xlu1 %v9542_v61, %s9210_s17  ;;  %8908 = vrcp.f32 %v1316_v21 }
 0x2ef   :  { %984 = vrot.lane.b32.xlu0 %v9548_v37, %s9210_s17  ;;  %994 = vrot.lane.b32.xlu1 %v9546_v3, %s9210_s17 }
 0x2f3   :  { %992 = vrot.lane.b32.xlu0 %v9550_v5, %s9210_s17  ;;  %686 = vrot.lane.b32.xlu1 %v9632_v60, %s9203_s16 }
 0x2f5   :  { %v8903_v57 = vpop.eup %8902 }
 0x2f6   :  { %v8905_v58 = vpop.eup %8904  ;;  %v9730_v59 = vmul.f32 %v8903_v57, %v1285_v2  ;;  %v1238_v2 = vsub.f32 %v9355_v20, %v9515_v44  ;;  %v1279_v20 = vmul.f32 %v1271_v19, %v9500_v15  ;;  %v1272_v44 = vmul.f32 %v1260_v16, %v1236_v25 }
 0x2f7   :  { %684 = vrot.lane.b32.xlu0 %v9638_v63, %s9203_s16  ;;  %694 = vrot.lane.b32.xlu1 %v9640_v46, %s9203_s16  ;;  %v8907_v13 = vpop.eup %8906  ;;  %v9745_v23 = vmul.f32 %v8905_v58, %v1283_v41 }
 0x2f8   :  { %14488 = vst [vmem:[#allocation18_spill] sm:$0xff] %v9730_v59  ;;  %v9747_v27 = vmul.f32 %v8907_v13, %v1286_v14  ;;  %v8909_v31 = vpop.eup %8908  ;;  %v1274_v41 = vmul.f32 %v1265_v51, %v1238_v2  ;;  %v9799_v26 = vadd.f32 %v1279_v20, %v9509_v35  ;;  %v1280_v6 = vmul.f32 %v1272_v44, %v9500_v15 }
 0x2f9   :  { %14490 = vst [vmem:[#allocation20_spill] sm:$0xff] %v9745_v23  ;;  %v9760_v34 = vmul.f32 %v8909_v31, %v1284_v4  ;;  %v9788_v4 = vadd.f32 %v1281_v56, %v9511_v42  ;;  %v487_v44 = vlaneseq }
 0x2fa   :  { %14491 = vst [vmem:[#allocation21_spill] sm:$0xff] %v9747_v27  ;;  %v1282_v43 = vmul.f32 %v1274_v41, %v9506_v30  ;;  %v7667_v36 = vmul.f32 -1.442695, %v9799_v26  ;;  %v9816_v38 = vadd.f32 %v1280_v6, %v9509_v35 }
 0x2fb   :  { %692 = vrot.lane.b32.xlu0 %v9646_v11, %s9203_s16  ;;  %617 = vrot.lane.b32.xlu1 %v9632_v60, %s9205_s4  ;;  %14492 = vst [vmem:[#allocation22_spill] sm:$0xff] %v9760_v34  ;;  %v7669_v29 = vmul.f32 -1.442695, %v9788_v4 }
 0x2fc   :  { %v9803_v30 = vadd.f32 %v1282_v43, %v9511_v42  ;;  %v7668_v16 = vmul.f32 -1.442695, %v9816_v38 }
 0x2fd   :  { %8910 = vpow2.f32 %v7669_v29 }
 0x2fe   :  { %v7670_v15 = vmul.f32 -1.442695, %v9803_v30  ;;  %8912 = vpow2.f32 %v7667_v36  ;;  %v9876_v36 = vshrl.u32 %v487_v44, 7 }
 0x2ff   :  { %615 = vrot.lane.b32.xlu0 %v9638_v63, %s9205_s4  ;;  %625 = vrot.lane.b32.xlu1 %v9640_v46, %s9205_s4 }
 0x300   :  { %8914 = vpow2.f32 %v7670_v15 }
 0x301   :  { %8916 = vpow2.f32 %v7668_v16 }
 0x303   :  { %623 = vrot.lane.b32.xlu0 %v9646_v11, %s9205_s4  ;;  %548 = vrot.lane.b32.xlu1 %v9632_v60, %s9200_s14 }
 0x307   :  { %546 = vrot.lane.b32.xlu0 %v9638_v63, %s9200_s14  ;;  %556 = vrot.lane.b32.xlu1 %v9640_v46, %s9200_s14 }
 0x30a   :  { %v8911_v13 = vpop.eup %8910 }
 0x30b   :  { %554 = vrot.lane.b32.xlu0 %v9646_v11, %s9200_s14  ;;  %477 = vrot.lane.b32.xlu1 %v9632_v60, %s9206_s5  ;;  %v8913_v31 = vpop.eup %8912  ;;  %v1321_v8 = vadd.f32 1.0, %v8911_v13  ;;  %v9880_v13 = vand.u32 127, %v487_v44 }
 0x30c   :  { %v1319_v19 = vadd.f32 1.0, %v8913_v31  ;;  %v707_v31 = vsub.s32 3, %v9876_v36 }
 0x30d   :  { %v8915_v2 = vpop.eup %8914  ;;  %8918 = vrcp.f32 %v1321_v8  ;;  %14493 = vst [vmem:[#allocation23_spill] sm:$0xff] %v9880_v13  ;;  %v9887_v8 = vld [vmem:[#allocation4] sm:$0xff]  ;;  %vm696_vm2 = vcmp.lt.s32.totalorder %v9880_v13, 1  ;;  %vm627_vm3 = vcmp.lt.s32.totalorder %v9880_v13, 15  ;;  %vm558_vm4 = vcmp.lt.s32.totalorder %v9880_v13, 16 }
 0x30e   :  { %v1322_v41 = vadd.f32 1.0, %v8915_v2  ;;  %v8917_v20 = vpop.eup %8916  ;;  %8920 = vrcp.f32 %v1319_v19  ;;  %vm489_vm5 = vcmp.lt.s32.totalorder %v9880_v13, 17  ;;  %vm931_vm6 = vcmp.lt.s32.totalorder %v9880_v13, 112 }
 0x30f   :  { %475 = vrot.lane.b32.xlu0 %v9638_v63, %s9206_s5  ;;  %485 = vrot.lane.b32.xlu1 %v9640_v46, %s9206_s5  ;;  %v1320_v43 = vadd.f32 1.0, %v8917_v20  ;;  %v9890_v20 = vld [vmem:[#allocation4 + $0x8] sm:$0xff]  ;;  %vm862_vm7 = vcmp.lt.s32.totalorder %v9880_v13, 113  ;;  %vm793_vm8 = vcmp.lt.s32.totalorder %v9880_v13, 127  ;;  %vm1000_vm9 = vcmp.lt.s32.totalorder %v9880_v13, 111 }
 0x310   :  { %8922 = vrcp.f32 %v1322_v41 }
 0x311   :  { %8924 = vrcp.f32 %v1320_v43  ;;  %v9899_v43 = vrot.slane %v9887_v8, %v707_v31 }
 0x313   :  { %483 = vrot.lane.b32.xlu0 %v9646_v11, %s9206_s5  ;;  %921 = vrot.lane.b32.xlu1 %v9632_v60, %s9207_s30  ;;  %14494 = vst [vmem:[#allocation24_spill] sm:$0xff] %v9899_v43 }
 0x317   :  { %919 = vrot.lane.b32.xlu0 %v9638_v63, %s9207_s30  ;;  %929 = vrot.lane.b32.xlu1 %v9640_v46, %s9207_s30 }
 0x31a   :  { %v8919_v41 = vpop.eup %8918 }
 0x31b   :  { %927 = vrot.lane.b32.xlu0 %v9646_v11, %s9207_s30  ;;  %852 = vrot.lane.b32.xlu1 %v9632_v60, %s9208_s15  ;;  %v8921_v22 = vpop.eup %8920  ;;  %v9904_v45 = vmul.f32 %v8919_v41, %v9788_v4 }
 0x31d   :  { %14495 = vst [vmem:[#allocation25_spill] sm:$0xff] %v9904_v45 }
 0x31f   :  { %850 = vrot.lane.b32.xlu0 %v9638_v63, %s9208_s15  ;;  %860 = vrot.lane.b32.xlu1 %v9640_v46, %s9208_s15 }
 0x323   :  { %858 = vrot.lane.b32.xlu0 %v9646_v11, %s9208_s15  ;;  %783 = vrot.lane.b32.xlu1 %v9632_v60, %s9209_s3 }
 0x325   :  { %v9708_v52 = vpop.permute.xlu1 %682 }
 0x327   :  { %781 = vrot.lane.b32.xlu0 %v9638_v63, %s9209_s3  ;;  %791 = vrot.lane.b32.xlu1 %v9640_v46, %s9209_s3 }
 0x329   :  { %v9714_v39 = vpop.permute.xlu1 %690  ;;  %v9716_v53 = vpop.permute.xlu0 %680 }
 0x32a   :  { %v698_v7 = vsel %vm696_vm2, %v9708_v52, %v9714_v39 }
 0x32b   :  { %789 = vrot.lane.b32.xlu0 %v9646_v11, %s9209_s3  ;;  %990 = vrot.lane.b32.xlu1 %v9632_v60, %s9210_s17 }
 0x32d   :  { %v9722_v54 = vpop.permute.xlu1 %613  ;;  %v9724_v55 = vpop.permute.xlu0 %688 }
 0x32e   :  { %v697_v18 = vsel %vm696_vm2, %v9716_v53, %v9724_v55  ;;  %v701_v4 = vsel %vm696_vm2, %v9724_v55, %v9716_v53  ;;  %v9934_v53 = vmul.f32 %v8921_v22, %v9799_v26  ;;  %v638_v55 = vsub.s32 2, %v9876_v36 }
 0x32f   :  { %988 = vrot.lane.b32.xlu0 %v9638_v63, %s9210_s17  ;;  %998 = vrot.lane.b32.xlu1 %v9640_v46, %s9210_s17 }
 0x330   :  { %14497 = vst [vmem:[#allocation27_spill] sm:$0xff] %v9934_v53 }
 0x331   :  { %v9732_v62 = vpop.permute.xlu1 %621  ;;  %v9734_v10 = vpop.permute.xlu0 %611 }
 0x333   :  { %996 = vrot.lane.b32.xlu0 %v9646_v11, %s9210_s17  ;;  %1529 = vrot.lane.b32.xlu1 %v9730_v59, %s9203_s16 }
 0x335   :  { %v9749_v0 = vpop.permute.xlu1 %544  ;;  %v9751_v33 = vpop.permute.xlu0 %619 }
 0x337   :  { %1537 = vrot.lane.b32.xlu1 %v9747_v27, %s9203_s16  ;;  %1527 = vrot.lane.b32.xlu0 %v9745_v23, %s9203_s16 }
 0x339   :  { %v9762_v32 = vpop.permute.xlu1 %552  ;;  %v9764_v40 = vpop.permute.xlu0 %542 }
 0x33b   :  { %1469 = vrot.lane.b32.xlu1 %v9730_v59, %s9205_s4  ;;  %1535 = vrot.lane.b32.xlu0 %v9760_v34, %s9203_s16 }
 0x33d   :  { %v9775_v14 = vpop.permute.xlu1 %473  ;;  %v9777_v9 = vpop.permute.xlu0 %550 }
 0x33f   :  { %1477 = vrot.lane.b32.xlu1 %v9747_v27, %s9205_s4  ;;  %1467 = vrot.lane.b32.xlu0 %v9745_v23, %s9205_s4 }
 0x341   :  { %v9790_v12 = vpop.permute.xlu1 %481  ;;  %v9792_v24 = vpop.permute.xlu0 %471 }
 0x343   :  { %1409 = vrot.lane.b32.xlu1 %v9730_v59, %s9200_s14  ;;  %1475 = vrot.lane.b32.xlu0 %v9760_v34, %s9205_s4 }
 0x345   :  { %v9806_v47 = vpop.permute.xlu1 %917  ;;  %v9808_v28 = vpop.permute.xlu0 %479 }
 0x347   :  { %1417 = vrot.lane.b32.xlu1 %v9747_v27, %s9200_s14  ;;  %1407 = vrot.lane.b32.xlu0 %v9745_v23, %s9200_s14 }
 0x349   :  { %v9819_v42 = vpop.permute.xlu1 %925  ;;  %v9821_v48 = vpop.permute.xlu0 %915 }
 0x34b   :  { %1349 = vrot.lane.b32.xlu1 %v9730_v59, %s9206_s5  ;;  %1415 = vrot.lane.b32.xlu0 %v9760_v34, %s9200_s14 }
 0x34d   :  { %v9828_v17 = vpop.permute.xlu1 %848  ;;  %v9830_v35 = vpop.permute.xlu0 %923 }
 0x34f   :  { %1357 = vrot.lane.b32.xlu1 %v9747_v27, %s9206_s5  ;;  %1347 = vrot.lane.b32.xlu0 %v9745_v23, %s9206_s5 }
 0x351   :  { %v9836_v21 = vpop.permute.xlu1 %856  ;;  %v9838_v51 = vpop.permute.xlu0 %846 }
 0x353   :  { %1737 = vrot.lane.b32.xlu1 %v9730_v59, %s9207_s30  ;;  %1355 = vrot.lane.b32.xlu0 %v9760_v34, %s9206_s5 }
 0x355   :  { %v9844_v57 = vpop.permute.xlu1 %779  ;;  %v9846_v58 = vpop.permute.xlu0 %854 }
 0x357   :  { %1745 = vrot.lane.b32.xlu1 %v9747_v27, %s9207_s30  ;;  %1735 = vrot.lane.b32.xlu0 %v9745_v23, %s9207_s30 }
 0x359   :  { %v9852_v1 = vpop.permute.xlu1 %787  ;;  %v9854_v49 = vpop.permute.xlu0 %777 }
 0x35b   :  { %1677 = vrot.lane.b32.xlu1 %v9730_v59, %s9208_s15  ;;  %1743 = vrot.lane.b32.xlu0 %v9760_v34, %s9207_s30 }
 0x35d   :  { %v9860_v56 = vpop.permute.xlu1 %986  ;;  %v9862_v25 = vpop.permute.xlu0 %785 }
 0x35f   :  { %1685 = vrot.lane.b32.xlu1 %v9747_v27, %s9208_s15  ;;  %1675 = vrot.lane.b32.xlu0 %v9745_v23, %s9208_s15 }
 0x361   :  { %v9868_v6 = vpop.permute.xlu1 %994  ;;  %v9870_v29 = vpop.permute.xlu0 %984 }
 0x363   :  { %1617 = vrot.lane.b32.xlu1 %v9730_v59, %s9209_s3  ;;  %1683 = vrot.lane.b32.xlu0 %v9760_v34, %s9208_s15 }
 0x365   :  { %v687_v15 = vpop.permute.xlu1 %686  ;;  %v9878_v16 = vpop.permute.xlu0 %992 }
 0x367   :  { %1625 = vrot.lane.b32.xlu1 %v9747_v27, %s9209_s3  ;;  %1615 = vrot.lane.b32.xlu0 %v9745_v23, %s9209_s3 }
 0x369   :  { %v695_v2 = vpop.permute.xlu1 %694  ;;  %v685_v19 = vpop.permute.xlu0 %684 }
 0x36a   :  { %v704_v44 = vsel %vm696_vm2, %v695_v2, %v687_v15  ;;  %v700_v50 = vsel %vm696_vm2, %v687_v15, %v695_v2  ;;  %v8923_v15 = vpop.eup %8922 }
 0x36b   :  { %1797 = vrot.lane.b32.xlu1 %v9730_v59, %s9210_s17  ;;  %1623 = vrot.lane.b32.xlu0 %v9760_v34, %s9209_s3  ;;  %v9911_v59 = vrot.slane %v9890_v20, %v707_v31  ;;  %v719_v2 = vmul.f32 %v9899_v43, %v704_v44  ;;  %v713_v44 = vmul.f32 %v9899_v43, %v701_v4  ;;  %v8925_v22 = vpop.eup %8924 }
 0x36c   :  { %v628_v4 = vsel %vm627_vm3, %v9734_v10, %v9751_v33 }
 0x36d   :  { %14496 = vst [vmem:[#allocation26_spill] sm:$0xff] %v9911_v59  ;;  %v618_v34 = vpop.permute.xlu1 %617  ;;  %v693_v37 = vpop.permute.xlu0 %692  ;;  %v720_v61 = vmul.f32 %v9911_v59, %v700_v50  ;;  %v714_v50 = vmul.f32 %v9911_v59, %v697_v18  ;;  %v716_v26 = vmul.f32 %v9911_v59, %v698_v7  ;;  %v9956_v18 = vrot.slane %v9887_v8, %v638_v55 }
 0x36e   :  { %v699_v41 = vsel %vm696_vm2, %v685_v19, %v693_v37  ;;  %v703_v31 = vsel %vm696_vm2, %v693_v37, %v685_v19  ;;  %v702_v37 = vsel %vm696_vm2, %v9714_v39, %v9708_v52  ;;  %v9943_v19 = vmul.f32 %v8923_v15, %v9803_v30 }
 0x36f   :  { %v717_v27 = vmul.f32 %v9899_v43, %v703_v31  ;;  %v718_v5 = vmul.f32 %v9911_v59, %v699_v41  ;;  %1795 = vrot.lane.b32.xlu0 %v9745_v23, %s9210_s17  ;;  %1533 = vrot.lane.b32.xlu1 %v9904_v45, %s9203_s16  ;;  %v715_v52 = vmul.f32 %v9899_v43, %v702_v37 }
 0x370   :  { %14498 = vst [vmem:[#allocation28_spill] sm:$0xff] %v9956_v18  ;;  %v8444_v7 = vpack.c.bf16 %v716_v26, %v714_v50  ;;  %v629_v15 = vsel %vm627_vm3, %v9722_v54, %v9732_v62 }
 0x371   :  { %v8447_v41 = vpack.c.bf16 %v719_v2, %v717_v27  ;;  %v626_v31 = vpop.permute.xlu1 %625  ;;  %v616_v23 = vpop.permute.xlu0 %615  ;;  %v8448_v3 = vpack.c.bf16 %v720_v61, %v718_v5  ;;  %v9959_v61 = vrot.slane %v9890_v20, %v638_v55  ;;  %v9964_v27 = vmul.f32 %v8925_v22, %v9816_v38 }
 0x372   :  { %v635_v39 = vsel %vm627_vm3, %v626_v31, %v618_v34  ;;  %v631_v5 = vsel %vm627_vm3, %v618_v34, %v626_v31  ;;  %v8443_v30 = vpack.c.bf16 %v715_v52, %v713_v44 }
 0x373   :  { %1531 = vrot.lane.b32.xlu0 %v9934_v53, %s9203_s16  ;;  %1541 = vrot.lane.b32.xlu1 %v9943_v19, %s9203_s16  ;;  %14499 = vst [vmem:[#allocation29_spill] sm:$0xff] %v9959_v61  ;;  %v650_v34 = vmul.f32 %v9956_v18, %v635_v39  ;;  %v651_v55 = vmul.f32 %v9959_v61, %v631_v5 }
 0x374   :  { %2375 = vmatprep.subr.bf16.mxu0 %v8448_v3  ;;  %v632_v3 = vsel %vm627_vm3, %v9751_v33, %v9734_v10  ;;  %v633_v10 = vsel %vm627_vm3, %v9732_v62, %v9722_v54  ;;  %v569_v33 = vsub.s32 1, %v9876_v36  ;;  %v647_v5 = vmul.f32 %v9959_v61, %v629_v15 }
 0x375   :  { %2376 = vmatpush1.bf16.msra.mxu0 %v8447_v41  ;;  %v549_v2 = vpop.permute.xlu1 %548  ;;  %v624_v37 = vpop.permute.xlu0 %623  ;;  %v644_v31 = vmul.f32 %v9956_v18, %v632_v3 }
 0x376   :  { %v630_v38 = vsel %vm627_vm3, %v616_v23, %v624_v37  ;;  %v634_v50 = vsel %vm627_vm3, %v624_v37, %v616_v23  ;;  %2377 = vmatprep.subr.bf16.mxu0 %v8444_v7  ;;  %v645_v23 = vmul.f32 %v9959_v61, %v628_v4  ;;  %v646_v7 = vmul.f32 %v9956_v18, %v633_v10 }
 0x377   :  { %v648_v44 = vmul.f32 %v9956_v18, %v634_v50  ;;  %v649_v41 = vmul.f32 %v9959_v61, %v630_v38  ;;  %1473 = vrot.lane.b32.xlu1 %v9904_v45, %s9205_s4  ;;  %1539 = vrot.lane.b32.xlu0 %v9964_v27, %s9203_s16  ;;  %v10007_v62 = vrot.slane %v9887_v8, %v569_v33 }
 0x378   :  { %v8436_v15 = vpack.c.bf16 %v647_v5, %v645_v23  ;;  %v8435_v4 = vpack.c.bf16 %v646_v7, %v644_v31  ;;  %v560_v37 = vsel %vm558_vm4, %v9749_v0, %v9762_v32  ;;  %v10016_v3 = vrot.slane %v9890_v20, %v569_v33 }
 0x379   :  { %v8439_v22 = vpack.c.bf16 %v650_v34, %v648_v44  ;;  %2378 = vmatpush1.bf16.msra.mxu0 %v8443_v30  ;;  %v557_v26 = vpop.permute.xlu1 %556  ;;  %v547_v52 = vpop.permute.xlu0 %546  ;;  %v8440_v39 = vpack.c.bf16 %v651_v55, %v649_v41  ;;  %14500 = vst [vmem:[#allocation30_spill] sm:$0xff] %v10007_v62  ;;  %v559_v34 = vsel %vm558_vm4, %v9764_v40, %v9777_v9  ;;  %v500_v31 = vsub.s32 0, %v9876_v36 }
 0x37a   :  { %v566_v54 = vsel %vm558_vm4, %v557_v26, %v549_v2  ;;  %v562_v30 = vsel %vm558_vm4, %v549_v2, %v557_v26  ;;  %14501 = vst [vmem:[#allocation31_spill] sm:$0xff] %v10016_v3  ;;  %v563_v2 = vsel %vm558_vm4, %v9777_v9, %v9764_v40  ;;  %v564_v40 = vsel %vm558_vm4, %v9762_v32, %v9749_v0 }
 0x37b   :  { %1481 = vrot.lane.b32.xlu1 %v9943_v19, %s9205_s4  ;;  %1471 = vrot.lane.b32.xlu0 %v9934_v53, %s9205_s4  ;;  %v581_v55 = vmul.f32 %v10007_v62, %v566_v54  ;;  %v582_v10 = vmul.f32 %v10016_v3, %v562_v30  ;;  %v576_v9 = vmul.f32 %v10016_v3, %v559_v34 }
 0x37c   :  { %2379 = vmatprep.subr.bf16.mxu0 %v8440_v39  ;;  %v578_v7 = vmul.f32 %v10016_v3, %v560_v37  ;;  %v577_v54 = vmul.f32 %v10007_v62, %v564_v40  ;;  %v10055_v32 = vrot.slane %v9887_v8, %v500_v31  ;;  %v491_v37 = vsel %vm489_vm5, %v9775_v14, %v9790_v12 }
 0x37d   :  { %2380 = vmatpush1.bf16.msra.mxu0 %v8439_v22  ;;  %v478_v38 = vpop.permute.xlu1 %477  ;;  %v555_v50 = vpop.permute.xlu0 %554  ;;  %v575_v22 = vmul.f32 %v10007_v62, %v563_v2  ;;  %v10064_v34 = vrot.slane %v9890_v20, %v500_v31 }
 0x37e   :  { %v561_v44 = vsel %vm558_vm4, %v547_v52, %v555_v50  ;;  %v565_v41 = vsel %vm558_vm4, %v555_v50, %v547_v52  ;;  %2381 = vmatprep.subr.bf16.mxu0 %v8436_v15  ;;  %14502 = vst [vmem:[#allocation32_spill] sm:$0xff] %v10055_v32  ;;  %v8428_v15 = vpack.c.bf16 %v578_v7, %v576_v9  ;;  %v942_v9 = vsub.s32 7, %v9876_v36 }
 0x37f   :  { %v579_v23 = vmul.f32 %v10007_v62, %v565_v41  ;;  %v580_v33 = vmul.f32 %v10016_v3, %v561_v44  ;;  %1413 = vrot.lane.b32.xlu1 %v9904_v45, %s9200_s14  ;;  %1479 = vrot.lane.b32.xlu0 %v9964_v27, %s9205_s4  ;;  %14503 = vst [vmem:[#allocation33_spill] sm:$0xff] %v10064_v34 }
 0x380   :  { %v490_v50 = vsel %vm489_vm5, %v9792_v24, %v9808_v28 }
 0x381   :  { %v8431_v26 = vpack.c.bf16 %v581_v55, %v579_v23  ;;  %2382 = vmatpush1.bf16.msra.mxu0 %v8435_v4  ;;  %v486_v52 = vpop.permute.xlu1 %485  ;;  %v476_v39 = vpop.permute.xlu0 %475  ;;  %v8432_v5 = vpack.c.bf16 %v582_v10, %v580_v33  ;;  %v8427_v4 = vpack.c.bf16 %v577_v54, %v575_v22 }
 0x382   :  { %v497_v0 = vsel %vm489_vm5, %v486_v52, %v478_v38  ;;  %v493_v30 = vsel %vm489_vm5, %v478_v38, %v486_v52  ;;  %v494_v38 = vsel %vm489_vm5, %v9808_v28, %v9792_v24  ;;  %v495_v24 = vsel %vm489_vm5, %v9790_v12, %v9775_v14 }
 0x383   :  { %1421 = vrot.lane.b32.xlu1 %v9943_v19, %s9200_s14  ;;  %1411 = vrot.lane.b32.xlu0 %v9934_v53, %s9200_s14  ;;  %v512_v44 = vmul.f32 %v10055_v32, %v497_v0  ;;  %v513_v23 = vmul.f32 %v10064_v34, %v493_v30  ;;  %v507_v28 = vmul.f32 %v10064_v34, %v490_v50 }
 0x384   :  { %2383 = vmatprep.subr.bf16.mxu0 %v8432_v5  ;;  %v506_v31 = vmul.f32 %v10055_v32, %v494_v38  ;;  %v509_v5 = vmul.f32 %v10064_v34, %v491_v37  ;;  %v508_v7 = vmul.f32 %v10055_v32, %v495_v24  ;;  %v10103_v12 = vrot.slane %v9887_v8, %v942_v9 }
 0x385   :  { %2384 = vmatpush1.bf16.msra.mxu0 %v8431_v26  ;;  %v922_v2 = vpop.permute.xlu1 %921  ;;  %v484_v55 = vpop.permute.xlu0 %483  ;;  %v936_v37 = vsel %vm931_vm6, %v9830_v35, %v9821_v48 }
 0x386   :  { %v492_v41 = vsel %vm489_vm5, %v476_v39, %v484_v55  ;;  %v496_v10 = vsel %vm489_vm5, %v484_v55, %v476_v39  ;;  %2385 = vmatprep.subr.bf16.mxu0 %v8428_v15  ;;  %14504 = vst [vmem:[#allocation34_spill] sm:$0xff] %v10103_v12  ;;  %v8420_v0 = vpack.c.bf16 %v509_v5, %v507_v28 }
 0x387   :  { %v510_v33 = vmul.f32 %v10055_v32, %v496_v10  ;;  %v511_v40 = vmul.f32 %v10064_v34, %v492_v41  ;;  %1353 = vrot.lane.b32.xlu1 %v9904_v45, %s9206_s5  ;;  %1419 = vrot.lane.b32.xlu0 %v9964_v27, %s9200_s14  ;;  %v8419_v30 = vpack.c.bf16 %v508_v7, %v506_v31 }
 0x388   :  { %v937_v15 = vsel %vm931_vm6, %v9819_v42, %v9806_v47 }
 0x389   :  { %v8423_v22 = vpack.c.bf16 %v512_v44, %v510_v33  ;;  %2386 = vmatpush1.bf16.msra.mxu0 %v8427_v4  ;;  %v930_v26 = vpop.permute.xlu1 %929  ;;  %v920_v52 = vpop.permute.xlu0 %919  ;;  %v8424_v39 = vpack.c.bf16 %v513_v23, %v511_v40  ;;  %v10112_v4 = vrot.slane %v9890_v20, %v942_v9  ;;  %v873_v40 = vsub.s32 6, %v9876_v36 }
 0x38a   :  { %v935_v14 = vsel %vm931_vm6, %v922_v2, %v930_v26  ;;  %v939_v54 = vsel %vm931_vm6, %v930_v26, %v922_v2  ;;  %v932_v2 = vsel %vm931_vm6, %v9821_v48, %v9830_v35  ;;  %v933_v48 = vsel %vm931_vm6, %v9806_v47, %v9819_v42 }
 0x38b   :  { %1361 = vrot.lane.b32.xlu1 %v9943_v19, %s9206_s5  ;;  %1351 = vrot.lane.b32.xlu0 %v9934_v53, %s9206_s5  ;;  %14505 = vst [vmem:[#allocation35_spill] sm:$0xff] %v10112_v4  ;;  %v954_v38 = vmul.f32 %v10103_v12, %v935_v14  ;;  %v955_v10 = vmul.f32 %v10112_v4, %v939_v54 }
 0x38c   :  { %2387 = vmatprep.subr.bf16.mxu0 %v8424_v39  ;;  %v949_v35 = vmul.f32 %v10112_v4, %v936_v37  ;;  %v948_v24 = vmul.f32 %v10103_v12, %v932_v2  ;;  %v951_v26 = vmul.f32 %v10112_v4, %v937_v15  ;;  %v10151_v42 = vrot.slane %v9887_v8, %v873_v40 }
 0x38d   :  { %2388 = vmatpush1.bf16.msra.mxu0 %v8423_v22  ;;  %v853_v50 = vpop.permute.xlu1 %852  ;;  %v928_v55 = vpop.permute.xlu0 %927  ;;  %v868_v14 = vsel %vm862_vm7, %v9836_v21, %v9828_v17  ;;  %v10160_v54 = vrot.slane %v9890_v20, %v873_v40  ;;  %v863_v37 = vsel %vm862_vm7, %v9838_v51, %v9846_v58 }
 0x38e   :  { %v934_v44 = vsel %vm931_vm6, %v920_v52, %v928_v55  ;;  %v938_v41 = vsel %vm931_vm6, %v928_v55, %v920_v52  ;;  %2389 = vmatprep.subr.bf16.mxu0 %v8420_v0  ;;  %v950_v52 = vmul.f32 %v10103_v12, %v933_v48  ;;  %14506 = vst [vmem:[#allocation36_spill] sm:$0xff] %v10151_v42 }
 0x38f   :  { %v952_v23 = vmul.f32 %v10103_v12, %v934_v44  ;;  %v953_v33 = vmul.f32 %v10112_v4, %v938_v41  ;;  %1741 = vrot.lane.b32.xlu1 %v9904_v45, %s9207_s30  ;;  %1359 = vrot.lane.b32.xlu0 %v9964_v27, %s9206_s5  ;;  %v8476_v5 = vpack.c.bf16 %v951_v26, %v949_v35 }
 0x390   :  { %v8475_v7 = vpack.c.bf16 %v950_v52, %v948_v24  ;;  %14507 = vst [vmem:[#allocation37_spill] sm:$0xff] %v10160_v54  ;;  %v867_v0 = vsel %vm862_vm7, %v9846_v58, %v9838_v51  ;;  %v864_v51 = vsel %vm862_vm7, %v9828_v17, %v9836_v21  ;;  %v882_v24 = vmul.f32 %v10160_v54, %v868_v14 }
 0x391   :  { %v8479_v28 = vpack.c.bf16 %v954_v38, %v952_v23  ;;  %2390 = vmatpush1.bf16.msra.mxu0 %v8419_v30  ;;  %v861_v9 = vpop.permute.xlu1 %860  ;;  %v851_v31 = vpop.permute.xlu0 %850  ;;  %v8480_v22 = vpack.c.bf16 %v955_v10, %v953_v33  ;;  %v880_v58 = vmul.f32 %v10160_v54, %v867_v0  ;;  %v804_v10 = vsub.s32 5, %v9876_v36 }
 0x392   :  { %v866_v47 = vsel %vm862_vm7, %v853_v50, %v861_v9  ;;  %v870_v39 = vsel %vm862_vm7, %v861_v9, %v853_v50  ;;  %v879_v23 = vmul.f32 %v10151_v42, %v863_v37 }
 0x393   :  { %1749 = vrot.lane.b32.xlu1 %v9943_v19, %s9207_s30  ;;  %1739 = vrot.lane.b32.xlu0 %v9934_v53, %s9207_s30  ;;  %v885_v50 = vmul.f32 %v10151_v42, %v866_v47  ;;  %v886_v38 = vmul.f32 %v10160_v54, %v870_v39  ;;  %v10199_v21 = vrot.slane %v9887_v8, %v804_v10 }
 0x394   :  { %2391 = vmatprep.subr.bf16.mxu0 %v8480_v22  ;;  %v8468_v9 = vpack.c.bf16 %v882_v24, %v880_v58  ;;  %v799_v22 = vsel %vm793_vm8, %v9852_v1, %v9844_v57  ;;  %v10208_v26 = vrot.slane %v9890_v20, %v804_v10  ;;  %v798_v8 = vsel %vm793_vm8, %v9862_v25, %v9854_v49  ;;  %v10247_v58 = vld [vmem:[#allocation4 + $0x18] ss:$0 sm:$0xff] }
 0x395   :  { %2392 = vmatpush2.bf16.msra.mxu0 %v8479_v28  ;;  %v784_v30 = vpop.permute.xlu1 %783  ;;  %v859_v15 = vpop.permute.xlu0 %858  ;;  %v881_v28 = vmul.f32 %v10151_v42, %v864_v51  ;;  %14508 = vst [vmem:[#allocation38_spill] sm:$0xff] %v10199_v21  ;;  %v794_v39 = vsel %vm793_vm8, %v9854_v49, %v9862_v25  ;;  %v795_v49 = vsel %vm793_vm8, %v9844_v57, %v9852_v1 }
 0x396   :  { %v865_v55 = vsel %vm862_vm7, %v851_v31, %v859_v15  ;;  %v869_v2 = vsel %vm862_vm7, %v859_v15, %v851_v31  ;;  %2393 = vmatprep.subr.bf16.mxu0 %v8476_v5  ;;  %14509 = vst [vmem:[#allocation39_spill] sm:$0xff] %v10208_v26  ;;  %v811_v25 = vmul.f32 %v10208_v26, %v798_v8 }
 0x397   :  { %v883_v44 = vmul.f32 %v10151_v42, %v865_v55  ;;  %v884_v41 = vmul.f32 %v10160_v54, %v869_v2  ;;  %1681 = vrot.lane.b32.xlu1 %v9904_v45, %s9208_s15  ;;  %1747 = vrot.lane.b32.xlu0 %v9964_v27, %s9207_s30  ;;  %v8467_v31 = vpack.c.bf16 %v881_v28, %v879_v23 }
 0x398   :  { %v810_v15 = vmul.f32 %v10199_v21, %v794_v39  ;;  %v1005_v10 = vsel %vm1000_vm9, %v9878_v16, %v9870_v29  ;;  %v8456_v8 = vpack.c.bf16 %v9640_v46, %v9646_v11  ;;  %v8455_v46 = vpack.c.bf16 %v9632_v60, %v9638_v63  ;;  %v10311_v63 = vld [vmem:[%s14224_s6] ss:$12 sps:$4 sm:$0xff]  }
 0x399   :  { %v8471_v33 = vpack.c.bf16 %v885_v50, %v883_v44  ;;  %2394 = vmatpush2.bf16.msra.mxu0 %v8475_v7  ;;  %v792_v48 = vpop.permute.xlu1 %791  ;;  %v782_v35 = vpop.permute.xlu0 %781  ;;  %v8472_v40 = vpack.c.bf16 %v886_v38, %v884_v41  ;;  %v813_v38 = vmul.f32 %v10208_v26, %v799_v22  ;;  %v812_v44 = vmul.f32 %v10199_v21, %v795_v49  ;;  %v14513_v49 = vld [vmem:[#allocation21_spill] sm:$0xff] }
 0x39a   :  { %v797_v17 = vsel %vm793_vm8, %v784_v30, %v792_v48  ;;  %v801_v36 = vsel %vm793_vm8, %v792_v48, %v784_v30  ;;  %v10255_v48 = vld [vmem:[#allocation4 + $0x10] ss:$0 sm:$0xff]  ;;  %v1018_v22 = vmul.f32 %v10247_v58, %v1005_v10 }
 0x39b   :  { %1689 = vrot.lane.b32.xlu1 %v9943_v19, %s9208_s15  ;;  %1679 = vrot.lane.b32.xlu0 %v9934_v53, %s9208_s15  ;;  %v816_v5 = vmul.f32 %v10199_v21, %v797_v17  ;;  %v817_v14 = vmul.f32 %v10208_v26, %v801_v36  ;;  %v8460_v41 = vpack.c.bf16 %v813_v38, %v811_v25  ;;  %v10316_v25 = vld [vmem:[%s14224_s6 + $0x8] ss:$12 sps:$4 sm:$0xff]  }
 0x39c   :  { %2395 = vmatprep.subr.bf16.mxu0 %v8472_v40  ;;  %v8459_v51 = vpack.c.bf16 %v812_v44, %v810_v15  ;;  %v2673_v15 = vld [vmem:[%s14219_s1 + $0x30] sm:$0xff]  ;;  %v10331_v44 = vld [vmem:[%s14224_s6 + $0x1c] ss:$12 sps:$4 sm:$0xff]  }
 0x39d   :  { %2396 = vmatpush2.bf16.msra.mxu0 %v8471_v33  ;;  %v991_v52 = vpop.permute.xlu1 %990  ;;  %v790_v47 = vpop.permute.xlu0 %789 }
 0x39e   :  { %v796_v7 = vsel %vm793_vm8, %v782_v35, %v790_v47  ;;  %v800_v20 = vsel %vm793_vm8, %v790_v47, %v782_v35  ;;  %2397 = vmatprep.subr.bf16.mxu0 %v8468_v9  ;;  %v1006_v35 = vsel %vm1000_vm9, %v9868_v6, %v9860_v56 }
 0x39f   :  { %v814_v0 = vmul.f32 %v10199_v21, %v796_v7  ;;  %v815_v30 = vmul.f32 %v10208_v26, %v800_v20  ;;  %1621 = vrot.lane.b32.xlu1 %v9904_v45, %s9209_s3  ;;  %1687 = vrot.lane.b32.xlu0 %v9964_v27, %s9208_s15  ;;  %v1002_v7 = vsel %vm1000_vm9, %v9860_v56, %v9868_v6 }
 0x3a0   :  { %v1020_v20 = vmul.f32 %v10247_v58, %v1006_v35  ;;  %v10353_v35 = vld [vmem:[%s14224_s6 + $0x18] ss:$12 sps:$4 sm:$0xff]  }
 0x3a1   :  { %v8463_v37 = vpack.c.bf16 %v816_v5, %v814_v0  ;;  %2398 = vmatpush2.bf16.msra.mxu0 %v8467_v31  ;;  %v999_v50 = vpop.permute.xlu1 %998  ;;  %v989_v55 = vpop.permute.xlu0 %988  ;;  %v8464_v2 = vpack.c.bf16 %v817_v14, %v815_v30  ;;  %v1001_v31 = vsel %vm1000_vm9, %v9870_v29, %v9878_v16  ;;  %v1019_v16 = vmul.f32 %v10255_v48, %v1002_v7  ;;  %v14510_v14 = vld [vmem:[#allocation15_spill] sm:$0xff]  ;;  %v14511_v0 = vld [vmem:[#allocation17_spill] sm:$0xff] }
 0x3a2   :  { %v1008_v57 = vsel %vm1000_vm9, %v999_v50, %v991_v52  ;;  %v1004_v1 = vsel %vm1000_vm9, %v991_v52, %v999_v50  ;;  %v1017_v29 = vmul.f32 %v10255_v48, %v1001_v31  ;;  %v8484_v11 = vpack.c.bf16 %v1020_v20, %v1018_v22  ;;  %14514 = vst [vmem:[#allocation15_spill] sm:$0xff] %v10311_v63  ;;  %v14517_v50 = vld [vmem:[#allocation16_spill] sm:$0xff]  ;;  %v2668_v22 = vld [vmem:[%s14219_s1 + $0x8] sm:$0xff]  ;;  %v10398_v7 = vld [vmem:[%s14224_s6 + $0x38] ss:$12 sps:$4 sm:$0xff]  }
 0x3a3   :  { %1629 = vrot.lane.b32.xlu1 %v9943_v19, %s9209_s3  ;;  %1619 = vrot.lane.b32.xlu0 %v9934_v53, %s9209_s3  ;;  %v1024_v28 = vmul.f32 %v10247_v58, %v1008_v57  ;;  %v1023_v9 = vmul.f32 %v10255_v48, %v1004_v1  ;;  %v14512_v30 = vpack.c.bf16 %v14510_v14, %v14511_v0  ;;  %v14520_v57 = vld [vmem:[#allocation22_spill] sm:$0xff]  ;;  %v2674_v1 = vld [vmem:[%s14219_s1 + $0x38] sm:$0xff]  ;;  %v2669_v31 = vld [vmem:[%s14219_s1 + $0x10] sm:$0xff] }
 0x3a4   :  { %2399 = vmatprep.subr.bf16.mxu0 %v8464_v2  ;;  %v8483_v60 = vpack.c.bf16 %v1019_v16, %v1017_v29  ;;  %14515 = vst [vmem:[#allocation17_spill] sm:$0xff] %v10316_v25  ;;  %14522 = vst [vmem:[#allocation16_spill] sm:$0xff] %v10353_v35  ;;  %v2667_v20 = vld [vmem:[%s14219_s1] sm:$0xff]  ;;  %v10413_v16 = vld [vmem:[%s14224_s6 + $0x4c] ss:$12 sps:$4 sm:$0xff]  }
 0x3a5   :  { %2400 = vmatpush2.bf16.msra.mxu0 %v8463_v37  ;;  %v10253_v23 = vpop.permute.xlu1 %1529  ;;  %v997_v33 = vpop.permute.xlu0 %996  ;;  %v14516_v37 = vld [vmem:[#allocation14_spill] sm:$0xff]  ;;  %14526 = vst [vmem:[#allocation43_spill] sm:$0xff] %v10398_v7  ;;  %14527 = vst [vmem:[#allocation44_spill] sm:$0xff] %v10413_v16  ;;  %v7906_v14 = vld [vmem:[%s14219_s1 + $0x78] sm:$0xff] }
 0x3a6   :  { %v1003_v40 = vsel %vm1000_vm9, %v989_v55, %v997_v33  ;;  %2401 = vmatprep.subr.bf16.mxu0 %v8460_v41  ;;  %v1007_v24 = vsel %vm1000_vm9, %v997_v33, %v989_v55  ;;  %v14518_v55 = vpack.c.bf16 %v14516_v37, %v14517_v50  ;;  %14519 = vst [vmem:[#allocation14_spill] sm:$0xff] %v10331_v44  ;;  %v2672_v41 = vld [vmem:[%s14219_s1 + $0x28] sm:$0xff]  ;;  %v14521_v33 = vmov 0   ;;  %v7903_v29 = vld [vmem:[%s14219_s1 + $0x60] sm:$0xff]  ;;  %v7901_v0 = vld [vmem:[%s14219_s1 + $0x50] sm:$0xff] }
 0x3a7   :  { %1801 = vrot.lane.b32.xlu1 %v9904_v45, %s9210_s17  ;;  %1627 = vrot.lane.b32.xlu0 %v9964_v27, %s9209_s3  ;;  %v1022_v17 = vmul.f32 %v10247_v58, %v1007_v24  ;;  %v1021_v36 = vmul.f32 %v10255_v48, %v1003_v40  ;;  %v10358_v40 = vld [vmem:[%s14224_s6 + $0x20] ss:$12 sps:$4 sm:$0xff]   ;;  %v10438_v37 = vld [vmem:[%s14224_s6 + $0x50] ss:$12 sps:$4 sm:$0xff]  }
 0x3a8   :  { %14523 = vst [vmem:[#allocation40_spill] sm:$0xff] %v10358_v40  ;;  %v2671_v24 = vld [vmem:[%s14219_s1 + $0x20] sm:$0xff]  ;;  %14529 = vst [vmem:[#allocation46_spill] sm:$0xff] %v10438_v37  ;;  %v7905_v50 = vld [vmem:[%s14219_s1 + $0x70] sm:$0xff] }
 0x3a9   :  { %2402 = vmatpush2.bf16.msra.mxu0 %v8459_v51  ;;  %v10280_v52 = vpop.permute.xlu1 %1537  ;;  %v10282_v47 = vpop.permute.xlu0 %1527  ;;  %v8488_v39 = vpack.c.bf16 %v1024_v28, %v1022_v17  ;;  %v8487_v5 = vpack.c.bf16 %v1023_v9, %v1021_v36  ;;  %v2670_v28 = vld [vmem:[%s14219_s1 + $0x18] sm:$0xff]  ;;  %v10373_v9 = vld [vmem:[%s14224_s6 + $0x34] ss:$12 sps:$4 sm:$0xff]  }
 0x3aa   :  { %2403 = vmatprep.subr.bf16.mxu0 %v8456_v8  ;;  %14524 = vst [vmem:[#allocation41_spill] sm:$0xff] %v10373_v9 }
 0x3ab   :  { %1809 = vrot.lane.b32.xlu1 %v9943_v19, %s9210_s17  ;;  %1799 = vrot.lane.b32.xlu0 %v9934_v53, %s9210_s17 }
 0x3ac   :  { %2460 = vmatprep.subr.bf16.mxu1 %v8488_v39 }
 0x3ad   :  { %2404 = vmatpush2.bf16.msra.mxu0 %v8455_v46  ;;  %2461 = vmatpush1.bf16.msra.mxu1 %v8487_v5  ;;  %v10297_v56 = vpop.permute.xlu1 %1469  ;;  %v10299_v6 = vpop.permute.xlu0 %1535  ;;  %v10393_v5 = vld [vmem:[%s14224_s6 + $0x30] ss:$12 sps:$4 sm:$0xff]  }
 0x3ae   :  { %2405 = vmatprep.subr.bf16.mxu0 %v14512_v30  ;;  %2462 = vmatprep.subr.bf16.mxu1 %v8484_v11  ;;  %14525 = vst [vmem:[#allocation42_spill] sm:$0xff] %v10393_v5 }
 0x3af   :  { %1805 = vrot.lane.b32.xlu1 %v14513_v49, %s9210_s17  ;;  %1807 = vrot.lane.b32.xlu0 %v9964_v27, %s9210_s17 }
 0x3b1   :  { %2406 = vmatpush2.bf16.msra.mxu0 %v14518_v55  ;;  %2463 = vmatpush1.bf16.msra.mxu1 %v8483_v60  ;;  %v10324_v2 = vpop.permute.xlu1 %1477  ;;  %v10326_v38 = vpop.permute.xlu0 %1467  ;;  %v114_v55 = vld [vmem:[%s14226_s8 + $0x30] sm:$0xff] }
 0x3b3   :  { %1803 = vrot.lane.b32.xlu0 %v14520_v57, %s9210_s17  ;;  %2707 = vperm.xlu1 %8797, %v2673_v15   ;;  %v10433_v15 = vld [vmem:[%s14224_s6 + $0x48] ss:$12 sps:$4 sm:$0xff]  }
 0x3b4   :  { %2408 = vmatmul.mubr.bf16.vlgmr.msra.gmra.mxu0 %v10311_v63  ;;  %7791 = vmatmul.mubr.msk.bf16.vlgmr.msra.gmra.mxu1 %vm169_vm0, %v10316_v25  ;;  %14528 = vst [vmem:[#allocation45_spill] sm:$0xff] %v10433_v15  ;;  %v108_v25 = vld [vmem:[%s14226_s8] sm:$0xff]  ;;  %v1544_v63 = vsel %vm696_vm2, %v10253_v23, %v10280_v52 }
 0x3b5   :  { %v10344_v51 = vpop.permute.xlu1 %1409  ;;  %v10346_v10 = vpop.permute.xlu0 %1475  ;;  %2417 = vmatprep.mubr.bf16.mxu0 %v10331_v44  ;;  %2490 = vmatprep.mubr.bf16.mxu1 %v14521_v33 }
 0x3b7   :  { %2712 = vperm.xlu0 %8796, %v2674_v1   ;;  %2702 = vperm.xlu1 %8797, %v2672_v41  }
 0x3b9   :  { %v10366_v17 = vpop.permute.xlu1 %1417  ;;  %v10368_v36 = vpop.permute.xlu0 %1407 }
 0x3bb   :  { %2697 = vperm.xlu0 %8796, %v2671_v24   ;;  %2692 = vperm.xlu1 %8797, %v2670_v28   ;;  %v7904_v24 = vld [vmem:[%s14219_s1 + $0x68] sm:$0xff]  ;;  %v115_v28 = vld [vmem:[%s14226_s8 + $0x38] sm:$0xff] }
 0x3bc   :  { %2418 = vmatmul.mubr.bf16.gmra.mxu0 %v10353_v35  ;;  %7792 = vmatmul.mubr.msk.bf16.gmra.mxu1 %vm169_vm0, %v10358_v40  ;;  %v121_v40 = vld [vmem:[%s14227_s9 + $0x28] sm:$0xff] }
 0x3bd   :  { %v10384_v8 = vpop.permute.xlu1 %1349  ;;  %v10386_v39 = vpop.permute.xlu0 %1415  ;;  %2427 = vmatprep.mubr.bf16.mxu0 %v10373_v9  ;;  %2500 = vmatprep.mubr.bf16.mxu1 %v14521_v33 }
 0x3bf   :  { %2687 = vperm.xlu0 %8796, %v2669_v31   ;;  %2682 = vperm.xlu1 %8797, %v2668_v22  }
 0x3c1   :  { %v10406_v46 = vpop.permute.xlu1 %1357  ;;  %v10408_v11 = vpop.permute.xlu0 %1347 }
 0x3c3   :  { %2677 = vperm.xlu0 %8796, %v2667_v20   ;;  %4424 = vperm.xlu1 %8797, %v7903_v29   ;;  %v14530_v20 = vld [vmem:[#allocation19_spill] sm:$0xff]  ;;  %v7902_v29 = vld [vmem:[%s14219_s1 + $0x58] sm:$0xff] }
 0x3c4   :  { %2428 = vmatmul.mubr.bf16.gmra.mxu0 %v10393_v5  ;;  %7793 = vmatmul.mubr.msk.bf16.gmra.mxu1 %vm169_vm0, %v10398_v7  ;;  %v112_v5 = vld [vmem:[%s14226_s8 + $0x20] sm:$0xff] }
 0x3c5   :  { %v10424_v30 = vpop.permute.xlu1 %1737  ;;  %v10426_v60 = vpop.permute.xlu0 %1355  ;;  %2437 = vmatprep.mubr.bf16.mxu0 %v10413_v16  ;;  %2510 = vmatprep.mubr.bf16.mxu1 %v14521_v33  ;;  %v123_v16 = vld [vmem:[%s14227_s9 + $0x38] sm:$0xff] }
 0x3c7   :  { %4439 = vperm.xlu0 %8796, %v7906_v14   ;;  %4414 = vperm.xlu1 %8797, %v7901_v0   ;;  %v122_v14 = vld [vmem:[%s14227_s9 + $0x30] sm:$0xff] }
 0x3c9   :  { %v10446_v1 = vpop.permute.xlu1 %1745  ;;  %v10448_v41 = vpop.permute.xlu0 %1735 }
 0x3cb   :  { %4434 = vperm.xlu0 %8796, %v7905_v50   ;;  %3149 = vperm.xlu1 %8797, %v114_v55   ;;  %v7900_v55 = vld [vmem:[%s14219_s1 + $0x48] sm:$0xff] }
 0x3cc   :  { %2438 = vmatmul.mubr.bf16.gmra.mxu0 %v10433_v15  ;;  %7794 = vmatmul.mubr.msk.bf16.gmra.mxu1 %vm169_vm0, %v10438_v37  ;;  %v7899_v37 = vld [vmem:[%s14219_s1 + $0x40] sm:$0xff] }
 0x3cd   :  { %v10459_v31 = vpop.permute.xlu1 %1677  ;;  %v10461_v22 = vpop.permute.xlu0 %1743  ;;  %2553 = vmatprep.mubr.bf16.mxu1 %v14530_v20  ;;  %2626 = vmatprep.mubr.bf16.mxu0 %v14521_v33  ;;  %v1543_v33 = vsel %vm696_vm2, %v10282_v47, %v10299_v6 }
 0x3cf   :  { %4429 = vperm.xlu0 %8796, %v7904_v24   ;;  %3154 = vperm.xlu1 %8797, %v115_v28   ;;  %v113_v24 = vld [vmem:[%s14226_s8 + $0x28] sm:$0xff] }
 0x3d1   :  { %v10471_v0 = vpop.permute.xlu1 %1685  ;;  %v10473_v50 = vpop.permute.xlu0 %1675 }
 0x3d3   :  { %4419 = vperm.xlu0 %8796, %v7902_v29   ;;  %3205 = vperm.xlu1 %8797, %v122_v14   ;;  %v120_v29 = vld [vmem:[%s14227_s9 + $0x20] sm:$0xff] }
 0x3d5   :  { %v10481_v28 = vpop.permute.xlu1 %1617  ;;  %v10483_v20 = vpop.permute.xlu0 %1683 }
 0x3d7   :  { %4409 = vperm.xlu0 %8796, %v7900_v55   ;;  %3144 = vperm.xlu1 %8797, %v113_v24   ;;  %v110_v55 = vld [vmem:[%s14226_s8 + $0x10] sm:$0xff] }
 0x3d9   :  { %v10491_v14 = vpop.permute.xlu1 %1625  ;;  %v10493_v15 = vpop.permute.xlu0 %1615 }
 0x3db   :  { %4404 = vperm.xlu0 %8796, %v7899_v37   ;;  %3195 = vperm.xlu1 %8797, %v120_v29   ;;  %v111_v37 = vld [vmem:[%s14226_s8 + $0x18] sm:$0xff] }
 0x3dd   :  { %v10501_v24 = vpop.permute.xlu1 %1797  ;;  %v10503_v7 = vpop.permute.xlu0 %1623 }
 0x3de   :  { %14531 = vst [vmem:[#allocation19_spill] sm:$0xff] %v10501_v24 }
 0x3df   :  { %3210 = vperm.xlu0 %8796, %v123_v16   ;;  %3129 = vperm.xlu1 %8797, %v110_v55   ;;  %v118_v16 = vld [vmem:[%s14227_s9 + $0x10] sm:$0xff] }
 0x3e1   :  { %v1534_v29 = vpop.permute.xlu1 %1533  ;;  %v10511_v9 = vpop.permute.xlu0 %1795 }
 0x3e2   :  { %14532 = vst [vmem:[#allocation47_spill] sm:$0xff] %v10511_v9 }
 0x3e3   :  { %3139 = vperm.xlu0 %8796, %v112_v5   ;;  %3134 = vperm.xlu1 %8797, %v111_v37   ;;  %v119_v37 = vld [vmem:[%s14227_s9 + $0x18] sm:$0xff] }
 0x3e5   :  { %v1542_v55 = vpop.permute.xlu1 %1541  ;;  %v1532_v35 = vpop.permute.xlu0 %1531 }
 0x3e6   :  { %v1550_v44 = vsel %vm696_vm2, %v1542_v55, %v1534_v29  ;;  %v1546_v5 = vsel %vm696_vm2, %v1534_v29, %v1542_v55  ;;  %v1552_v55 = vmul.f32 %v1543_v33, %v9911_v59 }
 0x3e7   :  { %3200 = vperm.xlu0 %8796, %v121_v40   ;;  %3185 = vperm.xlu1 %8797, %v118_v16   ;;  %v1547_v40 = vsel %vm696_vm2, %v10299_v6, %v10282_v47  ;;  %v1557_v49 = vmul.f32 %v1550_v44, %v9899_v43  ;;  %v1558_v53 = vmul.f32 %v1546_v5, %v9911_v59  ;;  %v116_v6 = vld [vmem:[%s14227_s9] sm:$0xff] }
 0x3e8   :  { %v1548_v47 = vsel %vm696_vm2, %v10280_v52, %v10253_v23  ;;  %v1554_v44 = vmul.f32 %v1544_v63, %v9911_v59  ;;  %v1551_v33 = vmul.f32 %v1547_v40, %v9899_v43  ;;  %v1483_v23 = vsel %vm627_vm3, %v10326_v38, %v10346_v10  ;;  %v117_v40 = vld [vmem:[%s14227_s9 + $0x8] sm:$0xff] }
 0x3e9   :  { %v1474_v16 = vpop.permute.xlu1 %1473  ;;  %v1540_v29 = vpop.permute.xlu0 %1539 }
 0x3ea   :  { %v1545_v57 = vsel %vm696_vm2, %v1532_v35, %v1540_v29  ;;  %v1549_v45 = vsel %vm696_vm2, %v1540_v29, %v1532_v35  ;;  %v8446_v52 = vpack.c.bf16 %v1554_v44, %v1552_v55  ;;  %v1492_v55 = vmul.f32 %v1483_v23, %v9959_v61 }
 0x3eb   :  { %v1555_v9 = vmul.f32 %v1549_v45, %v9899_v43  ;;  %v1556_v24 = vmul.f32 %v1545_v57, %v9911_v59  ;;  %3190 = vperm.xlu0 %8796, %v119_v37   ;;  %3119 = vperm.xlu1 %8797, %v108_v25   ;;  %v109_v25 = vld [vmem:[%s14226_s8 + $0x8] sm:$0xff]  ;;  %v1553_v57 = vmul.f32 %v1548_v47, %v9899_v43 }
 0x3ed   :  { %v8449_v35 = vpack.c.bf16 %v1557_v49, %v1555_v9  ;;  %v1482_v5 = vpop.permute.xlu1 %1481  ;;  %v1472_v45 = vpop.permute.xlu0 %1471  ;;  %v8450_v29 = vpack.c.bf16 %v1558_v53, %v1556_v24  ;;  %v8445_v63 = vpack.c.bf16 %v1553_v57, %v1551_v33  ;;  %v1484_v9 = vsel %vm627_vm3, %v10297_v56, %v10324_v2 }
 0x3ee   :  { %v1486_v49 = vsel %vm627_vm3, %v1474_v16, %v1482_v5  ;;  %v1490_v53 = vsel %vm627_vm3, %v1482_v5, %v1474_v16  ;;  %v1487_v16 = vsel %vm627_vm3, %v10346_v10, %v10326_v38  ;;  %v1488_v38 = vsel %vm627_vm3, %v10324_v2, %v10297_v56 }
 0x3ef   :  { %2521 = vmatprep.subr.bf16.mxu1 %v8450_v29  ;;  %3175 = vperm.xlu0 %8796, %v116_v6   ;;  %v1497_v44 = vmul.f32 %v1490_v53, %v9956_v18  ;;  %v1498_v33 = vmul.f32 %v1486_v49, %v9959_v61  ;;  %v1494_v10 = vmul.f32 %v1484_v9, %v9959_v61 }
 0x3f0   :  { %2522 = vmatpush1.bf16.msra.mxu1 %v8449_v35  ;;  %3124 = vperm.xlu1 %8797, %v109_v25   ;;  %v1491_v29 = vmul.f32 %v1487_v16, %v9956_v18  ;;  %v1423_v49 = vsel %vm558_vm4, %v10368_v36, %v10386_v39  ;;  %v1424_v9 = vsel %vm558_vm4, %v10344_v51, %v10366_v17 }
 0x3f1   :  { %v1414_v24 = vpop.permute.xlu1 %1413  ;;  %v1480_v37 = vpop.permute.xlu0 %1479  ;;  %2523 = vmatprep.subr.bf16.mxu1 %v8446_v52  ;;  %v1493_v52 = vmul.f32 %v1488_v38, %v9956_v18  ;;  %v8438_v53 = vpack.c.bf16 %v1494_v10, %v1492_v55  ;;  %v1427_v16 = vsel %vm558_vm4, %v10386_v39, %v10368_v36  ;;  %v1432_v55 = vmul.f32 %v1423_v49, %v10016_v3 }
 0x3f2   :  { %v1485_v47 = vsel %vm627_vm3, %v1472_v45, %v1480_v37  ;;  %v1489_v6 = vsel %vm627_vm3, %v1480_v37, %v1472_v45  ;;  %v1428_v36 = vsel %vm558_vm4, %v10366_v17, %v10344_v51  ;;  %v1434_v39 = vmul.f32 %v1424_v9, %v10016_v3 }
 0x3f3   :  { %v1495_v35 = vmul.f32 %v1489_v6, %v9956_v18  ;;  %v1496_v5 = vmul.f32 %v1485_v47, %v9959_v61  ;;  %v1364_v49 = vsel %vm489_vm5, %v10384_v8, %v10406_v46 }
 0x3f4   :  { %2524 = vmatpush1.bf16.msra.mxu1 %v8445_v63  ;;  %3180 = vperm.xlu1 %8797, %v117_v40   ;;  %v8437_v63 = vpack.c.bf16 %v1493_v52, %v1491_v29 }
 0x3f5   :  { %v8441_v45 = vpack.c.bf16 %v1497_v44, %v1495_v35  ;;  %v1422_v25 = vpop.permute.xlu1 %1421  ;;  %v1412_v57 = vpop.permute.xlu0 %1411  ;;  %v8442_v23 = vpack.c.bf16 %v1498_v33, %v1496_v5  ;;  %v1431_v5 = vmul.f32 %v1427_v16, %v10007_v62 }
 0x3f6   :  { %v1426_v56 = vsel %vm558_vm4, %v1414_v24, %v1422_v25  ;;  %v1430_v2 = vsel %vm558_vm4, %v1422_v25, %v1414_v24  ;;  %v1433_v25 = vmul.f32 %v1428_v36, %v10007_v62 }
 0x3f7   :  { %2525 = vmatprep.subr.bf16.mxu1 %v8442_v23  ;;  %v1437_v6 = vmul.f32 %v1430_v2, %v10007_v62  ;;  %v1438_v44 = vmul.f32 %v1426_v56, %v10016_v3  ;;  %v8430_v23 = vpack.c.bf16 %v1434_v39, %v1432_v55  ;;  %v1367_v2 = vsel %vm489_vm5, %v10426_v60, %v10408_v11 }
 0x3f8   :  { %2526 = vmatpush1.bf16.msra.mxu1 %v8441_v45  ;;  %v8429_v52 = vpack.c.bf16 %v1433_v25, %v1431_v5  ;;  %v1755_v39 = vsel %vm931_vm6, %v10461_v22, %v10448_v41  ;;  %v1751_v25 = vsel %vm931_vm6, %v10448_v41, %v10461_v22  ;;  %v1752_v41 = vsel %vm931_vm6, %v10424_v30, %v10446_v1 }
 0x3f9   :  { %v1354_v37 = vpop.permute.xlu1 %1353  ;;  %v1420_v40 = vpop.permute.xlu0 %1419  ;;  %2527 = vmatprep.subr.bf16.mxu1 %v8438_v53 }
 0x3fa   :  { %v1425_v24 = vsel %vm558_vm4, %v1412_v57, %v1420_v40  ;;  %v1429_v47 = vsel %vm558_vm4, %v1420_v40, %v1412_v57  ;;  %v1363_v57 = vsel %vm489_vm5, %v10408_v11, %v10426_v60  ;;  %v1368_v11 = vsel %vm489_vm5, %v10406_v46, %v10384_v8 }
 0x3fb   :  { %v1435_v33 = vmul.f32 %v1429_v47, %v10007_v62  ;;  %v1436_v35 = vmul.f32 %v1425_v24, %v10016_v3  ;;  %v1374_v60 = vmul.f32 %v1364_v49, %v10064_v34  ;;  %v1371_v47 = vmul.f32 %v1367_v2, %v10055_v32 }
 0x3fc   :  { %2528 = vmatpush1.bf16.msra.mxu1 %v8437_v63  ;;  %v1372_v63 = vmul.f32 %v1363_v57, %v10064_v34  ;;  %v1373_v36 = vmul.f32 %v1368_v11, %v10055_v32  ;;  %v1760_v57 = vmul.f32 %v1755_v39, %v10112_v4  ;;  %v1696_v11 = vsel %vm862_vm7, %v10471_v0, %v10459_v31 }
 0x3fd   :  { %v8433_v38 = vpack.c.bf16 %v1437_v6, %v1435_v33  ;;  %v1362_v10 = vpop.permute.xlu1 %1361  ;;  %v1352_v29 = vpop.permute.xlu0 %1351  ;;  %v8434_v45 = vpack.c.bf16 %v1438_v44, %v1436_v35 }
 0x3fe   :  { %v1366_v51 = vsel %vm489_vm5, %v1354_v37, %v1362_v10  ;;  %v1370_v17 = vsel %vm489_vm5, %v1362_v10, %v1354_v37  ;;  %v8422_v5 = vpack.c.bf16 %v1374_v60, %v1372_v63  ;;  %v1756_v10 = vsel %vm931_vm6, %v10446_v1, %v10424_v30 }
 0x3ff   :  { %2529 = vmatprep.subr.bf16.mxu1 %v8434_v45  ;;  %v1377_v40 = vmul.f32 %v1370_v17, %v10055_v32  ;;  %v1378_v16 = vmul.f32 %v1366_v51, %v10064_v34  ;;  %v1762_v22 = vmul.f32 %v1756_v10, %v10112_v4 }
 0x400   :  { %2530 = vmatpush1.bf16.msra.mxu1 %v8433_v38  ;;  %v8421_v38 = vpack.c.bf16 %v1373_v36, %v1371_v47 }
 0x401   :  { %v1742_v53 = vpop.permute.xlu1 %1741  ;;  %v1360_v56 = vpop.permute.xlu0 %1359  ;;  %2531 = vmatprep.subr.bf16.mxu1 %v8430_v23 }
 0x402   :  { %v1365_v9 = vsel %vm489_vm5, %v1352_v29, %v1360_v56  ;;  %v1369_v37 = vsel %vm489_vm5, %v1360_v56, %v1352_v29  ;;  %v1759_v56 = vmul.f32 %v1751_v25, %v10103_v12 }
 0x403   :  { %v1375_v55 = vmul.f32 %v1369_v37, %v10055_v32  ;;  %v1376_v24 = vmul.f32 %v1365_v9, %v10064_v34 }
 0x404   :  { %2532 = vmatpush1.bf16.msra.mxu1 %v8429_v52 }
 0x405   :  { %v8425_v6 = vpack.c.bf16 %v1377_v40, %v1375_v55  ;;  %v1750_v44 = vpop.permute.xlu1 %1749  ;;  %v1740_v33 = vpop.permute.xlu0 %1739  ;;  %v8426_v35 = vpack.c.bf16 %v1378_v16, %v1376_v24  ;;  %v1761_v40 = vmul.f32 %v1752_v41, %v10103_v12  ;;  %v1695_v16 = vsel %vm862_vm7, %v10483_v20, %v10473_v50 }
 0x406   :  { %v1754_v8 = vsel %vm931_vm6, %v1742_v53, %v1750_v44  ;;  %v1758_v46 = vsel %vm931_vm6, %v1750_v44, %v1742_v53  ;;  %v8478_v55 = vpack.c.bf16 %v1762_v22, %v1760_v57  ;;  %v1700_v44 = vmul.f32 %v1695_v16, %v10160_v54 }
 0x407   :  { %2533 = vmatprep.subr.bf16.mxu1 %v8426_v35  ;;  %v1765_v17 = vmul.f32 %v1754_v8, %v10103_v12  ;;  %v1766_v52 = vmul.f32 %v1758_v46, %v10112_v4  ;;  %v8477_v24 = vpack.c.bf16 %v1761_v40, %v1759_v56  ;;  %v1635_v57 = vsel %vm793_vm8, %v10503_v7, %v10493_v15 }
 0x408   :  { %2534 = vmatpush1.bf16.msra.mxu1 %v8425_v6  ;;  %v1691_v6 = vsel %vm862_vm7, %v10473_v50, %v10483_v20  ;;  %v1692_v50 = vsel %vm862_vm7, %v10459_v31, %v10471_v0  ;;  %v1702_v20 = vmul.f32 %v1696_v11, %v10160_v54  ;;  %v1640_v41 = vmul.f32 %v1635_v57, %v10208_v26  ;;  %v14536_v57 = vld [vmem:[#allocation25_spill] sm:$0xff] }
 0x409   :  { %v1682_v29 = vpop.permute.xlu1 %1681  ;;  %v1748_v45 = vpop.permute.xlu0 %1747  ;;  %2535 = vmatprep.subr.bf16.mxu1 %v8422_v5  ;;  %v1699_v46 = vmul.f32 %v1691_v6, %v10151_v42  ;;  %v1701_v25 = vmul.f32 %v1692_v50, %v10151_v42  ;;  %v14533_v50 = vld [vmem:[#allocation19_spill] sm:$0xff] }
 0x40a   :  { %v1753_v23 = vsel %vm931_vm6, %v1740_v33, %v1748_v45  ;;  %v1757_v51 = vsel %vm931_vm6, %v1748_v45, %v1740_v33 }
 0x40b   :  { %v1763_v49 = vmul.f32 %v1753_v23, %v10103_v12  ;;  %v1764_v53 = vmul.f32 %v1757_v51, %v10112_v4  ;;  %v8470_v23 = vpack.c.bf16 %v1702_v20, %v1700_v44  ;;  %v8469_v51 = vpack.c.bf16 %v1701_v25, %v1699_v46  ;;  %v14535_v25 = vld [vmem:[#allocation27_spill] sm:$0xff] }
 0x40c   :  { %2536 = vmatpush1.bf16.msra.mxu1 %v8421_v38 }
 0x40d   :  { %v8481_v2 = vpack.c.bf16 %v1765_v17, %v1763_v49  ;;  %v1690_v63 = vpop.permute.xlu1 %1689  ;;  %v1680_v9 = vpop.permute.xlu0 %1679  ;;  %v8482_v37 = vpack.c.bf16 %v1766_v52, %v1764_v53  ;;  %v1636_v17 = vsel %vm793_vm8, %v10491_v14, %v10481_v28  ;;  %v1631_v53 = vsel %vm793_vm8, %v10493_v15, %v10503_v7 }
 0x40e   :  { %v1694_v30 = vsel %vm862_vm7, %v1682_v29, %v1690_v63  ;;  %v1698_v1 = vsel %vm862_vm7, %v1690_v63, %v1682_v29  ;;  %v1632_v7 = vsel %vm793_vm8, %v10481_v28, %v10491_v14  ;;  %v1642_v15 = vmul.f32 %v1636_v17, %v10208_v26 }
 0x40f   :  { %2537 = vmatprep.subr.bf16.mxu1 %v8482_v37  ;;  %v1705_v36 = vmul.f32 %v1694_v30, %v10151_v42  ;;  %v1706_v39 = vmul.f32 %v1698_v1, %v10160_v54  ;;  %v1639_v1 = vmul.f32 %v1631_v53, %v10199_v21  ;;  %v1641_v11 = vmul.f32 %v1632_v7, %v10199_v21  ;;  %v14545_v7 = vld [vmem:[#allocation16_spill] sm:$0xff] }
 0x410   :  { %2538 = vmatpush2.bf16.msra.mxu1 %v8481_v2 }
 0x411   :  { %v1622_v60 = vpop.permute.xlu1 %1621  ;;  %v1688_v47 = vpop.permute.xlu0 %1687  ;;  %2539 = vmatprep.subr.bf16.mxu1 %v8478_v55  ;;  %v8461_v6 = vpack.c.bf16 %v1641_v11, %v1639_v1  ;;  %v14551_v1 = vld [vmem:[#allocation45_spill] sm:$0xff] }
 0x412   :  { %v1693_v33 = vsel %vm862_vm7, %v1680_v9, %v1688_v47  ;;  %v1697_v35 = vsel %vm862_vm7, %v1688_v47, %v1680_v9 }
 0x413   :  { %v1703_v5 = vmul.f32 %v1693_v33, %v10151_v42  ;;  %v1704_v8 = vmul.f32 %v1697_v35, %v10160_v54  ;;  %v8458_v35 = vpack.c.bf16 %v9943_v19, %v9964_v27  ;;  %v14534_v27 = vld [vmem:[#allocation47_spill] sm:$0xff] }
 0x414   :  { %2540 = vmatpush2.bf16.msra.mxu1 %v8477_v24  ;;  %v8462_v24 = vpack.c.bf16 %v1642_v15, %v1640_v41  ;;  %v14546_v15 = vld [vmem:[#allocation40_spill] sm:$0xff] }
 0x415   :  { %v8473_v38 = vpack.c.bf16 %v1705_v36, %v1703_v5  ;;  %v1630_v10 = vpop.permute.xlu1 %1629  ;;  %v1620_v29 = vpop.permute.xlu0 %1619  ;;  %v8474_v45 = vpack.c.bf16 %v1706_v39, %v1704_v8 }
 0x416   :  { %v1634_v31 = vsel %vm793_vm8, %v1622_v60, %v1630_v10  ;;  %v1638_v0 = vsel %vm793_vm8, %v1630_v10, %v1622_v60 }
 0x417   :  { %2541 = vmatprep.subr.bf16.mxu1 %v8474_v45  ;;  %v1645_v2 = vmul.f32 %v1634_v31, %v10199_v21  ;;  %v1646_v63 = vmul.f32 %v1638_v0, %v10208_v26  ;;  %v14537_v31 = vld [vmem:[#allocation22_spill] sm:$0xff]  ;;  %v14538_v0 = vld [vmem:[#allocation21_spill] sm:$0xff] }
 0x418   :  { %2542 = vmatpush2.bf16.msra.mxu1 %v8473_v38 }
 0x419   :  { %v1802_v52 = vpop.permute.xlu1 %1801  ;;  %v1628_v49 = vpop.permute.xlu0 %1627  ;;  %2543 = vmatprep.subr.bf16.mxu1 %v8470_v23  ;;  %v8457_v23 = vpack.c.bf16 %v14536_v57, %v14535_v25 }
 0x41a   :  { %v1633_v22 = vsel %vm793_vm8, %v1620_v29, %v1628_v49  ;;  %v1637_v56 = vsel %vm793_vm8, %v1628_v49, %v1620_v29 }
 0x41b   :  { %v1643_v9 = vmul.f32 %v1633_v22, %v10199_v21  ;;  %v1644_v37 = vmul.f32 %v1637_v56, %v10208_v26  ;;  %v14539_v56 = vld [vmem:[#allocation20_spill] sm:$0xff] }
 0x41c   :  { %2544 = vmatpush2.bf16.msra.mxu1 %v8469_v51  ;;  %v8454_v51 = vpack.c.bf16 %v14538_v0, %v14537_v31 }
 0x41d   :  { %v8465_v40 = vpack.c.bf16 %v1645_v2, %v1643_v9  ;;  %v1810_v16 = vpop.permute.xlu1 %1809  ;;  %v1800_v55 = vpop.permute.xlu0 %1799  ;;  %v8466_v30 = vpack.c.bf16 %v1646_v63, %v1644_v37  ;;  %v14540_v2 = vld [vmem:[#allocation18_spill] sm:$0xff]  ;;  %v14541_v9 = vld [vmem:[#allocation15_spill] sm:$0xff]  ;;  %v14542_v37 = vld [vmem:[#allocation17_spill] sm:$0xff] }
 0x41e   :  { %v1814_v60 = vsel %vm1000_vm9, %v1802_v52, %v1810_v16  ;;  %v1818_v47 = vsel %vm1000_vm9, %v1810_v16, %v1802_v52  ;;  %v8453_v63 = vpack.c.bf16 %v14540_v2, %v14539_v56  ;;  %v14548_v16 = vld [vmem:[#allocation42_spill] sm:$0xff] }
 0x41f   :  { %2545 = vmatprep.subr.bf16.mxu1 %v8466_v30  ;;  %v1825_v36 = vmul.f32 %v10255_v48, %v1814_v60  ;;  %v1826_v39 = vmul.f32 %v10247_v58, %v1818_v47  ;;  %v14550_v30 = vld [vmem:[#allocation44_spill] sm:$0xff] }
 0x420   :  { %2546 = vmatpush2.bf16.msra.mxu1 %v8465_v40  ;;  %v14547_v40 = vld [vmem:[#allocation41_spill] sm:$0xff] }
 0x421   :  { %v1806_v28 = vpop.permute.xlu1 %1805  ;;  %v1808_v14 = vpop.permute.xlu0 %1807  ;;  %2547 = vmatprep.subr.bf16.mxu1 %v8462_v24  ;;  %v14552_v24 = vld [vmem:[#allocation46_spill] sm:$0xff] }
 0x422   :  { %v1813_v44 = vsel %vm1000_vm9, %v1800_v55, %v1808_v14  ;;  %v1817_v33 = vsel %vm1000_vm9, %v1808_v14, %v1800_v55  ;;  %v1812_v20 = vsel %vm1000_vm9, %v14533_v50, %v1806_v28  ;;  %v1816_v46 = vsel %vm1000_vm9, %v1806_v28, %v14533_v50  ;;  %v14549_v55 = vld [vmem:[#allocation43_spill] sm:$0xff] }
 0x423   :  { %v1823_v5 = vmul.f32 %v10255_v48, %v1813_v44  ;;  %v1824_v8 = vmul.f32 %v10247_v58, %v1817_v33  ;;  %v1821_v17 = vmul.f32 %v10255_v48, %v1812_v20  ;;  %v1822_v52 = vmul.f32 %v10247_v58, %v1816_v46 }
 0x424   :  { %2548 = vmatpush2.bf16.msra.mxu1 %v8461_v6 }
 0x425   :  { %v8489_v38 = vpack.c.bf16 %v1825_v36, %v1823_v5  ;;  %v1804_v10 = vpop.permute.xlu0 %1803  ;;  %2549 = vmatprep.subr.bf16.mxu1 %v8458_v35  ;;  %v8490_v19 = vpack.c.bf16 %v1826_v39, %v1824_v8 }
 0x426   :  { %v1811_v29 = vsel %vm1000_vm9, %v14534_v27, %v1804_v10  ;;  %v1815_v45 = vsel %vm1000_vm9, %v1804_v10, %v14534_v27 }
 0x427   :  { %v1819_v49 = vmul.f32 %v10255_v48, %v1811_v29  ;;  %v1820_v53 = vmul.f32 %v10247_v58, %v1815_v45  ;;  %2606 = vmatprep.subr.bf16.mxu0 %v8490_v19  ;;  %v14543_v48 = vld [vmem:[#allocation14_spill] sm:$0xff]  ;;  %v14544_v58 = vmov 0  }
 0x428   :  { %2550 = vmatpush2.bf16.msra.mxu1 %v8457_v23  ;;  %2607 = vmatpush1.bf16.msra.mxu0 %v8489_v38 }
 0x429   :  { %v8485_v41 = vpack.c.bf16 %v1821_v17, %v1819_v49  ;;  %2551 = vmatprep.subr.bf16.mxu1 %v8454_v51  ;;  %v8486_v22 = vpack.c.bf16 %v1822_v52, %v1820_v53 }
 0x42b   :  { %2608 = vmatprep.subr.bf16.mxu0 %v8486_v22 }
 0x42c   :  { %2552 = vmatpush2.bf16.msra.mxu1 %v8453_v63  ;;  %2609 = vmatpush1.bf16.msra.mxu0 %v8485_v41 }
 0x42e   :  { %v10814_v60 = vpop.permute.xlu1 %2707 }
 0x42f   :  { %2554 = vmatmul.mubr.bf16.vlgmr.msra.gmra.mxu1 %v14541_v9  ;;  %7795 = vmatmul.mubr.msk.bf16.vlgmr.msra.gmra.mxu0 %vm169_vm0, %v14542_v37 }
 0x430   :  { %2563 = vmatprep.mubr.bf16.mxu1 %v14543_v48  ;;  %2636 = vmatprep.mubr.bf16.mxu0 %v14544_v58 }
 0x432   :  { %v10812_v11 = vpop.permute.xlu0 %2712  ;;  %v10818_v28 = vpop.permute.xlu1 %2702 }
 0x436   :  { %v10816_v47 = vpop.permute.xlu0 %2697  ;;  %v2693_v6 = vpop.permute.xlu1 %2692 }
 0x437   :  { %2564 = vmatmul.mubr.bf16.gmra.mxu1 %v14545_v7  ;;  %7796 = vmatmul.mubr.msk.bf16.gmra.mxu0 %vm169_vm0, %v14546_v15 }
 0x438   :  { %2573 = vmatprep.mubr.bf16.mxu1 %v14547_v40  ;;  %2646 = vmatprep.mubr.bf16.mxu0 %v14544_v58 }
 0x43a   :  { %v2688_v14 = vpop.permute.xlu0 %2687  ;;  %v2683_v46 = vpop.permute.xlu1 %2682 }
 0x43e   :  { %v2678_v5 = vpop.permute.xlu0 %2677 }
 0x43f   :  { %2574 = vmatmul.mubr.bf16.gmra.mxu1 %v14548_v16  ;;  %7797 = vmatmul.mubr.msk.bf16.gmra.mxu0 %vm169_vm0, %v14549_v55 }
 0x440   :  { %2583 = vmatprep.mubr.bf16.mxu1 %v14550_v30  ;;  %2656 = vmatprep.mubr.bf16.mxu0 %v14544_v58 }
 0x447   :  { %2584 = vmatmul.mubr.bf16.gmra.mxu1 %v14551_v1  ;;  %7798 = vmatmul.mubr.msk.bf16.gmra.mxu0 %vm169_vm0, %v14552_v24 }
 0x474   :  { %v2409_v44 = vpop.f32.mrf.mxu0  ;;  %v2482_v33 = vpop.f32.mrf.mxu1 }
 0x475   :  { %v2483_v35 = vadd.f32 %v2482_v33, %v2409_v44 }
 0x476   :  { %v2411_v36 = vpop.f32.mrf.mxu0  ;;  %v2484_v39 = vpop.f32.mrf.mxu1 }
 0x477   :  { %v2485_v8 = vadd.f32 %v2484_v39, %v2411_v36  ;;  %v10820_v38 = vadd.f32 %v2678_v5, %v2483_v35 }
 0x478   :  { %v2413_v50 = vpop.f32.mrf.mxu0  ;;  %v2486_v20 = vpop.f32.mrf.mxu1 }
 0x479   :  { %v10822_v10 = vadd.f32 %v2678_v5, %v2485_v8  ;;  %v2487_v19 = vadd.f32 %v2486_v20, %v2413_v50  ;;  %v2755_v17 = vmul.f32 %v10820_v38, %v10820_v38 }
 0x47a   :  { %v2415_v27 = vpop.f32.mrf.mxu0  ;;  %v2488_v29 = vpop.f32.mrf.mxu1 }
 0x47b   :  { %v10824_v45 = vadd.f32 %v2683_v46, %v2487_v19  ;;  %v2489_v25 = vadd.f32 %v2488_v29, %v2415_v27  ;;  %v2731_v57 = vadd.f32 %v10822_v10, %v10820_v38  ;;  %v2756_v23 = vmul.f32 %v10822_v10, %v10822_v10 }
 0x47c   :  { %v2419_v31 = vpop.f32.mrf.mxu0  ;;  %v2492_v0 = vpop.f32.mrf.mxu1 }
 0x47d   :  { %v10830_v51 = vadd.f32 %v2683_v46, %v2489_v25  ;;  %2732 = vadd.xlane.f32.xlu1 %v2731_v57  ;;  %v2771_v41 = vadd.f32 %v2756_v23, %v2755_v17  ;;  %v2757_v22 = vmul.f32 %v10824_v45, %v10824_v45  ;;  %v2493_v9 = vadd.f32 %v2492_v0, %v2419_v31 }
 0x47e   :  { %v2421_v52 = vpop.f32.mrf.mxu0  ;;  %v2494_v49 = vpop.f32.mrf.mxu1 }
 0x47f   :  { %v2495_v53 = vadd.f32 %v2494_v49, %v2421_v52  ;;  %v2758_v56 = vmul.f32 %v10830_v51, %v10830_v51  ;;  %v2734_v55 = vadd.f32 %v10830_v51, %v10824_v45  ;;  %v10842_v24 = vadd.f32 %v2688_v14, %v2493_v9 }
 0x480   :  { %v2423_v2 = vpop.f32.mrf.mxu0  ;;  %v2496_v63 = vpop.f32.mrf.mxu1 }
 0x481   :  { %v2497_v37 = vadd.f32 %v2496_v63, %v2423_v2  ;;  %2772 = vadd.xlane.f32.xlu1 %v2771_v41  ;;  %v2774_v48 = vadd.f32 %v2758_v56, %v2757_v22  ;;  %v10838_v40 = vadd.f32 %v2688_v14, %v2495_v53 }
 0x482   :  { %v2425_v7 = vpop.f32.mrf.mxu0  ;;  %v2498_v15 = vpop.f32.mrf.mxu1 }
 0x483   :  { %v2499_v16 = vadd.f32 %v2498_v15, %v2425_v7  ;;  %2775 = vadd.xlane.f32.xlu0 %v2774_v48  ;;  %v10844_v44 = vadd.f32 %v2693_v6, %v2497_v37  ;;  %v2737_v39 = vadd.f32 %v10838_v40, %v10842_v24  ;;  %v2760_v8 = vmul.f32 %v10838_v40, %v10838_v40 }
 0x484   :  { %v2429_v30 = vpop.f32.mrf.mxu0  ;;  %v2502_v1 = vpop.f32.mrf.mxu1 }
 0x485   :  { %v10846_v33 = vadd.f32 %v2693_v6, %v2499_v16  ;;  %2735 = vadd.xlane.f32.xlu1 %v2734_v55  ;;  %v2759_v6 = vmul.f32 %v10842_v24, %v10842_v24  ;;  %v2503_v0 = vadd.f32 %v2502_v1, %v2429_v30  ;;  %v2761_v49 = vmul.f32 %v10844_v44, %v10844_v44 }
 0x486   :  { %v2431_v35 = vpop.f32.mrf.mxu0  ;;  %v2504_v36 = vpop.f32.mrf.mxu1 }
 0x487   :  { %v2740_v5 = vadd.f32 %v10846_v33, %v10844_v44  ;;  %v2505_v27 = vadd.f32 %v2504_v36, %v2431_v35  ;;  %v2777_v25 = vadd.f32 %v2760_v8, %v2759_v6  ;;  %v2762_v57 = vmul.f32 %v10846_v33, %v10846_v33 }
 0x488   :  { %v2433_v50 = vpop.f32.mrf.mxu0  ;;  %v2506_v20 = vpop.f32.mrf.mxu1  ;;  %v10872_v37 = vadd.f32 %v10816_v47, %v2503_v0 }
 0x489   :  { %v2507_v14 = vadd.f32 %v2506_v20, %v2433_v50  ;;  %2738 = vadd.xlane.f32.xlu1 %v2737_v39  ;;  %2741 = vadd.xlane.f32.xlu0 %v2740_v5  ;;  %v10867_v22 = vadd.f32 %v10816_v47, %v2505_v27  ;;  %v2780_v56 = vadd.f32 %v2762_v57, %v2761_v49  ;;  %v10908_v57 = vpop.permute.xlu1 %4424 }
 0x48a   :  { %v2435_v46 = vpop.f32.mrf.mxu0  ;;  %v2508_v19 = vpop.f32.mrf.mxu1  ;;  %v2763_v47 = vmul.f32 %v10872_v37, %v10872_v37 }
 0x48b   :  { %v2509_v29 = vadd.f32 %v2508_v19, %v2435_v46  ;;  %v10859_v17 = vadd.f32 %v10818_v28, %v2507_v14  ;;  %v2743_v16 = vadd.f32 %v10867_v22, %v10872_v37  ;;  %v2764_v55 = vmul.f32 %v10867_v22, %v10867_v22 }
 0x48c   :  { %v2439_v23 = vpop.f32.mrf.mxu0  ;;  %v2512_v31 = vpop.f32.mrf.mxu1 }
 0x48d   :  { %v10862_v52 = vadd.f32 %v10818_v28, %v2509_v29  ;;  %2778 = vadd.xlane.f32.xlu1 %v2777_v25  ;;  %v2783_v36 = vadd.f32 %v2764_v55, %v2763_v47  ;;  %v2513_v8 = vadd.f32 %v2512_v31, %v2439_v23  ;;  %v2765_v50 = vmul.f32 %v10859_v17, %v10859_v17  ;;  %v4415_v23 = vpop.permute.xlu1 %4414  ;;  %v10910_v31 = vld [vmem:[#allocation9] sm:$0xff] }
 0x48e   :  { %v2441_v53 = vpop.f32.mrf.mxu0  ;;  %v2514_v41 = vpop.f32.mrf.mxu1  ;;  %8735 = vmatprep.mubr.msk.f32.mxu1 %vm2803_vm10, %v10910_v31 }
 0x48f   :  { %v2746_v2 = vadd.f32 %v10862_v52, %v10859_v17  ;;  %v2515_v35 = vadd.f32 %v2514_v41, %v2441_v53  ;;  %v2766_v5 = vmul.f32 %v10862_v52, %v10862_v52  ;;  %v10896_v14 = vadd.f32 %v10814_v60, %v2513_v8  ;;  %v10918_v53 = vpop.permute.xlu0 %4439 }
 0x490   :  { %v2443_v63 = vpop.f32.mrf.mxu0  ;;  %v2516_v9 = vpop.f32.mrf.mxu1 }
 0x491   :  { %v2517_v28 = vadd.f32 %v2516_v9, %v2443_v63  ;;  %2781 = vadd.xlane.f32.xlu1 %v2780_v56  ;;  %2747 = vadd.xlane.f32.xlu0 %v2746_v2  ;;  %v2786_v20 = vadd.f32 %v2766_v5, %v2765_v50  ;;  %v2767_v19 = vmul.f32 %v10896_v14, %v10896_v14  ;;  %v10914_v0 = vpop.permute.xlu1 %3149 }
 0x492   :  { %v2445_v48 = vpop.f32.mrf.mxu0  ;;  %v2518_v7 = vpop.f32.mrf.mxu1 }
 0x493   :  { %v2519_v15 = vadd.f32 %v2518_v7, %v2445_v48  ;;  %v10879_v30 = vadd.f32 %v10812_v11, %v2517_v28  ;;  %v10922_v56 = vpop.permute.xlu0 %4434 }
 0x495   :  { %v10882_v1 = vadd.f32 %v10812_v11, %v2519_v15  ;;  %2744 = vadd.xlane.f32.xlu1 %v2743_v16  ;;  %v10893_v11 = vadd.f32 %v10814_v60, %v2515_v35  ;;  %v2769_v60 = vmul.f32 %v10879_v30, %v10879_v30  ;;  %v10916_v49 = vpop.permute.xlu1 %3154 }
 0x497   :  { %v2752_v39 = vadd.f32 %v10882_v1, %v10879_v30  ;;  %v2749_v6 = vadd.f32 %v10893_v11, %v10896_v14  ;;  %v2768_v46 = vmul.f32 %v10893_v11, %v10893_v11  ;;  %v2770_v29 = vmul.f32 %v10882_v1, %v10882_v1  ;;  %v10926_v63 = vpop.permute.xlu0 %4429 }
 0x499   :  { %2784 = vadd.xlane.f32.xlu1 %v2783_v36  ;;  %2753 = vadd.xlane.f32.xlu0 %v2752_v39  ;;  %v2789_v27 = vadd.f32 %v2768_v46, %v2767_v19  ;;  %v2792_v25 = vadd.f32 %v2770_v29, %v2769_v60  ;;  %v10920_v41 = vpop.permute.xlu1 %3205 }
 0x49b   :  { %v4420_v28 = vpop.permute.xlu0 %4419 }
 0x49d   :  { %2787 = vadd.xlane.f32.xlu1 %v2786_v20  ;;  %v10924_v2 = vpop.permute.xlu1 %3144 }
 0x49f   :  { %v4410_v7 = vpop.permute.xlu0 %4409 }
 0x4a1   :  { %2750 = vadd.xlane.f32.xlu1 %v2749_v6  ;;  %v10928_v9 = vpop.permute.xlu1 %3195 }
 0x4a3   :  { %v4405_v47 = vpop.permute.xlu0 %4404 }
 0x4a5   :  { %2790 = vadd.xlane.f32.xlu1 %v2789_v27  ;;  %v10930_v48 = vpop.permute.xlu1 %3129 }
 0x4a9   :  { %2793 = vadd.xlane.f32.xlu1 %v2792_v25  ;;  %v10932_v15 = vpop.permute.xlu1 %3134 }
 0x4ad   :  { %v10934_v35 = vpop.permute.xlu1 %3185 }
 0x4b1   :  { %v10942_v25 = vpop.permute.xlu1 %3119 }
 0x4ef   :  { %v2555_v16 = vpop.f32.mrf.mxu1  ;;  %v2628_v55 = vpop.f32.mrf.mxu0 }
 0x4f0   :  { %v2629_v36 = vadd.f32 %v2628_v55, %v2555_v16 }
 0x4f1   :  { %v2557_v39 = vpop.f32.mrf.mxu1  ;;  %v2630_v5 = vpop.f32.mrf.mxu0 }
 0x4f2   :  { %v10936_v8 = vadd.f32 %v4405_v47, %v2629_v36  ;;  %v2631_v50 = vadd.f32 %v2630_v5, %v2557_v39 }
 0x4f3   :  { %v2559_v20 = vpop.f32.mrf.mxu1  ;;  %v2632_v6 = vpop.f32.mrf.mxu0 }
 0x4f4   :  { %v10938_v46 = vadd.f32 %v4405_v47, %v2631_v50  ;;  %v2633_v19 = vadd.f32 %v2632_v6, %v2559_v20  ;;  %v4482_v60 = vmul.f32 %v10936_v8, %v10936_v8 }
 0x4f5   :  { %v2561_v27 = vpop.f32.mrf.mxu1  ;;  %v2634_v29 = vpop.f32.mrf.mxu0 }
 0x4f6   :  { %14553 = vst [vmem:[#allocation19_spill] sm:$0xff] %v10938_v46  ;;  %v10944_v42 = vadd.f32 %v4410_v7, %v2633_v19  ;;  %v2635_v16 = vadd.f32 %v2634_v29, %v2561_v27  ;;  %v4458_v55 = vadd.f32 %v10938_v46, %v10936_v8  ;;  %v4483_v36 = vmul.f32 %v10938_v46, %v10938_v46 }
 0x4f7   :  { %v2565_v39 = vpop.f32.mrf.mxu1  ;;  %v2638_v47 = vpop.f32.mrf.mxu0 }
 0x4f8   :  { %14554 = vst [vmem:[#allocation47_spill] sm:$0xff] %v10944_v42  ;;  %v10950_v5 = vadd.f32 %v4410_v7, %v2635_v16  ;;  %v2639_v50 = vadd.f32 %v2638_v47, %v2565_v39  ;;  %4459 = vadd.xlane.f32.xlu1 %v4458_v55  ;;  %v4498_v20 = vadd.f32 %v4483_v36, %v4482_v60  ;;  %v10960_v39 = vpop.permute.xlu1 %3124 }
 0x4f9   :  { %v2567_v6 = vpop.f32.mrf.mxu1  ;;  %v2640_v54 = vpop.f32.mrf.mxu0  ;;  %v4484_v19 = vmul.f32 %v10944_v42, %v10944_v42 }
 0x4fa   :  { %14555 = vst [vmem:[#allocation27_spill] sm:$0xff] %v10950_v5  ;;  %v10954_v18 = vadd.f32 %v4415_v23, %v2639_v50  ;;  %v2641_v27 = vadd.f32 %v2640_v54, %v2567_v6  ;;  %4499 = vadd.xlane.f32.xlu0 %v4498_v20  ;;  %v4461_v29 = vadd.f32 %v10950_v5, %v10944_v42 }
 0x4fb   :  { %v4485_v61 = vmul.f32 %v10950_v5, %v10950_v5  ;;  %v2569_v7 = vpop.f32.mrf.mxu1  ;;  %v2642_v16 = vpop.f32.mrf.mxu0 }
 0x4fc   :  { %14556 = vst [vmem:[#allocation25_spill] sm:$0xff] %v10954_v18  ;;  %v10962_v60 = vadd.f32 %v4415_v23, %v2641_v27  ;;  %v2643_v55 = vadd.f32 %v2642_v16, %v2569_v7  ;;  %4462 = vadd.xlane.f32.xlu1 %v4461_v29  ;;  %v4486_v54 = vmul.f32 %v10954_v18, %v10954_v18 }
 0x4fd   :  { %v4501_v36 = vadd.f32 %v4485_v61, %v4484_v19  ;;  %v2571_v47 = vpop.f32.mrf.mxu1  ;;  %v2644_v50 = vpop.f32.mrf.mxu0 }
 0x4fe   :  { %14557 = vst [vmem:[#allocation22_spill] sm:$0xff] %v10962_v60  ;;  %v10966_v20 = vadd.f32 %v4420_v28, %v2643_v55  ;;  %v2645_v6 = vadd.f32 %v2644_v50, %v2571_v47  ;;  %v4464_v4 = vadd.f32 %v10962_v60, %v10954_v18  ;;  %v4487_v12 = vmul.f32 %v10962_v60, %v10962_v60  ;;  %v10976_v47 = vpop.permute.xlu1 %3180 }
 0x4ff   :  { %4502 = vadd.xlane.f32.xlu0 %v4501_v36  ;;  %v2575_v23 = vpop.f32.mrf.mxu1  ;;  %v2648_v27 = vpop.f32.mrf.mxu0 }
 0x500   :  { %14558 = vst [vmem:[#allocation21_spill] sm:$0xff] %v10966_v20  ;;  %v10972_v7 = vadd.f32 %v4420_v28, %v2645_v6  ;;  %v2649_v61 = vadd.f32 %v2648_v27, %v2575_v23  ;;  %4465 = vadd.xlane.f32.xlu1 %v4464_v4  ;;  %v4504_v19 = vadd.f32 %v4487_v12, %v4486_v54 }
 0x501   :  { %v2577_v29 = vpop.f32.mrf.mxu1  ;;  %v2650_v16 = vpop.f32.mrf.mxu0  ;;  %v4488_v55 = vmul.f32 %v10966_v20, %v10966_v20 }
 0x502   :  { %14559 = vst [vmem:[#allocation20_spill] sm:$0xff] %v10972_v7  ;;  %v10979_v36 = vadd.f32 %v10908_v57, %v2649_v61  ;;  %v2651_v50 = vadd.f32 %v2650_v16, %v2577_v29  ;;  %v4467_v59 = vadd.f32 %v10972_v7, %v10966_v20  ;;  %v4489_v28 = vmul.f32 %v10972_v7, %v10972_v7 }
 0x503   :  { %4505 = vadd.xlane.f32.xlu0 %v4504_v19  ;;  %v2579_v4 = vpop.f32.mrf.mxu1  ;;  %v2652_v12 = vpop.f32.mrf.mxu0 }
 0x504   :  { %14560 = vst [vmem:[#allocation18_spill] sm:$0xff] %v10979_v36  ;;  %v10986_v54 = vadd.f32 %v10908_v57, %v2651_v50  ;;  %v2653_v6 = vadd.f32 %v2652_v12, %v2579_v4  ;;  %4468 = vadd.xlane.f32.xlu1 %v4467_v59  ;;  %v4507_v23 = vadd.f32 %v4489_v28, %v4488_v55  ;;  %v11002_v12 = vpop.permute.xlu0 %3210 }
 0x505   :  { %v2581_v27 = vpop.f32.mrf.mxu1  ;;  %v2654_v43 = vpop.f32.mrf.mxu0  ;;  %v4490_v16 = vmul.f32 %v10979_v36, %v10979_v36 }
 0x506   :  { %14561 = vst [vmem:[#allocation15_spill] sm:$0xff] %v10986_v54  ;;  %v10988_v61 = vpop.xlane.xlu1 %2732  ;;  %v2655_v29 = vadd.f32 %v2654_v43, %v2581_v27  ;;  %v4470_v19 = vadd.f32 %v10986_v54, %v10979_v36  ;;  %v4491_v34 = vmul.f32 %v10986_v54, %v10986_v54  ;;  %v10997_v59 = vadd.f32 %v10926_v63, %v2653_v6 }
 0x507   :  { %4508 = vadd.xlane.f32.xlu0 %v4507_v23  ;;  %v2585_v57 = vpop.f32.mrf.mxu1  ;;  %v2658_v50 = vpop.f32.mrf.mxu0 }
 0x508   :  { %14562 = vst [vmem:[#allocation17_spill] sm:$0xff] %v10997_v59  ;;  %v11000_v55 = vadd.f32 %v10926_v63, %v2655_v29  ;;  %4471 = vadd.xlane.f32.xlu1 %v4470_v19  ;;  %v4510_v43 = vadd.f32 %v4491_v34, %v4490_v16  ;;  %v2659_v63 = vadd.f32 %v2658_v50, %v2585_v57 }
 0x509   :  { %v2587_v28 = vpop.f32.mrf.mxu1  ;;  %v2660_v4 = vpop.f32.mrf.mxu0  ;;  %v4492_v34 = vmul.f32 %v10997_v59, %v10997_v59 }
 0x50a   :  { %14563 = vst [vmem:[#allocation14_spill] sm:$0xff] %v11000_v55  ;;  %v11004_v23 = vpop.xlane.xlu1 %2772  ;;  %v2661_v27 = vadd.f32 %v2660_v4, %v2587_v28  ;;  %v4473_v32 = vadd.f32 %v11000_v55, %v10997_v59  ;;  %v4493_v6 = vmul.f32 %v11000_v55, %v11000_v55  ;;  %v11015_v4 = vpop.permute.xlu0 %3139  ;;  %v11018_v3 = vadd.f32 %v10922_v56, %v2659_v63 }
 0x50b   :  { %4511 = vadd.xlane.f32.xlu0 %v4510_v43  ;;  %v2589_v26 = vpop.f32.mrf.mxu1  ;;  %v2662_v21 = vpop.f32.mrf.mxu0 }
 0x50c   :  { %4474 = vadd.xlane.f32.xlu1 %v4473_v32  ;;  %v11013_v29 = vadd.f32 %v10922_v56, %v2661_v27  ;;  %v4513_v16 = vadd.f32 %v4493_v6, %v4492_v34  ;;  %14565 = vst [vmem:[#allocation40_spill] sm:$0xff] %v11018_v3  ;;  %v2663_v50 = vadd.f32 %v2662_v21, %v2589_v26 }
 0x50d   :  { %v2591_v28 = vpop.f32.mrf.mxu1  ;;  %v2664_v43 = vpop.f32.mrf.mxu0  ;;  %v4494_v27 = vmul.f32 %v11018_v3, %v11018_v3 }
 0x50e   :  { %14564 = vst [vmem:[#allocation16_spill] sm:$0xff] %v11013_v29  ;;  %v2736_v19 = vpop.xlane.xlu1 %2735  ;;  %v2665_v62 = vadd.f32 %v2664_v43, %v2591_v28  ;;  %v4476_v32 = vadd.f32 %v11013_v29, %v11018_v3  ;;  %v4495_v57 = vmul.f32 %v11013_v29, %v11013_v29  ;;  %v11026_v6 = vpop.permute.xlu0 %3200 }
 0x510   :  { %4514 = vadd.xlane.f32.xlu1 %v4513_v16  ;;  %v11029_v34 = vadd.f32 %v10918_v53, %v2665_v62  ;;  %v4516_v63 = vadd.f32 %v4495_v57, %v4494_v27  ;;  %v11032_v16 = vadd.f32 %v10918_v53, %v2663_v50 }
 0x512   :  { %v2739_v13 = vpop.xlane.xlu1 %2738  ;;  %14566 = vst [vmem:[#allocation41_spill] sm:$0xff] %v11029_v34  ;;  %14567 = vst [vmem:[#allocation42_spill] sm:$0xff] %v11032_v16  ;;  %v4479_v43 = vadd.f32 %v11029_v34, %v11032_v16  ;;  %v4497_v21 = vmul.f32 %v11029_v34, %v11029_v34  ;;  %v11038_v26 = vpop.permute.xlu0 %3190  ;;  %v4496_v62 = vmul.f32 %v11032_v16, %v11032_v16 }
 0x514   :  { %4477 = vadd.xlane.f32.xlu1 %v4476_v32  ;;  %v4519_v29 = vadd.f32 %v4497_v21, %v4496_v62 }
 0x516   :  { %v2779_v56 = vpop.xlane.xlu1 %2778  ;;  %v11042_v57 = vpop.permute.xlu0 %3175 }
 0x518   :  { %4517 = vadd.xlane.f32.xlu1 %v4516_v63 }
 0x51a   :  { %v2782_v28 = vpop.xlane.xlu1 %2781  ;;  %v2776_v50 = vpop.xlane.xlu0 %2775 }
 0x51c   :  { %4480 = vadd.xlane.f32.xlu1 %v4479_v43 }
 0x51e   :  { %v2745_v32 = vpop.xlane.xlu1 %2744  ;;  %v2742_v63 = vpop.xlane.xlu0 %2741 }
 0x51f   :  { %v2798_v62 = vsel %vm164_vm1, %v2742_v63, %v2782_v28 }
 0x520   :  { %4520 = vadd.xlane.f32.xlu1 %v4519_v29 }
 0x522   :  { %v2785_v53 = vpop.xlane.xlu1 %2784  ;;  %v2748_v54 = vpop.xlane.xlu0 %2747 }
 0x523   :  { %v2799_v21 = vsel %vm164_vm1, %v2745_v32, %v2785_v53 }
 0x526   :  { %v2788_v27 = vpop.xlane.xlu1 %2787  ;;  %v2754_v55 = vpop.xlane.xlu0 %2753 }
 0x527   :  { %v2800_v29 = vsel %vm164_vm1, %v2748_v54, %v2788_v27  ;;  %v101_v54 = vld [vmem:[#allocation9 + $0x8] sm:$0xff] }
 0x52a   :  { %v2751_v3 = vpop.xlane.xlu1 %2750 }
 0x52e   :  { %v2791_v36 = vpop.xlane.xlu1 %2790 }
 0x52f   :  { %v2801_v43 = vsel %vm164_vm1, %v2751_v3, %v2791_v36  ;;  %v2796_v3 = vsel %vm164_vm1, %v2736_v19, %v2776_v50  ;;  %v2795_v36 = vsel %vm164_vm1, %v10988_v61, %v11004_v23  ;;  %v105_v19 = vld [vmem:[#allocation9 + $0x28] sm:$0xff]  ;;  %v107_v61 = vld [vmem:[#allocation9 + $0x38] sm:$0xff] }
 0x532   :  { %v2794_v34 = vpop.xlane.xlu1 %2793 }
 0x533   :  { %v2802_v59 = vsel %vm164_vm1, %v2754_v55, %v2794_v34  ;;  %v2797_v55 = vsel %vm164_vm1, %v2739_v13, %v2779_v56  ;;  %v103_v34 = vld [vmem:[#allocation9 + $0x18] sm:$0xff]  ;;  %v104_v13 = vld [vmem:[#allocation9 + $0x20] sm:$0xff]  ;;  %v106_v56 = vld [vmem:[#allocation9 + $0x30] sm:$0xff] }
 0x534   :  { %8719 = vmatprep.subr.mxu1 %v2802_v59 }
 0x535   :  { %8720 = vmatpush3.msra.mxu1 %v2802_v59  ;;  %v102_v59 = vld [vmem:[#allocation9 + $0x10] sm:$0xff] }
 0x536   :  { %8721 = vmatprep.subr.mxu1 %v2801_v43 }
 0x537   :  { %8722 = vmatpush3.msra.mxu1 %v2801_v43 }
 0x538   :  { %8723 = vmatprep.subr.mxu1 %v2800_v29 }
 0x539   :  { %8724 = vmatpush3.msra.mxu1 %v2800_v29 }
 0x53a   :  { %8725 = vmatprep.subr.mxu1 %v2799_v21 }
 0x53b   :  { %8726 = vmatpush3.msra.mxu1 %v2799_v21 }
 0x53c   :  { %8727 = vmatprep.subr.mxu1 %v2798_v62 }
 0x53d   :  { %8728 = vmatpush3.msra.mxu1 %v2798_v62 }
 0x53e   :  { %8729 = vmatprep.subr.mxu1 %v2797_v55 }
 0x53f   :  { %8730 = vmatpush3.msra.mxu1 %v2797_v55 }
 0x540   :  { %8731 = vmatprep.subr.mxu1 %v2796_v3 }
 0x541   :  { %8732 = vmatpush3.msra.mxu1 %v2796_v3 }
 0x542   :  { %8733 = vmatprep.subr.mxu1 %v2795_v36 }
 0x543   :  { %8734 = vmatpush3.msra.mxu1 %v2795_v36 }
 0x544   :  { %8736 = vmatmul.mubr.msk.f32.vlgmr.msra.gmra.mxu1 %vm2803_vm10, %v101_v54 }
 0x545   :  { %8738 = vmatprep.mubr.msk.f32.mxu1 %vm2803_vm10, %v102_v59 }
 0x548   :  { %8739 = vmatmul.mubr.msk.f32.gmra.mxu1 %vm2803_vm10, %v103_v34 }
 0x549   :  { %8741 = vmatprep.mubr.msk.f32.mxu1 %vm2803_vm10, %v104_v13 }
 0x54c   :  { %8742 = vmatmul.mubr.msk.f32.gmra.mxu1 %vm2803_vm10, %v105_v19 }
 0x54d   :  { %8744 = vmatprep.mubr.msk.f32.mxu1 %vm2803_vm10, %v106_v56 }
 0x550   :  { %8745 = vmatmul.mubr.msk.f32.gmra.mxu1 %vm2803_vm10, %v107_v61 }
 0x551   :  { %8763 = vmatprep.mubr.msk.f32.mxu1 %vm2803_vm10, %v10910_v31 }
 0x581   :  { %v4460_v23 = vpop.xlane.xlu1 %4459 }
 0x583   :  { %v4500_v27 = vpop.xlane.xlu0 %4499 }
 0x585   :  { %v4463_v28 = vpop.xlane.xlu1 %4462 }
 0x588   :  { %v4503_v29 = vpop.xlane.xlu0 %4502 }
 0x589   :  { %v4466_v32 = vpop.xlane.xlu1 %4465 }
 0x58c   :  { %v4506_v62 = vpop.xlane.xlu0 %4505 }
 0x58d   :  { %v4469_v53 = vpop.xlane.xlu1 %4468 }
 0x590   :  { %v4509_v36 = vpop.xlane.xlu0 %4508 }
 0x591   :  { %v4472_v50 = vpop.xlane.xlu1 %4471  ;;  %v4525_v5 = vsel %vm164_vm1, %v4469_v53, %v4509_v36 }
 0x594   :  { %v4512_v20 = vpop.xlane.xlu0 %4511 }
 0x595   :  { %v4475_v63 = vpop.xlane.xlu1 %4474  ;;  %v4526_v18 = vsel %vm164_vm1, %v4472_v50, %v4512_v20 }
 0x599   :  { %v4515_v43 = vpop.xlane.xlu1 %4514 }
 0x59a   :  { %v4527_v60 = vsel %vm164_vm1, %v4475_v63, %v4515_v43  ;;  %v4522_v63 = vsel %vm164_vm1, %v4460_v23, %v4500_v27 }
 0x59d   :  { %v4478_v21 = vpop.xlane.xlu1 %4477 }
 0x5a1   :  { %v4518_v55 = vpop.xlane.xlu1 %4517 }
 0x5a2   :  { %v4528_v31 = vsel %vm164_vm1, %v4478_v21, %v4518_v55 }
 0x5a5   :  { %v4481_v3 = vpop.xlane.xlu1 %4480 }
 0x5a9   :  { %v4521_v16 = vpop.xlane.xlu1 %4520 }
 0x5aa   :  { %v4529_v7 = vsel %vm164_vm1, %v4481_v3, %v4521_v16  ;;  %v4524_v16 = vsel %vm164_vm1, %v4466_v32, %v4506_v62 }
 0x5ab   :  { %8747 = vmatprep.subr.mxu1 %v4529_v7 }
 0x5ac   :  { %8748 = vmatpush3.msra.mxu1 %v4529_v7  ;;  %v4523_v7 = vsel %vm164_vm1, %v4463_v28, %v4503_v29 }
 0x5ad   :  { %8749 = vmatprep.subr.mxu1 %v4528_v31 }
 0x5ae   :  { %8750 = vmatpush3.msra.mxu1 %v4528_v31 }
 0x5af   :  { %8751 = vmatprep.subr.mxu1 %v4527_v60 }
 0x5b0   :  { %8752 = vmatpush3.msra.mxu1 %v4527_v60 }
 0x5b1   :  { %8753 = vmatprep.subr.mxu1 %v4526_v18 }
 0x5b2   :  { %8754 = vmatpush3.msra.mxu1 %v4526_v18 }
 0x5b3   :  { %8755 = vmatprep.subr.mxu1 %v4525_v5 }
 0x5b4   :  { %8756 = vmatpush3.msra.mxu1 %v4525_v5 }
 0x5b5   :  { %8757 = vmatprep.subr.mxu1 %v4524_v16 }
 0x5b6   :  { %8758 = vmatpush3.msra.mxu1 %v4524_v16 }
 0x5b7   :  { %8759 = vmatprep.subr.mxu1 %v4523_v7 }
 0x5b8   :  { %8760 = vmatpush3.msra.mxu1 %v4523_v7 }
 0x5b9   :  { %8761 = vmatprep.subr.mxu1 %v4522_v63 }
 0x5ba   :  { %8762 = vmatpush3.msra.mxu1 %v4522_v63 }
 0x5bb   :  { %8764 = vmatmul.mubr.msk.f32.vlgmr.msra.gmra.mxu1 %vm2803_vm10, %v101_v54 }
 0x5bc   :  { %8766 = vmatprep.mubr.msk.f32.mxu1 %vm2803_vm10, %v102_v59 }
 0x5bf   :  { %8767 = vmatmul.mubr.msk.f32.gmra.mxu1 %vm2803_vm10, %v103_v34 }
 0x5c0   :  { %8769 = vmatprep.mubr.msk.f32.mxu1 %vm2803_vm10, %v104_v13 }
 0x5c3   :  { %8770 = vmatmul.mubr.msk.f32.gmra.mxu1 %vm2803_vm10, %v105_v19 }
 0x5c4   :  { %8772 = vmatprep.mubr.msk.f32.mxu1 %vm2803_vm10, %v106_v56 }
 0x5c7   :  { %8773 = vmatmul.mubr.msk.f32.gmra.mxu1 %vm2803_vm10, %v107_v61 }
 0x604   :  { %v8737_v18 = vpop.f32.mrf.mxu1 }
 0x605   :  { %v2934_v5 = vmul.f32 %v8737_v18, %v8737_v18  ;;  %2996 = vperm.xlu1 %8797, %v8737_v18  }
 0x606   :  { %v2894_v60 = vpop.f32.mrf.mxu1 }
 0x607   :  { %v2933_v20 = vmul.f32 %v2894_v60, %v2894_v60  ;;  %2991 = vperm.xlu0 %8796, %v2894_v60  }
 0x608   :  { %v11078_v23 = vpop.f32.mrf.mxu1 }
 0x609   :  { %2951 = vrot.lane.b32.xlu1 %v2934_v5, %s9203_s16  ;;  %v2936_v13 = vmul.f32 %v11078_v23, %v11078_v23 }
 0x60a   :  { %v2904_v54 = vpop.f32.mrf.mxu1 }
 0x60b   :  { %2949 = vrot.lane.b32.xlu0 %v2933_v20, %s9203_s16  ;;  %v2935_v59 = vmul.f32 %v2904_v54, %v2904_v54 }
 0x60c   :  { %v11082_v34 = vpop.f32.mrf.mxu1 }
 0x60d   :  { %3006 = vperm.xlu1 %8797, %v11078_v23   ;;  %v2938_v28 = vmul.f32 %v11082_v34, %v11082_v34 }
 0x60e   :  { %v11087_v19 = vpop.f32.mrf.mxu1 }
 0x60f   :  { %2953 = vrot.lane.b32.xlu0 %v2935_v59, %s9203_s16  ;;  %v2937_v53 = vmul.f32 %v11087_v19, %v11087_v19 }
 0x610   :  { %v11090_v56 = vpop.f32.mrf.mxu1 }
 0x611   :  { %2955 = vrot.lane.b32.xlu1 %v2936_v13, %s9203_s16  ;;  %v2940_v61 = vmul.f32 %v11090_v56, %v11090_v56 }
 0x612   :  { %v11099_v32 = vpop.f32.mrf.mxu1 }
 0x613   :  { %3016 = vperm.xlu0 %8796, %v11082_v34   ;;  %v2939_v50 = vmul.f32 %v11099_v32, %v11099_v32 }
 0x615   :  { %3001 = vperm.xlu1 %8797, %v2904_v54  }
 0x617   :  { %2963 = vrot.lane.b32.xlu0 %v2940_v61, %s9203_s16 }
 0x619   :  { %2959 = vrot.lane.b32.xlu1 %v2938_v28, %s9203_s16 }
 0x61b   :  { %3021 = vperm.xlu0 %8796, %v11099_v32  }
 0x61d   :  { %3011 = vperm.xlu1 %8797, %v11087_v19  }
 0x621   :  { %2957 = vrot.lane.b32.xlu1 %v2937_v53, %s9203_s16 }
 0x625   :  { %3026 = vperm.xlu1 %8797, %v11090_v56  }
 0x629   :  { %2961 = vrot.lane.b32.xlu1 %v2939_v50, %s9203_s16 }
 0x67b   :  { %v11111_v27 = vpop.f32.mrf.mxu1 }
 0x67c   :  { %v4636_v43 = vmul.f32 %v11111_v27, %v11111_v27  ;;  %4698 = vperm.xlu0 %8796, %v11111_v27  }
 0x67d   :  { %v11116_v29 = vpop.f32.mrf.mxu1 }
 0x67e   :  { %v4635_v21 = vmul.f32 %v11116_v29, %v11116_v29  ;;  %4653 = vrot.lane.b32.xlu1 %v4636_v43, %s9203_s16 }
 0x67f   :  { %v11121_v62 = vpop.f32.mrf.mxu1 }
 0x680   :  { %v11123_v55 = vpop.permute.xlu1 %2996  ;;  %4651 = vrot.lane.b32.xlu0 %v4635_v21, %s9203_s16  ;;  %v4638_v59 = vmul.f32 %v11121_v62, %v11121_v62 }
 0x681   :  { %v11126_v3 = vpop.f32.mrf.mxu1 }
 0x682   :  { %v11128_v36 = vpop.permute.xlu0 %2991  ;;  %4693 = vperm.xlu1 %8797, %v11116_v29   ;;  %v4637_v7 = vmul.f32 %v11126_v3, %v11126_v3 }
 0x683   :  { %v11135_v20 = vpop.f32.mrf.mxu1 }
 0x684   :  { %v2952_v31 = vpop.permute.xlu1 %2951  ;;  %4703 = vperm.xlu0 %8796, %v11126_v3  }
 0x685   :  { %v2974_v16 = vsub.f32 %v8737_v18, %v2952_v31  ;;  %v4640_v18 = vmul.f32 %v11135_v20, %v11135_v20 }
 0x686   :  { %v2950_v63 = vpop.permute.xlu0 %2949  ;;  %4708 = vperm.xlu1 %8797, %v11121_v62  }
 0x687   :  { %v2973_v5 = vsub.f32 %v2894_v60, %v2950_v63  ;;  %v2982_v13 = vmax.f32 %v2974_v16, 0.0  ;;  %v11145_v60 = vpop.f32.mrf.mxu1 }
 0x688   :  { %v11139_v61 = vpop.permute.xlu1 %3006  ;;  %4655 = vrot.lane.b32.xlu0 %v4637_v7, %s9203_s16  ;;  %v4639_v7 = vmul.f32 %v11145_v60, %v11145_v60 }
 0x689   :  { %v2981_v28 = vmax.f32 %v2973_v5, 0.0  ;;  %v3046_v21 = vadd.f32 1e-05, %v2982_v13  ;;  %v11149_v46 = vpop.f32.mrf.mxu1 }
 0x68a   :  { %v2954_v53 = vpop.permute.xlu0 %2953  ;;  %4657 = vrot.lane.b32.xlu1 %v4638_v59, %s9203_s16 }
 0x68b   :  { %v3045_v50 = vadd.f32 1e-05, %v2981_v28  ;;  %v2975_v43 = vsub.f32 %v2904_v54, %v2954_v53  ;;  %v11159_v53 = vpop.f32.mrf.mxu1 }
 0x68c   :  { %v2956_v31 = vpop.permute.xlu1 %2955  ;;  %4718 = vperm.xlu0 %8796, %v11135_v20  }
 0x68d   :  { %v2983_v16 = vmax.f32 %v2975_v43, 0.0  ;;  %v2976_v63 = vsub.f32 %v11078_v23, %v2956_v31  ;;  %8926 = vrsqrt.f32 %v3045_v50 }
 0x68e   :  { %v11153_v5 = vpop.permute.xlu0 %3016  ;;  %4661 = vrot.lane.b32.xlu1 %v4640_v18, %s9203_s16  ;;  %8928 = vrsqrt.f32 %v3046_v21  ;;  %v4641_v21 = vmul.f32 %v11159_v53, %v11159_v53 }
 0x68f   :  { %v3047_v54 = vadd.f32 1e-05, %v2983_v16  ;;  %v2984_v59 = vmax.f32 %v2976_v63, 0.0  ;;  %v4642_v63 = vmul.f32 %v11149_v46, %v11149_v46 }
 0x690   :  { %v11156_v13 = vpop.permute.xlu1 %3001  ;;  %4659 = vrot.lane.b32.xlu0 %v4639_v7, %s9203_s16 }
 0x691   :  { %v3048_v28 = vadd.f32 1e-05, %v2984_v59  ;;  %8930 = vrsqrt.f32 %v3047_v54  ;;  %v14568_v54 = vmov 1  }
 0x692   :  { %v2964_v23 = vpop.permute.xlu0 %2963  ;;  %4713 = vperm.xlu1 %8797, %v11145_v60  }
 0x693   :  { %v2980_v50 = vsub.f32 %v11090_v56, %v2964_v23  ;;  %8932 = vrsqrt.f32 %v3048_v28 }
 0x694   :  { %v2960_v43 = vpop.permute.xlu1 %2959  ;;  %4723 = vperm.xlu0 %8796, %v11159_v53  }
 0x695   :  { %v2978_v18 = vsub.f32 %v11082_v34, %v2960_v43  ;;  %v2988_v31 = vmax.f32 %v2980_v50, 0.0 }
 0x696   :  { %4728 = vperm.xlu1 %8797, %v11149_v46  }
 0x697   :  { %v2986_v16 = vmax.f32 %v2978_v18, 0.0  ;;  %v3052_v59 = vadd.f32 1e-05, %v2988_v31 }
 0x698   :  { %v11170_v7 = vpop.permute.xlu1 %3011  ;;  %4663 = vrot.lane.b32.xlu0 %v4641_v21, %s9203_s16 }
 0x699   :  { %v3050_v56 = vadd.f32 1e-05, %v2986_v16  ;;  %8799 = vset.pattern.permute.xlu0 %v14568_v54 }
 0x69a   :  { %4665 = vrot.lane.b32.xlu1 %v4642_v63, %s9203_s16  ;;  %v8927_v34 = vpop.eup %8926 }
 0x69b   :  { %8934 = vrsqrt.f32 %v3050_v56  ;;  %8798 = vset.pattern.permute.xlu1 %v14568_v54  ;;  %v8929_v23 = vpop.eup %8928 }
 0x69c   :  { %v2958_v28 = vpop.permute.xlu1 %2957  ;;  %3063 = vperm.xlu0 %8799, %v8927_v34   ;;  %8936 = vrsqrt.f32 %v3052_v59 }
 0x69d   :  { %v2977_v50 = vsub.f32 %v11087_v19, %v2958_v28 }
 0x69e   :  { %3068 = vperm.xlu1 %8798, %v8929_v23   ;;  %v8931_v43 = vpop.eup %8930 }
 0x69f   :  { %v2985_v18 = vmax.f32 %v2977_v50, 0.0 }
 0x6a0   :  { %v11177_v21 = vpop.permute.xlu1 %3026  ;;  %3073 = vperm.xlu0 %8799, %v8931_v43   ;;  %v8933_v16 = vpop.eup %8932 }
 0x6a1   :  { %v3049_v42 = vadd.f32 1e-05, %v2985_v18  ;;  %v11181_v43 = vpop.permute.xlu0 %3021 }
 0x6a2   :  { %3078 = vperm.xlu1 %8798, %v8933_v16  }
 0x6a3   :  { %8938 = vrsqrt.f32 %v3049_v42 }
 0x6a4   :  { %v2962_v31 = vpop.permute.xlu1 %2961 }
 0x6a5   :  { %v2979_v63 = vsub.f32 %v11099_v32, %v2962_v31 }
 0x6a7   :  { %v2987_v56 = vmax.f32 %v2979_v63, 0.0 }
 0x6a8   :  { %v8935_v54 = vpop.eup %8934 }
 0x6a9   :  { %v3051_v34 = vadd.f32 1e-05, %v2987_v56  ;;  %3088 = vperm.xlu1 %8798, %v8935_v54   ;;  %v8937_v19 = vpop.eup %8936 }
 0x6ab   :  { %8940 = vrsqrt.f32 %v3051_v34 }
 0x6ad   :  { %3098 = vperm.xlu1 %8798, %v8937_v19  }
 0x6b0   :  { %v8939_v28 = vpop.eup %8938 }
 0x6b1   :  { %3083 = vperm.xlu0 %8799, %v8939_v28  }
 0x6b8   :  { %v8941_v59 = vpop.eup %8940 }
 0x6b9   :  { %3093 = vperm.xlu0 %8799, %v8941_v59  }
 0x6f0   :  { %v4654_v23 = vpop.permute.xlu1 %4653 }
 0x6f1   :  { %v4676_v50 = vsub.f32 %v11111_v27, %v4654_v23 }
 0x6f3   :  { %v4684_v42 = vmax.f32 %v4676_v50, 0.0 }
 0x6f5   :  { %v4748_v18 = vadd.f32 1e-05, %v4684_v42 }
 0x6f7   :  { %8942 = vrsqrt.f32 %v4748_v18  ;;  %v11183_v32 = vpop.permute.xlu0 %4698 }
 0x6f8   :  { %14569 = vst [vmem:[#allocation43_spill] sm:$0xff] %v11183_v32 }
 0x6fb   :  { %v4652_v16 = vpop.permute.xlu0 %4651 }
 0x6fc   :  { %v4675_v31 = vsub.f32 %v11116_v29, %v4652_v16 }
 0x6fd   :  { %v11186_v63 = vpop.permute.xlu1 %4693 }
 0x6fe   :  { %v4683_v56 = vmax.f32 %v4675_v31, 0.0 }
 0x6ff   :  { %v11188_v54 = vpop.permute.xlu0 %4703 }
 0x700   :  { %14570 = vst [vmem:[#allocation44_spill] sm:$0xff] %v11188_v54  ;;  %v4747_v34 = vadd.f32 1e-05, %v4683_v56 }
 0x701   :  { %v11190_v19 = vpop.permute.xlu1 %4708 }
 0x702   :  { %14571 = vst [vmem:[#allocation45_spill] sm:$0xff] %v11190_v19  ;;  %8944 = vrsqrt.f32 %v4747_v34 }
 0x703   :  { %v4656_v27 = vpop.permute.xlu0 %4655 }
 0x704   :  { %v8943_v28 = vpop.eup %8942  ;;  %v4677_v59 = vsub.f32 %v11126_v3, %v4656_v27 }
 0x705   :  { %v4658_v23 = vpop.permute.xlu1 %4657  ;;  %4770 = vperm.xlu1 %8798, %v8943_v28  }
 0x706   :  { %v4685_v50 = vmax.f32 %v4677_v59, 0.0  ;;  %v4678_v42 = vsub.f32 %v11121_v62, %v4658_v23 }
 0x707   :  { %v11194_v18 = vpop.permute.xlu0 %4718 }
 0x708   :  { %v4749_v29 = vadd.f32 1e-05, %v4685_v50  ;;  %v4686_v16 = vmax.f32 %v4678_v42, 0.0 }
 0x709   :  { %v4662_v31 = vpop.permute.xlu1 %4661 }
 0x70a   :  { %8946 = vrsqrt.f32 %v4749_v29  ;;  %v4750_v54 = vadd.f32 1e-05, %v4686_v16  ;;  %v4680_v56 = vsub.f32 %v11135_v20, %v4662_v31 }
 0x70b   :  { %v4660_v19 = vpop.permute.xlu0 %4659 }
 0x70c   :  { %8948 = vrsqrt.f32 %v4750_v54  ;;  %v4688_v34 = vmax.f32 %v4680_v56, 0.0  ;;  %v4679_v32 = vsub.f32 %v11145_v60, %v4660_v19  ;;  %v3029_v60 = vsub.f32 %v10820_v38, %v11128_v36 }
 0x70d   :  { %v11198_v3 = vpop.permute.xlu1 %4713  ;;  %v3030_v19 = vsub.f32 %v10822_v10, %v11128_v36  ;;  %v3032_v38 = vsub.f32 %v10830_v51, %v11123_v55 }
 0x70e   :  { %v4752_v27 = vadd.f32 1e-05, %v4688_v34  ;;  %v4687_v28 = vmax.f32 %v4679_v32, 0.0 }
 0x70f   :  { %v8945_v59 = vpop.eup %8944  ;;  %v11200_v62 = vpop.permute.xlu0 %4723 }
 0x710   :  { %8950 = vrsqrt.f32 %v4752_v27  ;;  %v4751_v23 = vadd.f32 1e-05, %v4687_v28  ;;  %4765 = vperm.xlu1 %8798, %v8945_v59  }
 0x711   :  { %v11202_v50 = vpop.permute.xlu1 %4728 }
 0x712   :  { %8952 = vrsqrt.f32 %v4751_v23 }
 0x713   :  { %v4664_v42 = vpop.permute.xlu0 %4663 }
 0x714   :  { %v4681_v20 = vsub.f32 %v11159_v53, %v4664_v42  ;;  %v3031_v53 = vsub.f32 %v10824_v45, %v11123_v55 }
 0x715   :  { %v4666_v54 = vpop.permute.xlu1 %4665 }
 0x716   :  { %v4689_v32 = vmax.f32 %v4681_v20, 0.0  ;;  %v4682_v29 = vsub.f32 %v11149_v46, %v4666_v54 }
 0x717   :  { %v8947_v16 = vpop.eup %8946  ;;  %v3064_v31 = vpop.permute.xlu0 %3063 }
 0x718   :  { %v4753_v56 = vadd.f32 1e-05, %v4689_v32  ;;  %v4690_v34 = vmax.f32 %v4682_v29, 0.0  ;;  %v3101_v27 = vmul.f32 %v3064_v31, %v3029_v60  ;;  %v3102_v28 = vmul.f32 %v3064_v31, %v3030_v19  ;;  %4775 = vperm.xlu0 %8799, %v8947_v16  }
 0x719   :  { %v8949_v59 = vpop.eup %8948  ;;  %v3069_v23 = vpop.permute.xlu1 %3068 }
 0x71a   :  { %8954 = vrsqrt.f32 %v4753_v56  ;;  %v4754_v10 = vadd.f32 1e-05, %v4690_v34  ;;  %v3157_v36 = vmul.f32 %v10942_v25, %v3101_v27  ;;  %v3158_v46 = vmul.f32 %v10942_v25, %v3102_v28  ;;  %4780 = vperm.xlu1 %8798, %v8949_v59  }
 0x71b   :  { %v3103_v42 = vmul.f32 %v3069_v23, %v3031_v53  ;;  %v3104_v20 = vmul.f32 %v3069_v23, %v3032_v38 }
 0x71c   :  { %8956 = vrsqrt.f32 %v4754_v10  ;;  %v3213_v54 = vadd.f32 %v11042_v57, %v3157_v36  ;;  %v3214_v60 = vadd.f32 %v11042_v57, %v3158_v46 }
 0x71d   :  { %v8951_v19 = vpop.eup %8950  ;;  %v3159_v45 = vmul.f32 %v10960_v39, %v3103_v42  ;;  %v3160_v51 = vmul.f32 %v10960_v39, %v3104_v20 }
 0x71e   :  { %v7807_v55 = vmul.f32 -1.442695, %v3213_v54  ;;  %v7808_v32 = vmul.f32 -1.442695, %v3214_v60  ;;  %4790 = vperm.xlu1 %8798, %v8951_v19  }
 0x71f   :  { %v3215_v29 = vadd.f32 %v10976_v47, %v3159_v45  ;;  %v3216_v16 = vadd.f32 %v10976_v47, %v3160_v51  ;;  %v8953_v31 = vpop.eup %8952 }
 0x720   :  { %8958 = vpow2.f32 %v7807_v55 }
 0x721   :  { %8960 = vpow2.f32 %v7808_v32  ;;  %v7809_v56 = vmul.f32 -1.442695, %v3215_v29  ;;  %v7810_v34 = vmul.f32 -1.442695, %v3216_v16 }
 0x722   :  { %4785 = vperm.xlu1 %8798, %v8953_v31  }
 0x723   :  { %8962 = vpow2.f32 %v7809_v56 }
 0x724   :  { %8964 = vpow2.f32 %v7810_v34 }
 0x727   :  { %v8955_v27 = vpop.eup %8954 }
 0x728   :  { %4795 = vperm.xlu0 %8799, %v8955_v27   ;;  %v3074_v27 = vpop.permute.xlu0 %3073 }
 0x729   :  { %v8957_v28 = vpop.eup %8956 }
 0x72a   :  { %4800 = vperm.xlu1 %8798, %v8957_v28   ;;  %v3035_v28 = vsub.f32 %v10844_v44, %v11139_v61 }
 0x72c   :  { %8800 = vset.pattern.permute.xlu0 %v14544_v58 }
 0x72d   :  { %v8959_v59 = vpop.eup %8958 }
 0x72e   :  { %v8961_v53 = vpop.eup %8960  ;;  %v3277_v38 = vadd.f32 1.0, %v8959_v59  ;;  %8801 = vset.pattern.permute.xlu1 %v14544_v58  ;;  %v3034_v59 = vsub.f32 %v10838_v40, %v11156_v13 }
 0x72f   :  { %v3278_v23 = vadd.f32 1.0, %v8961_v53 }
 0x730   :  { %v8963_v10 = vpop.eup %8962  ;;  %8966 = vrcp.f32 %v3277_v38  ;;  %v3106_v38 = vmul.f32 %v3074_v27, %v3034_v59 }
 0x731   :  { %v8965_v36 = vpop.eup %8964  ;;  %v3279_v46 = vadd.f32 1.0, %v8963_v10  ;;  %8968 = vrcp.f32 %v3278_v23  ;;  %v3036_v23 = vsub.f32 %v10846_v33, %v11139_v61 }
 0x732   :  { %v3280_v42 = vadd.f32 1.0, %v8965_v36  ;;  %v3162_v40 = vmul.f32 %v10930_v48, %v3106_v38 }
 0x733   :  { %8970 = vrcp.f32 %v3279_v46 }
 0x734   :  { %8972 = vrcp.f32 %v3280_v42  ;;  %v3218_v36 = vadd.f32 %v10934_v35, %v3162_v40 }
 0x73d   :  { %v8967_v20 = vpop.eup %8966 }
 0x73e   :  { %v11224_v19 = vmul.f32 %v8967_v20, %v3213_v54  ;;  %v8969_v45 = vpop.eup %8968 }
 0x73f   :  { %v11230_v31 = vmul.f32 %v8969_v45, %v3214_v60  ;;  %v3033_v60 = vsub.f32 %v10842_v24, %v11156_v13  ;;  %v7812_v45 = vmul.f32 -1.442695, %v3218_v36 }
 0x740   :  { %14572 = vst [vmem:[#allocation46_spill] sm:$0xff] %v11224_v19  ;;  %v8971_v51 = vpop.eup %8970  ;;  %3461 = vrot.lane.b32.xlu0 %v11224_v19, %s9200_s14 }
 0x741   :  { %v8973_v55 = vpop.eup %8972  ;;  %v11228_v32 = vmul.f32 %v8971_v51, %v3215_v29  ;;  %14574 = vst [vmem:[#allocation49_spill] sm:$0xff] %v11230_v31  ;;  %v3105_v29 = vmul.f32 %v3074_v27, %v3033_v60 }
 0x742   :  { %v11232_v56 = vmul.f32 %v8973_v55, %v3216_v16  ;;  %v3079_v16 = vpop.permute.xlu1 %3078 }
 0x743   :  { %14573 = vst [vmem:[#allocation48_spill] sm:$0xff] %v11228_v32  ;;  %3463 = vrot.lane.b32.xlu1 %v11228_v32, %s9200_s14  ;;  %v3107_v53 = vmul.f32 %v3079_v16, %v3035_v28  ;;  %v3161_v24 = vmul.f32 %v10930_v48, %v3105_v29  ;;  %v3108_v44 = vmul.f32 %v3079_v16, %v3036_v23 }
 0x744   :  { %14575 = vst [vmem:[#allocation50_spill] sm:$0xff] %v11232_v56  ;;  %3477 = vrot.lane.b32.xlu0 %v11230_v31, %s9200_s14 }
 0x745   :  { %v3163_v10 = vmul.f32 %v10932_v15, %v3107_v53  ;;  %v3217_v13 = vadd.f32 %v10934_v35, %v3161_v24  ;;  %v3164_v33 = vmul.f32 %v10932_v15, %v3108_v44 }
 0x747   :  { %3479 = vrot.lane.b32.xlu1 %v11232_v56, %s9200_s14  ;;  %v3219_v61 = vadd.f32 %v11038_v26, %v3163_v10  ;;  %v7811_v46 = vmul.f32 -1.442695, %v3217_v13  ;;  %v3220_v42 = vadd.f32 %v11038_v26, %v3164_v33 }
 0x748   :  { %3877 = vrot.lane.b32.xlu0 %v11224_v19, %s9209_s3 }
 0x749   :  { %v7813_v20 = vmul.f32 -1.442695, %v3219_v61  ;;  %8974 = vpow2.f32 %v7811_v46  ;;  %v7814_v51 = vmul.f32 -1.442695, %v3220_v42  ;;  %v3084_v46 = vpop.permute.xlu0 %3083 }
 0x74b   :  { %3879 = vrot.lane.b32.xlu1 %v11228_v32, %s9209_s3  ;;  %8976 = vpow2.f32 %v7813_v20  ;;  %v3037_v20 = vsub.f32 %v10872_v37, %v11170_v7 }
 0x74c   :  { %3893 = vrot.lane.b32.xlu0 %v11230_v31, %s9209_s3  ;;  %8978 = vpow2.f32 %v7812_v45  ;;  %v3039_v45 = vsub.f32 %v10859_v17, %v11153_v5 }
 0x74d   :  { %8980 = vpow2.f32 %v7814_v51 }
 0x74f   :  { %3895 = vrot.lane.b32.xlu1 %v11232_v56, %s9209_s3 }
 0x750   :  { %3341 = vrot.lane.b32.xlu0 %v11224_v19, %s9206_s5 }
 0x753   :  { %3343 = vrot.lane.b32.xlu1 %v11228_v32, %s9206_s5 }
 0x754   :  { %3357 = vrot.lane.b32.xlu0 %v11230_v31, %s9206_s5 }
 0x756   :  { %v8975_v55 = vpop.eup %8974 }
 0x757   :  { %3359 = vrot.lane.b32.xlu1 %v11232_v56, %s9206_s5  ;;  %v3281_v60 = vadd.f32 1.0, %v8975_v55 }
 0x758   :  { %3701 = vrot.lane.b32.xlu0 %v11224_v19, %s9203_s16  ;;  %v8977_v27 = vpop.eup %8976 }
 0x759   :  { %v8979_v29 = vpop.eup %8978  ;;  %v3283_v16 = vadd.f32 1.0, %v8977_v27  ;;  %8982 = vrcp.f32 %v3281_v60  ;;  %v3040_v27 = vsub.f32 %v10862_v52, %v11153_v5 }
 0x75a   :  { %v8981_v28 = vpop.eup %8980  ;;  %v3282_v59 = vadd.f32 1.0, %v8979_v29 }
 0x75b   :  { %3703 = vrot.lane.b32.xlu1 %v11228_v32, %s9203_s16  ;;  %v3284_v53 = vadd.f32 1.0, %v8981_v28  ;;  %8984 = vrcp.f32 %v3283_v16 }
 0x75c   :  { %3717 = vrot.lane.b32.xlu0 %v11230_v31, %s9203_s16  ;;  %8986 = vrcp.f32 %v3282_v59 }
 0x75d   :  { %8988 = vrcp.f32 %v3284_v53 }
 0x75f   :  { %3719 = vrot.lane.b32.xlu1 %v11232_v56, %s9203_s16 }
 0x760   :  { %4117 = vrot.lane.b32.xlu0 %v11224_v19, %s9207_s30 }
 0x763   :  { %4119 = vrot.lane.b32.xlu1 %v11228_v32, %s9207_s30 }
 0x764   :  { %4133 = vrot.lane.b32.xlu0 %v11230_v31, %s9207_s30 }
 0x766   :  { %v8983_v38 = vpop.eup %8982 }
 0x767   :  { %4135 = vrot.lane.b32.xlu1 %v11232_v56, %s9207_s30  ;;  %v11314_v23 = vmul.f32 %v8983_v38, %v3217_v13 }
 0x768   :  { %3581 = vrot.lane.b32.xlu0 %v11224_v19, %s9205_s4  ;;  %v8985_v24 = vpop.eup %8984 }
 0x769   :  { %14576 = vst [vmem:[#allocation51_spill] sm:$0xff] %v11314_v23  ;;  %v8987_v44 = vpop.eup %8986  ;;  %v11320_v10 = vmul.f32 %v8985_v24, %v3219_v61  ;;  %v3089_v61 = vpop.permute.xlu1 %3088 }
 0x76a   :  { %v8989_v40 = vpop.eup %8988  ;;  %v11322_v33 = vmul.f32 %v8987_v44, %v3218_v36  ;;  %v3109_v36 = vmul.f32 %v3084_v46, %v3037_v20  ;;  %v3111_v51 = vmul.f32 %v3089_v61, %v3039_v45  ;;  %v3112_v17 = vmul.f32 %v3089_v61, %v3040_v27  ;;  %v11398_v20 = vpop.permute.xlu0 %3093 }
 0x76b   :  { %3583 = vrot.lane.b32.xlu1 %v11228_v32, %s9205_s4  ;;  %14577 = vst [vmem:[#allocation52_spill] sm:$0xff] %v11320_v10  ;;  %v11328_v13 = vmul.f32 %v8989_v40, %v3220_v42  ;;  %v3038_v42 = vsub.f32 %v10867_v22, %v11170_v7 }
 0x76c   :  { %3597 = vrot.lane.b32.xlu0 %v11230_v31, %s9205_s4  ;;  %14578 = vst [vmem:[#allocation53_spill] sm:$0xff] %v11322_v33  ;;  %v3165_v37 = vmul.f32 %v11015_v4, %v3109_v36  ;;  %v3167_v60 = vmul.f32 %v10924_v2, %v3111_v51  ;;  %v3168_v52 = vmul.f32 %v10924_v2, %v3112_v17 }
 0x76d   :  { %14579 = vst [vmem:[#allocation54_spill] sm:$0xff] %v11328_v13  ;;  %v3110_v55 = vmul.f32 %v3084_v46, %v3038_v42  ;;  %v11364_v29 = vpop.permute.xlu1 %3098 }
 0x76e   :  { %v11354_v7 = vadd.f32 %v10928_v9, %v3165_v37  ;;  %v11362_v5 = vadd.f32 %v11026_v6, %v3167_v60  ;;  %v11375_v59 = vadd.f32 %v11026_v6, %v3168_v52 }
 0x76f   :  { %3599 = vrot.lane.b32.xlu1 %v11232_v56, %s9205_s4  ;;  %v3166_v22 = vmul.f32 %v11015_v4, %v3110_v55 }
 0x770   :  { %3997 = vrot.lane.b32.xlu0 %v11224_v19, %s9208_s15  ;;  %v7815_v28 = vmul.f32 -1.442695, %v11354_v7  ;;  %v7817_v53 = vmul.f32 -1.442695, %v11362_v5  ;;  %v7818_v44 = vmul.f32 -1.442695, %v11375_v59 }
 0x771   :  { %v11367_v16 = vadd.f32 %v10928_v9, %v3166_v22 }
 0x772   :  { %8990 = vpow2.f32 %v7815_v28 }
 0x773   :  { %3999 = vrot.lane.b32.xlu1 %v11228_v32, %s9208_s15  ;;  %v7816_v24 = vmul.f32 -1.442695, %v11367_v16  ;;  %8992 = vpow2.f32 %v7817_v53 }
 0x774   :  { %4013 = vrot.lane.b32.xlu0 %v11230_v31, %s9208_s15 }
 0x775   :  { %8994 = vpow2.f32 %v7816_v24 }
 0x776   :  { %8996 = vpow2.f32 %v7818_v44 }
 0x777   :  { %4015 = vrot.lane.b32.xlu1 %v11232_v56, %s9208_s15 }
 0x778   :  { %4237 = vrot.lane.b32.xlu0 %v11224_v19, %s9210_s17 }
 0x77b   :  { %4239 = vrot.lane.b32.xlu1 %v11228_v32, %s9210_s17 }
 0x77c   :  { %4253 = vrot.lane.b32.xlu0 %v11230_v31, %s9210_s17 }
 0x77f   :  { %4255 = vrot.lane.b32.xlu1 %v11232_v56, %s9210_s17  ;;  %v8991_v61 = vpop.eup %8990 }
 0x780   :  { %3465 = vrot.lane.b32.xlu0 %v11314_v23, %s9200_s14  ;;  %v11378_v38 = vpop.permute.xlu1 %4770  ;;  %v8993_v45 = vpop.eup %8992  ;;  %v3285_v42 = vadd.f32 1.0, %v8991_v61 }
 0x781   :  { %v3287_v37 = vadd.f32 1.0, %v8993_v45 }
 0x782   :  { %v8995_v55 = vpop.eup %8994  ;;  %8998 = vrcp.f32 %v3285_v42 }
 0x783   :  { %3467 = vrot.lane.b32.xlu1 %v11320_v10, %s9200_s14  ;;  %v8997_v17 = vpop.eup %8996  ;;  %v3286_v60 = vadd.f32 1.0, %v8995_v55  ;;  %9000 = vrcp.f32 %v3287_v37 }
 0x784   :  { %3481 = vrot.lane.b32.xlu0 %v11322_v33, %s9200_s14  ;;  %v3288_v52 = vadd.f32 1.0, %v8997_v17 }
 0x785   :  { %9002 = vrcp.f32 %v3286_v60 }
 0x786   :  { %9004 = vrcp.f32 %v3288_v52 }
 0x787   :  { %3483 = vrot.lane.b32.xlu1 %v11328_v13, %s9200_s14 }
 0x788   :  { %3881 = vrot.lane.b32.xlu0 %v11314_v23, %s9209_s3 }
 0x78b   :  { %3883 = vrot.lane.b32.xlu1 %v11320_v10, %s9209_s3  ;;  %v11386_v40 = vpop.permute.xlu1 %4765 }
 0x78c   :  { %3897 = vrot.lane.b32.xlu0 %v11322_v33, %s9209_s3 }
 0x78f   :  { %3899 = vrot.lane.b32.xlu1 %v11328_v13, %s9209_s3  ;;  %v8999_v42 = vpop.eup %8998 }
 0x790   :  { %3345 = vrot.lane.b32.xlu0 %v11314_v23, %s9206_s5  ;;  %v9001_v37 = vpop.eup %9000  ;;  %v11447_v17 = vmul.f32 %v8999_v42, %v11354_v7 }
 0x791   :  { %v11456_v34 = vmul.f32 %v9001_v37, %v11362_v5 }
 0x792   :  { %14581 = vst [vmem:[#allocation56_spill] sm:$0xff] %v11447_v17  ;;  %v9003_v52 = vpop.eup %9002 }
 0x793   :  { %3347 = vrot.lane.b32.xlu1 %v11320_v10, %s9206_s5  ;;  %v11406_v51 = vpop.permute.xlu0 %4775  ;;  %14582 = vst [vmem:[#allocation57_spill] sm:$0xff] %v11456_v34  ;;  %v9005_v58 = vpop.eup %9004  ;;  %v11461_v19 = vmul.f32 %v9003_v52, %v11367_v16  ;;  %v3041_v16 = vsub.f32 %v10896_v14, %v11181_v43 }
 0x794   :  { %3361 = vrot.lane.b32.xlu0 %v11322_v33, %s9206_s5  ;;  %v11470_v42 = vmul.f32 %v9005_v58, %v11375_v59  ;;  %v3043_v58 = vsub.f32 %v10879_v30, %v11177_v21  ;;  %v3042_v59 = vsub.f32 %v10893_v11, %v11181_v43  ;;  %v3044_v30 = vsub.f32 %v10882_v1, %v11177_v21 }
 0x795   :  { %v11392_v46 = vpop.permute.xlu1 %4780  ;;  %14583 = vst [vmem:[#allocation58_spill] sm:$0xff] %v11461_v19  ;;  %v3113_v52 = vmul.f32 %v11398_v20, %v3041_v16 }
 0x796   :  { %14585 = vst [vmem:[#allocation60_spill] sm:$0xff] %v11470_v42  ;;  %v3115_v14 = vmul.f32 %v11364_v29, %v3043_v58  ;;  %v3114_v16 = vmul.f32 %v11398_v20, %v3042_v59  ;;  %v3116_v11 = vmul.f32 %v11364_v29, %v3044_v30 }
 0x797   :  { %3363 = vrot.lane.b32.xlu1 %v11328_v13, %s9206_s5 }
 0x798   :  { %3705 = vrot.lane.b32.xlu0 %v11314_v23, %s9203_s16  ;;  %v3171_v43 = vmul.f32 %v10916_v49, %v3115_v14  ;;  %v3170_v20 = vmul.f32 %v10914_v0, %v3114_v16  ;;  %v3172_v1 = vmul.f32 %v10916_v49, %v3116_v11 }
 0x799   :  { %v11400_v36 = vpop.permute.xlu1 %4790 }
 0x79a   :  { %v11524_v21 = vadd.f32 %v11002_v12, %v3171_v43  ;;  %v11529_v14 = vadd.f32 %v10920_v41, %v3170_v20  ;;  %v11539_v30 = vadd.f32 %v11002_v12, %v3172_v1 }
 0x79b   :  { %3707 = vrot.lane.b32.xlu1 %v11320_v10, %s9203_s16 }
 0x79c   :  { %3721 = vrot.lane.b32.xlu0 %v11322_v33, %s9203_s16  ;;  %v7821_v11 = vmul.f32 -1.442695, %v11524_v21  ;;  %v7820_v20 = vmul.f32 -1.442695, %v11529_v14 }
 0x79d   :  { %v11412_v27 = vpop.permute.xlu1 %4785 }
 0x79f   :  { %3723 = vrot.lane.b32.xlu1 %v11328_v13, %s9203_s16 }
 0x7a0   :  { %4121 = vrot.lane.b32.xlu0 %v11314_v23, %s9207_s30 }
 0x7a3   :  { %4123 = vrot.lane.b32.xlu1 %v11320_v10, %s9207_s30  ;;  %v11414_v22 = vpop.permute.xlu0 %4795 }
 0x7a4   :  { %4137 = vrot.lane.b32.xlu0 %v11322_v33, %s9207_s30 }
 0x7a5   :  { %v11420_v28 = vpop.permute.xlu1 %4800 }
 0x7a7   :  { %4139 = vrot.lane.b32.xlu1 %v11328_v13, %s9207_s30 }
 0x7a8   :  { %3585 = vrot.lane.b32.xlu0 %v11314_v23, %s9205_s4 }
 0x7ab   :  { %3587 = vrot.lane.b32.xlu1 %v11320_v10, %s9205_s4 }
 0x7ac   :  { %3601 = vrot.lane.b32.xlu0 %v11322_v33, %s9205_s4 }
 0x7af   :  { %3603 = vrot.lane.b32.xlu1 %v11328_v13, %s9205_s4 }
 0x7b0   :  { %4001 = vrot.lane.b32.xlu0 %v11314_v23, %s9208_s15 }
 0x7b2   :  { %v11422_v53 = vpop.permute.xlu0 %3461 }
 0x7b3   :  { %4003 = vrot.lane.b32.xlu1 %v11320_v10, %s9208_s15 }
 0x7b4   :  { %4017 = vrot.lane.b32.xlu0 %v11322_v33, %s9208_s15 }
 0x7b5   :  { %v11428_v24 = vpop.permute.xlu1 %3463 }
 0x7b6   :  { %v11430_v44 = vpop.permute.xlu0 %3477 }
 0x7b7   :  { %4019 = vrot.lane.b32.xlu1 %v11328_v13, %s9208_s15 }
 0x7b8   :  { %4241 = vrot.lane.b32.xlu0 %v11314_v23, %s9210_s17 }
 0x7b9   :  { %v11436_v61 = vpop.permute.xlu1 %3479 }
 0x7ba   :  { %v11438_v45 = vpop.permute.xlu0 %3877 }
 0x7bb   :  { %14580 = vst [vmem:[#allocation55_spill] sm:$0xff] %v11438_v45  ;;  %4243 = vrot.lane.b32.xlu1 %v11320_v10, %s9210_s17 }
 0x7bc   :  { %4257 = vrot.lane.b32.xlu0 %v11322_v33, %s9210_s17 }
 0x7bd   :  { %v11444_v55 = vpop.permute.xlu1 %3879 }
 0x7be   :  { %v11449_v60 = vpop.permute.xlu0 %3893 }
 0x7bf   :  { %4259 = vrot.lane.b32.xlu1 %v11328_v13, %s9210_s17 }
 0x7c0   :  { %3469 = vrot.lane.b32.xlu0 %v11447_v17, %s9200_s14 }
 0x7c1   :  { %v11458_v54 = vpop.permute.xlu1 %3895 }
 0x7c2   :  { %v11463_v7 = vpop.permute.xlu0 %3341 }
 0x7c3   :  { %14584 = vst [vmem:[#allocation59_spill] sm:$0xff] %v11463_v7  ;;  %3471 = vrot.lane.b32.xlu1 %v11456_v34, %s9200_s14 }
 0x7c4   :  { %3485 = vrot.lane.b32.xlu0 %v11461_v19, %s9200_s14 }
 0x7c5   :  { %v11472_v32 = vpop.permute.xlu1 %3343 }
 0x7c6   :  { %v11474_v5 = vpop.permute.xlu0 %3357 }
 0x7c7   :  { %14586 = vst [vmem:[#allocation61_spill] sm:$0xff] %v11474_v5  ;;  %3487 = vrot.lane.b32.xlu1 %v11470_v42, %s9200_s14 }
 0x7c8   :  { %3885 = vrot.lane.b32.xlu0 %v11447_v17, %s9209_s3 }
 0x7c9   :  { %v11482_v37 = vpop.permute.xlu1 %3359 }
 0x7ca   :  { %v11485_v31 = vpop.permute.xlu0 %3701 }
 0x7cb   :  { %14587 = vst [vmem:[#allocation62_spill] sm:$0xff] %v11485_v31  ;;  %3887 = vrot.lane.b32.xlu1 %v11456_v34, %s9209_s3  ;;  %v3169_v31 = vmul.f32 %v10914_v0, %v3113_v52 }
 0x7cc   :  { %3901 = vrot.lane.b32.xlu0 %v11461_v19, %s9209_s3 }
 0x7cd   :  { %v11496_v56 = vpop.permute.xlu1 %3703  ;;  %v11514_v52 = vadd.f32 %v10920_v41, %v3169_v31 }
 0x7ce   :  { %14588 = vst [vmem:[#allocation63_spill] sm:$0xff] %v11496_v56  ;;  %v11500_v5 = vpop.permute.xlu0 %3717 }
 0x7cf   :  { %14589 = vst [vmem:[#allocation64_spill] sm:$0xff] %v11500_v5  ;;  %3903 = vrot.lane.b32.xlu1 %v11470_v42, %s9209_s3  ;;  %v7819_v31 = vmul.f32 -1.442695, %v11514_v52 }
 0x7d0   :  { %3349 = vrot.lane.b32.xlu0 %v11447_v17, %s9206_s5 }
 0x7d1   :  { %v11510_v58 = vpop.permute.xlu1 %3719  ;;  %9006 = vpow2.f32 %v7819_v31 }
 0x7d2   :  { %14590 = vst [vmem:[#allocation65_spill] sm:$0xff] %v11510_v58  ;;  %v11516_v59 = vpop.permute.xlu0 %4117  ;;  %9008 = vpow2.f32 %v7821_v11 }
 0x7d3   :  { %14591 = vst [vmem:[#allocation66_spill] sm:$0xff] %v11516_v59  ;;  %3351 = vrot.lane.b32.xlu1 %v11456_v34, %s9206_s5  ;;  %9010 = vpow2.f32 %v7820_v20 }
 0x7d4   :  { %3365 = vrot.lane.b32.xlu0 %v11461_v19, %s9206_s5 }
 0x7d5   :  { %v11526_v29 = vpop.permute.xlu1 %4119 }
 0x7d6   :  { %14592 = vst [vmem:[#allocation67_spill] sm:$0xff] %v11526_v29  ;;  %v11532_v16 = vpop.permute.xlu0 %4133 }
 0x7d7   :  { %14593 = vst [vmem:[#allocation68_spill] sm:$0xff] %v11532_v16  ;;  %3367 = vrot.lane.b32.xlu1 %v11470_v42, %s9206_s5  ;;  %v7822_v16 = vmul.f32 -1.442695, %v11539_v30 }
 0x7d8   :  { %3709 = vrot.lane.b32.xlu0 %v11447_v17, %s9203_s16 }
 0x7d9   :  { %v11542_v43 = vpop.permute.xlu1 %4135  ;;  %9012 = vpow2.f32 %v7822_v16 }
 0x7da   :  { %14594 = vst [vmem:[#allocation69_spill] sm:$0xff] %v11542_v43  ;;  %v11545_v59 = vpop.permute.xlu0 %3581 }
 0x7db   :  { %14595 = vst [vmem:[#allocation70_spill] sm:$0xff] %v11545_v59  ;;  %3711 = vrot.lane.b32.xlu1 %v11456_v34, %s9203_s16 }
 0x7dc   :  { %3725 = vrot.lane.b32.xlu0 %v11461_v19, %s9203_s16 }
 0x7dd   :  { %v11552_v1 = vpop.permute.xlu1 %3583 }
 0x7de   :  { %14596 = vst [vmem:[#allocation71_spill] sm:$0xff] %v11552_v1  ;;  %v11554_v29 = vpop.permute.xlu0 %3597  ;;  %v9007_v1 = vpop.eup %9006 }
 0x7df   :  { %14597 = vst [vmem:[#allocation72_spill] sm:$0xff] %v11554_v29  ;;  %3727 = vrot.lane.b32.xlu1 %v11470_v42, %s9203_s16 }
 0x7e0   :  { %4125 = vrot.lane.b32.xlu0 %v11447_v17, %s9207_s30 }
 0x7e1   :  { %v11560_v31 = vpop.permute.xlu1 %3599 }
 0x7e2   :  { %14598 = vst [vmem:[#allocation73_spill] sm:$0xff] %v11560_v31  ;;  %v11562_v59 = vpop.permute.xlu0 %3997  ;;  %v3289_v31 = vadd.f32 1.0, %v9007_v1 }
 0x7e3   :  { %14599 = vst [vmem:[#allocation74_spill] sm:$0xff] %v11562_v59  ;;  %4127 = vrot.lane.b32.xlu1 %v11456_v34, %s9207_s30  ;;  %v9009_v59 = vpop.eup %9008 }
 0x7e4   :  { %4141 = vrot.lane.b32.xlu0 %v11461_v19, %s9207_s30  ;;  %v9011_v43 = vpop.eup %9010  ;;  %9014 = vrcp.f32 %v3289_v31 }
 0x7e5   :  { %v11568_v11 = vpop.permute.xlu1 %3999  ;;  %v3290_v58 = vadd.f32 1.0, %v9011_v43 }
 0x7e6   :  { %14600 = vst [vmem:[#allocation75_spill] sm:$0xff] %v11568_v11  ;;  %v11570_v20 = vpop.permute.xlu0 %4013  ;;  %v9013_v56 = vpop.eup %9012 }
 0x7e7   :  { %14601 = vst [vmem:[#allocation76_spill] sm:$0xff] %v11570_v20  ;;  %4143 = vrot.lane.b32.xlu1 %v11470_v42, %s9207_s30  ;;  %v3291_v20 = vadd.f32 1.0, %v9009_v59  ;;  %v3292_v1 = vadd.f32 1.0, %v9013_v56 }
 0x7e8   :  { %3589 = vrot.lane.b32.xlu0 %v11447_v17, %s9205_s4 }
 0x7e9   :  { %v11576_v16 = vpop.permute.xlu1 %4015  ;;  %9016 = vrcp.f32 %v3291_v20 }
 0x7ea   :  { %14602 = vst [vmem:[#allocation77_spill] sm:$0xff] %v11576_v16  ;;  %v11578_v29 = vpop.permute.xlu0 %4237  ;;  %9018 = vrcp.f32 %v3290_v58 }
 0x7eb   :  { %14603 = vst [vmem:[#allocation78_spill] sm:$0xff] %v11578_v29  ;;  %3591 = vrot.lane.b32.xlu1 %v11456_v34, %s9205_s4  ;;  %9020 = vrcp.f32 %v3292_v1 }
 0x7ec   :  { %3605 = vrot.lane.b32.xlu0 %v11461_v19, %s9205_s4 }
 0x7ed   :  { %v11584_v11 = vpop.permute.xlu1 %4239 }
 0x7ee   :  { %14604 = vst [vmem:[#allocation79_spill] sm:$0xff] %v11584_v11  ;;  %v11586_v5 = vpop.permute.xlu0 %4253 }
 0x7ef   :  { %14605 = vst [vmem:[#allocation80_spill] sm:$0xff] %v11586_v5  ;;  %3607 = vrot.lane.b32.xlu1 %v11470_v42, %s9205_s4 }
 0x7f0   :  { %4005 = vrot.lane.b32.xlu0 %v11447_v17, %s9208_s15 }
 0x7f1   :  { %v11592_v29 = vpop.permute.xlu1 %4255  ;;  %v9015_v31 = vpop.eup %9014 }
 0x7f2   :  { %14606 = vst [vmem:[#allocation81_spill] sm:$0xff] %v11592_v29  ;;  %v11594_v16 = vpop.permute.xlu0 %3465  ;;  %v11619_v5 = vmul.f32 %v9015_v31, %v11514_v52 }
 0x7f3   :  { %14607 = vst [vmem:[#allocation82_spill] sm:$0xff] %v11594_v16  ;;  %4007 = vrot.lane.b32.xlu1 %v11456_v34, %s9208_s15 }
 0x7f4   :  { %4021 = vrot.lane.b32.xlu0 %v11461_v19, %s9208_s15 }
 0x7f5   :  { %v11600_v59 = vpop.permute.xlu1 %3467 }
 0x7f6   :  { %14608 = vst [vmem:[#allocation83_spill] sm:$0xff] %v11600_v59  ;;  %v11602_v43 = vpop.permute.xlu0 %3481  ;;  %v9017_v1 = vpop.eup %9016 }
 0x7f7   :  { %14609 = vst [vmem:[#allocation84_spill] sm:$0xff] %v11602_v43  ;;  %4023 = vrot.lane.b32.xlu1 %v11470_v42, %s9208_s15  ;;  %v9019_v11 = vpop.eup %9018 }
 0x7f8   :  { %4245 = vrot.lane.b32.xlu0 %v11447_v17, %s9210_s17 }
 0x7f9   :  { %v11608_v56 = vpop.permute.xlu1 %3483 }
 0x7fa   :  { %14610 = vst [vmem:[#allocation85_spill] sm:$0xff] %v11608_v56  ;;  %v11610_v58 = vpop.permute.xlu0 %3881  ;;  %v9021_v56 = vpop.eup %9020 }
 0x7fb   :  { %14611 = vst [vmem:[#allocation86_spill] sm:$0xff] %v11610_v58  ;;  %4247 = vrot.lane.b32.xlu1 %v11456_v34, %s9210_s17  ;;  %v11628_v58 = vmul.f32 %v9017_v1, %v11524_v21  ;;  %v11642_v31 = vmul.f32 %v9021_v56, %v11539_v30  ;;  %v14620_v30 = vld [vmem:[#allocation43_spill] sm:$0xff] }
 0x7fc   :  { %4261 = vrot.lane.b32.xlu0 %v11461_v19, %s9210_s17  ;;  %v14621_v56 = vld [vmem:[#allocation47_spill] sm:$0xff] }
 0x7fd   :  { %v11616_v20 = vpop.permute.xlu1 %3883 }
 0x7fe   :  { %14612 = vst [vmem:[#allocation87_spill] sm:$0xff] %v11616_v20  ;;  %v11621_v29 = vpop.permute.xlu0 %3897  ;;  %v11633_v20 = vmul.f32 %v9019_v11, %v11529_v14  ;;  %v4731_v14 = vsub.f32 %v10936_v8, %v11186_v63 }
 0x7ff   :  { %14613 = vst [vmem:[#allocation88_spill] sm:$0xff] %v11621_v29  ;;  %4263 = vrot.lane.b32.xlu1 %v11470_v42, %s9210_s17 }
 0x800   :  { %3473 = vrot.lane.b32.xlu0 %v11619_v5, %s9200_s14  ;;  %v4803_v1 = vmul.f32 %v11386_v40, %v4731_v14 }
 0x801   :  { %v11630_v59 = vpop.permute.xlu1 %3899 }
 0x802   :  { %14614 = vst [vmem:[#allocation89_spill] sm:$0xff] %v11630_v59  ;;  %v11635_v52 = vpop.permute.xlu0 %3345 }
 0x803   :  { %14615 = vst [vmem:[#allocation90_spill] sm:$0xff] %v11635_v52  ;;  %3475 = vrot.lane.b32.xlu1 %v11628_v58, %s9200_s14 }
 0x804   :  { %3489 = vrot.lane.b32.xlu0 %v11633_v20, %s9200_s14 }
 0x805   :  { %v11644_v29 = vpop.permute.xlu1 %3347 }
 0x806   :  { %14616 = vst [vmem:[#allocation91_spill] sm:$0xff] %v11644_v29  ;;  %v11646_v21 = vpop.permute.xlu0 %3361  ;;  %v4733_v29 = vsub.f32 %v14621_v56, %v14620_v30  ;;  %v14625_v56 = vld [vmem:[#allocation27_spill] sm:$0xff] }
 0x807   :  { %14617 = vst [vmem:[#allocation92_spill] sm:$0xff] %v11646_v21  ;;  %3491 = vrot.lane.b32.xlu1 %v11642_v31, %s9200_s14  ;;  %v14622_v21 = vld [vmem:[#allocation19_spill] sm:$0xff]  ;;  %v4734_v43 = vsub.f32 %v14625_v56, %v14620_v30 }
 0x808   :  { %3889 = vrot.lane.b32.xlu0 %v11619_v5, %s9209_s3  ;;  %v4732_v59 = vsub.f32 %v14622_v21, %v11186_v63  ;;  %v4805_v8 = vmul.f32 %v11378_v38, %v4733_v29 }
 0x809   :  { %v11654_v11 = vpop.permute.xlu1 %3363  ;;  %v4806_v63 = vmul.f32 %v11378_v38, %v4734_v43 }
 0x80a   :  { %14618 = vst [vmem:[#allocation93_spill] sm:$0xff] %v11654_v11  ;;  %v11657_v52 = vpop.permute.xlu0 %3705  ;;  %v4804_v14 = vmul.f32 %v11386_v40, %v4732_v59  ;;  %v4821_v29 = vmul.f32 %v4805_v8, %v10960_v39 }
 0x80b   :  { %14619 = vst [vmem:[#allocation94_spill] sm:$0xff] %v11657_v52  ;;  %3891 = vrot.lane.b32.xlu1 %v11628_v58, %s9209_s3  ;;  %v4819_v52 = vmul.f32 %v4803_v1, %v10942_v25  ;;  %v4822_v30 = vmul.f32 %v4806_v63, %v10960_v39 }
 0x80c   :  { %3905 = vrot.lane.b32.xlu0 %v11633_v20, %s9209_s3  ;;  %v4820_v40 = vmul.f32 %v4804_v14, %v10942_v25  ;;  %v11696_v38 = vadd.f32 %v4821_v29, %v10976_v47 }
 0x80d   :  { %v11668_v16 = vpop.permute.xlu1 %3707  ;;  %v11686_v59 = vadd.f32 %v4819_v52, %v11042_v57  ;;  %v11711_v39 = vadd.f32 %v4822_v30, %v10976_v47 }
 0x80e   :  { %14623 = vst [vmem:[#allocation43_spill] sm:$0xff] %v11668_v16  ;;  %v11672_v11 = vpop.permute.xlu0 %3721  ;;  %v11701_v25 = vadd.f32 %v4820_v40, %v11042_v57  ;;  %v7917_v14 = vmul.f32 -1.442695, %v11696_v38  ;;  %v14652_v16 = vld [vmem:[#allocation21_spill] sm:$0xff] }
 0x80f   :  { %14624 = vst [vmem:[#allocation47_spill] sm:$0xff] %v11672_v11  ;;  %3907 = vrot.lane.b32.xlu1 %v11642_v31, %s9209_s3  ;;  %v7915_v52 = vmul.f32 -1.442695, %v11686_v59  ;;  %v7918_v29 = vmul.f32 -1.442695, %v11711_v39 }
 0x810   :  { %3353 = vrot.lane.b32.xlu0 %v11619_v5, %s9206_s5  ;;  %v7916_v57 = vmul.f32 -1.442695, %v11701_v25 }
 0x811   :  { %v11682_v21 = vpop.permute.xlu1 %3723  ;;  %9022 = vpow2.f32 %v7915_v52 }
 0x812   :  { %14626 = vst [vmem:[#allocation19_spill] sm:$0xff] %v11682_v21  ;;  %v11688_v1 = vpop.permute.xlu0 %4121  ;;  %9024 = vpow2.f32 %v7917_v14  ;;  %v14651_v21 = vld [vmem:[#allocation45_spill] sm:$0xff] }
 0x813   :  { %14627 = vst [vmem:[#allocation27_spill] sm:$0xff] %v11688_v1  ;;  %3355 = vrot.lane.b32.xlu1 %v11628_v58, %s9206_s5  ;;  %9026 = vpow2.f32 %v7916_v57  ;;  %v4737_v11 = vsub.f32 %v14652_v16, %v14651_v21  ;;  %v8820_v16 = vld [vmem:[%s14228_s10 + $0x4] ss:$20 sps:$4 sm:$0xff]  }
 0x814   :  { %3369 = vrot.lane.b32.xlu0 %v11633_v20, %s9206_s5  ;;  %9028 = vpow2.f32 %v7918_v29  ;;  %7144 = vmatprep.mubr.bf16.mxu0 %v8820_v16 }
 0x815   :  { %v11698_v43 = vpop.permute.xlu1 %4123 }
 0x816   :  { %14628 = vst [vmem:[#allocation95_spill] sm:$0xff] %v11698_v43  ;;  %v11704_v8 = vpop.permute.xlu0 %4137 }
 0x817   :  { %14629 = vst [vmem:[#allocation96_spill] sm:$0xff] %v11704_v8  ;;  %3371 = vrot.lane.b32.xlu1 %v11642_v31, %s9206_s5 }
 0x818   :  { %3713 = vrot.lane.b32.xlu0 %v11619_v5, %s9203_s16 }
 0x819   :  { %v11714_v56 = vpop.permute.xlu1 %4139 }
 0x81a   :  { %14630 = vst [vmem:[#allocation97_spill] sm:$0xff] %v11714_v56  ;;  %v11717_v63 = vpop.permute.xlu0 %3585 }
 0x81b   :  { %14631 = vst [vmem:[#allocation98_spill] sm:$0xff] %v11717_v63  ;;  %3715 = vrot.lane.b32.xlu1 %v11628_v58, %s9203_s16 }
 0x81c   :  { %3729 = vrot.lane.b32.xlu0 %v11633_v20, %s9203_s16 }
 0x81d   :  { %v11724_v47 = vpop.permute.xlu1 %3587 }
 0x81e   :  { %14632 = vst [vmem:[#allocation99_spill] sm:$0xff] %v11724_v47  ;;  %v11726_v40 = vpop.permute.xlu0 %3601  ;;  %v9023_v47 = vpop.eup %9022 }
 0x81f   :  { %14633 = vst [vmem:[#allocation100_spill] sm:$0xff] %v11726_v40  ;;  %3731 = vrot.lane.b32.xlu1 %v11642_v31, %s9203_s16 }
 0x820   :  { %4129 = vrot.lane.b32.xlu0 %v11619_v5, %s9207_s30 }
 0x821   :  { %v11732_v30 = vpop.permute.xlu1 %3603 }
 0x822   :  { %14634 = vst [vmem:[#allocation101_spill] sm:$0xff] %v11732_v30  ;;  %v11734_v52 = vpop.permute.xlu0 %4001  ;;  %v4899_v30 = vadd.f32 1.0, %v9023_v47 }
 0x823   :  { %14635 = vst [vmem:[#allocation102_spill] sm:$0xff] %v11734_v52  ;;  %4131 = vrot.lane.b32.xlu1 %v11628_v58, %s9207_s30  ;;  %v9025_v52 = vpop.eup %9024 }
 0x824   :  { %4145 = vrot.lane.b32.xlu0 %v11633_v20, %s9207_s30  ;;  %v9027_v40 = vpop.eup %9026  ;;  %9030 = vrcp.f32 %v4899_v30 }
 0x825   :  { %v11740_v14 = vpop.permute.xlu1 %4003  ;;  %v9029_v43 = vpop.eup %9028  ;;  %v4900_v56 = vadd.f32 1.0, %v9027_v40 }
 0x826   :  { %14636 = vst [vmem:[#allocation103_spill] sm:$0xff] %v11740_v14  ;;  %v11742_v57 = vpop.permute.xlu0 %4017  ;;  %v4902_v47 = vadd.f32 1.0, %v9029_v43  ;;  %v14646_v43 = vld [vmem:[#allocation44_spill] sm:$0xff] }
 0x827   :  { %14637 = vst [vmem:[#allocation104_spill] sm:$0xff] %v11742_v57  ;;  %4147 = vrot.lane.b32.xlu1 %v11642_v31, %s9207_s30  ;;  %v4901_v57 = vadd.f32 1.0, %v9025_v52  ;;  %v14647_v52 = vld [vmem:[#allocation25_spill] sm:$0xff] }
 0x828   :  { %3593 = vrot.lane.b32.xlu0 %v11619_v5, %s9205_s4 }
 0x829   :  { %v11748_v29 = vpop.permute.xlu1 %4019  ;;  %9032 = vrcp.f32 %v4901_v57  ;;  %v4735_v57 = vsub.f32 %v14647_v52, %v14646_v43  ;;  %v14653_v52 = vld [vmem:[#allocation20_spill] sm:$0xff] }
 0x82a   :  { %14638 = vst [vmem:[#allocation105_spill] sm:$0xff] %v11748_v29  ;;  %v11750_v63 = vpop.permute.xlu0 %4241  ;;  %9034 = vrcp.f32 %v4900_v56 }
 0x82b   :  { %14639 = vst [vmem:[#allocation106_spill] sm:$0xff] %v11750_v63  ;;  %3595 = vrot.lane.b32.xlu1 %v11628_v58, %s9205_s4  ;;  %9036 = vrcp.f32 %v4902_v47  ;;  %v4807_v47 = vmul.f32 %v11406_v51, %v4735_v57  ;;  %v4809_v57 = vmul.f32 %v11392_v46, %v4737_v11 }
 0x82c   :  { %3609 = vrot.lane.b32.xlu0 %v11633_v20, %s9205_s4 }
 0x82d   :  { %v11756_v14 = vpop.permute.xlu1 %4243 }
 0x82e   :  { %14640 = vst [vmem:[#allocation107_spill] sm:$0xff] %v11756_v14  ;;  %v11758_v1 = vpop.permute.xlu0 %4257 }
 0x82f   :  { %14641 = vst [vmem:[#allocation108_spill] sm:$0xff] %v11758_v1  ;;  %3611 = vrot.lane.b32.xlu1 %v11642_v31, %s9205_s4  ;;  %v14649_v1 = vld [vmem:[#allocation22_spill] sm:$0xff] }
 0x830   :  { %4009 = vrot.lane.b32.xlu0 %v11619_v5, %s9208_s15 }
 0x831   :  { %v11764_v63 = vpop.permute.xlu1 %4259  ;;  %v9031_v8 = vpop.eup %9030 }
 0x832   :  { %14642 = vst [vmem:[#allocation109_spill] sm:$0xff] %v11764_v63  ;;  %v11766_v29 = vpop.permute.xlu0 %3469  ;;  %v4736_v63 = vsub.f32 %v14649_v1, %v14646_v43  ;;  %v14654_v1 = vld [vmem:[#allocation17_spill] sm:$0xff] }
 0x833   :  { %14643 = vst [vmem:[#allocation110_spill] sm:$0xff] %v11766_v29  ;;  %4011 = vrot.lane.b32.xlu1 %v11628_v58, %s9208_s15  ;;  %v4738_v29 = vsub.f32 %v14653_v52, %v14651_v21  ;;  %v4741_v43 = vsub.f32 %v14654_v1, %v11194_v18 }
 0x834   :  { %4025 = vrot.lane.b32.xlu0 %v11633_v20, %s9208_s15 }
 0x835   :  { %v11772_v40 = vpop.permute.xlu1 %3471  ;;  %v4810_v52 = vmul.f32 %v11392_v46, %v4738_v29  ;;  %v4813_v45 = vmul.f32 %v11400_v36, %v4741_v43 }
 0x836   :  { %14644 = vst [vmem:[#allocation111_spill] sm:$0xff] %v11772_v40  ;;  %v11774_v30 = vpop.permute.xlu0 %3485  ;;  %v9033_v40 = vpop.eup %9032 }
 0x837   :  { %14645 = vst [vmem:[#allocation112_spill] sm:$0xff] %v11774_v30  ;;  %4027 = vrot.lane.b32.xlu1 %v11642_v31, %s9208_s15  ;;  %v4808_v30 = vmul.f32 %v11406_v51, %v4736_v63  ;;  %v11809_v51 = vmul.f32 %v9031_v8, %v11686_v59  ;;  %v4823_v63 = vmul.f32 %v4807_v47, %v10930_v48  ;;  %v9035_v11 = vpop.eup %9034 }
 0x838   :  { %4249 = vrot.lane.b32.xlu0 %v11619_v5, %s9210_s17  ;;  %v11827_v46 = vmul.f32 %v9033_v40, %v11696_v38  ;;  %v9037_v43 = vpop.eup %9036  ;;  %v11834_v16 = vmul.f32 %v9035_v11, %v11701_v25  ;;  %v4829_v38 = vmul.f32 %v4813_v45, %v10924_v2 }
 0x839   :  { %v11782_v56 = vpop.permute.xlu1 %3487  ;;  %14657 = vst [vmem:[#allocation45_spill] sm:$0xff] %v11809_v51  ;;  %v4824_v8 = vmul.f32 %v4808_v30, %v10930_v48  ;;  %v11837_v48 = vadd.f32 %v4823_v63, %v10934_v35  ;;  %v11853_v40 = vmul.f32 %v9037_v43, %v11711_v39 }
 0x83a   :  { %14648 = vst [vmem:[#allocation44_spill] sm:$0xff] %v11782_v56  ;;  %v11787_v14 = vpop.permute.xlu0 %3885  ;;  %v14656_v56 = vld [vmem:[#allocation14_spill] sm:$0xff]  ;;  %14660 = vst [vmem:[#allocation21_spill] sm:$0xff] %v11827_v46  ;;  %v11869_v63 = vadd.f32 %v4829_v38, %v11026_v6 }
 0x83b   :  { %14650 = vst [vmem:[#allocation25_spill] sm:$0xff] %v11787_v14  ;;  %4251 = vrot.lane.b32.xlu1 %v11628_v58, %s9210_s17  ;;  %v4742_v21 = vsub.f32 %v14656_v56, %v11194_v18  ;;  %v14659_v18 = vld [vmem:[#allocation15_spill] sm:$0xff]  ;;  %14661 = vst [vmem:[#allocation20_spill] sm:$0xff] %v11834_v16 }
 0x83c   :  { %4265 = vrot.lane.b32.xlu0 %v11633_v20, %s9210_s17  ;;  %v4740_v59 = vsub.f32 %v14659_v18, %v11198_v3  ;;  %14662 = vst [vmem:[#allocation17_spill] sm:$0xff] %v11853_v40 }
 0x83d   :  { %v11801_v14 = vpop.permute.xlu1 %3887  ;;  %v4814_v56 = vmul.f32 %v11400_v36, %v4742_v21 }
 0x83e   :  { %14655 = vst [vmem:[#allocation22_spill] sm:$0xff] %v11801_v14  ;;  %v11813_v1 = vpop.permute.xlu0 %3901  ;;  %v14658_v14 = vld [vmem:[#allocation18_spill] sm:$0xff]  ;;  %v4812_v36 = vmul.f32 %v11412_v27, %v4740_v59 }
 0x83f   :  { %v4739_v7 = vsub.f32 %v14658_v14, %v11198_v3  ;;  %4267 = vrot.lane.b32.xlu1 %v11642_v31, %s9210_s17  ;;  %v4825_v14 = vmul.f32 %v4809_v57, %v10932_v15  ;;  %v4826_v3 = vmul.f32 %v4810_v52, %v10932_v15  ;;  %v4830_v25 = vmul.f32 %v4814_v56, %v10924_v2 }
 0x840   :  { %5083 = vrot.lane.b32.xlu0 %v11809_v51, %s9200_s14  ;;  %v7919_v57 = vmul.f32 -1.442695, %v11837_v48  ;;  %v4828_v2 = vmul.f32 %v4812_v36, %v11015_v4 }
 0x841   :  { %v4811_v29 = vmul.f32 %v11412_v27, %v4739_v7  ;;  %v11831_v47 = vpop.permute.xlu1 %3903  ;;  %v11847_v7 = vadd.f32 %v4824_v8, %v10934_v35  ;;  %v11856_v15 = vadd.f32 %v4825_v14, %v11038_v26  ;;  %v11863_v35 = vadd.f32 %v4826_v3, %v11038_v26 }
 0x842   :  { %v11841_v30 = vpop.permute.xlu0 %3349  ;;  %v11875_v52 = vadd.f32 %v4830_v25, %v11026_v6  ;;  %9038 = vpow2.f32 %v7919_v57  ;;  %v11887_v59 = vadd.f32 %v4828_v2, %v10928_v9  ;;  %v7925_v6 = vmul.f32 -1.442695, %v11869_v63 }
 0x843   :  { %5085 = vrot.lane.b32.xlu1 %v11827_v46, %s9200_s14  ;;  %v4827_v27 = vmul.f32 %v4811_v29, %v11015_v4  ;;  %v7920_v39 = vmul.f32 -1.442695, %v11847_v7  ;;  %v7921_v26 = vmul.f32 -1.442695, %v11856_v15  ;;  %v7922_v18 = vmul.f32 -1.442695, %v11863_v35 }
 0x844   :  { %5099 = vrot.lane.b32.xlu0 %v11834_v16, %s9200_s14  ;;  %v7926_v56 = vmul.f32 -1.442695, %v11875_v52 }
 0x845   :  { %v11859_v45 = vpop.permute.xlu1 %3351  ;;  %v11881_v4 = vadd.f32 %v4827_v27, %v10928_v9  ;;  %9040 = vpow2.f32 %v7920_v39  ;;  %v7924_v9 = vmul.f32 -1.442695, %v11887_v59 }
 0x846   :  { %v11866_v21 = vpop.permute.xlu0 %3365  ;;  %9042 = vpow2.f32 %v7921_v26 }
 0x847   :  { %5101 = vrot.lane.b32.xlu1 %v11853_v40, %s9200_s14  ;;  %v7923_v14 = vmul.f32 -1.442695, %v11881_v4  ;;  %9044 = vpow2.f32 %v7922_v18 }
 0x848   :  { %4963 = vrot.lane.b32.xlu0 %v11809_v51, %s9206_s5  ;;  %9046 = vpow2.f32 %v7925_v6 }
 0x849   :  { %v11883_v11 = vpop.permute.xlu1 %3367  ;;  %9048 = vpow2.f32 %v7926_v56 }
 0x84a   :  { %v11889_v8 = vpop.permute.xlu0 %3709  ;;  %9050 = vpow2.f32 %v7923_v14 }
 0x84b   :  { %14663 = vst [vmem:[#allocation14_spill] sm:$0xff] %v11889_v8  ;;  %4965 = vrot.lane.b32.xlu1 %v11827_v46, %s9206_s5  ;;  %9052 = vpow2.f32 %v7924_v9 }
 0x84c   :  { %4979 = vrot.lane.b32.xlu0 %v11834_v16, %s9206_s5 }
 0x84d   :  { %v11898_v29 = vpop.permute.xlu1 %3711 }
 0x84e   :  { %14664 = vst [vmem:[#allocation18_spill] sm:$0xff] %v11898_v29  ;;  %v11901_v43 = vpop.permute.xlu0 %3725 }
 0x84f   :  { %14665 = vst [vmem:[#allocation15_spill] sm:$0xff] %v11901_v43  ;;  %4981 = vrot.lane.b32.xlu1 %v11853_v40, %s9206_s5  ;;  %v9039_v27 = vpop.eup %9038 }
 0x850   :  { %5499 = vrot.lane.b32.xlu0 %v11809_v51, %s9209_s3  ;;  %v4903_v26 = vadd.f32 1.0, %v9039_v27 }
 0x851   :  { %v11907_v3 = vpop.permute.xlu1 %3727 }
 0x852   :  { %v11909_v36 = vpop.permute.xlu0 %4125  ;;  %v9041_v57 = vpop.eup %9040  ;;  %9054 = vrcp.f32 %v4903_v26 }
 0x853   :  { %14666 = vst [vmem:[#allocation113_spill] sm:$0xff] %v11909_v36  ;;  %5501 = vrot.lane.b32.xlu1 %v11827_v46, %s9209_s3  ;;  %v9043_v39 = vpop.eup %9042  ;;  %v4904_v14 = vadd.f32 1.0, %v9041_v57 }
 0x854   :  { %5515 = vrot.lane.b32.xlu0 %v11834_v16, %s9209_s3  ;;  %v9045_v6 = vpop.eup %9044 }
 0x855   :  { %v11915_v38 = vpop.permute.xlu1 %4127  ;;  %v9047_v56 = vpop.eup %9046  ;;  %9056 = vrcp.f32 %v4904_v14  ;;  %v14677_v14 = vld [vmem:[#allocation42_spill] sm:$0xff] }
 0x856   :  { %14667 = vst [vmem:[#allocation114_spill] sm:$0xff] %v11915_v38  ;;  %v11917_v25 = vpop.permute.xlu0 %4141  ;;  %v9049_v9 = vpop.eup %9048 }
 0x857   :  { %14668 = vst [vmem:[#allocation115_spill] sm:$0xff] %v11917_v25  ;;  %5517 = vrot.lane.b32.xlu1 %v11853_v40, %s9209_s3  ;;  %v4905_v25 = vadd.f32 1.0, %v9043_v39  ;;  %v9051_v38 = vpop.eup %9050  ;;  %v4910_v43 = vadd.f32 1.0, %v9049_v9 }
 0x858   :  { %5323 = vrot.lane.b32.xlu0 %v11809_v51, %s9203_s16  ;;  %v9053_v27 = vpop.eup %9052  ;;  %v4907_v57 = vadd.f32 1.0, %v9051_v38 }
 0x859   :  { %v11923_v2 = vpop.permute.xlu1 %4143  ;;  %9058 = vrcp.f32 %v4905_v25  ;;  %v4745_v25 = vsub.f32 %v14677_v14, %v11202_v50  ;;  %v14966_v14 = vmov 0  }
 0x85a   :  { %14669 = vst [vmem:[#allocation116_spill] sm:$0xff] %v11923_v2  ;;  %v11925_v18 = vpop.permute.xlu0 %3589  ;;  %v4906_v2 = vadd.f32 1.0, %v9045_v6  ;;  %v14675_v6 = vld [vmem:[#allocation40_spill] sm:$0xff] }
 0x85b   :  { %14670 = vst [vmem:[#allocation117_spill] sm:$0xff] %v11925_v18  ;;  %5325 = vrot.lane.b32.xlu1 %v11827_v46, %s9203_s16  ;;  %v4909_v18 = vadd.f32 1.0, %v9047_v56  ;;  %v14676_v56 = vld [vmem:[#allocation16_spill] sm:$0xff] }
 0x85c   :  { %5339 = vrot.lane.b32.xlu0 %v11834_v16, %s9203_s16  ;;  %9060 = vrcp.f32 %v4906_v2  ;;  %v4744_v29 = vsub.f32 %v14676_v56, %v11200_v62 }
 0x85d   :  { %v11931_v36 = vpop.permute.xlu1 %3591  ;;  %9062 = vrcp.f32 %v4909_v18 }
 0x85e   :  { %14671 = vst [vmem:[#allocation118_spill] sm:$0xff] %v11931_v36  ;;  %v11933_v8 = vpop.permute.xlu0 %3605  ;;  %v4908_v36 = vadd.f32 1.0, %v9053_v27  ;;  %9064 = vrcp.f32 %v4910_v43  ;;  %v4816_v2 = vmul.f32 %v11414_v22, %v4744_v29  ;;  %v14680_v43 = vld [vmem:[#allocation41_spill] sm:$0xff] }
 0x85f   :  { %14672 = vst [vmem:[#allocation119_spill] sm:$0xff] %v11933_v8  ;;  %5341 = vrot.lane.b32.xlu1 %v11853_v40, %s9203_s16  ;;  %v4743_v8 = vsub.f32 %v14675_v6, %v11200_v62  ;;  %9066 = vrcp.f32 %v4907_v57  ;;  %v4817_v62 = vmul.f32 %v11420_v28, %v4745_v25  ;;  %v4746_v27 = vsub.f32 %v14680_v43, %v11202_v50  ;;  %v9055_v56 = vpop.eup %9054 }
 0x860   :  { %5203 = vrot.lane.b32.xlu0 %v11809_v51, %s9205_s4  ;;  %9068 = vrcp.f32 %v4908_v36  ;;  %v3501_v50 = vsel %vm558_vm4, %v11430_v44, %v11422_v53 }
 0x861   :  { %v11939_v39 = vpop.permute.xlu1 %3607  ;;  %v4815_v38 = vmul.f32 %v11414_v22, %v4743_v8  ;;  %v4832_v22 = vmul.f32 %v4816_v2, %v10914_v0  ;;  %v4818_v36 = vmul.f32 %v11420_v28, %v4746_v27  ;;  %v4833_v57 = vmul.f32 %v4817_v62, %v10916_v49 }
 0x862   :  { %14673 = vst [vmem:[#allocation120_spill] sm:$0xff] %v11939_v39  ;;  %v11941_v26 = vpop.permute.xlu0 %4005  ;;  %v9057_v27 = vpop.eup %9056  ;;  %v3494_v62 = vsel %vm558_vm4, %v11428_v24, %v11436_v61 }
 0x863   :  { %14674 = vst [vmem:[#allocation121_spill] sm:$0xff] %v11941_v26  ;;  %5205 = vrot.lane.b32.xlu1 %v11827_v46, %s9205_s4  ;;  %v4831_v8 = vmul.f32 %v4815_v38, %v10914_v0  ;;  %v3502_v38 = vsel %vm558_vm4, %v11436_v61, %v11428_v24  ;;  %v12002_v25 = vadd.f32 %v4832_v22, %v10920_v41  ;;  %v14689_v22 = vld [vmem:[#allocation30_spill] sm:$0xff] }
 0x864   :  { %5219 = vrot.lane.b32.xlu0 %v11834_v16, %s9205_s4  ;;  %v3493_v0 = vsel %vm558_vm4, %v11422_v53, %v11430_v44  ;;  %v3910_v24 = vsel %vm793_vm8, %v11444_v55, %v11458_v54  ;;  %v3382_v61 = vsel %vm489_vm5, %v11482_v37, %v11472_v32 }
 0x865   :  { %v11955_v9 = vpop.permute.xlu1 %4007  ;;  %v11999_v28 = vadd.f32 %v4831_v8, %v10920_v41  ;;  %14685 = vst [vmem:[#allocation122_spill] sm:$0xff] %v12002_v25  ;;  %v4834_v8 = vmul.f32 %v4818_v36, %v10916_v49  ;;  %v12019_v41 = vadd.f32 %v4833_v57, %v11002_v12  ;;  %v3918_v49 = vsel %vm793_vm8, %v11458_v54, %v11444_v55  ;;  %v14692_v57 = vld [vmem:[#allocation31_spill] sm:$0xff]  ;;  %v14718_v25 = vld [vmem:[#allocation82_spill] sm:$0xff] }
 0x866   :  { %14678 = vst [vmem:[#allocation40_spill] sm:$0xff] %v11955_v9  ;;  %v11958_v18 = vpop.permute.xlu0 %4021  ;;  %v9059_v43 = vpop.eup %9058  ;;  %v12044_v36 = vmul.f32 %v9057_v27, %v11847_v7  ;;  %v3374_v54 = vsel %vm489_vm5, %v11472_v32, %v11482_v37  ;;  %v14694_v7 = vld [vmem:[#allocation55_spill] sm:$0xff] }
 0x867   :  { %14679 = vst [vmem:[#allocation16_spill] sm:$0xff] %v11958_v18  ;;  %5221 = vrot.lane.b32.xlu1 %v11853_v40, %s9205_s4  ;;  %14684 = vst [vmem:[#allocation23_spill] sm:$0xff] %v11999_v28  ;;  %v14695_v27 = vld [vmem:[#allocation59_spill] sm:$0xff] }
 0x868   :  { %5739 = vrot.lane.b32.xlu0 %v11809_v51, %s9207_s30  ;;  %14688 = vst [vmem:[#allocation125_spill] sm:$0xff] %v12019_v41  ;;  %v12027_v51 = vmul.f32 %v3502_v38, %v14689_v22  ;;  %14691 = vst [vmem:[#allocation127_spill] sm:$0xff] %v12044_v36  ;;  %v12059_v38 = vmul.f32 %v9059_v43, %v11856_v15  ;;  %v14698_v15 = vld [vmem:[#allocation38_spill] sm:$0xff] }
 0x869   :  { %v11968_v29 = vpop.permute.xlu1 %4023  ;;  %v9061_v44 = vpop.eup %9060  ;;  %v12076_v43 = vmul.f32 %v3910_v24, %v14698_v15  ;;  %v14716_v24 = vld [vmem:[#allocation63_spill] sm:$0xff] }
 0x86a   :  { %14681 = vst [vmem:[#allocation42_spill] sm:$0xff] %v11968_v29  ;;  %v11972_v6 = vpop.permute.xlu0 %4245  ;;  %14693 = vst [vmem:[#allocation128_spill] sm:$0xff] %v12059_v38  ;;  %v12089_v9 = vmul.f32 %v9061_v44, %v11863_v35 }
 0x86b   :  { %14682 = vst [vmem:[#allocation41_spill] sm:$0xff] %v11972_v6  ;;  %5741 = vrot.lane.b32.xlu1 %v11827_v46, %s9207_s30  ;;  %v12022_v46 = vmul.f32 %v3501_v50, %v14689_v22  ;;  %v12050_v50 = vmul.f32 %v3494_v62, %v14692_v57  ;;  %v3917_v62 = vsel %vm793_vm8, %v11449_v60, %v14694_v7  ;;  %v14699_v6 = vld [vmem:[#allocation39_spill] sm:$0xff] }
 0x86c   :  { %5755 = vrot.lane.b32.xlu0 %v11834_v16, %s9207_s30  ;;  %v12015_v16 = vmul.f32 %v9055_v56, %v11837_v48  ;;  %v9063_v48 = vpop.eup %9062  ;;  %v12047_v56 = vmul.f32 %v3493_v0, %v14692_v57  ;;  %v3909_v0 = vsel %vm793_vm8, %v14694_v7, %v11449_v60  ;;  %v14700_v60 = vld [vmem:[#allocation32_spill] sm:$0xff] }
 0x86d   :  { %v12012_v2 = vpop.permute.xlu1 %4247  ;;  %v9065_v55 = vpop.eup %9064  ;;  %v12086_v7 = vmul.f32 %v3382_v61, %v14700_v60  ;;  %v12105_v61 = vmul.f32 %v3917_v62, %v14699_v6 }
 0x86e   :  { %14686 = vst [vmem:[#allocation123_spill] sm:$0xff] %v12012_v2  ;;  %14687 = vst [vmem:[#allocation124_spill] sm:$0xff] %v12015_v16  ;;  %v12024_v53 = vpop.permute.xlu0 %4261  ;;  %v12079_v2 = vmul.f32 %v3918_v49, %v14699_v6  ;;  %v14704_v49 = vld [vmem:[#allocation33_spill] sm:$0xff]  ;;  %v12118_v44 = vmul.f32 %v9065_v55, %v11875_v52  ;;  %v14711_v55 = vld [vmem:[#allocation64_spill] sm:$0xff] }
 0x86f   :  { %14690 = vst [vmem:[#allocation126_spill] sm:$0xff] %v12024_v53  ;;  %5757 = vrot.lane.b32.xlu1 %v11853_v40, %s9207_s30  ;;  %v14696_v40 = vld [vmem:[#allocation61_spill] sm:$0xff]  ;;  %v9067_v53 = vpop.eup %9066  ;;  %14701 = vst [vmem:[#allocation59_spill] sm:$0xff] %v12086_v7  ;;  %v12097_v41 = vmul.f32 %v3374_v54, %v14704_v49 }
 0x870   :  { %5087 = vrot.lane.b32.xlu0 %v12015_v16, %s9200_s14  ;;  %v3381_v32 = vsel %vm489_vm5, %v14696_v40, %v14695_v27  ;;  %v3373_v18 = vsel %vm489_vm5, %v14695_v27, %v14696_v40  ;;  %v9069_v29 = vpop.eup %9068  ;;  %14702 = vst [vmem:[#allocation61_spill] sm:$0xff] %v12089_v9  ;;  %v12102_v40 = vmul.f32 %v3909_v0, %v14698_v15  ;;  %14707 = vst [vmem:[#allocation33_spill] sm:$0xff] %v12118_v44  ;;  %v14715_v52 = vld [vmem:[#allocation65_spill] sm:$0xff] }
 0x871   :  { %v12073_v37 = vpop.permute.xlu1 %4263  ;;  %v12108_v35 = vmul.f32 %v3381_v32, %v14700_v60  ;;  %v12121_v54 = vmul.f32 %v9067_v53, %v11881_v4  ;;  %v12124_v0 = vmul.f32 %v3373_v18, %v14704_v49  ;;  %v12127_v27 = vmul.f32 %v9069_v29, %v11887_v59  ;;  %v14712_v4 = vld [vmem:[#allocation62_spill] sm:$0xff]  ;;  %v14713_v29 = vld [vmem:[#allocation44_spill] sm:$0xff]  ;;  %v14714_v53 = vld [vmem:[#allocation111_spill] sm:$0xff] }
 0x872   :  { %14697 = vst [vmem:[#allocation55_spill] sm:$0xff] %v12073_v37  ;;  %v3474_v26 = vpop.permute.xlu0 %3473  ;;  %v12092_v37 = vadd.f32 %v4834_v8, %v11002_v12  ;;  %v12115_v8 = vmul.f32 %v9063_v48, %v11869_v63  ;;  %v12139_v18 = vsel %vm696_vm2, %v14712_v4, %v14711_v55  ;;  %v12145_v59 = vsel %vm696_vm2, %v14711_v55, %v14712_v4  ;;  %v14717_v32 = vld [vmem:[#allocation84_spill] sm:$0xff] }
 0x873   :  { %5089 = vrot.lane.b32.xlu1 %v12059_v38, %s9200_s14  ;;  %14705 = vst [vmem:[#allocation39_spill] sm:$0xff] %v12108_v35  ;;  %14708 = vst [vmem:[#allocation129_spill] sm:$0xff] %v12121_v54  ;;  %v3498_v63 = vsel %vm558_vm4, %v14714_v53, %v14713_v29  ;;  %v3734_v12 = vsel %vm696_vm2, %v14716_v24, %v14715_v52  ;;  %v3742_v55 = vsel %vm696_vm2, %v14715_v52, %v14716_v24  ;;  %v14719_v24 = vld [vmem:[#allocation85_spill] sm:$0xff]  ;;  %v14720_v52 = vld [vmem:[#allocation83_spill] sm:$0xff] }
 0x874   :  { %14703 = vst [vmem:[#allocation38_spill] sm:$0xff] %v12092_v37  ;;  %5103 = vrot.lane.b32.xlu0 %v12044_v36, %s9200_s14  ;;  %14706 = vst [vmem:[#allocation32_spill] sm:$0xff] %v12115_v8  ;;  %v3495_v28 = vsel %vm558_vm4, %v14718_v25, %v14717_v32  ;;  %v3503_v39 = vsel %vm558_vm4, %v14717_v32, %v14718_v25  ;;  %v3496_v44 = vsel %vm558_vm4, %v14720_v52, %v14719_v24  ;;  %v14724_v35 = vld [vmem:[#allocation26_spill] sm:$0xff] }
 0x875   :  { %14709 = vst [vmem:[#allocation130_spill] sm:$0xff] %v12124_v0  ;;  %v3476_v62 = vpop.permute.xlu1 %3475  ;;  %14710 = vst [vmem:[#allocation131_spill] sm:$0xff] %v12127_v27  ;;  %v14721_v27 = vld [vmem:[#allocation112_spill] sm:$0xff]  ;;  %v3506_v54 = vsel %vm558_vm4, %v14713_v29, %v14714_v53  ;;  %v3520_v23 = vmul.f32 %v3498_v63, %v14692_v57  ;;  %v12217_v7 = vmul.f32 %v3734_v12, %v14724_v35 }
 0x876   :  { %v3490_v48 = vpop.permute.xlu0 %3489  ;;  %v14723_v29 = vld [vmem:[#allocation24_spill] sm:$0xff] }
 0x877   :  { %5105 = vrot.lane.b32.xlu1 %v12089_v9, %s9200_s14  ;;  %v3499_v4 = vsel %vm558_vm4, %v3474_v26, %v3490_v48  ;;  %v3507_v37 = vsel %vm558_vm4, %v3490_v48, %v3474_v26  ;;  %v14722_v26 = vld [vmem:[#allocation110_spill] sm:$0xff]  ;;  %v12201_v63 = vmul.f32 %v3742_v55, %v14723_v29  ;;  %v3519_v55 = vmul.f32 %v3506_v54, %v14689_v22  ;;  %v14728_v12 = vld [vmem:[#allocation88_spill] sm:$0xff] }
 0x878   :  { %4967 = vrot.lane.b32.xlu0 %v12015_v16, %s9206_s5  ;;  %v3497_v48 = vsel %vm558_vm4, %v14722_v26, %v14721_v27  ;;  %v3521_v33 = vmul.f32 %v3507_v37, %v14689_v22  ;;  %v3522_v13 = vmul.f32 %v3499_v4, %v14692_v57  ;;  %v3505_v37 = vsel %vm558_vm4, %v14721_v27, %v14722_v26 }
 0x879   :  { %v3492_v8 = vpop.permute.xlu1 %3491  ;;  %v3518_v53 = vmul.f32 %v3497_v48, %v14692_v57  ;;  %v3513_v27 = vmul.f32 %v3503_v39, %v14689_v22  ;;  %v3514_v26 = vmul.f32 %v3495_v28, %v14692_v57  ;;  %v14727_v28 = vld [vmem:[#allocation86_spill] sm:$0xff] }
 0x87a   :  { %v3500_v25 = vsel %vm558_vm4, %v3476_v62, %v3492_v8  ;;  %v3508_v32 = vsel %vm558_vm4, %v3492_v8, %v3476_v62  ;;  %v3890_v10 = vpop.permute.xlu0 %3889  ;;  %v3504_v8 = vsel %vm558_vm4, %v14719_v24, %v14720_v52  ;;  %v3516_v62 = vmul.f32 %v3496_v44, %v14692_v57  ;;  %v14725_v24 = vld [vmem:[#allocation69_spill] sm:$0xff]  ;;  %v14726_v44 = vld [vmem:[#allocation67_spill] sm:$0xff] }
 0x87b   :  { %v3523_v17 = vmul.f32 %v3508_v32, %v14689_v22  ;;  %v3524_v34 = vmul.f32 %v3500_v25, %v14692_v57  ;;  %4969 = vrot.lane.b32.xlu1 %v12059_v38, %s9206_s5  ;;  %v12223_v52 = vsel %vm931_vm6, %v14726_v44, %v14725_v24  ;;  %v3515_v48 = vmul.f32 %v3504_v8, %v14689_v22  ;;  %v14729_v8 = vld [vmem:[#allocation87_spill] sm:$0xff] }
 0x87c   :  { %4983 = vrot.lane.b32.xlu0 %v12044_v36, %s9206_s5  ;;  %v8512_v39 = vpack.c.bf16 %v3516_v62, %v3514_v26  ;;  %v3919_v54 = vsel %vm793_vm8, %v14728_v12, %v14727_v28 }
 0x87d   :  { %v8519_v4 = vpack.c.bf16 %v3523_v17, %v3521_v33  ;;  %v3892_v25 = vpop.permute.xlu1 %3891  ;;  %v8520_v32 = vpack.c.bf16 %v3524_v34, %v3522_v13  ;;  %v3517_v33 = vmul.f32 %v3505_v37, %v14689_v22  ;;  %v8516_v34 = vpack.c.bf16 %v3520_v23, %v3518_v53  ;;  %v14730_v37 = vld [vmem:[#allocation89_spill] sm:$0xff] }
 0x87e   :  { %v3906_v19 = vpop.permute.xlu0 %3905  ;;  %v3920_v23 = vsel %vm793_vm8, %v14730_v37, %v14729_v8 }
 0x87f   :  { %4985 = vrot.lane.b32.xlu1 %v12089_v9, %s9206_s5  ;;  %7112 = vmatprep.subr.bf16.mxu0 %v8520_v32  ;;  %v3915_v13 = vsel %vm793_vm8, %v3890_v10, %v3906_v19  ;;  %v3923_v17 = vsel %vm793_vm8, %v3906_v19, %v3890_v10  ;;  %v8515_v53 = vpack.c.bf16 %v3519_v55, %v3517_v33  ;;  %v14731_v32 = vld [vmem:[#allocation22_spill] sm:$0xff] }
 0x880   :  { %7113 = vmatpush1.bf16.msra.mxu0 %v8519_v4  ;;  %5503 = vrot.lane.b32.xlu0 %v12015_v16, %s9209_s3  ;;  %v3922_v19 = vsel %vm793_vm8, %v11831_v47, %v14731_v32  ;;  %v14732_v4 = vld [vmem:[#allocation25_spill] sm:$0xff]  ;;  %v3914_v26 = vsel %vm793_vm8, %v14731_v32, %v11831_v47  ;;  %v3937_v22 = vmul.f32 %v3915_v13, %v14698_v15 }
 0x881   :  { %v3908_v10 = vpop.permute.xlu1 %3907  ;;  %7114 = vmatprep.subr.bf16.mxu0 %v8516_v34  ;;  %v3921_v62 = vsel %vm793_vm8, %v11813_v1, %v14732_v4  ;;  %v3938_v34 = vmul.f32 %v3923_v17, %v14699_v6  ;;  %v3912_v47 = vsel %vm793_vm8, %v14729_v8, %v14730_v37  ;;  %v3936_v13 = vmul.f32 %v3922_v19, %v14699_v6 }
 0x882   :  { %v3916_v55 = vsel %vm793_vm8, %v3892_v25, %v3908_v10  ;;  %v3924_v33 = vsel %vm793_vm8, %v3908_v10, %v3892_v25  ;;  %v3354_v57 = vpop.permute.xlu0 %3353  ;;  %v3913_v25 = vsel %vm793_vm8, %v14732_v4, %v11813_v1  ;;  %v3932_v17 = vmul.f32 %v3920_v23, %v14699_v6 }
 0x883   :  { %v3939_v42 = vmul.f32 %v3916_v55, %v14698_v15  ;;  %v3940_v0 = vmul.f32 %v3924_v33, %v14699_v6  ;;  %5505 = vrot.lane.b32.xlu1 %v12059_v38, %s9209_s3  ;;  %v3935_v32 = vmul.f32 %v3914_v26, %v14698_v15  ;;  %v8511_v8 = vpack.c.bf16 %v3515_v48, %v3513_v27 }
 0x884   :  { %7115 = vmatpush1.bf16.msra.mxu0 %v8515_v53  ;;  %5519 = vrot.lane.b32.xlu0 %v12044_v36, %s9209_s3  ;;  %v3911_v1 = vsel %vm793_vm8, %v14727_v28, %v14728_v12  ;;  %v3930_v37 = vmul.f32 %v3919_v54, %v14699_v6  ;;  %v3934_v53 = vmul.f32 %v3921_v62, %v14699_v6 }
 0x885   :  { %v8583_v10 = vpack.c.bf16 %v3939_v42, %v3937_v22  ;;  %v3356_v55 = vpop.permute.xlu1 %3355  ;;  %7116 = vmatprep.subr.bf16.mxu0 %v8512_v39  ;;  %v8584_v33 = vpack.c.bf16 %v3940_v0, %v3938_v34  ;;  %v3931_v4 = vmul.f32 %v3912_v47, %v14698_v15  ;;  %v3933_v23 = vmul.f32 %v3913_v25, %v14698_v15 }
 0x886   :  { %v3370_v19 = vpop.permute.xlu0 %3369  ;;  %v3378_v42 = vsel %vm489_vm5, %v11859_v45, %v11883_v11  ;;  %v8580_v27 = vpack.c.bf16 %v3936_v13, %v3934_v53  ;;  %v3377_v39 = vsel %vm489_vm5, %v11841_v30, %v11866_v21  ;;  %v14733_v12 = vpack.c.bf16 %v12050_v50, %v12047_v56 }
 0x887   :  { %5521 = vrot.lane.b32.xlu1 %v12089_v9, %s9209_s3  ;;  %7185 = vmatprep.subr.bf16.mxu1 %v8584_v33  ;;  %v3379_v22 = vsel %vm489_vm5, %v3354_v57, %v3370_v19  ;;  %v3387_v0 = vsel %vm489_vm5, %v3370_v19, %v3354_v57  ;;  %v8579_v48 = vpack.c.bf16 %v3935_v32, %v3933_v23  ;;  %v14738_v19 = vld [vmem:[#allocation90_spill] sm:$0xff] }
 0x888   :  { %7117 = vmatpush1.bf16.msra.mxu0 %v8511_v8  ;;  %7186 = vmatpush1.bf16.msra.mxu1 %v8583_v10  ;;  %v8576_v54 = vpack.c.bf16 %v3932_v17, %v3930_v37  ;;  %v3386_v57 = vsel %vm489_vm5, %v11883_v11, %v11859_v45  ;;  %v3400_v62 = vmul.f32 %v3378_v42, %v14704_v49  ;;  %v14734_v11 = vld [vmem:[#allocation93_spill] sm:$0xff]  ;;  %v14735_v17 = vld [vmem:[#allocation91_spill] sm:$0xff] }
 0x889   :  { %v3372_v28 = vpop.permute.xlu1 %3371  ;;  %5327 = vrot.lane.b32.xlu0 %v12015_v16, %s9203_s16  ;;  %7118 = vmatprep.subr.bf16.mxu0 %v14733_v12  ;;  %v3401_v56 = vmul.f32 %v3387_v0, %v14700_v60  ;;  %v3402_v50 = vmul.f32 %v3379_v22, %v14704_v49  ;;  %v3929_v45 = vmul.f32 %v3911_v1, %v14698_v15 }
 0x88a   :  { %v3380_v26 = vsel %vm489_vm5, %v3356_v55, %v3372_v28  ;;  %v3388_v34 = vsel %vm489_vm5, %v3372_v28, %v3356_v55  ;;  %7187 = vmatprep.subr.bf16.mxu1 %v8580_v27  ;;  %v12316_v47 = vpop.permute.xlu0 %3713  ;;  %v3376_v32 = vsel %vm489_vm5, %v14735_v17, %v14734_v11  ;;  %v3385_v10 = vsel %vm489_vm5, %v11866_v21, %v11841_v30  ;;  %v14737_v21 = vld [vmem:[#allocation92_spill] sm:$0xff] }
 0x88b   :  { %v3403_v25 = vmul.f32 %v3388_v34, %v14700_v60  ;;  %v3404_v13 = vmul.f32 %v3380_v26, %v14704_v49  ;;  %5329 = vrot.lane.b32.xlu1 %v12059_v38, %s9203_s16  ;;  %v14736_v55 = vpack.c.bf16 %v12027_v51, %v12022_v46  ;;  %v3398_v33 = vmul.f32 %v3377_v39, %v14704_v49  ;;  %v14741_v39 = vld [vmem:[#allocation34_spill] sm:$0xff]  ;;  %v14742_v26 = vld [vmem:[#allocation35_spill] sm:$0xff] }
 0x88c   :  { %7188 = vmatpush1.bf16.msra.mxu1 %v8579_v48  ;;  %v4158_v53 = vsel %vm931_vm6, %v14725_v24, %v14726_v44  ;;  %v8575_v30 = vpack.c.bf16 %v3931_v4, %v3929_v45  ;;  %v3375_v51 = vsel %vm489_vm5, %v14738_v19, %v14737_v21  ;;  %v3399_v46 = vmul.f32 %v3386_v57, %v14700_v60  ;;  %v14739_v44 = vld [vmem:[#allocation68_spill] sm:$0xff]  ;;  %v14740_v4 = vld [vmem:[#allocation66_spill] sm:$0xff] }
 0x88d   :  { %7119 = vmatpush1.bf16.msra.mxu0 %v14736_v55  ;;  %v8503_v8 = vpack.c.bf16 %v3403_v25, %v3401_v56  ;;  %v3716_v37 = vpop.permute.xlu1 %3715  ;;  %5343 = vrot.lane.b32.xlu0 %v12044_v36, %s9203_s16  ;;  %v8504_v1 = vpack.c.bf16 %v3404_v13, %v3402_v50  ;;  %v3384_v42 = vsel %vm489_vm5, %v14734_v11, %v14735_v17  ;;  %v14744_v17 = vld [vmem:[#allocation72_spill] sm:$0xff] }
 0x88e   :  { %7189 = vmatprep.subr.bf16.mxu1 %v8576_v54  ;;  %v3730_v23 = vpop.permute.xlu0 %3729  ;;  %v3396_v22 = vmul.f32 %v3376_v32, %v14704_v49  ;;  %v8500_v24 = vpack.c.bf16 %v3400_v62, %v3398_v33  ;;  %v4149_v0 = vsel %vm931_vm6, %v14740_v4, %v14739_v44  ;;  %v4157_v27 = vsel %vm931_vm6, %v14739_v44, %v14740_v4  ;;  %v14745_v32 = vld [vmem:[#allocation70_spill] sm:$0xff] }
 0x88f   :  { %5345 = vrot.lane.b32.xlu1 %v12089_v9, %s9203_s16  ;;  %7120 = vmatprep.subr.bf16.mxu0 %v8504_v1  ;;  %v3397_v48 = vmul.f32 %v3385_v10, %v14700_v60  ;;  %v12366_v28 = vmul.f32 %v12223_v52, %v14741_v39  ;;  %v3383_v12 = vsel %vm489_vm5, %v14737_v21, %v14738_v19 }
 0x890   :  { %7190 = vmatpush1.bf16.msra.mxu1 %v8575_v30  ;;  %v3394_v54 = vmul.f32 %v3375_v51, %v14704_v49  ;;  %v12377_v62 = vmul.f32 %v12145_v59, %v14723_v29  ;;  %v12380_v34 = vmul.f32 %v4158_v53, %v14742_v26  ;;  %v3395_v52 = vmul.f32 %v3384_v42, %v14700_v60  ;;  %v14748_v51 = vld [vmem:[#allocation29_spill] sm:$0xff] }
 0x891   :  { %7121 = vmatpush1.bf16.msra.mxu0 %v8503_v8  ;;  %v3732_v57 = vpop.permute.xlu1 %3731  ;;  %5207 = vrot.lane.b32.xlu0 %v12015_v16, %s9205_s4  ;;  %v8499_v56 = vpack.c.bf16 %v3399_v46, %v3397_v48  ;;  %v14743_v50 = vpack.c.bf16 %v12079_v2, %v12105_v61  ;;  %v12390_v13 = vmul.f32 %v12139_v18, %v14724_v35  ;;  %v14749_v42 = vld [vmem:[#allocation73_spill] sm:$0xff]  ;;  %v14754_v48 = vld [vmem:[#allocation19_spill] sm:$0xff] }
 0x892   :  { %7122 = vmatprep.subr.bf16.mxu0 %v8500_v24  ;;  %v12386_v25 = vpop.permute.xlu0 %4129  ;;  %v12393_v45 = vmul.f32 %v4149_v0, %v14741_v39  ;;  %v12396_v59 = vmul.f32 %v4157_v27, %v14742_v26  ;;  %v8496_v11 = vpack.c.bf16 %v3396_v22, %v3394_v54  ;;  %v3613_v2 = vsel %vm627_vm3, %v14745_v32, %v14744_v17  ;;  %v14750_v22 = vld [vmem:[#allocation71_spill] sm:$0xff]  ;;  %v14755_v54 = vld [vmem:[#allocation18_spill] sm:$0xff] }
 0x893   :  { %7191 = vmatprep.subr.bf16.mxu1 %v14743_v50  ;;  %5209 = vrot.lane.b32.xlu1 %v12059_v38, %s9205_s4  ;;  %v3393_v61 = vmul.f32 %v3383_v12, %v14700_v60  ;;  %v3740_v18 = vsel %vm696_vm2, %v3716_v37, %v3732_v57  ;;  %v14746_v10 = vpack.c.bf16 %v12076_v43, %v12102_v40  ;;  %v14753_v27 = vld [vmem:[#allocation43_spill] sm:$0xff] }
 0x894   :  { %v8539_v55 = vpack.c.bf16 %v12201_v63, %v12377_v62  ;;  %v8603_v33 = vpack.c.bf16 %v12366_v28, %v12393_v45  ;;  %v8540_v1 = vpack.c.bf16 %v12217_v7, %v12390_v13  ;;  %v12422_v43 = vsel %vm627_vm3, %v14744_v17, %v14745_v32  ;;  %v14757_v17 = vld [vmem:[#allocation130_spill] sm:$0xff]  ;;  %v14816_v28 = vld [vmem:[#allocation104_spill] sm:$0xff] }
 0x895   :  { %7123 = vmatpush1.bf16.msra.mxu0 %v8499_v56  ;;  %7192 = vmatpush1.bf16.msra.mxu1 %v14746_v10  ;;  %v4132_v8 = vpop.permute.xlu1 %4131  ;;  %v8495_v40 = vpack.c.bf16 %v3395_v52, %v3393_v61  ;;  %v3739_v53 = vsel %vm696_vm2, %v12316_v47, %v3730_v23  ;;  %v14747_v30 = vpack.c.bf16 %v11642_v31, %v11633_v20  ;;  %v14751_v20 = vld [vmem:[#allocation94_spill] sm:$0xff]  ;;  %v14752_v31 = vld [vmem:[#allocation47_spill] sm:$0xff] }
 0x896   :  { %5223 = vrot.lane.b32.xlu0 %v12044_v36, %s9205_s4  ;;  %7124 = vmatprep.subr.bf16.mxu0 %v8496_v11  ;;  %v4146_v21 = vpop.permute.xlu0 %4145  ;;  %v8604_v19 = vpack.c.bf16 %v12380_v34, %v12396_v59  ;;  %v12433_v46 = vmul.f32 %v3613_v2, %v14748_v51  ;;  %v3614_v24 = vsel %vm627_vm3, %v14750_v22, %v14749_v42  ;;  %v14814_v59 = vld [vmem:[#allocation38_spill] sm:$0xff] }
 0x897   :  { %7193 = vmatprep.subr.bf16.mxu1 %v14747_v30  ;;  %v3748_v44 = vsel %vm696_vm2, %v3732_v57, %v3716_v37  ;;  %v3764_v4 = vmul.f32 %v3740_v18, %v14724_v35  ;;  %5225 = vrot.lane.b32.xlu1 %v12089_v9, %s9205_s4  ;;  %v3743_v0 = vsel %vm696_vm2, %v14752_v31, %v14751_v20  ;;  %v14762_v18 = vld [vmem:[#allocation58_spill] sm:$0xff] }
 0x898   :  { %v3744_v12 = vsel %vm696_vm2, %v14754_v48, %v14753_v27  ;;  %v3738_v37 = vsel %vm696_vm2, %v14755_v54, %v11907_v3  ;;  %v14756_v57 = vpack.c.bf16 %v11628_v58, %v11619_v5  ;;  %v3736_v52 = vsel %vm696_vm2, %v14753_v27, %v14754_v48  ;;  %v14764_v27 = vld [vmem:[#allocation59_spill] sm:$0xff] }
 0x899   :  { %7125 = vmatpush1.bf16.msra.mxu0 %v8495_v40  ;;  %v3747_v56 = vsel %vm696_vm2, %v3730_v23, %v12316_v47  ;;  %v3762_v50 = vmul.f32 %v3739_v53, %v14724_v35  ;;  %v4148_v11 = vpop.permute.xlu1 %4147  ;;  %v14758_v32 = vpack.c.bf16 %v12097_v41, %v14757_v17  ;;  %v12476_v5 = vsel %vm627_vm3, %v14749_v42, %v14750_v22  ;;  %v14759_v47 = vld [vmem:[#allocation15_spill] sm:$0xff]  ;;  %v14760_v23 = vld [vmem:[#allocation14_spill] sm:$0xff]  ;;  %v14761_v41 = vld [vmem:[#allocation60_spill] sm:$0xff] }
 0x89a   :  { %7194 = vmatpush1.bf16.msra.mxu1 %v14756_v57  ;;  %5743 = vrot.lane.b32.xlu0 %v12015_v16, %s9207_s30  ;;  %v3735_v58 = vsel %vm696_vm2, %v14751_v20, %v14752_v31  ;;  %v3737_v2 = vsel %vm696_vm2, %v14760_v23, %v14759_v47  ;;  %v3763_v61 = vmul.f32 %v3748_v44, %v14723_v29  ;;  %v12490_v40 = vpop.permute.xlu0 %3593  ;;  %v14765_v48 = vld [vmem:[#allocation39_spill] sm:$0xff]  ;;  %v14767_v57 = vld [vmem:[#allocation57_spill] sm:$0xff]  ;;  %v14768_v17 = vld [vmem:[#allocation56_spill] sm:$0xff] }
 0x89b   :  { %7126 = vmatprep.subr.bf16.mxu0 %v14758_v32  ;;  %v14763_v10 = vpack.c.bf16 %v14761_v41, %v14762_v18  ;;  %v12493_v53 = vmul.f32 %v3744_v12, %v14723_v29  ;;  %v3746_v30 = vsel %vm696_vm2, %v11907_v3, %v14755_v54  ;;  %v3760_v42 = vmul.f32 %v3738_v37, %v14724_v35  ;;  %v14770_v41 = vld [vmem:[#allocation54_spill] sm:$0xff] }
 0x89c   :  { %5745 = vrot.lane.b32.xlu1 %v12059_v38, %s9207_s30  ;;  %v8552_v22 = vpack.c.bf16 %v3764_v4, %v3762_v50  ;;  %v12503_v44 = vmul.f32 %v3743_v0, %v14723_v29  ;;  %v3756_v20 = vmul.f32 %v3736_v52, %v14724_v35  ;;  %v3761_v31 = vmul.f32 %v3747_v56, %v14723_v29 }
 0x89d   :  { %7195 = vmatprep.subr.bf16.mxu1 %v14763_v10  ;;  %v14766_v12 = vpack.c.bf16 %v14764_v27, %v14765_v48  ;;  %v14769_v3 = vpack.c.bf16 %v14767_v57, %v14768_v17  ;;  %v3745_v4 = vsel %vm696_vm2, %v14759_v47, %v14760_v23  ;;  %v3758_v0 = vmul.f32 %v3737_v2, %v14724_v35  ;;  %v3596_v37 = vpop.permute.xlu1 %3595  ;;  %v14771_v47 = vld [vmem:[#allocation53_spill] sm:$0xff]  ;;  %v14776_v27 = vld [vmem:[#allocation51_spill] sm:$0xff] }
 0x89e   :  { %v4164_v54 = vsel %vm931_vm6, %v4148_v11, %v4132_v8  ;;  %5759 = vrot.lane.b32.xlu0 %v12044_v36, %s9207_s30  ;;  %v12523_v52 = vmul.f32 %v3614_v24, %v14748_v51  ;;  %v3754_v56 = vmul.f32 %v3735_v58, %v14724_v35  ;;  %v3759_v50 = vmul.f32 %v3746_v30, %v14723_v29  ;;  %v3610_v2 = vpop.permute.xlu0 %3609  ;;  %v14773_v30 = vld [vmem:[#allocation114_spill] sm:$0xff]  ;;  %v14780_v17 = vld [vmem:[#allocation129_spill] sm:$0xff] }
 0x89f   :  { %7127 = vmatpush1.bf16.msra.mxu0 %v14766_v12  ;;  %7196 = vmatpush1.bf16.msra.mxu1 %v14769_v3  ;;  %v8551_v32 = vpack.c.bf16 %v3763_v61, %v3761_v31  ;;  %v14772_v23 = vpack.c.bf16 %v14770_v41, %v14771_v47  ;;  %v8543_v18 = vpack.c.bf16 %v12493_v53, %v12503_v44  ;;  %v14775_v44 = vld [vmem:[#allocation52_spill] sm:$0xff] }
 0x8a0   :  { %7128 = vmatprep.subr.bf16.mxu0 %v8552_v22  ;;  %v4163_v10 = vsel %vm931_vm6, %v4146_v21, %v12386_v25  ;;  %v4156_v24 = vsel %vm931_vm6, %v4132_v8, %v4148_v11  ;;  %5761 = vrot.lane.b32.xlu1 %v12089_v9, %s9207_s30  ;;  %v8548_v58 = vpack.c.bf16 %v3760_v42, %v3758_v0  ;;  %v14774_v22 = vld [vmem:[#allocation116_spill] sm:$0xff]  ;;  %v14779_v8 = vld [vmem:[#allocation27_spill] sm:$0xff] }
 0x8a1   :  { %7197 = vmatprep.subr.bf16.mxu1 %v14772_v23  ;;  %v3757_v61 = vmul.f32 %v3745_v4, %v14723_v29  ;;  %v4162_v31 = vsel %vm931_vm6, %v14774_v22, %v14773_v30  ;;  %v4180_v53 = vmul.f32 %v4164_v54, %v14742_v26  ;;  %v14777_v48 = vpack.c.bf16 %v14775_v44, %v14776_v27  ;;  %v14778_v12 = vld [vmem:[#allocation96_spill] sm:$0xff]  ;;  %v3612_v57 = vpop.permute.xlu1 %3611  ;;  %v14781_v4 = vld [vmem:[#allocation97_spill] sm:$0xff]  ;;  %v14782_v0 = vld [vmem:[#allocation95_spill] sm:$0xff] }
 0x8a2   :  { %v4151_v11 = vsel %vm931_vm6, %v14779_v8, %v14778_v12  ;;  %v4155_v42 = vsel %vm931_vm6, %v12386_v25, %v4146_v21  ;;  %5091 = vrot.lane.b32.xlu0 %v14780_v17, %s9200_s14  ;;  %v8544_v3 = vpack.c.bf16 %v3756_v20, %v3754_v56  ;;  %v4152_v54 = vsel %vm931_vm6, %v14782_v0, %v14781_v4  ;;  %v14783_v23 = vld [vmem:[#allocation50_spill] sm:$0xff]  ;;  %v14784_v44 = vld [vmem:[#allocation49_spill] sm:$0xff]  ;;  %v12566_v25 = vpop.permute.xlu0 %4009  ;;  %v14787_v56 = vld [vmem:[#allocation115_spill] sm:$0xff] }
 0x8a3   :  { %7129 = vmatpush2.bf16.msra.mxu0 %v8551_v32  ;;  %7198 = vmatpush1.bf16.msra.mxu1 %v14777_v48  ;;  %v8547_v32 = vpack.c.bf16 %v3759_v50, %v3757_v61  ;;  %v4178_v41 = vmul.f32 %v4163_v10, %v14742_v26  ;;  %v4179_v47 = vmul.f32 %v4156_v24, %v14741_v39  ;;  %v14786_v20 = vld [vmem:[#allocation113_spill] sm:$0xff] }
 0x8a4   :  { %7130 = vmatprep.subr.bf16.mxu0 %v8548_v58  ;;  %v14785_v27 = vpack.c.bf16 %v14783_v23, %v14784_v44  ;;  %v4160_v21 = vsel %vm931_vm6, %v14781_v4, %v14782_v0  ;;  %v4161_v50 = vsel %vm931_vm6, %v14787_v56, %v14786_v20  ;;  %v4154_v10 = vsel %vm931_vm6, %v14773_v30, %v14774_v22  ;;  %v14788_v58 = vld [vmem:[#allocation32_spill] sm:$0xff]  ;;  %v14790_v0 = vld [vmem:[#allocation46_spill] sm:$0xff] }
 0x8a5   :  { %v4176_v24 = vmul.f32 %v4162_v31, %v14742_v26  ;;  %5093 = vrot.lane.b32.xlu1 %v14788_v58, %s9200_s14  ;;  %v4177_v61 = vmul.f32 %v4155_v42, %v14741_v39  ;;  %v3620_v48 = vsel %vm627_vm3, %v3596_v37, %v3612_v57  ;;  %v14789_v4 = vld [vmem:[#allocation48_spill] sm:$0xff]  ;;  %v8616_v44 = vpack.c.bf16 %v4180_v53, %v4178_v41  ;;  %v4012_v42 = vpop.permute.xlu1 %4011 }
 0x8a6   :  { %7199 = vmatprep.subr.bf16.mxu1 %v14785_v27  ;;  %v14791_v23 = vpack.c.bf16 %v14789_v4, %v14790_v0  ;;  %v4159_v30 = vsel %vm931_vm6, %v14778_v12, %v14779_v8  ;;  %v12594_v22 = vmul.f32 %v4152_v54, %v14741_v39  ;;  %v4153_v31 = vsel %vm931_vm6, %v14786_v20, %v14787_v56  ;;  %v4026_v8 = vpop.permute.xlu0 %4025 }
 0x8a7   :  { %7131 = vmatpush2.bf16.msra.mxu0 %v8547_v32  ;;  %v14792_v32 = vld [vmem:[#allocation131_spill] sm:$0xff]  ;;  %v4174_v53 = vmul.f32 %v4161_v50, %v14742_v26  ;;  %v4175_v41 = vmul.f32 %v4154_v10, %v14741_v39  ;;  %v8615_v27 = vpack.c.bf16 %v4179_v47, %v4177_v61  ;;  %v3619_v12 = vsel %vm627_vm3, %v12490_v40, %v3610_v2  ;;  %v14793_v50 = vld [vmem:[#allocation33_spill] sm:$0xff]  ;;  %v14794_v10 = vld [vmem:[#allocation120_spill] sm:$0xff] }
 0x8a8   :  { %7200 = vmatpush1.bf16.msra.mxu1 %v14791_v23  ;;  %5107 = vrot.lane.b32.xlu0 %v14792_v32, %s9200_s14  ;;  %v4169_v54 = vmul.f32 %v4151_v11, %v14741_v39  ;;  %v4172_v20 = vmul.f32 %v4160_v21, %v14742_v26  ;;  %v3628_v56 = vsel %vm627_vm3, %v3612_v57, %v3596_v37  ;;  %v14795_v61 = vld [vmem:[#allocation118_spill] sm:$0xff]  ;;  %v14797_v23 = vld [vmem:[#allocation117_spill] sm:$0xff] }
 0x8a9   :  { %7132 = vmatprep.subr.bf16.mxu0 %v8544_v3  ;;  %7201 = vmatprep.subr.bf16.mxu1 %v8616_v44  ;;  %v3644_v3 = vmul.f32 %v3620_v48, %v14748_v51  ;;  %v4173_v47 = vmul.f32 %v4153_v31, %v14741_v39  ;;  %v3618_v4 = vsel %vm627_vm3, %v14795_v61, %v14794_v10  ;;  %v4028_v48 = vpop.permute.xlu1 %4027 }
 0x8aa   :  { %5109 = vrot.lane.b32.xlu1 %v14793_v50, %s9200_s14  ;;  %v8612_v11 = vpack.c.bf16 %v4176_v24, %v4174_v53  ;;  %v4170_v21 = vmul.f32 %v4159_v30, %v14742_v26  ;;  %v3627_v37 = vsel %vm627_vm3, %v3610_v2, %v12490_v40  ;;  %v3642_v57 = vmul.f32 %v3619_v12, %v14748_v51  ;;  %v14796_v24 = vld [vmem:[#allocation119_spill] sm:$0xff]  ;;  %v14798_v30 = vld [vmem:[#allocation28_spill] sm:$0xff]  ;;  %v12635_v2 = vpop.permute.xlu0 %4249  ;;  %v14800_v53 = vld [vmem:[#allocation98_spill] sm:$0xff] }
 0x8ab   :  { %7133 = vmatpush2.bf16.msra.mxu0 %v8543_v18  ;;  %v8607_v18 = vpack.c.bf16 %v12594_v22, %v4169_v54  ;;  %v8611_v0 = vpack.c.bf16 %v4175_v41, %v4173_v47  ;;  %v3617_v44 = vsel %vm627_vm3, %v14797_v23, %v14796_v24  ;;  %v3643_v40 = vmul.f32 %v3628_v56, %v14798_v30  ;;  %v14799_v22 = vld [vmem:[#allocation100_spill] sm:$0xff]  ;;  %v14802_v12 = vld [vmem:[#allocation99_spill] sm:$0xff] }
 0x8ac   :  { %7202 = vmatpush2.bf16.msra.mxu1 %v8615_v27  ;;  %4971 = vrot.lane.b32.xlu0 %v14780_v17, %s9206_s5  ;;  %v3626_v31 = vsel %vm627_vm3, %v14794_v10, %v14795_v61  ;;  %v3640_v7 = vmul.f32 %v3618_v4, %v14748_v51  ;;  %v8536_v13 = vpack.c.bf16 %v3644_v3, %v3642_v57  ;;  %v14801_v27 = vld [vmem:[#allocation101_spill] sm:$0xff]  ;;  %v14803_v47 = vld [vmem:[#allocation23_spill] sm:$0xff] }
 0x8ad   :  { %7134 = vmatprep.subr.bf16.mxu0 %v8540_v1  ;;  %7203 = vmatprep.subr.bf16.mxu1 %v8612_v11  ;;  %v8608_v1 = vpack.c.bf16 %v4172_v20, %v4170_v21  ;;  %v3615_v41 = vsel %vm627_vm3, %v14800_v53, %v14799_v22  ;;  %v3616_v54 = vsel %vm627_vm3, %v14802_v12, %v14801_v27  ;;  %v7927_v3 = vmul.f32 -1.442695, %v14803_v47  ;;  %v12664_v4 = vpop.permute.xlu1 %4251 }
 0x8ae   :  { %4973 = vrot.lane.b32.xlu1 %v14788_v58, %s9206_s5  ;;  %v3641_v56 = vmul.f32 %v3627_v37, %v14798_v30  ;;  %v3625_v20 = vsel %vm627_vm3, %v14796_v24, %v14797_v23  ;;  %v3638_v10 = vmul.f32 %v3617_v44, %v14748_v51  ;;  %v4044_v61 = vsel %vm862_vm7, %v4028_v48, %v4012_v42  ;;  %v12677_v21 = vpop.permute.xlu0 %4265  ;;  %v14804_v23 = vld [vmem:[#allocation122_spill] sm:$0xff] }
 0x8af   :  { %7135 = vmatpush2.bf16.msra.mxu0 %v8539_v55  ;;  %v3623_v63 = vsel %vm627_vm3, %v14799_v22, %v14800_v53  ;;  %v3624_v62 = vsel %vm627_vm3, %v14801_v27, %v14802_v12  ;;  %v3639_v55 = vmul.f32 %v3626_v31, %v14798_v30  ;;  %v3636_v37 = vmul.f32 %v3616_v54, %v14748_v51  ;;  %v14806_v22 = vld [vmem:[#allocation125_spill] sm:$0xff]  ;;  %v14807_v12 = vld [vmem:[#allocation40_spill] sm:$0xff] }
 0x8b0   :  { %7204 = vmatpush2.bf16.msra.mxu1 %v8611_v0  ;;  %4987 = vrot.lane.b32.xlu0 %v14792_v32, %s9206_s5  ;;  %v8535_v11 = vpack.c.bf16 %v3643_v40, %v3641_v56  ;;  %v4043_v57 = vsel %vm862_vm7, %v4026_v8, %v12566_v25  ;;  %v4036_v0 = vsel %vm862_vm7, %v4012_v42, %v4028_v48  ;;  %v7928_v44 = vmul.f32 -1.442695, %v14804_v23  ;;  %v14808_v42 = vld [vmem:[#allocation42_spill] sm:$0xff] }
 0x8b1   :  { %7136 = vmatprep.subr.bf16.mxu0 %v8536_v13  ;;  %7205 = vmatprep.subr.bf16.mxu1 %v8608_v1  ;;  %v8532_v24 = vpack.c.bf16 %v3640_v7, %v3638_v10  ;;  %v3634_v40 = vmul.f32 %v3615_v41, %v14748_v51  ;;  %v3637_v31 = vmul.f32 %v3625_v20, %v14798_v30  ;;  %v14805_v13 = vld [vmem:[#allocation37_spill] sm:$0xff]  ;;  %v7929_v53 = vmul.f32 -1.442695, %v14806_v22  ;;  %v12700_v41 = vpop.permute.xlu1 %4267  ;;  %v14809_v20 = vld [vmem:[#allocation36_spill] sm:$0xff] }
 0x8b2   :  { %4989 = vrot.lane.b32.xlu1 %v14793_v50, %s9206_s5  ;;  %v4060_v1 = vmul.f32 %v4044_v61, %v14805_v13  ;;  %v3635_v27 = vmul.f32 %v3624_v62, %v14798_v30  ;;  %v4042_v48 = vsel %vm862_vm7, %v14808_v42, %v14807_v12  ;;  %v4035_v7 = vsel %vm862_vm7, %v12566_v25, %v4026_v8  ;;  %v12710_v61 = vpop.permute.xlu0 %5083  ;;  %v14810_v25 = vld [vmem:[#allocation103_spill] sm:$0xff]  ;;  %v14811_v8 = vld [vmem:[#allocation105_spill] sm:$0xff] }
 0x8b3   :  { %7137 = vmatpush2.bf16.msra.mxu0 %v8535_v11  ;;  %v8531_v54 = vpack.c.bf16 %v3639_v55, %v3637_v31  ;;  %v4058_v56 = vmul.f32 %v4043_v57, %v14805_v13  ;;  %v4059_v10 = vmul.f32 %v4036_v0, %v14809_v20  ;;  %v4040_v62 = vsel %vm862_vm7, %v14811_v8, %v14810_v25  ;;  %v14812_v11 = vld [vmem:[#allocation121_spill] sm:$0xff] }
 0x8b4   :  { %7206 = vmatpush2.bf16.msra.mxu1 %v8607_v18  ;;  %5507 = vrot.lane.b32.xlu0 %v14780_v17, %s9209_s3  ;;  %v3633_v18 = vmul.f32 %v3623_v63, %v14798_v30  ;;  %v4034_v55 = vsel %vm862_vm7, %v14807_v12, %v14808_v42  ;;  %v8528_v34 = vpack.c.bf16 %v3636_v37, %v3634_v40  ;;  %9070 = vpow2.f32 %v7927_v3 }
 0x8b5   :  { %7138 = vmatprep.subr.bf16.mxu0 %v8532_v24  ;;  %7207 = vmatprep.subr.bf16.mxu1 %v8604_v19  ;;  %v14813_v24 = vld [vmem:[#allocation16_spill] sm:$0xff]  ;;  %v7930_v19 = vmul.f32 -1.442695, %v14814_v59  ;;  %v4056_v57 = vmul.f32 %v4042_v48, %v14805_v13  ;;  %v4057_v0 = vmul.f32 %v4035_v7, %v14809_v20  ;;  %v8600_v31 = vpack.c.bf16 %v4060_v1, %v4058_v56  ;;  %v12738_v40 = vpop.permute.xlu1 %5085  ;;  %v14815_v48 = vld [vmem:[#allocation102_spill] sm:$0xff]  ;;  %v4362_v56 = vld [vmem:[%s14218_s0 + $0x28] sm:$0xff] }
 0x8b6   :  { %v4041_v63 = vsel %vm862_vm7, %v14813_v24, %v14812_v11  ;;  %5509 = vrot.lane.b32.xlu1 %v14788_v58, %s9209_s3  ;;  %v3631_v12 = vmul.f32 %v12476_v5, %v14798_v30  ;;  %v8527_v42 = vpack.c.bf16 %v3635_v27, %v3633_v18  ;;  %v4033_v37 = vsel %vm862_vm7, %v14812_v11, %v14813_v24  ;;  %v12748_v1 = vpop.permute.xlu0 %5099  ;;  %v14818_v11 = vld [vmem:[#allocation77_spill] sm:$0xff] }
 0x8b7   :  { %7139 = vmatpush2.bf16.msra.mxu0 %v8531_v54  ;;  %v4039_v45 = vsel %vm862_vm7, %v14816_v28, %v14815_v48  ;;  %v4055_v5 = vmul.f32 %v4034_v55, %v14809_v20  ;;  %v8599_v3 = vpack.c.bf16 %v4059_v10, %v4057_v0  ;;  %v3629_v27 = vmul.f32 %v12422_v43, %v14798_v30  ;;  %v4364_v43 = vld [vmem:[%s14218_s0 + $0x38] sm:$0xff]  ;;  %v14817_v10 = vld [vmem:[#allocation75_spill] sm:$0xff]  ;;  %v14819_v55 = vld [vmem:[#allocation74_spill] sm:$0xff] }
 0x8b8   :  { %7208 = vmatpush2.bf16.msra.mxu1 %v8603_v33  ;;  %5523 = vrot.lane.b32.xlu0 %v14792_v32, %s9209_s3  ;;  %v4054_v33 = vmul.f32 %v4041_v63, %v14805_v13  ;;  %v4032_v7 = vsel %vm862_vm7, %v14810_v25, %v14811_v8  ;;  %v4052_v18 = vmul.f32 %v4040_v62, %v14805_v13  ;;  %9072 = vpow2.f32 %v7928_v44  ;;  %v4361_v63 = vld [vmem:[%s14218_s0 + $0x20] sm:$0xff] }
 0x8b9   :  { %7140 = vmatprep.subr.bf16.mxu0 %v8528_v34  ;;  %7209 = vmatprep.subr.bf16.mxu1 %v8600_v31  ;;  %v8524_v54 = vpack.c.bf16 %v12523_v52, %v12433_v46  ;;  %v4038_v25 = vsel %vm862_vm7, %v14818_v11, %v14817_v10  ;;  %v4053_v8 = vmul.f32 %v4033_v37, %v14809_v20  ;;  %9074 = vpow2.f32 %v7929_v53  ;;  %v12777_v44 = vpop.permute.xlu1 %5101  ;;  %v4363_v53 = vld [vmem:[%s14218_s0 + $0x30] sm:$0xff] }
 0x8ba   :  { %5525 = vrot.lane.b32.xlu1 %v14793_v50, %s9209_s3  ;;  %v8596_v62 = vpack.c.bf16 %v4056_v57, %v4054_v33  ;;  %v8523_v46 = vpack.c.bf16 %v3631_v12, %v3629_v27  ;;  %v4031_v52 = vsel %vm862_vm7, %v14815_v48, %v14816_v28  ;;  %v4050_v24 = vmul.f32 %v4039_v45, %v14805_v13  ;;  %v14820_v34 = vld [vmem:[#allocation76_spill] sm:$0xff]  ;;  %v12792_v12 = vpop.permute.xlu0 %4963  ;;  %v4358_v33 = vld [vmem:[%s14218_s0 + $0x8] sm:$0xff] }
 0x8bb   :  { %7141 = vmatpush2.bf16.msra.mxu0 %v8527_v42  ;;  %v4037_v57 = vsel %vm862_vm7, %v14820_v34, %v14819_v55  ;;  %v4051_v0 = vmul.f32 %v4032_v7, %v14809_v20  ;;  %v8595_v31 = vpack.c.bf16 %v4055_v5, %v4053_v8  ;;  %v8640_v42 = vpack.c.bf16 %v4364_v43, %v4362_v56  ;;  %v8818_v45 = vld [vmem:[%s14228_s10] ss:$20 sps:$4 sm:$0xff]   ;;  %v4360_v5 = vld [vmem:[%s14218_s0 + $0x18] sm:$0xff] }
 0x8bc   :  { %7210 = vmatpush2.bf16.msra.mxu1 %v8599_v3  ;;  %5331 = vrot.lane.b32.xlu0 %v14780_v17, %s9203_s16  ;;  %v4030_v37 = vsel %vm862_vm7, %v14817_v10, %v14818_v11  ;;  %v4048_v48 = vmul.f32 %v4038_v25, %v14805_v13  ;;  %v8592_v28 = vpack.c.bf16 %v4052_v18, %v4050_v24  ;;  %9076 = vpow2.f32 %v7930_v19  ;;  %v4357_v43 = vld [vmem:[%s14218_s0] sm:$0xff]  ;;  %v4359_v19 = vld [vmem:[%s14218_s0 + $0x10] sm:$0xff] }
 0x8bd   :  { %7142 = vmatprep.subr.bf16.mxu0 %v8524_v54  ;;  %7211 = vmatprep.subr.bf16.mxu1 %v8596_v62  ;;  %v4049_v3 = vmul.f32 %v4031_v52, %v14809_v20  ;;  %v4284_v27 = vsel %vm1000_vm9, %v12700_v41, %v12664_v4  ;;  %v8639_v7 = vpack.c.bf16 %v4363_v53, %v4361_v63  ;;  %v12820_v56 = vpop.permute.xlu1 %4965  ;;  %v12841_v52 = vld [vmem:[#allocation4 + $0x18] ss:$0 sm:$0xff] }
 0x8be   :  { %5333 = vrot.lane.b32.xlu1 %v14788_v58, %s9203_s16  ;;  %v4029_v18 = vsel %vm862_vm7, %v14819_v55, %v14820_v34  ;;  %v4046_v54 = vmul.f32 %v4037_v57, %v14805_v13  ;;  %v4047_v10 = vmul.f32 %v4030_v37, %v14809_v20  ;;  %v4283_v25 = vsel %vm1000_vm9, %v12677_v21, %v12635_v2  ;;  %v12835_v8 = vpop.permute.xlu0 %4979  ;;  %v14821_v55 = vld [vmem:[#allocation123_spill] sm:$0xff] }
 0x8bf   :  { %7143 = vmatpush2.bf16.msra.mxu0 %v8523_v46  ;;  %v8591_v11 = vpack.c.bf16 %v4051_v0, %v4049_v3  ;;  %v8636_v62 = vpack.c.bf16 %v4360_v5, %v4358_v33  ;;  %v4276_v46 = vsel %vm1000_vm9, %v12664_v4, %v12700_v41  ;;  %v4300_v24 = vmul.f32 %v12841_v52, %v4284_v27  ;;  %v14822_v34 = vld [vmem:[#allocation55_spill] sm:$0xff]  ;;  %v12864_v33 = vld [vmem:[#allocation4 + $0x10] ss:$0 sm:$0xff] }
 0x8c0   :  { %7212 = vmatpush2.bf16.msra.mxu1 %v8595_v31  ;;  %5347 = vrot.lane.b32.xlu0 %v14792_v32, %s9203_s16  ;;  %v8588_v63 = vpack.c.bf16 %v4048_v48, %v4046_v54  ;;  %v4045_v53 = vmul.f32 %v4029_v18, %v14809_v20  ;;  %v4282_v57 = vsel %vm1000_vm9, %v14822_v34, %v14821_v55  ;;  %v14823_v48 = vld [vmem:[#allocation41_spill] sm:$0xff] }
 0x8c1   :  { %7213 = vmatprep.subr.bf16.mxu1 %v8592_v28  ;;  %7262 = vmatprep.subr.bf16.mxu0 %v8640_v42  ;;  %v8635_v0 = vpack.c.bf16 %v4359_v19, %v4357_v43  ;;  %v4275_v4 = vsel %vm1000_vm9, %v12635_v2, %v12677_v21  ;;  %v4298_v41 = vmul.f32 %v12841_v52, %v4283_v25  ;;  %v12856_v31 = vpop.permute.xlu1 %4981  ;;  %v9071_v42 = vpop.eup %9070  ;;  %v14824_v28 = vld [vmem:[#allocation126_spill] sm:$0xff]  ;;  %v14826_v18 = vld [vmem:[#allocation109_spill] sm:$0xff] }
 0x8c2   :  { %5349 = vrot.lane.b32.xlu1 %v14793_v50, %s9203_s16  ;;  %7145 = vmatmul.mubr.bf16.vlgmr.msra.gmra.mxu0 %v8818_v45  ;;  %v8587_v37 = vpack.c.bf16 %v4047_v10, %v4045_v53  ;;  %v4281_v45 = vsel %vm1000_vm9, %v14824_v28, %v14823_v48  ;;  %v4299_v5 = vmul.f32 %v12864_v33, %v4276_v46  ;;  %v12867_v2 = vpop.permute.xlu0 %5499 }
 0x8c3   :  { %7263 = vmatpush1.bf16.msra.mxu0 %v8639_v7  ;;  %v4274_v21 = vsel %vm1000_vm9, %v14821_v55, %v14822_v34  ;;  %v4296_v3 = vmul.f32 %v12841_v52, %v4282_v57  ;;  %v8632_v27 = vpack.c.bf16 %v4300_v24, %v4298_v41  ;;  %v14825_v7 = vld [vmem:[#allocation107_spill] sm:$0xff]  ;;  %v4297_v43 = vmul.f32 %v12864_v33, %v4275_v4  ;;  %v14827_v24 = vld [vmem:[#allocation106_spill] sm:$0xff] }
 0x8c4   :  { %7214 = vmatpush2.bf16.msra.mxu1 %v8591_v11  ;;  %5211 = vrot.lane.b32.xlu0 %v14780_v17, %s9205_s4  ;;  %v4280_v54 = vsel %vm1000_vm9, %v14826_v18, %v14825_v7  ;;  %v4273_v10 = vsel %vm1000_vm9, %v14823_v48, %v14824_v28  ;;  %v4294_v11 = vmul.f32 %v12841_v52, %v4281_v45  ;;  %v4911_v4 = vadd.f32 1.0, %v9071_v42  ;;  %v14829_v28 = vld [vmem:[#allocation79_spill] sm:$0xff]  ;;  %v14830_v45 = vld [vmem:[#allocation81_spill] sm:$0xff] }
 0x8c5   :  { %7215 = vmatprep.subr.bf16.mxu1 %v8588_v63  ;;  %7264 = vmatprep.subr.bf16.mxu0 %v8636_v62  ;;  %v9073_v19 = vpop.eup %9072  ;;  %v12886_v25 = vpop.permute.xlu1 %5501  ;;  %v8821_v62 = vld [vmem:[%s14228_s10 + $0x2c] ss:$20 sps:$4 sm:$0xff]   ;;  %v14828_v63 = vld [vmem:[#allocation108_spill] sm:$0xff]  ;;  %v4295_v55 = vmul.f32 %v12864_v33, %v4274_v21  ;;  %v8631_v34 = vpack.c.bf16 %v4299_v5, %v4297_v43  ;;  %v4272_v41 = vsel %vm1000_vm9, %v14825_v7, %v14826_v18 }
 0x8c6   :  { %5213 = vrot.lane.b32.xlu1 %v14788_v58, %s9205_s4  ;;  %v9075_v46 = vpop.eup %9074  ;;  %v4279_v53 = vsel %vm1000_vm9, %v14828_v63, %v14827_v24  ;;  %v12898_v57 = vpop.permute.xlu0 %5515  ;;  %v8628_v48 = vpack.c.bf16 %v4296_v3, %v4294_v11  ;;  %7154 = vmatprep.mubr.bf16.mxu0 %v8821_v62  ;;  %v4278_v5 = vsel %vm1000_vm9, %v14830_v45, %v14829_v28  ;;  %v14831_v43 = vld [vmem:[#allocation78_spill] sm:$0xff]  ;;  %v14832_v11 = vld [vmem:[#allocation80_spill] sm:$0xff]  ;;  %9078 = vrcp.f32 %v4911_v4 }
 0x8c7   :  { %7265 = vmatpush1.bf16.msra.mxu0 %v8635_v0  ;;  %v8823_v0 = vld [vmem:[%s14228_s10 + $0x28] ss:$20 sps:$4 sm:$0xff]   ;;  %v4293_v21 = vmul.f32 %v12864_v33, %v4273_v10  ;;  %v4913_v42 = vadd.f32 1.0, %v9075_v46  ;;  %v4290_v7 = vmul.f32 %v12841_v52, %v4279_v53  ;;  %v4277_v10 = vsel %vm1000_vm9, %v14832_v11, %v14831_v43 }
 0x8c8   :  { %7216 = vmatpush2.bf16.msra.mxu1 %v8587_v37  ;;  %5227 = vrot.lane.b32.xlu0 %v14792_v32, %s9205_s4  ;;  %v4292_v37 = vmul.f32 %v12841_v52, %v4280_v54  ;;  %v4912_v54 = vadd.f32 1.0, %v9073_v19  ;;  %v4291_v62 = vmul.f32 %v12864_v33, %v4272_v41 }
 0x8c9   :  { %7266 = vmatprep.subr.bf16.mxu0 %v8632_v27  ;;  %v4271_v27 = vsel %vm1000_vm9, %v14827_v24, %v14828_v63  ;;  %v12920_v18 = vpop.permute.xlu1 %5517  ;;  %v9077_v3 = vpop.eup %9076  ;;  %v8627_v46 = vpack.c.bf16 %v4295_v55, %v4293_v21  ;;  %v4270_v24 = vsel %vm1000_vm9, %v14829_v28, %v14830_v45  ;;  %v4288_v63 = vmul.f32 %v12841_v52, %v4278_v5  ;;  %v8829_v5 = vld [vmem:[%s14228_s10 + $0x50] ss:$20 sps:$4 sm:$0xff]  }
 0x8ca   :  { %5229 = vrot.lane.b32.xlu1 %v14793_v50, %s9205_s4  ;;  %7155 = vmatmul.mubr.bf16.gmra.mxu0 %v8823_v0  ;;  %v8624_v19 = vpack.c.bf16 %v4292_v37, %v4290_v7  ;;  %v4289_v53 = vmul.f32 %v12864_v33, %v4271_v27  ;;  %v4914_v41 = vadd.f32 1.0, %v9077_v3  ;;  %9080 = vrcp.f32 %v4913_v42  ;;  %v8827_v37 = vld [vmem:[%s14228_s10 + $0x54] ss:$20 sps:$4 sm:$0xff]  }
 0x8cb   :  { %7267 = vmatpush1.bf16.msra.mxu0 %v8631_v34  ;;  %v12929_v34 = vpop.permute.xlu0 %5323  ;;  %v4269_v55 = vsel %vm1000_vm9, %v14831_v43, %v14832_v11  ;;  %v4286_v0 = vmul.f32 %v12841_v52, %v4277_v10  ;;  %9082 = vrcp.f32 %v4912_v54  ;;  %7164 = vmatprep.mubr.bf16.mxu0 %v8827_v37  ;;  %v8832_v43 = vld [vmem:[%s14228_s10 + $0x78] ss:$20 sps:$4 sm:$0xff]  }
 0x8cc   :  { %5747 = vrot.lane.b32.xlu0 %v14780_v17, %s9207_s30  ;;  %7268 = vmatprep.subr.bf16.mxu0 %v8628_v48  ;;  %14833 = vst [vmem:[#allocation64_spill] sm:$0xff] %v12929_v34  ;;  %v4287_v48 = vmul.f32 %v12864_v33, %v4270_v24  ;;  %v8623_v28 = vpack.c.bf16 %v4291_v62, %v4289_v53  ;;  %9084 = vrcp.f32 %v4914_v41  ;;  %v8824_v62 = vld [vmem:[%s14228_s10 + $0x8] ss:$20 sps:$4 sm:$0xff]   ;;  %v14843_v41 = vmov 0  }
 0x8cd   :  { %v12944_v4 = vpop.permute.xlu1 %5325  ;;  %v8620_v52 = vpack.c.bf16 %v4288_v63, %v4286_v0  ;;  %v4285_v21 = vmul.f32 %v12864_v33, %v4269_v55  ;;  %v8830_v33 = vld [vmem:[%s14228_s10 + $0x7c] ss:$20 sps:$4 sm:$0xff]  }
 0x8ce   :  { %5749 = vrot.lane.b32.xlu1 %v14788_v58, %s9207_s30  ;;  %14834 = vst [vmem:[#allocation62_spill] sm:$0xff] %v12944_v4 }
 0x8cf   :  { %7269 = vmatpush1.bf16.msra.mxu0 %v8627_v46  ;;  %v12952_v45 = vpop.permute.xlu0 %5339  ;;  %v8619_v27 = vpack.c.bf16 %v4287_v48, %v4285_v21  ;;  %v12992_v46 = vld [vmem:[%s14228_s10 + $0xc] ss:$20 sps:$4 sm:$0xff]   ;;  %v8833_v48 = vld [vmem:[%s14228_s10 + $0x10] ss:$20 sps:$4 sm:$0xff]  }
 0x8d0   :  { %5763 = vrot.lane.b32.xlu0 %v14792_v32, %s9207_s30  ;;  %7270 = vmatprep.subr.bf16.mxu0 %v8624_v19  ;;  %14835 = vst [vmem:[#allocation44_spill] sm:$0xff] %v12952_v45 }
 0x8d1   :  { %v12960_v42 = vpop.permute.xlu1 %5341  ;;  %7217 = vmatprep.mubr.bf16.mxu1 %v12992_v46 }
 0x8d2   :  { %5765 = vrot.lane.b32.xlu1 %v14793_v50, %s9207_s30  ;;  %14836 = vst [vmem:[#allocation111_spill] sm:$0xff] %v12960_v42  ;;  %7165 = vmatmul.mubr.bf16.gmra.mxu0 %v8829_v5 }
 0x8d3   :  { %7271 = vmatpush1.bf16.msra.mxu0 %v8623_v28  ;;  %v12964_v7 = vpop.permute.xlu0 %5203  ;;  %7174 = vmatprep.mubr.bf16.mxu0 %v8830_v33  ;;  %v9079_v11 = vpop.eup %9078  ;;  %v8837_v33 = vld [vmem:[%s14228_s10 + $0x38] ss:$20 sps:$4 sm:$0xff]  }
 0x8d4   :  { %5627 = vrot.lane.b32.xlu0 %v14780_v17, %s9208_s15  ;;  %7272 = vmatprep.subr.bf16.mxu0 %v8620_v52  ;;  %14837 = vst [vmem:[#allocation65_spill] sm:$0xff] %v12964_v7  ;;  %v12997_v19 = vmul.f32 %v9079_v11, %v14803_v47 }
 0x8d5   :  { %v12968_v3 = vpop.permute.xlu1 %5205  ;;  %7218 = vmatmul.mubr.bf16.vlgmr.msra.gmra.mxu1 %v8824_v62  ;;  %v8838_v62 = vld [vmem:[%s14228_s10 + $0x5c] ss:$20 sps:$4 sm:$0xff]  }
 0x8d6   :  { %5629 = vrot.lane.b32.xlu1 %v14788_v58, %s9208_s15  ;;  %14838 = vst [vmem:[#allocation63_spill] sm:$0xff] %v12968_v3  ;;  %14842 = vst [vmem:[#allocation83_spill] sm:$0xff] %v12997_v19 }
 0x8d7   :  { %7273 = vmatpush1.bf16.msra.mxu0 %v8619_v27  ;;  %v12975_v54 = vpop.permute.xlu0 %5219  ;;  %v9081_v24 = vpop.eup %9080 }
 0x8d8   :  { %5643 = vrot.lane.b32.xlu0 %v14792_v32, %s9208_s15  ;;  %14839 = vst [vmem:[#allocation84_spill] sm:$0xff] %v12975_v54  ;;  %v9083_v53 = vpop.eup %9082  ;;  %v13004_v55 = vmul.f32 %v9081_v24, %v14806_v22  ;;  %v8840_v24 = vld [vmem:[%s14228_s10 + $0x58] ss:$20 sps:$4 sm:$0xff]  }
 0x8d9   :  { %v12982_v10 = vpop.permute.xlu1 %5221  ;;  %v9085_v37 = vpop.eup %9084  ;;  %v13016_v28 = vmul.f32 %v9083_v53, %v14804_v23  ;;  %v8834_v23 = vld [vmem:[%s14228_s10 + $0x34] ss:$20 sps:$4 sm:$0xff]  }
 0x8da   :  { %5645 = vrot.lane.b32.xlu1 %v14793_v50, %s9208_s15  ;;  %14840 = vst [vmem:[#allocation82_spill] sm:$0xff] %v12982_v10  ;;  %7175 = vmatmul.mubr.bf16.gmra.mxu0 %v8832_v43  ;;  %14844 = vst [vmem:[#allocation112_spill] sm:$0xff] %v13004_v55  ;;  %v13021_v22 = vmul.f32 %v9085_v37, %v14814_v59  ;;  %v8836_v59 = vld [vmem:[%s14228_s10 + $0x30] ss:$20 sps:$4 sm:$0xff]  }
 0x8db   :  { %v12994_v63 = vpop.permute.xlu0 %5739  ;;  %7290 = vmatprep.mubr.bf16.mxu0 %v14843_v41  ;;  %14847 = vst [vmem:[#allocation69_spill] sm:$0xff] %v13016_v28  ;;  %7227 = vmatprep.mubr.bf16.mxu1 %v8834_v23 }
 0x8dc   :  { %5867 = vrot.lane.b32.xlu0 %v14780_v17, %s9210_s17  ;;  %14841 = vst [vmem:[#allocation85_spill] sm:$0xff] %v12994_v63  ;;  %14848 = vst [vmem:[#allocation67_spill] sm:$0xff] %v13021_v22 }
 0x8dd   :  { %v13006_v0 = vpop.permute.xlu1 %5741  ;;  %7228 = vmatmul.mubr.bf16.gmra.mxu1 %v8836_v59 }
 0x8de   :  { %5869 = vrot.lane.b32.xlu1 %v14788_v58, %s9210_s17  ;;  %14845 = vst [vmem:[#allocation110_spill] sm:$0xff] %v13006_v0  ;;  %7237 = vmatprep.mubr.bf16.mxu1 %v8838_v62  ;;  %v8844_v62 = vld [vmem:[%s14228_s10 + $0x80] ss:$20 sps:$4 sm:$0xff]  }
 0x8df   :  { %v13010_v47 = vpop.permute.xlu0 %5755 }
 0x8e0   :  { %5095 = vrot.lane.b32.xlu0 %v12997_v19, %s9200_s14  ;;  %14846 = vst [vmem:[#allocation26_spill] sm:$0xff] %v13010_v47  ;;  %v8845_v47 = vld [vmem:[%s14228_s10 + $0x88] ss:$20 sps:$4 sm:$0xff]  }
 0x8e1   :  { %v13023_v5 = vpop.permute.xlu1 %5757 }
 0x8e2   :  { %5097 = vrot.lane.b32.xlu1 %v13004_v55, %s9200_s14  ;;  %14849 = vst [vmem:[#allocation86_spill] sm:$0xff] %v13023_v5  ;;  %8187 = vmatmul.mubr.msk.bf16.vlgmr.msra.gmra.mxu0 %vm7099_vm11, %v8833_v48  ;;  %v8841_v48 = vld [vmem:[%s14228_s10 + $0x60] ss:$20 sps:$4 sm:$0xff]  }
 0x8e3   :  { %v13027_v52 = vpop.permute.xlu0 %5087  ;;  %7300 = vmatprep.mubr.bf16.mxu0 %v14843_v41 }
 0x8e4   :  { %5111 = vrot.lane.b32.xlu0 %v13016_v28, %s9200_s14 }
 0x8e5   :  { %v13039_v21 = vpop.permute.xlu1 %5089  ;;  %7238 = vmatmul.mubr.bf16.gmra.mxu1 %v8840_v24 }
 0x8e6   :  { %5113 = vrot.lane.b32.xlu1 %v13021_v22, %s9200_s14 }
 0x8e7   :  { %v13043_v27 = vpop.permute.xlu0 %5103 }
 0x8e8   :  { %5883 = vrot.lane.b32.xlu0 %v14792_v32, %s9210_s17  ;;  %v14864_v32 = vld [vmem:[#allocation45_spill] sm:$0xff] }
 0x8e9   :  { %v13050_v43 = vpop.permute.xlu1 %5105 }
 0x8ea   :  { %4977 = vrot.lane.b32.xlu1 %v13004_v55, %s9206_s5  ;;  %8188 = vmatmul.mubr.msk.bf16.gmra.mxu0 %vm7099_vm11, %v8837_v33  ;;  %v8842_v33 = vld [vmem:[%s14228_s10 + $0x84] ss:$20 sps:$4 sm:$0xff]  }
 0x8eb   :  { %v13054_v11 = vpop.permute.xlu0 %4967  ;;  %7310 = vmatprep.mubr.bf16.mxu0 %v14843_v41  ;;  %7247 = vmatprep.mubr.bf16.mxu1 %v8842_v33 }
 0x8ec   :  { %5623 = vrot.lane.b32.xlu0 %v12015_v16, %s9208_s15 }
 0x8ed   :  { %v13066_v53 = vpop.permute.xlu1 %4969  ;;  %7248 = vmatmul.mubr.bf16.gmra.mxu1 %v8844_v62 }
 0x8ee   :  { %4993 = vrot.lane.b32.xlu1 %v13021_v22, %s9206_s5 }
 0x8ef   :  { %v13070_v37 = vpop.permute.xlu0 %4983 }
 0x8f0   :  { %4975 = vrot.lane.b32.xlu0 %v12997_v19, %s9206_s5 }
 0x8f1   :  { %v13077_v23 = vpop.permute.xlu1 %4985 }
 0x8f2   :  { %5513 = vrot.lane.b32.xlu1 %v13004_v55, %s9209_s3  ;;  %8189 = vmatmul.mubr.msk.bf16.gmra.mxu0 %vm7099_vm11, %v8841_v48 }
 0x8f3   :  { %v13081_v59 = vpop.permute.xlu0 %5503  ;;  %7320 = vmatprep.mubr.bf16.mxu0 %v14843_v41  ;;  %v9088_v41 = vld [vmem:[%s14228_s10 + $0x4] ss:$20 sps:$4 sm:$0xff]  }
 0x8f4   :  { %4991 = vrot.lane.b32.xlu0 %v13016_v28, %s9206_s5  ;;  %7363 = vmatprep.mubr.bf16.mxu1 %v9088_v41 }
 0x8f5   :  { %v13093_v24 = vpop.permute.xlu1 %5505 }
 0x8f6   :  { %5529 = vrot.lane.b32.xlu1 %v13021_v22, %s9209_s3 }
 0x8f7   :  { %v13097_v48 = vpop.permute.xlu0 %5519 }
 0x8f8   :  { %5511 = vrot.lane.b32.xlu0 %v12997_v19, %s9209_s3 }
 0x8f9   :  { %v13107_v63 = vpop.permute.xlu1 %5521 }
 0x8fa   :  { %5337 = vrot.lane.b32.xlu1 %v13004_v55, %s9203_s16  ;;  %8190 = vmatmul.mubr.msk.bf16.gmra.mxu0 %vm7099_vm11, %v8845_v47 }
 0x8fb   :  { %v5328_v33 = vpop.permute.xlu0 %5327  ;;  %7436 = vmatprep.mubr.bf16.mxu0 %v12992_v46 }
 0x8fc   :  { %5527 = vrot.lane.b32.xlu0 %v13016_v28, %s9209_s3 }
 0x8fd   :  { %v5330_v62 = vpop.permute.xlu1 %5329 }
 0x8fe   :  { %5353 = vrot.lane.b32.xlu1 %v13021_v22, %s9203_s16 }
 0x8ff   :  { %v5344_v41 = vpop.permute.xlu0 %5343 }
 0x900   :  { %5335 = vrot.lane.b32.xlu0 %v12997_v19, %s9203_s16  ;;  %v5357_v5 = vsel %vm696_vm2, %v5328_v33, %v5344_v41  ;;  %v5365_v47 = vsel %vm696_vm2, %v5344_v41, %v5328_v33 }
 0x901   :  { %v5346_v0 = vpop.permute.xlu1 %5345  ;;  %v13130_v54 = vmul.f32 %v5365_v47, %v14723_v29  ;;  %v13133_v3 = vmul.f32 %v5357_v5, %v14724_v35 }
 0x902   :  { %5217 = vrot.lane.b32.xlu1 %v13004_v55, %s9205_s4  ;;  %v5358_v46 = vsel %vm696_vm2, %v5330_v62, %v5346_v0  ;;  %v5366_v7 = vsel %vm696_vm2, %v5346_v0, %v5330_v62 }
 0x903   :  { %14850 = vst [vmem:[#allocation88_spill] sm:$0xff] %v13130_v54  ;;  %14851 = vst [vmem:[#allocation87_spill] sm:$0xff] %v13133_v3  ;;  %v13136_v10 = vmul.f32 %v5366_v7, %v14723_v29  ;;  %v13139_v33 = vmul.f32 %v5358_v46, %v14724_v35  ;;  %v5208_v41 = vpop.permute.xlu0 %5207 }
 0x904   :  { %5351 = vrot.lane.b32.xlu0 %v13016_v28, %s9203_s16 }
 0x905   :  { %14852 = vst [vmem:[#allocation89_spill] sm:$0xff] %v13136_v10  ;;  %14853 = vst [vmem:[#allocation22_spill] sm:$0xff] %v13139_v33  ;;  %v5210_v0 = vpop.permute.xlu1 %5209 }
 0x906   :  { %5233 = vrot.lane.b32.xlu1 %v13021_v22, %s9205_s4 }
 0x908   :  { %5639 = vrot.lane.b32.xlu0 %v12044_v36, %s9208_s15  ;;  %v5224_v7 = vpop.permute.xlu0 %5223 }
 0x909   :  { %v5237_v62 = vsel %vm627_vm3, %v5208_v41, %v5224_v7  ;;  %v5245_v47 = vsel %vm627_vm3, %v5224_v7, %v5208_v41  ;;  %v5226_v46 = vpop.permute.xlu1 %5225 }
 0x90a   :  { %5753 = vrot.lane.b32.xlu1 %v13004_v55, %s9207_s30  ;;  %v5238_v58 = vsel %vm627_vm3, %v5210_v0, %v5226_v46  ;;  %v5246_v5 = vsel %vm627_vm3, %v5226_v46, %v5210_v0  ;;  %v13162_v17 = vmul.f32 %v5245_v47, %v14798_v30  ;;  %v13165_v54 = vmul.f32 %v5237_v62, %v14748_v51 }
 0x90b   :  { %v13168_v10 = vmul.f32 %v5246_v5, %v14798_v30  ;;  %v13171_v41 = vmul.f32 %v5238_v58, %v14748_v51 }
 0x90c   :  { %5863 = vrot.lane.b32.xlu0 %v12015_v16, %s9210_s17  ;;  %14854 = vst [vmem:[#allocation25_spill] sm:$0xff] %v13162_v17  ;;  %14855 = vst [vmem:[#allocation93_spill] sm:$0xff] %v13165_v54  ;;  %v5744_v7 = vpop.permute.xlu0 %5743 }
 0x90d   :  { %14856 = vst [vmem:[#allocation91_spill] sm:$0xff] %v13168_v10  ;;  %14857 = vst [vmem:[#allocation92_spill] sm:$0xff] %v13171_v41 }
 0x90e   :  { %5769 = vrot.lane.b32.xlu1 %v13021_v22, %s9207_s30  ;;  %v5746_v0 = vpop.permute.xlu1 %5745 }
 0x910   :  { %5215 = vrot.lane.b32.xlu0 %v12997_v19, %s9205_s4  ;;  %v5760_v5 = vpop.permute.xlu0 %5759 }
 0x911   :  { %v5773_v58 = vsel %vm931_vm6, %v5744_v7, %v5760_v5  ;;  %v5781_v47 = vsel %vm931_vm6, %v5760_v5, %v5744_v7 }
 0x912   :  { %5633 = vrot.lane.b32.xlu1 %v13004_v55, %s9208_s15  ;;  %v5762_v46 = vpop.permute.xlu1 %5761  ;;  %v13194_v17 = vmul.f32 %v5773_v58, %v14741_v39  ;;  %v13197_v10 = vmul.f32 %v5781_v47, %v14742_v26 }
 0x913   :  { %v5774_v16 = vsel %vm931_vm6, %v5746_v0, %v5762_v46  ;;  %v5782_v62 = vsel %vm931_vm6, %v5762_v46, %v5746_v0 }
 0x914   :  { %5231 = vrot.lane.b32.xlu0 %v13016_v28, %s9205_s4  ;;  %14858 = vst [vmem:[#allocation90_spill] sm:$0xff] %v13194_v17  ;;  %14859 = vst [vmem:[#allocation68_spill] sm:$0xff] %v13197_v10  ;;  %v13200_v54 = vmul.f32 %v5774_v16, %v14741_v39  ;;  %v13203_v7 = vmul.f32 %v5782_v62, %v14742_v26  ;;  %v5092_v5 = vpop.permute.xlu0 %5091  ;;  %v14862_v17 = vld [vmem:[#allocation30_spill] sm:$0xff]  ;;  %v14863_v10 = vld [vmem:[#allocation31_spill] sm:$0xff] }
 0x916   :  { %14860 = vst [vmem:[#allocation66_spill] sm:$0xff] %v13200_v54  ;;  %14861 = vst [vmem:[#allocation34_spill] sm:$0xff] %v13203_v7  ;;  %5649 = vrot.lane.b32.xlu1 %v13021_v22, %s9208_s15 }
 0x917   :  { %v5094_v0 = vpop.permute.xlu1 %5093 }
 0x918   :  { %5879 = vrot.lane.b32.xlu0 %v12044_v36, %s9210_s17 }
 0x91a   :  { %5873 = vrot.lane.b32.xlu1 %v13004_v55, %s9210_s17  ;;  %v5108_v16 = vpop.permute.xlu0 %5107 }
 0x91b   :  { %v5119_v62 = vsel %vm558_vm4, %v5092_v5, %v5108_v16  ;;  %v5127_v47 = vsel %vm558_vm4, %v5108_v16, %v5092_v5 }
 0x91c   :  { %v5110_v46 = vpop.permute.xlu1 %5109  ;;  %5751 = vrot.lane.b32.xlu0 %v12997_v19, %s9207_s30  ;;  %v13226_v54 = vmul.f32 %v5127_v47, %v14862_v17  ;;  %v13229_v7 = vmul.f32 %v5119_v62, %v14863_v10 }
 0x91d   :  { %v5120_v41 = vsel %vm558_vm4, %v5094_v0, %v5110_v46  ;;  %v5128_v58 = vsel %vm558_vm4, %v5110_v46, %v5094_v0 }
 0x91e   :  { %v13232_v36 = vmul.f32 %v5128_v58, %v14862_v17  ;;  %v13235_v5 = vmul.f32 %v5120_v41, %v14863_v10  ;;  %5889 = vrot.lane.b32.xlu1 %v13021_v22, %s9210_s17  ;;  %v4972_v16 = vpop.permute.xlu0 %4971 }
 0x920   :  { %v4974_v0 = vpop.permute.xlu1 %4973  ;;  %5767 = vrot.lane.b32.xlu0 %v13016_v28, %s9207_s30 }
 0x922   :  { %5885 = vrot.lane.b32.xlu1 %v14793_v50, %s9210_s17  ;;  %v4988_v58 = vpop.permute.xlu0 %4987 }
 0x923   :  { %v4999_v41 = vsel %vm489_vm5, %v4972_v16, %v4988_v58  ;;  %v5007_v47 = vsel %vm489_vm5, %v4988_v58, %v4972_v16 }
 0x924   :  { %v4990_v46 = vpop.permute.xlu1 %4989  ;;  %5619 = vrot.lane.b32.xlu0 %v14864_v32, %s9208_s15  ;;  %v13258_v33 = vmul.f32 %v5007_v47, %v14700_v60  ;;  %v13261_v50 = vmul.f32 %v4999_v41, %v14704_v49 }
 0x925   :  { %v5000_v3 = vsel %vm489_vm5, %v4974_v0, %v4990_v46  ;;  %v5008_v62 = vsel %vm489_vm5, %v4990_v46, %v4974_v0 }
 0x926   :  { %v13264_v55 = vmul.f32 %v5008_v62, %v14700_v60  ;;  %v13267_v16 = vmul.f32 %v5000_v3, %v14704_v49  ;;  %5625 = vrot.lane.b32.xlu1 %v12059_v38, %s9208_s15  ;;  %v5508_v58 = vpop.permute.xlu0 %5507 }
 0x928   :  { %v5510_v0 = vpop.permute.xlu1 %5509  ;;  %5631 = vrot.lane.b32.xlu0 %v12997_v19, %s9208_s15 }
 0x92a   :  { %5641 = vrot.lane.b32.xlu1 %v12089_v9, %s9208_s15  ;;  %v5524_v62 = vpop.permute.xlu0 %5523 }
 0x92b   :  { %v5535_v3 = vsel %vm793_vm8, %v5508_v58, %v5524_v62  ;;  %v5543_v47 = vsel %vm793_vm8, %v5524_v62, %v5508_v58 }
 0x92c   :  { %v5526_v46 = vpop.permute.xlu1 %5525  ;;  %5647 = vrot.lane.b32.xlu0 %v13016_v28, %s9208_s15  ;;  %v13290_v45 = vmul.f32 %v5535_v3, %v14698_v15  ;;  %v13293_v22 = vmul.f32 %v5543_v47, %v14699_v6 }
 0x92d   :  { %v5536_v34 = vsel %vm793_vm8, %v5510_v0, %v5526_v46  ;;  %v5544_v41 = vsel %vm793_vm8, %v5526_v46, %v5510_v0 }
 0x92e   :  { %14865 = vst [vmem:[#allocation72_spill] sm:$0xff] %v13290_v45  ;;  %v13296_v4 = vmul.f32 %v5536_v34, %v14698_v15  ;;  %v13299_v58 = vmul.f32 %v5544_v41, %v14699_v6  ;;  %5865 = vrot.lane.b32.xlu1 %v12059_v38, %s9210_s17  ;;  %v5332_v62 = vpop.permute.xlu0 %5331 }
 0x930   :  { %14866 = vst [vmem:[#allocation70_spill] sm:$0xff] %v13296_v4  ;;  %v5334_v0 = vpop.permute.xlu1 %5333  ;;  %5871 = vrot.lane.b32.xlu0 %v12997_v19, %s9210_s17 }
 0x932   :  { %5881 = vrot.lane.b32.xlu1 %v12089_v9, %s9210_s17  ;;  %v5348_v34 = vpop.permute.xlu0 %5347 }
 0x933   :  { %v5359_v41 = vsel %vm696_vm2, %v5332_v62, %v5348_v34  ;;  %v5367_v47 = vsel %vm696_vm2, %v5348_v34, %v5332_v62  ;;  %v14870_v34 = vld [vmem:[#allocation21_spill] sm:$0xff] }
 0x934   :  { %v5350_v46 = vpop.permute.xlu1 %5349  ;;  %5887 = vrot.lane.b32.xlu0 %v13016_v28, %s9210_s17  ;;  %v13322_v38 = vmul.f32 %v5367_v47, %v14723_v29  ;;  %v13325_v9 = vmul.f32 %v5359_v41, %v14724_v35  ;;  %v14871_v47 = vld [vmem:[#allocation20_spill] sm:$0xff] }
 0x935   :  { %v5360_v42 = vsel %vm696_vm2, %v5334_v0, %v5350_v46  ;;  %v5368_v3 = vsel %vm696_vm2, %v5350_v46, %v5334_v0 }
 0x936   :  { %14867 = vst [vmem:[#allocation29_spill] sm:$0xff] %v13322_v38  ;;  %14868 = vst [vmem:[#allocation73_spill] sm:$0xff] %v13325_v9  ;;  %v13328_v19 = vmul.f32 %v5368_v3, %v14723_v29  ;;  %v13331_v62 = vmul.f32 %v5360_v42, %v14724_v35  ;;  %5621 = vrot.lane.b32.xlu1 %v14870_v34, %s9208_s15  ;;  %v5212_v28 = vpop.permute.xlu0 %5211  ;;  %v14872_v3 = vld [vmem:[#allocation17_spill] sm:$0xff] }
 0x938   :  { %14869 = vst [vmem:[#allocation71_spill] sm:$0xff] %v13328_v19  ;;  %v5214_v0 = vpop.permute.xlu1 %5213  ;;  %5635 = vrot.lane.b32.xlu0 %v14871_v47, %s9208_s15 }
 0x93a   :  { %5637 = vrot.lane.b32.xlu1 %v14872_v3, %s9208_s15  ;;  %v5228_v46 = vpop.permute.xlu0 %5227 }
 0x93b   :  { %v5239_v42 = vsel %vm627_vm3, %v5212_v28, %v5228_v46  ;;  %v5247_v4 = vsel %vm627_vm3, %v5228_v46, %v5212_v28 }
 0x93c   :  { %v5230_v29 = vpop.permute.xlu1 %5229  ;;  %5859 = vrot.lane.b32.xlu0 %v14864_v32, %s9210_s17  ;;  %v13354_v38 = vmul.f32 %v5247_v4, %v14798_v30  ;;  %v13357_v19 = vmul.f32 %v5239_v42, %v14748_v51  ;;  %v6192_v32 = vld [vmem:[%s14229_s11 + $0x8] sm:$0xff] }
 0x93d   :  { %v5240_v45 = vsel %vm627_vm3, %v5214_v0, %v5230_v29  ;;  %v5248_v41 = vsel %vm627_vm3, %v5230_v29, %v5214_v0  ;;  %v6191_v0 = vld [vmem:[%s14229_s11] sm:$0xff] }
 0x93e   :  { %14873 = vst [vmem:[#allocation94_spill] sm:$0xff] %v13354_v38  ;;  %14874 = vst [vmem:[#allocation47_spill] sm:$0xff] %v13357_v19  ;;  %v13360_v9 = vmul.f32 %v5248_v41, %v14798_v30  ;;  %v13363_v28 = vmul.f32 %v5240_v45, %v14748_v51  ;;  %5861 = vrot.lane.b32.xlu1 %v14870_v34, %s9210_s17  ;;  %v5748_v46 = vpop.permute.xlu0 %5747  ;;  %v6193_v19 = vld [vmem:[%s14229_s11 + $0x10] sm:$0xff] }
 0x940   :  { %14875 = vst [vmem:[#allocation43_spill] sm:$0xff] %v13360_v9  ;;  %14876 = vst [vmem:[#allocation19_spill] sm:$0xff] %v13363_v28  ;;  %v5750_v29 = vpop.permute.xlu1 %5749  ;;  %5875 = vrot.lane.b32.xlu0 %v14871_v47, %s9210_s17 }
 0x942   :  { %5877 = vrot.lane.b32.xlu1 %v14872_v3, %s9210_s17  ;;  %v5764_v45 = vpop.permute.xlu0 %5763 }
 0x943   :  { %v5775_v41 = vsel %vm931_vm6, %v5748_v46, %v5764_v45  ;;  %v5783_v42 = vsel %vm931_vm6, %v5764_v45, %v5748_v46 }
 0x944   :  { %v5766_v38 = vpop.permute.xlu1 %5765  ;;  %6201 = vperm.xlu0 %8800, %v6191_v0   ;;  %v13393_v28 = vmul.f32 %v5775_v41, %v14741_v39  ;;  %v13396_v46 = vmul.f32 %v5783_v42, %v14742_v26 }
 0x945   :  { %v5776_v4 = vsel %vm931_vm6, %v5750_v29, %v5766_v38  ;;  %v5784_v9 = vsel %vm931_vm6, %v5766_v38, %v5750_v29  ;;  %v6194_v38 = vld [vmem:[%s14229_s11 + $0x18] sm:$0xff]  ;;  %v6196_v29 = vld [vmem:[%s14229_s11 + $0x28] sm:$0xff] }
 0x946   :  { %14877 = vst [vmem:[#allocation18_spill] sm:$0xff] %v13393_v28  ;;  %14878 = vst [vmem:[#allocation130_spill] sm:$0xff] %v13396_v46  ;;  %v13399_v45 = vmul.f32 %v5776_v4, %v14741_v39  ;;  %v13402_v0 = vmul.f32 %v5784_v9, %v14742_v26  ;;  %v5628_v34 = vpop.permute.xlu0 %5627  ;;  %6206 = vperm.xlu1 %8801, %v6192_v32   ;;  %v6195_v4 = vld [vmem:[%s14229_s11 + $0x20] sm:$0xff] }
 0x948   :  { %14879 = vst [vmem:[#allocation15_spill] sm:$0xff] %v13399_v45  ;;  %14880 = vst [vmem:[#allocation14_spill] sm:$0xff] %v13402_v0  ;;  %v5630_v41 = vpop.permute.xlu1 %5629  ;;  %6211 = vperm.xlu0 %8800, %v6193_v19  }
 0x94a   :  { %v5644_v9 = vpop.permute.xlu0 %5643  ;;  %6216 = vperm.xlu1 %8801, %v6194_v38   ;;  %v6197_v38 = vld [vmem:[%s14229_s11 + $0x30] sm:$0xff] }
 0x94b   :  { %v5655_v32 = vsel %vm862_vm7, %v5628_v34, %v5644_v9  ;;  %v5663_v26 = vsel %vm862_vm7, %v5644_v9, %v5628_v34 }
 0x94c   :  { %v5646_v28 = vpop.permute.xlu1 %5645  ;;  %6221 = vperm.xlu0 %8800, %v6195_v4   ;;  %v13429_v45 = vmul.f32 %v5655_v32, %v14809_v20  ;;  %v13432_v34 = vmul.f32 %v5663_v26, %v14805_v13 }
 0x94d   :  { %v5656_v19 = vsel %vm862_vm7, %v5630_v41, %v5646_v28  ;;  %v5664_v42 = vsel %vm862_vm7, %v5646_v28, %v5630_v41  ;;  %v6198_v28 = vld [vmem:[%s14229_s11 + $0x38] sm:$0xff] }
 0x94e   :  { %14881 = vst [vmem:[#allocation60_spill] sm:$0xff] %v13429_v45  ;;  %14882 = vst [vmem:[#allocation58_spill] sm:$0xff] %v13432_v34  ;;  %v13435_v9 = vmul.f32 %v5656_v19, %v14809_v20  ;;  %v13438_v4 = vmul.f32 %v5664_v42, %v14805_v13  ;;  %v5868_v46 = vpop.permute.xlu0 %5867  ;;  %6226 = vperm.xlu1 %8801, %v6196_v29  }
 0x950   :  { %14883 = vst [vmem:[#allocation59_spill] sm:$0xff] %v13435_v9  ;;  %14884 = vst [vmem:[#allocation39_spill] sm:$0xff] %v13438_v4  ;;  %v13445_v32 = vpop.permute.xlu1 %5869  ;;  %6231 = vperm.xlu0 %8800, %v6197_v38  }
 0x952   :  { %v5096_v19 = vpop.permute.xlu0 %5095  ;;  %6236 = vperm.xlu1 %8801, %v6198_v28  }
 0x954   :  { %v5098_v20 = vpop.permute.xlu1 %5097 }
 0x956   :  { %v5112_v42 = vpop.permute.xlu0 %5111 }
 0x957   :  { %v5121_v29 = vsel %vm558_vm4, %v5096_v19, %v5112_v42  ;;  %v5129_v13 = vsel %vm558_vm4, %v5112_v42, %v5096_v19  ;;  %v5118_v19 = vsel %vm558_vm4, %v13039_v21, %v13050_v43 }
 0x958   :  { %v5114_v0 = vpop.permute.xlu1 %5113  ;;  %v5143_v26 = vmul.f32 %v5129_v13, %v14862_v17  ;;  %v5144_v38 = vmul.f32 %v5121_v29, %v14863_v10  ;;  %v5138_v4 = vmul.f32 %v5118_v19, %v14863_v10 }
 0x959   :  { %v5122_v41 = vsel %vm558_vm4, %v5098_v20, %v5114_v0  ;;  %v5130_v45 = vsel %vm558_vm4, %v5114_v0, %v5098_v20 }
 0x95a   :  { %v5145_v28 = vmul.f32 %v5130_v45, %v14862_v17  ;;  %v5146_v9 = vmul.f32 %v5122_v41, %v14863_v10  ;;  %v5884_v34 = vpop.permute.xlu0 %5883  ;;  %v5117_v45 = vsel %vm558_vm4, %v13027_v52, %v13043_v27  ;;  %v5126_v41 = vsel %vm558_vm4, %v13050_v43, %v13039_v21 }
 0x95b   :  { %v13467_v42 = vsel %vm1000_vm9, %v5868_v46, %v5884_v34  ;;  %v13471_v20 = vsel %vm1000_vm9, %v5884_v34, %v5868_v46  ;;  %v5116_v46 = vsel %vm558_vm4, %v12738_v40, %v12777_v44  ;;  %v5125_v34 = vsel %vm558_vm4, %v13043_v27, %v13027_v52 }
 0x95c   :  { %14885 = vst [vmem:[#allocation57_spill] sm:$0xff] %v13467_v42  ;;  %v8521_v13 = vpack.c.bf16 %v5145_v28, %v5143_v26  ;;  %v4978_v0 = vpop.permute.xlu1 %4977  ;;  %v8522_v29 = vpack.c.bf16 %v5146_v9, %v5144_v38  ;;  %v5136_v9 = vmul.f32 %v5117_v45, %v14863_v10  ;;  %v14886_v21 = vpack.c.bf16 %v13235_v5, %v13229_v7 }
 0x95d   :  { %v5115_v43 = vsel %vm558_vm4, %v12710_v61, %v12748_v1  ;;  %v5137_v38 = vmul.f32 %v5126_v41, %v14862_v17  ;;  %v5124_v28 = vsel %vm558_vm4, %v12777_v44, %v12738_v40  ;;  %v5134_v52 = vmul.f32 %v5116_v46, %v14863_v10 }
 0x95e   :  { %7331 = vmatprep.subr.bf16.mxu1 %v8522_v29  ;;  %v13482_v42 = vpop.permute.xlu0 %5623  ;;  %v8514_v19 = vpack.c.bf16 %v5138_v4, %v5136_v9  ;;  %v14887_v7 = vpack.c.bf16 %v13232_v36, %v13226_v54  ;;  %v5123_v5 = vsel %vm558_vm4, %v12748_v1, %v12710_v61  ;;  %v5132_v29 = vmul.f32 %v5115_v43, %v14863_v10 }
 0x95f   :  { %7332 = vmatpush1.bf16.msra.mxu1 %v8521_v13  ;;  %v5135_v13 = vmul.f32 %v5125_v34, %v14862_v17  ;;  %v5133_v40 = vmul.f32 %v5124_v28, %v14862_v17  ;;  %v5131_v36 = vmul.f32 %v5123_v5, %v14862_v17  ;;  %v4998_v28 = vsel %vm489_vm5, %v13066_v53, %v13077_v23 }
 0x960   :  { %v4994_v26 = vpop.permute.xlu1 %4993  ;;  %7333 = vmatprep.subr.bf16.mxu1 %v14886_v21  ;;  %v8510_v46 = vpack.c.bf16 %v5134_v52, %v5132_v29  ;;  %v5003_v5 = vsel %vm489_vm5, %v12835_v8, %v12792_v12  ;;  %v4996_v29 = vsel %vm489_vm5, %v12820_v56, %v12856_v31 }
 0x961   :  { %v8513_v44 = vpack.c.bf16 %v5137_v38, %v5135_v13  ;;  %v5002_v4 = vsel %vm489_vm5, %v4978_v0, %v4994_v26  ;;  %v5010_v1 = vsel %vm489_vm5, %v4994_v26, %v4978_v0  ;;  %v8509_v21 = vpack.c.bf16 %v5133_v40, %v5131_v36 }
 0x962   :  { %v4976_v27 = vpop.permute.xlu0 %4975  ;;  %v5026_v10 = vmul.f32 %v5002_v4, %v14704_v49  ;;  %v5025_v52 = vmul.f32 %v5010_v1, %v14700_v60  ;;  %v4997_v0 = vsel %vm489_vm5, %v13054_v11, %v13070_v37  ;;  %v5006_v40 = vsel %vm489_vm5, %v13077_v23, %v13066_v53 }
 0x963   :  { %7334 = vmatpush1.bf16.msra.mxu1 %v14887_v7  ;;  %v5542_v1 = vsel %vm793_vm8, %v13107_v63, %v13093_v24 }
 0x964   :  { %v5514_v45 = vpop.permute.xlu1 %5513  ;;  %7335 = vmatprep.subr.bf16.mxu1 %v8514_v19 }
 0x966   :  { %v4992_v41 = vpop.permute.xlu0 %4991 }
 0x967   :  { %v5001_v54 = vsel %vm489_vm5, %v4976_v27, %v4992_v41  ;;  %v5009_v61 = vsel %vm489_vm5, %v4992_v41, %v4976_v27  ;;  %7336 = vmatpush1.bf16.msra.mxu1 %v8513_v44  ;;  %v4995_v27 = vsel %vm489_vm5, %v12792_v12, %v12835_v8  ;;  %v5018_v44 = vmul.f32 %v4998_v28, %v14704_v49 }
 0x968   :  { %v5024_v34 = vmul.f32 %v5001_v54, %v14704_v49  ;;  %v5530_v9 = vpop.permute.xlu1 %5529  ;;  %7337 = vmatprep.subr.bf16.mxu1 %v8510_v46  ;;  %v5023_v43 = vmul.f32 %v5009_v61, %v14700_v60  ;;  %v5016_v12 = vmul.f32 %v4997_v0, %v14704_v49  ;;  %v5017_v61 = vmul.f32 %v5006_v40, %v14700_v60 }
 0x969   :  { %v5538_v13 = vsel %vm793_vm8, %v5514_v45, %v5530_v9  ;;  %v5546_v7 = vsel %vm793_vm8, %v5530_v9, %v5514_v45  ;;  %v5005_v45 = vsel %vm489_vm5, %v13070_v37, %v13054_v11  ;;  %v14888_v11 = vpack.c.bf16 %v13267_v16, %v13261_v50 }
 0x96a   :  { %v5512_v17 = vpop.permute.xlu0 %5511  ;;  %v8506_v38 = vpack.c.bf16 %v5026_v10, %v5024_v34  ;;  %v8505_v19 = vpack.c.bf16 %v5025_v52, %v5023_v43  ;;  %v5561_v46 = vmul.f32 %v5538_v13, %v14698_v15  ;;  %v5562_v53 = vmul.f32 %v5546_v7, %v14699_v6 }
 0x96b   :  { %7338 = vmatpush1.bf16.msra.mxu1 %v8509_v21  ;;  %v5014_v37 = vmul.f32 %v4996_v29, %v14704_v49  ;;  %v5004_v10 = vsel %vm489_vm5, %v12856_v31, %v12820_v56  ;;  %v8498_v21 = vpack.c.bf16 %v5018_v44, %v5016_v12  ;;  %v5011_v50 = vmul.f32 %v5003_v5, %v14700_v60 }
 0x96c   :  { %v5338_v26 = vpop.permute.xlu1 %5337  ;;  %7339 = vmatprep.subr.bf16.mxu1 %v8506_v38  ;;  %v5012_v16 = vmul.f32 %v4995_v27, %v14704_v49  ;;  %v5541_v38 = vsel %vm793_vm8, %v13097_v48, %v13081_v59  ;;  %v14889_v28 = vpack.c.bf16 %v13264_v55, %v13258_v33  ;;  %v5540_v56 = vsel %vm793_vm8, %v12920_v18, %v12886_v25 }
 0x96d   :  { %v5534_v49 = vsel %vm793_vm8, %v13093_v24, %v13107_v63  ;;  %v5554_v31 = vmul.f32 %v5542_v1, %v14699_v6  ;;  %v5013_v0 = vmul.f32 %v5004_v10, %v14700_v60  ;;  %v5532_v63 = vsel %vm793_vm8, %v12886_v25, %v12920_v18 }
 0x96e   :  { %v5528_v4 = vpop.permute.xlu0 %5527  ;;  %v8494_v27 = vpack.c.bf16 %v5014_v37, %v5012_v16  ;;  %v5552_v24 = vmul.f32 %v5541_v38, %v14699_v6  ;;  %v14890_v13 = vpack.c.bf16 %v13299_v58, %v13293_v22  ;;  %v5550_v5 = vmul.f32 %v5540_v56, %v14699_v6  ;;  %v14902_v56 = vld [vmem:[#allocation64_spill] sm:$0xff] }
 0x96f   :  { %v5537_v8 = vsel %vm793_vm8, %v5512_v17, %v5528_v4  ;;  %v5545_v41 = vsel %vm793_vm8, %v5528_v4, %v5512_v17  ;;  %7340 = vmatpush1.bf16.msra.mxu1 %v8505_v19  ;;  %v5015_v17 = vmul.f32 %v5005_v45, %v14700_v60  ;;  %v5539_v19 = vsel %vm793_vm8, %v12898_v57, %v12867_v2  ;;  %v14891_v45 = vld [vmem:[#allocation24_spill] sm:$0xff] }
 0x970   :  { %v5559_v23 = vmul.f32 %v5537_v8, %v14698_v15  ;;  %v5560_v36 = vmul.f32 %v5545_v41, %v14699_v6  ;;  %v5354_v54 = vpop.permute.xlu1 %5353  ;;  %7341 = vmatprep.subr.bf16.mxu1 %v14888_v11  ;;  %v5533_v60 = vsel %vm793_vm8, %v13081_v59, %v13097_v48  ;;  %v5553_v29 = vmul.f32 %v5534_v49, %v14698_v15  ;;  %v14892_v8 = vld [vmem:[#allocation70_spill] sm:$0xff]  ;;  %v14893_v41 = vld [vmem:[#allocation72_spill] sm:$0xff] }
 0x971   :  { %v8497_v55 = vpack.c.bf16 %v5017_v61, %v5015_v17  ;;  %v5362_v33 = vsel %vm696_vm2, %v5338_v26, %v5354_v54  ;;  %v5370_v18 = vsel %vm696_vm2, %v5354_v54, %v5338_v26  ;;  %v8578_v58 = vpack.c.bf16 %v5554_v31, %v5552_v24  ;;  %v14899_v17 = vld [vmem:[#allocation69_spill] sm:$0xff] }
 0x972   :  { %v8585_v34 = vpack.c.bf16 %v5561_v46, %v5559_v23  ;;  %v5336_v9 = vpop.permute.xlu0 %5335  ;;  %v8586_v43 = vpack.c.bf16 %v5562_v53, %v5560_v36  ;;  %v5386_v59 = vmul.f32 %v5362_v33, %v14724_v35  ;;  %v8493_v44 = vpack.c.bf16 %v5013_v0, %v5011_v50  ;;  %v14897_v50 = vld [vmem:[#allocation73_spill] sm:$0xff]  ;;  %v14903_v33 = vld [vmem:[#allocation71_spill] sm:$0xff] }
 0x973   :  { %7342 = vmatpush1.bf16.msra.mxu1 %v14889_v28  ;;  %v5551_v4 = vmul.f32 %v5533_v60, %v14698_v15  ;;  %v14894_v46 = vpack.c.bf16 %v14892_v8, %v14893_v41  ;;  %v5531_v26 = vsel %vm793_vm8, %v12867_v2, %v12898_v57  ;;  %v5548_v53 = vmul.f32 %v5539_v19, %v14699_v6  ;;  %v14895_v57 = vld [vmem:[#allocation111_spill] sm:$0xff]  ;;  %v14901_v28 = vld [vmem:[#allocation44_spill] sm:$0xff] }
 0x974   :  { %v13603_v52 = vpop.permute.xlu1 %5217  ;;  %7343 = vmatprep.subr.bf16.mxu1 %v8498_v21  ;;  %7404 = vmatprep.subr.bf16.mxu0 %v8586_v43  ;;  %v5549_v54 = vmul.f32 %v5532_v63, %v14698_v15  ;;  %v5385_v37 = vmul.f32 %v5370_v18, %v14891_v45  ;;  %v5547_v10 = vmul.f32 %v5531_v26, %v14698_v15  ;;  %v14900_v15 = vld [vmem:[#allocation67_spill] sm:$0xff]  ;;  %v14907_v60 = vld [vmem:[#allocation112_spill] sm:$0xff] }
 0x975   :  { %7405 = vmatpush1.bf16.msra.mxu0 %v8585_v34  ;;  %v8577_v11 = vpack.c.bf16 %v5553_v29, %v5551_v4  ;;  %v8574_v1 = vpack.c.bf16 %v5550_v5, %v5548_v53  ;;  %v14898_v16 = vpack.c.bf16 %v13331_v62, %v14897_v50  ;;  %v8570_v38 = vpack.c.bf16 %v14900_v15, %v14899_v17  ;;  %v14906_v63 = vld [vmem:[#allocation83_spill] sm:$0xff]  ;;  %v14908_v29 = vld [vmem:[#allocation22_spill] sm:$0xff]  ;;  %v14913_v53 = vld [vmem:[#allocation89_spill] sm:$0xff] }
 0x976   :  { %7406 = vmatprep.subr.bf16.mxu0 %v14890_v13  ;;  %v5352_v7 = vpop.permute.xlu0 %5351  ;;  %v8573_v2 = vpack.c.bf16 %v5549_v54, %v5547_v10  ;;  %v5355_v49 = vsel %vm696_vm2, %v14902_v56, %v14901_v28  ;;  %v8569_v24 = vpack.c.bf16 %v14907_v60, %v14906_v63  ;;  %v5363_v13 = vsel %vm696_vm2, %v14901_v28, %v14902_v56  ;;  %v14911_v18 = vld [vmem:[#allocation131_spill] sm:$0xff]  ;;  %v14921_v28 = vld [vmem:[#allocation128_spill] sm:$0xff]  ;;  %v14924_v60 = vld [vmem:[#allocation45_spill] sm:$0xff] }
 0x977   :  { %v5361_v40 = vsel %vm696_vm2, %v5336_v9, %v5352_v7  ;;  %v5369_v25 = vsel %vm696_vm2, %v5352_v7, %v5336_v9  ;;  %7344 = vmatpush1.bf16.msra.mxu1 %v8497_v55  ;;  %v14896_v9 = vld [vmem:[#allocation62_spill] sm:$0xff]  ;;  %v5372_v7 = vmul.f32 %v5355_v49, %v14724_v35  ;;  %v5371_v41 = vmul.f32 %v5363_v13, %v14891_v45 }
 0x978   :  { %v5384_v22 = vmul.f32 %v5361_v40, %v14724_v35  ;;  %v5234_v48 = vpop.permute.xlu1 %5233  ;;  %7345 = vmatprep.subr.bf16.mxu1 %v8494_v27  ;;  %v5383_v12 = vmul.f32 %v5369_v25, %v14891_v45  ;;  %v5356_v21 = vsel %vm696_vm2, %v14896_v9, %v14895_v57  ;;  %v5364_v31 = vsel %vm696_vm2, %v14895_v57, %v14896_v9  ;;  %v14904_v27 = vld [vmem:[#allocation29_spill] sm:$0xff]  ;;  %v14909_v40 = vld [vmem:[#allocation87_spill] sm:$0xff] }
 0x979   :  { %7407 = vmatpush1.bf16.msra.mxu0 %v14894_v46  ;;  %v5374_v0 = vmul.f32 %v5356_v21, %v14724_v35  ;;  %v14905_v19 = vpack.c.bf16 %v14903_v33, %v14904_v27  ;;  %v14910_v25 = vpack.c.bf16 %v14908_v29, %v14909_v40  ;;  %v5242_v4 = vsel %vm627_vm3, %v13603_v52, %v5234_v48  ;;  %v14918_v57 = vld [vmem:[#allocation127_spill] sm:$0xff]  ;;  %v14919_v9 = vld [vmem:[#allocation61_spill] sm:$0xff]  ;;  %v14922_v27 = vld [vmem:[#allocation82_spill] sm:$0xff] }
 0x97a   :  { %7408 = vmatprep.subr.bf16.mxu0 %v8578_v58  ;;  %v13644_v23 = vpop.permute.xlu0 %5639  ;;  %v8554_v36 = vpack.c.bf16 %v5386_v59, %v5384_v22  ;;  %v8553_v34 = vpack.c.bf16 %v5385_v37, %v5383_v12  ;;  %v14912_v59 = vld [vmem:[#allocation33_spill] sm:$0xff]  ;;  %v14917_v37 = vld [vmem:[#allocation32_spill] sm:$0xff]  ;;  %v5250_v10 = vsel %vm627_vm3, %v5234_v48, %v13603_v52  ;;  %v8562_v21 = vpack.c.bf16 %v14919_v9, %v14918_v57 }
 0x97b   :  { %7346 = vmatpush1.bf16.msra.mxu1 %v8493_v44  ;;  %v8566_v22 = vpack.c.bf16 %v14912_v59, %v14911_v18  ;;  %v5373_v44 = vmul.f32 %v5364_v31, %v14891_v45  ;;  %v8542_v12 = vpack.c.bf16 %v5374_v0, %v5372_v7  ;;  %v5265_v48 = vmul.f32 %v5250_v10, %v14798_v30  ;;  %v14926_v29 = vld [vmem:[#allocation84_spill] sm:$0xff]  ;;  %v14927_v40 = vld [vmem:[#allocation65_spill] sm:$0xff]  ;;  %v14929_v18 = vld [vmem:[#allocation47_spill] sm:$0xff] }
 0x97c   :  { %v13648_v61 = vpop.permute.xlu1 %5753  ;;  %7347 = vmatprep.subr.bf16.mxu1 %v8554_v36  ;;  %v14914_v36 = vld [vmem:[#allocation88_spill] sm:$0xff]  ;;  %v8558_v31 = vpack.c.bf16 %v14872_v3, %v14871_v47  ;;  %v5235_v47 = vsel %vm627_vm3, %v14927_v40, %v14926_v29  ;;  %v14936_v9 = vld [vmem:[#allocation93_spill] sm:$0xff] }
 0x97d   :  { %7409 = vmatpush1.bf16.msra.mxu0 %v8577_v11  ;;  %v14915_v54 = vpack.c.bf16 %v14913_v53, %v14914_v36  ;;  %v14916_v11 = vld [vmem:[#allocation129_spill] sm:$0xff]  ;;  %v8541_v50 = vpack.c.bf16 %v5373_v44, %v5371_v41  ;;  %v14931_v53 = vld [vmem:[#allocation43_spill] sm:$0xff]  ;;  %v14932_v36 = vld [vmem:[#allocation94_spill] sm:$0xff] }
 0x97e   :  { %7410 = vmatprep.subr.bf16.mxu0 %v8574_v1  ;;  %v13651_v6 = vpop.permute.xlu0 %5863  ;;  %v8565_v1 = vpack.c.bf16 %v14917_v37, %v14916_v11  ;;  %v14935_v57 = vld [vmem:[#allocation92_spill] sm:$0xff] }
 0x97f   :  { %7348 = vmatpush2.bf16.msra.mxu1 %v8553_v34  ;;  %v5266_v34 = vmul.f32 %v5242_v4, %v14748_v51 }
 0x980   :  { %v13657_v43 = vpop.permute.xlu1 %5769  ;;  %7349 = vmatprep.subr.bf16.mxu1 %v14898_v16 }
 0x981   :  { %7411 = vmatpush1.bf16.msra.mxu0 %v8573_v2  ;;  %v5786_v44 = vsel %vm931_vm6, %v13657_v43, %v13648_v61 }
 0x982   :  { %7412 = vmatprep.subr.bf16.mxu0 %v8570_v38  ;;  %v5216_v55 = vpop.permute.xlu0 %5215  ;;  %v13673_v62 = vpop.f32.mrf.mxu0  ;;  %v14920_v38 = vld [vmem:[#allocation124_spill] sm:$0xff] }
 0x983   :  { %7350 = vmatpush2.bf16.msra.mxu1 %v14905_v19  ;;  %v8561_v56 = vpack.c.bf16 %v14921_v28, %v14920_v38  ;;  %v14923_v19 = vld [vmem:[#allocation63_spill] sm:$0xff] }
 0x984   :  { %v13685_v5 = vpop.permute.xlu1 %5633  ;;  %7351 = vmatprep.subr.bf16.mxu1 %v14910_v25  ;;  %v13692_v58 = vpop.f32.mrf.mxu0  ;;  %v5236_v63 = vsel %vm627_vm3, %v14923_v19, %v14922_v27  ;;  %v14928_v25 = vld [vmem:[#allocation19_spill] sm:$0xff] }
 0x985   :  { %7413 = vmatpush1.bf16.msra.mxu0 %v8569_v24  ;;  %v14925_v24 = vld [vmem:[#allocation21_spill] sm:$0xff]  ;;  %v14930_v59 = vpack.c.bf16 %v14928_v25, %v14929_v18  ;;  %v8004_v18 = vld [vmem:[%s14218_s0 + $0x48] sm:$0xff] }
 0x986   :  { %7414 = vmatprep.subr.bf16.mxu0 %v8566_v22  ;;  %v5232_v35 = vpop.permute.xlu0 %5231  ;;  %v13698_v8 = vpop.f32.mrf.mxu0  ;;  %v8557_v13 = vpack.c.bf16 %v14925_v24, %v14924_v60  ;;  %v5778_v22 = vsel %vm931_vm6, %v13648_v61, %v13657_v43 }
 0x987   :  { %v5241_v46 = vsel %vm627_vm3, %v5216_v55, %v5232_v35  ;;  %v5249_v26 = vsel %vm627_vm3, %v5232_v35, %v5216_v55  ;;  %7352 = vmatpush2.bf16.msra.mxu1 %v14915_v54  ;;  %v5244_v35 = vsel %vm627_vm3, %v14922_v27, %v14923_v19  ;;  %v14933_v54 = vpack.c.bf16 %v14931_v53, %v14932_v36  ;;  %v14939_v27 = vld [vmem:[#allocation25_spill] sm:$0xff] }
 0x988   :  { %v5264_v45 = vmul.f32 %v5241_v46, %v14748_v51  ;;  %v13715_v2 = vpop.permute.xlu1 %5649  ;;  %7353 = vmatprep.subr.bf16.mxu1 %v8542_v12  ;;  %v5263_v16 = vmul.f32 %v5249_v26, %v14798_v30  ;;  %v13720_v17 = vpop.f32.mrf.mxu0  ;;  %v5254_v12 = vmul.f32 %v5236_v63, %v14748_v51  ;;  %v5243_v46 = vsel %vm627_vm3, %v14926_v29, %v14927_v40  ;;  %v8009_v29 = vld [vmem:[%s14218_s0 + $0x70] sm:$0xff]  ;;  %v14941_v40 = vld [vmem:[#allocation110_spill] sm:$0xff] }
 0x989   :  { %7415 = vmatpush1.bf16.msra.mxu0 %v8565_v1  ;;  %v5252_v26 = vmul.f32 %v5235_v47, %v14748_v51  ;;  %v5801_v37 = vmul.f32 %v5778_v22, %v14741_v39  ;;  %v14934_v1 = vld [vmem:[#allocation35_spill] sm:$0xff]  ;;  %v14942_v47 = vld [vmem:[#allocation86_spill] sm:$0xff] }
 0x98a   :  { %7416 = vmatprep.subr.bf16.mxu0 %v8562_v21  ;;  %v13722_v15 = vpop.permute.xlu0 %5879  ;;  %v8538_v52 = vpack.c.bf16 %v5266_v34, %v5264_v45  ;;  %v8537_v0 = vpack.c.bf16 %v5265_v48, %v5263_v16  ;;  %v13731_v55 = vpop.f32.mrf.mxu0  ;;  %v5802_v10 = vmul.f32 %v5786_v44, %v14934_v1  ;;  %v14937_v21 = vpack.c.bf16 %v14935_v57, %v14936_v9  ;;  %v8008_v16 = vld [vmem:[%s14218_s0 + $0x68] sm:$0xff]  ;;  %v14943_v44 = vld [vmem:[#allocation14_spill] sm:$0xff] }
 0x98b   :  { %7354 = vmatpush2.bf16.msra.mxu1 %v8541_v50  ;;  %v5253_v50 = vmul.f32 %v5244_v35, %v14798_v30  ;;  %v5780_v25 = vsel %vm931_vm6, %v14942_v47, %v14941_v40  ;;  %v14944_v35 = vld [vmem:[#allocation130_spill] sm:$0xff]  ;;  %v14948_v57 = vld [vmem:[#allocation15_spill] sm:$0xff] }
 0x98c   :  { %v13727_v49 = vpop.permute.xlu1 %5873  ;;  %7355 = vmatprep.subr.bf16.mxu1 %v8538_v52  ;;  %v13739_v7 = vpop.f32.mrf.mxu0  ;;  %v8010_v52 = vld [vmem:[%s14218_s0 + $0x78] sm:$0xff]  ;;  %v14949_v9 = vld [vmem:[#allocation18_spill] sm:$0xff] }
 0x98d   :  { %7417 = vmatpush1.bf16.msra.mxu0 %v8561_v56  ;;  %v8526_v56 = vpack.c.bf16 %v5254_v12, %v5252_v26  ;;  %v8642_v24 = vpack.c.bf16 %v8010_v52, %v8008_v16  ;;  %v14945_v12 = vpack.c.bf16 %v14943_v44, %v14944_v35  ;;  %v14947_v26 = vld [vmem:[#allocation26_spill] sm:$0xff] }
 0x98e   :  { %7418 = vmatprep.subr.bf16.mxu0 %v8558_v31  ;;  %v5752_v33 = vpop.permute.xlu0 %5751  ;;  %v13758_v4 = vpop.f32.mrf.mxu0  ;;  %v14955_v35 = vld [vmem:[#allocation66_spill] sm:$0xff] }
 0x98f   :  { %7356 = vmatpush2.bf16.msra.mxu1 %v8537_v0  ;;  %v5251_v0 = vmul.f32 %v5243_v46, %v14798_v30  ;;  %v14946_v46 = vld [vmem:[#allocation85_spill] sm:$0xff] }
 0x990   :  { %v13745_v3 = vpop.permute.xlu1 %5889  ;;  %7357 = vmatprep.subr.bf16.mxu1 %v14930_v59  ;;  %v13777_v11 = vpop.f32.mrf.mxu0  ;;  %v8006_v59 = vld [vmem:[%s14218_s0 + $0x58] sm:$0xff]  ;;  %v5771_v16 = vsel %vm931_vm6, %v14946_v46, %v14947_v26 }
 0x991   :  { %7419 = vmatpush1.bf16.msra.mxu0 %v8557_v13  ;;  %v8007_v13 = vld [vmem:[%s14218_s0 + $0x60] sm:$0xff]  ;;  %v8525_v30 = vpack.c.bf16 %v5253_v50, %v5251_v0  ;;  %v14952_v0 = vld [vmem:[#allocation68_spill] sm:$0xff]  ;;  %v5787_v44 = vmul.f32 %v5771_v16, %v14741_v39 }
 0x992   :  { %v5768_v41 = vpop.permute.xlu0 %5767  ;;  %v13795_v48 = vpop.f32.mrf.mxu0  ;;  %v8641_v53 = vpack.c.bf16 %v8009_v29, %v8007_v13 }
 0x993   :  { %v5777_v61 = vsel %vm931_vm6, %v5752_v33, %v5768_v41  ;;  %v5785_v43 = vsel %vm931_vm6, %v5768_v41, %v5752_v33  ;;  %7358 = vmatpush2.bf16.msra.mxu1 %v14933_v54  ;;  %v14938_v33 = vld [vmem:[#allocation91_spill] sm:$0xff]  ;;  %v5790_v54 = vmul.f32 %v5780_v25, %v14934_v1 }
 0x994   :  { %v5799_v34 = vmul.f32 %v5777_v61, %v14741_v39  ;;  %v5800_v51 = vmul.f32 %v5785_v43, %v14934_v1  ;;  %v13783_v45 = vpop.permute.xlu1 %5885  ;;  %7359 = vmatprep.subr.bf16.mxu1 %v14937_v21  ;;  %v14940_v19 = vpack.c.bf16 %v14938_v33, %v14939_v27  ;;  %v13803_v63 = vpop.f32.mrf.mxu0  ;;  %v5779_v61 = vsel %vm931_vm6, %v14947_v26, %v14946_v46 }
 0x995   :  { %v5772_v43 = vsel %vm931_vm6, %v14941_v40, %v14942_v47  ;;  %v14950_v21 = vpack.c.bf16 %v14948_v57, %v14949_v9  ;;  %v5788_v52 = vmul.f32 %v5779_v61, %v14934_v1  ;;  %v14954_v47 = vld [vmem:[#allocation37_spill] sm:$0xff]  ;;  %v5896_v9 = vsel %vm1000_vm9, %v13445_v32, %v13783_v45 }
 0x996   :  { %v8617_v38 = vpack.c.bf16 %v5801_v37, %v5799_v34  ;;  %v13797_v28 = vpop.permute.xlu0 %5619  ;;  %v8618_v31 = vpack.c.bf16 %v5802_v10, %v5800_v51  ;;  %v13823_v22 = vpop.f32.mrf.mxu0  ;;  %v8638_v10 = vpack.c.bf16 %v8006_v59, %v8004_v18  ;;  %v8003_v34 = vld [vmem:[%s14218_s0 + $0x40] sm:$0xff]  ;;  %v8005_v51 = vld [vmem:[%s14218_s0 + $0x50] sm:$0xff] }
 0x997   :  { %7360 = vmatpush2.bf16.msra.mxu1 %v14940_v19  ;;  %v5666_v19 = vsel %vm862_vm7, %v13715_v2, %v13685_v5  ;;  %v8637_v13 = vpack.c.bf16 %v8005_v51, %v8003_v34  ;;  %v8606_v59 = vpack.c.bf16 %v5790_v54, %v5788_v52  ;;  %v14958_v34 = vld [vmem:[#allocation36_spill] sm:$0xff]  ;;  %v5901_v52 = vsel %vm1000_vm9, %v13722_v15, %v13651_v6 }
 0x998   :  { %v13805_v60 = vpop.permute.xlu1 %5625  ;;  %7361 = vmatprep.subr.bf16.mxu1 %v8526_v56  ;;  %7420 = vmatprep.subr.bf16.mxu0 %v8618_v31  ;;  %v13836_v36 = vpop.f32.mrf.mxu0  ;;  %v9089_v56 = vld [vmem:[%s14228_s10] ss:$20 sps:$4 sm:$0xff]  }
 0x999   :  { %7421 = vmatpush2.bf16.msra.mxu0 %v8617_v38  ;;  %v5789_v38 = vmul.f32 %v5772_v43, %v14741_v39  ;;  %v14951_v31 = vld [vmem:[#allocation34_spill] sm:$0xff]  ;;  %v5682_v43 = vmul.f32 %v5666_v19, %v14954_v47  ;;  %v5898_v39 = vsel %vm1000_vm9, %v13727_v49, %v13745_v3  ;;  %v9093_v19 = vld [vmem:[%s14228_s10 + $0x28] ss:$20 sps:$4 sm:$0xff]  }
 0x99a   :  { %7422 = vmatprep.subr.bf16.mxu0 %v14945_v12  ;;  %v5632_v41 = vpop.permute.xlu0 %5631  ;;  %v13850_v50 = vpop.f32.mrf.mxu0  ;;  %v14953_v33 = vpack.c.bf16 %v14951_v31, %v14952_v0  ;;  %v14956_v12 = vld [vmem:[#allocation90_spill] sm:$0xff]  ;;  %v13933_v0 = vld [vmem:[#allocation4 + $0x10] ss:$0 sm:$0xff] }
 0x99b   :  { %7362 = vmatpush2.bf16.msra.mxu1 %v8525_v30  ;;  %v13875_v30 = vpop.f32.mrf.mxu1  ;;  %v14957_v46 = vpack.c.bf16 %v14955_v35, %v14956_v12  ;;  %v8605_v54 = vpack.c.bf16 %v5789_v38, %v5787_v44 }
 0x99c   :  { %v13839_v37 = vpop.permute.xlu1 %5641  ;;  %7481 = vmatprep.subr.bf16.mxu1 %v8642_v24  ;;  %v9090_v24 = vld [vmem:[%s14228_s10 + $0x2c] ss:$20 sps:$4 sm:$0xff]   ;;  %v13873_v29 = vpop.f32.mrf.mxu0 }
 0x99d   :  { %7423 = vmatpush2.bf16.msra.mxu0 %v14950_v21  ;;  %v13888_v61 = vpop.f32.mrf.mxu1  ;;  %v5662_v38 = vsel %vm862_vm7, %v13839_v37, %v13805_v60 }
 0x99e   :  { %7364 = vmatmul.mubr.bf16.vlgmr.msra.gmra.mxu1 %v9089_v56  ;;  %7424 = vmatprep.subr.bf16.mxu0 %v14953_v33  ;;  %v5648_v27 = vpop.permute.xlu0 %5647  ;;  %v13886_v26 = vpop.f32.mrf.mxu0  ;;  %v5674_v44 = vmul.f32 %v5662_v38, %v14954_v47 }
 0x99f   :  { %v5665_v1 = vsel %vm862_vm7, %v5648_v27, %v5632_v41  ;;  %7373 = vmatprep.mubr.bf16.mxu1 %v9090_v24  ;;  %7482 = vmatpush1.bf16.msra.mxu1 %v8641_v53  ;;  %v5657_v40 = vsel %vm862_vm7, %v5632_v41, %v5648_v27  ;;  %v5658_v41 = vsel %vm862_vm7, %v13685_v5, %v13715_v2  ;;  %v13906_v5 = vpop.f32.mrf.mxu1 }
 0x9a0   :  { %v5680_v25 = vmul.f32 %v5665_v1, %v14954_v47  ;;  %v13880_v18 = vpop.permute.xlu1 %5865  ;;  %7483 = vmatprep.subr.bf16.mxu1 %v8638_v10  ;;  %v5906_v10 = vsel %vm1000_vm9, %v13745_v3, %v13727_v49  ;;  %v5679_v51 = vmul.f32 %v5657_v40, %v14958_v34  ;;  %v13904_v57 = vpop.f32.mrf.mxu0  ;;  %v5653_v2 = vsel %vm862_vm7, %v13482_v42, %v13644_v23 }
 0x9a1   :  { %7425 = vmatpush2.bf16.msra.mxu0 %v14957_v46  ;;  %v5661_v49 = vsel %vm862_vm7, %v13644_v23, %v13482_v42  ;;  %v5681_v3 = vmul.f32 %v5658_v41, %v14958_v34  ;;  %v13931_v31 = vpop.f32.mrf.mxu1  ;;  %v5921_v42 = vmul.f32 %v13933_v0, %v5898_v39  ;;  %v13936_v23 = vld [vmem:[#allocation4 + $0x18] ss:$0 sm:$0xff]  ;;  %v5904_v27 = vsel %vm1000_vm9, %v13783_v45, %v13445_v32  ;;  %v9094_v32 = vld [vmem:[%s14228_s10 + $0x54] ss:$20 sps:$4 sm:$0xff]  }
 0x9a2   :  { %7426 = vmatprep.subr.bf16.mxu0 %v8606_v59  ;;  %v5872_v53 = vpop.permute.xlu0 %5871  ;;  %v8602_v16 = vpack.c.bf16 %v5682_v43, %v5680_v25  ;;  %v13929_v56 = vpop.f32.mrf.mxu0  ;;  %v5922_v33 = vmul.f32 %v13936_v23, %v5906_v10  ;;  %v13947_v24 = vmul.f32 %v13933_v0, %v5896_v9  ;;  %v5654_v59 = vsel %vm862_vm7, %v13805_v60, %v13839_v37  ;;  %v14959_v41 = vld [vmem:[#allocation57_spill] sm:$0xff] }
 0x9a3   :  { %7484 = vmatpush1.bf16.msra.mxu1 %v8637_v13  ;;  %v8601_v13 = vpack.c.bf16 %v5681_v3, %v5679_v51  ;;  %v5915_v43 = vmul.f32 %v13933_v0, %v14959_v41  ;;  %v13975_v37 = vpop.f32.mrf.mxu1  ;;  %v5671_v10 = vmul.f32 %v5653_v2, %v14958_v34  ;;  %v5672_v51 = vmul.f32 %v5661_v49, %v14954_v47  ;;  %v14961_v3 = vld [vmem:[#allocation58_spill] sm:$0xff] }
 0x9a4   :  { %v5882_v21 = vpop.permute.xlu1 %5881  ;;  %v13956_v45 = vpop.f32.mrf.mxu0 }
 0x9a5   :  { %7427 = vmatpush2.bf16.msra.mxu0 %v8605_v54  ;;  %v5918_v54 = vmul.f32 %v13936_v23, %v5904_v27  ;;  %v5902_v39 = vsel %vm1000_vm9, %v5882_v21, %v13880_v18 }
 0x9a6   :  { %7374 = vmatmul.mubr.bf16.gmra.mxu1 %v9093_v19  ;;  %7428 = vmatprep.subr.bf16.mxu0 %v8602_v16  ;;  %v5888_v1 = vpop.permute.xlu0 %5887  ;;  %v13973_v60 = vpop.f32.mrf.mxu0  ;;  %v14960_v16 = vld [vmem:[#allocation39_spill] sm:$0xff]  ;;  %v5893_v19 = vsel %vm1000_vm9, %v13651_v6, %v13722_v15  ;;  %v5914_v6 = vmul.f32 %v13936_v23, %v5902_v39 }
 0x9a7   :  { %v5897_v40 = vsel %vm1000_vm9, %v5872_v53, %v5888_v1  ;;  %v5905_v25 = vsel %vm1000_vm9, %v5888_v1, %v5872_v53  ;;  %7383 = vmatprep.mubr.bf16.mxu1 %v9094_v32  ;;  %v5916_v53 = vmul.f32 %v13936_v23, %v13471_v20  ;;  %v14962_v38 = vpack.c.bf16 %v14960_v16, %v14961_v3 }
 0x9a8   :  { %v5919_v35 = vmul.f32 %v13933_v0, %v5897_v40  ;;  %v5920_v12 = vmul.f32 %v13936_v23, %v5905_v25  ;;  %v5622_v46 = vpop.permute.xlu1 %5621  ;;  %v5912_v1 = vmul.f32 %v13936_v23, %v5901_v52  ;;  %v13991_v49 = vpop.f32.mrf.mxu0  ;;  %v8629_v40 = vpack.c.bf16 %v13947_v24, %v5915_v43 }
 0x9a9   :  { %7429 = vmatpush2.bf16.msra.mxu0 %v8601_v13  ;;  %v5673_v13 = vmul.f32 %v5654_v59, %v14958_v34  ;;  %v8594_v52 = vpack.c.bf16 %v5674_v44, %v5672_v51  ;;  %v14963_v59 = vld [vmem:[#allocation59_spill] sm:$0xff]  ;;  %v8630_v24 = vpack.c.bf16 %v5918_v54, %v5916_v53 }
 0x9aa   :  { %v8633_v9 = vpack.c.bf16 %v5921_v42, %v5919_v35  ;;  %7430 = vmatprep.subr.bf16.mxu0 %v14962_v38  ;;  %v5636_v20 = vpop.permute.xlu0 %5635  ;;  %v8634_v27 = vpack.c.bf16 %v5922_v33, %v5920_v12  ;;  %v13993_v42 = vpop.f32.mrf.mxu1  ;;  %v5894_v33 = vsel %vm1000_vm9, %v13880_v18, %v5882_v21  ;;  %v14964_v35 = vld [vmem:[#allocation60_spill] sm:$0xff]  ;;  %v8626_v38 = vpack.c.bf16 %v5914_v6, %v5912_v1 }
 0x9ab   :  { %v5659_v2 = vsel %vm862_vm7, %v5636_v20, %v13797_v28  ;;  %v14965_v12 = vpack.c.bf16 %v14963_v59, %v14964_v35  ;;  %v14007_v41 = vpop.f32.mrf.mxu0  ;;  %v5651_v21 = vsel %vm862_vm7, %v13797_v28, %v5636_v20  ;;  %v8593_v53 = vpack.c.bf16 %v5673_v13, %v5671_v10  ;;  %v9096_v28 = vld [vmem:[%s14228_s10 + $0x7c] ss:$20 sps:$4 sm:$0xff]  }
 0x9ac   :  { %v5638_v15 = vpop.permute.xlu1 %5637  ;;  %7485 = vmatprep.subr.bf16.mxu1 %v8634_v27  ;;  %v14009_v18 = vpop.f32.mrf.mxu1  ;;  %v5668_v44 = vmul.f32 %v5659_v2, %v14954_v47  ;;  %v5913_v54 = vmul.f32 %v13933_v0, %v5894_v33  ;;  %v5911_v20 = vmul.f32 %v13933_v0, %v5893_v19  ;;  %v5667_v10 = vmul.f32 %v5651_v21, %v14958_v34 }
 0x9ad   :  { %v5652_v25 = vsel %vm862_vm7, %v5622_v46, %v5638_v15  ;;  %v5660_v32 = vsel %vm862_vm7, %v5638_v15, %v5622_v46  ;;  %7431 = vmatpush2.bf16.msra.mxu0 %v14965_v12  ;;  %7486 = vmatpush1.bf16.msra.mxu1 %v8633_v9  ;;  %v9095_v46 = vld [vmem:[%s14228_s10 + $0x50] ss:$20 sps:$4 sm:$0xff]   ;;  %v14024_v9 = vpop.f32.mrf.mxu0 }
 0x9ae   :  { %v5670_v43 = vmul.f32 %v5660_v32, %v14954_v47  ;;  %7384 = vmatmul.mubr.bf16.gmra.mxu1 %v9095_v46  ;;  %7432 = vmatprep.subr.bf16.mxu0 %v8594_v52  ;;  %v5860_v39 = vpop.permute.xlu0 %5859  ;;  %v5669_v51 = vmul.f32 %v5652_v25, %v14958_v34  ;;  %v14026_v47 = vpop.f32.mrf.mxu1  ;;  %v8625_v33 = vpack.c.bf16 %v5913_v54, %v5911_v20  ;;  %v9100_v54 = vld [vmem:[%s14228_s10 + $0x10] ss:$20 sps:$4 sm:$0xff]  }
 0x9af   :  { %7487 = vmatprep.subr.bf16.mxu1 %v8630_v24  ;;  %7393 = vmatprep.mubr.bf16.mxu1 %v9096_v28  ;;  %v14030_v27 = vpop.f32.mrf.mxu0  ;;  %v9097_v24 = vld [vmem:[%s14228_s10 + $0x78] ss:$20 sps:$4 sm:$0xff]  }
 0x9b0   :  { %v5862_v16 = vpop.permute.xlu1 %5861  ;;  %v8590_v3 = vpack.c.bf16 %v5670_v43, %v5668_v44  ;;  %v14032_v2 = vpop.f32.mrf.mxu1  ;;  %v8589_v15 = vpack.c.bf16 %v5669_v51, %v5667_v10  ;;  %v9098_v43 = vld [vmem:[%s14228_s10 + $0x8] ss:$20 sps:$4 sm:$0xff]  }
 0x9b1   :  { %7433 = vmatpush2.bf16.msra.mxu0 %v8593_v53  ;;  %7488 = vmatpush1.bf16.msra.mxu1 %v8629_v40  ;;  %v14038_v19 = vpop.f32.mrf.mxu0  ;;  %v9102_v10 = vld [vmem:[%s14228_s10 + $0x5c] ss:$20 sps:$4 sm:$0xff]  }
 0x9b2   :  { %7434 = vmatprep.subr.bf16.mxu0 %v8590_v3  ;;  %7489 = vmatprep.subr.bf16.mxu1 %v8626_v38  ;;  %v5876_v13 = vpop.permute.xlu0 %5875  ;;  %v14053_v21 = vpop.f32.mrf.mxu1 }
 0x9b3   :  { %v5891_v52 = vsel %vm1000_vm9, %v5860_v39, %v5876_v13  ;;  %v5899_v1 = vsel %vm1000_vm9, %v5876_v13, %v5860_v39  ;;  %v14044_v25 = vpop.f32.mrf.mxu0 }
 0x9b4   :  { %v5878_v34 = vpop.permute.xlu1 %5877  ;;  %v5907_v32 = vmul.f32 %v13933_v0, %v5891_v52  ;;  %v5908_v59 = vmul.f32 %v13936_v23, %v5899_v1 }
 0x9b5   :  { %v5892_v40 = vsel %vm1000_vm9, %v5862_v16, %v5878_v34  ;;  %v5900_v6 = vsel %vm1000_vm9, %v5878_v34, %v5862_v16  ;;  %7435 = vmatpush2.bf16.msra.mxu0 %v8589_v15  ;;  %7490 = vmatpush1.bf16.msra.mxu1 %v8625_v33  ;;  %v14059_v39 = vpop.f32.mrf.mxu0  ;;  %v9101_v16 = vld [vmem:[%s14228_s10 + $0x30] ss:$20 sps:$4 sm:$0xff]  }
 0x9b6   :  { %v5909_v35 = vmul.f32 %v13933_v0, %v5892_v40  ;;  %v5910_v12 = vmul.f32 %v13936_v23, %v5900_v6  ;;  %7394 = vmatmul.mubr.bf16.gmra.mxu1 %v9097_v24  ;;  %v9099_v0 = vld [vmem:[%s14228_s10 + $0x34] ss:$20 sps:$4 sm:$0xff]   ;;  %v14064_v23 = vpop.f32.mrf.mxu1  ;;  %v9105_v24 = vld [vmem:[%s14228_s10 + $0x84] ss:$20 sps:$4 sm:$0xff]  }
 0x9b7   :  { %7509 = vmatprep.mubr.bf16.mxu1 %v14966_v14  ;;  %v14066_v53 = vpop.f32.mrf.mxu0 }
 0x9b8   :  { %v8621_v44 = vpack.c.bf16 %v5909_v35, %v5907_v32  ;;  %7437 = vmatmul.mubr.bf16.vlgmr.msra.gmra.mxu0 %v9098_v43  ;;  %v8622_v46 = vpack.c.bf16 %v5910_v12, %v5908_v59  ;;  %v14072_v51 = vpop.f32.mrf.mxu1 }
 0x9b9   :  { %7446 = vmatprep.mubr.bf16.mxu0 %v9099_v0  ;;  %v14084_v20 = vpop.f32.mrf.mxu0 }
 0x9ba   :  { %7491 = vmatprep.subr.bf16.mxu1 %v8622_v46 }
 0x9bb   :  { %7492 = vmatpush1.bf16.msra.mxu1 %v8621_v44  ;;  %v14103_v59 = vpop.f32.mrf.mxu0 }
 0x9be   :  { %8191 = vmatmul.mubr.msk.bf16.vlgmr.msra.gmra.mxu1 %vm7099_vm11, %v9100_v54 }
 0x9bf   :  { %7519 = vmatprep.mubr.bf16.mxu1 %v14966_v14  ;;  %v14075_v28 = vpop.permute.xlu0 %6201 }
 0x9c0   :  { %7447 = vmatmul.mubr.bf16.gmra.mxu0 %v9101_v16  ;;  %v7147_v3 = vadd.f32 %v13673_v62, %v14075_v28  ;;  %v7149_v38 = vadd.f32 %v13692_v58, %v14075_v28  ;;  %v7249_v58 = vpop.f32.mrf.mxu1 }
 0x9c1   :  { %7456 = vmatprep.mubr.bf16.mxu0 %v9102_v10  ;;  %v14089_v13 = vpop.permute.xlu1 %6206 }
 0x9c2   :  { %v7151_v33 = vadd.f32 %v13698_v8, %v14089_v13  ;;  %v7220_v15 = vadd.f32 %v13875_v30, %v7147_v3  ;;  %v7222_v52 = vadd.f32 %v13888_v61, %v7149_v38  ;;  %v7153_v62 = vadd.f32 %v13720_v17, %v14089_v13  ;;  %v9103_v61 = vld [vmem:[%s14228_s10 + $0x38] ss:$20 sps:$4 sm:$0xff]   ;;  %v9106_v38 = vld [vmem:[%s14228_s10 + $0x60] ss:$20 sps:$4 sm:$0xff]  }
 0x9c3   :  { %v14097_v1 = vpop.permute.xlu0 %6211 }
 0x9c4   :  { %v7224_v34 = vadd.f32 %v13906_v5, %v7151_v33  ;;  %v7293_v40 = vadd.f32 %v13929_v56, %v7220_v15  ;;  %v7295_v6 = vadd.f32 %v13956_v45, %v7222_v52  ;;  %v7226_v32 = vadd.f32 %v13931_v31, %v7153_v62  ;;  %v7251_v45 = vpop.f32.mrf.mxu1  ;;  %v9107_v33 = vld [vmem:[%s14228_s10 + $0x80] ss:$20 sps:$4 sm:$0xff]  }
 0x9c5   :  { %v14105_v8 = vpop.permute.xlu1 %6216  ;;  %v7157_v30 = vadd.f32 %v13731_v55, %v14097_v1  ;;  %v7159_v17 = vadd.f32 %v13739_v7, %v14097_v1 }
 0x9c6   :  { %8192 = vmatmul.mubr.msk.bf16.gmra.mxu1 %vm7099_vm11, %v9103_v61  ;;  %7550 = vst [vmem:[#allocation10] sm:$0xff] %v7293_v40  ;;  %7551 = vst [vmem:[#allocation10 + $0x8] sm:$0xff] %v7295_v6  ;;  %v7297_v5 = vadd.f32 %v13973_v60, %v7224_v34  ;;  %v7299_v56 = vadd.f32 %v13991_v49, %v7226_v32  ;;  %v7161_v31 = vadd.f32 %v13758_v4, %v14105_v8  ;;  %v9104_v60 = vld [vmem:[%s14228_s10 + $0x58] ss:$20 sps:$4 sm:$0xff]   ;;  %v7253_v0 = vpop.f32.mrf.mxu1 }
 0x9c7   :  { %v7163_v55 = vadd.f32 %v13777_v11, %v14105_v8  ;;  %7529 = vmatprep.mubr.bf16.mxu1 %v14966_v14  ;;  %v7230_v7 = vadd.f32 %v13975_v37, %v7157_v30  ;;  %v7232_v35 = vadd.f32 %v13993_v42, %v7159_v17  ;;  %v14124_v12 = vpop.permute.xlu0 %6221  ;;  %v7324_v42 = vpop.f32.mrf.mxu0 }
 0x9c8   :  { %7457 = vmatmul.mubr.bf16.gmra.mxu0 %v9104_v60  ;;  %7552 = vst [vmem:[#allocation10 + $0x10] sm:$0xff] %v7297_v5  ;;  %7553 = vst [vmem:[#allocation10 + $0x18] sm:$0xff] %v7299_v56  ;;  %v7234_v4 = vadd.f32 %v14009_v18, %v7161_v31  ;;  %v7167_v49 = vadd.f32 %v13795_v48, %v14124_v12  ;;  %v7169_v37 = vadd.f32 %v13803_v63, %v14124_v12  ;;  %v7255_v10 = vpop.f32.mrf.mxu1 }
 0x9c9   :  { %v7236_v11 = vadd.f32 %v14026_v47, %v7163_v55  ;;  %7466 = vmatprep.mubr.bf16.mxu0 %v9105_v24  ;;  %v7303_v44 = vadd.f32 %v14007_v41, %v7230_v7  ;;  %v7305_v43 = vadd.f32 %v14024_v9, %v7232_v35  ;;  %v14140_v46 = vpop.permute.xlu1 %6226  ;;  %v7326_v16 = vpop.f32.mrf.mxu0 }
 0x9ca   :  { %v7307_v18 = vadd.f32 %v14030_v27, %v7234_v4  ;;  %v7171_v48 = vadd.f32 %v13823_v22, %v14140_v46  ;;  %v7240_v63 = vadd.f32 %v14032_v2, %v7167_v49  ;;  %v7242_v54 = vadd.f32 %v14053_v21, %v7169_v37 }
 0x9cb   :  { %v7309_v47 = vadd.f32 %v14038_v19, %v7236_v11  ;;  %7554 = vst [vmem:[#allocation10 + $0x20] sm:$0xff] %v7303_v44  ;;  %7555 = vst [vmem:[#allocation10 + $0x28] sm:$0xff] %v7305_v43  ;;  %v7173_v41 = vadd.f32 %v13836_v36, %v14140_v46  ;;  %v14150_v9 = vpop.permute.xlu0 %6231  ;;  %v7328_v52 = vpop.f32.mrf.mxu0 }
 0x9cc   :  { %7556 = vst [vmem:[#allocation10 + $0x30] sm:$0xff] %v7307_v18  ;;  %v7244_v27 = vadd.f32 %v14064_v23, %v7171_v48  ;;  %v7313_v19 = vadd.f32 %v14044_v25, %v7240_v63  ;;  %v7177_v22 = vadd.f32 %v13850_v50, %v14150_v9  ;;  %v7179_v2 = vadd.f32 %v13873_v29, %v14150_v9 }
 0x9cd   :  { %7557 = vst [vmem:[#allocation10 + $0x38] sm:$0xff] %v7309_v47  ;;  %v7315_v21 = vadd.f32 %v14059_v39, %v7242_v54  ;;  %v7246_v3 = vadd.f32 %v14072_v51, %v7173_v41  ;;  %v14160_v36 = vpop.permute.xlu1 %6236 }
 0x9ce   :  { %8193 = vmatmul.mubr.msk.bf16.gmra.mxu1 %vm7099_vm11, %v9106_v38  ;;  %7558 = vst [vmem:[#allocation10 + $0x40] sm:$0xff] %v7313_v19  ;;  %v7317_v25 = vadd.f32 %v14066_v53, %v7244_v27  ;;  %v7181_v50 = vadd.f32 %v13886_v26, %v14160_v36  ;;  %v7250_v29 = vadd.f32 %v7249_v58, %v7177_v22 }
 0x9cf   :  { %v7252_v23 = vadd.f32 %v7251_v45, %v7179_v2  ;;  %7539 = vmatprep.mubr.bf16.mxu1 %v14966_v14  ;;  %7559 = vst [vmem:[#allocation10 + $0x48] sm:$0xff] %v7315_v21  ;;  %v7319_v39 = vadd.f32 %v14084_v20, %v7246_v3  ;;  %v7183_v51 = vadd.f32 %v13904_v57, %v14160_v36  ;;  %v9108_v57 = vld [vmem:[%s14228_s10 + $0x88] ss:$20 sps:$4 sm:$0xff]   ;;  %s9211_s10 = smov [#allocation10]  }
 0x9d0   :  { %7467 = vmatmul.mubr.bf16.gmra.mxu0 %v9107_v33  ;;  %7560 = vst [vmem:[#allocation10 + $0x50] sm:$0xff] %v7317_v25  ;;  %v7254_v53 = vadd.f32 %v7253_v0, %v7181_v50  ;;  %v7323_v26 = vadd.f32 %v14103_v59, %v7250_v29  ;;  %s7588_s6 = sshll.u32 %s9211_s10, 4  ;;  %s7589_s6 = int_to_ptr.vmem [resolvable:$true] %s7588_s6 }
 0x9d1   :  { %v7325_v15 = vadd.f32 %v7324_v42, %v7252_v23  ;;  %7561 = vst [vmem:[#allocation10 + $0x58] sm:$0xff] %v7319_v39  ;;  %v7256_v62 = vadd.f32 %v7255_v10, %v7183_v51  ;;  %s9169_s27 = scalar_lea.vmem %s7589_s6, 4096  ;;  %p9174_p2 = scmp.lt.s32.totalorder %s7589_s6, %s7589_s6 }
 0x9d2   :  { %7562 = vst [vmem:[#allocation10 + $0x60] sm:$0xff] %v7323_v26  ;;  %v7327_v14 = vadd.f32 %v7326_v16, %v7254_v53  ;;  %p9170_p1 = scmp.ne.s32.totalorder %s7589_s6, %s9169_s27  ;;  %p9175_p3 = scmp.lt.s32.totalorder %s9169_s27, %s9169_s27 }
 0x9d3   :  { %7563 = vst [vmem:[#allocation10 + $0x68] sm:$0xff] %v7325_v15  ;;  %v7329_v20 = vadd.f32 %v7328_v52, %v7256_v62 }
 0x9d4   :  { %7564 = vst [vmem:[#allocation10 + $0x70] sm:$0xff] %v7327_v14  ;;  %p9176_p4 = por %p9175_p3, %p9174_p2 }
 0x9d5   :  { %7565 = vst [vmem:[#allocation10 + $0x78] sm:$0xff] %v7329_v20 }
 0x9d6   :  { %8194 = vmatmul.mubr.msk.bf16.gmra.mxu1 %vm7099_vm11, %v9108_v57  ;;  %p9177_p5 = pnand %p9176_p4, %p9170_p1 }
 0xa5e   :  { %v7365_v58 = vpop.f32.mrf.mxu1 }
 0xa5f   :  { %v7366_v4 = vadd.f32 %v7365_v58, %v14075_v28 }
 0xa60   :  { %v7367_v34 = vpop.f32.mrf.mxu1 }
 0xa61   :  { %v7368_v37 = vadd.f32 %v7367_v34, %v14075_v28 }
 0xa62   :  { %v7369_v40 = vpop.f32.mrf.mxu1 }
 0xa63   :  { %v7370_v43 = vadd.f32 %v7369_v40, %v14089_v13 }
 0xa64   :  { %v7371_v6 = vpop.f32.mrf.mxu1 }
 0xa65   :  { %v7372_v0 = vadd.f32 %v7371_v6, %v14089_v13 }
 0xa66   :  { %v7375_v32 = vpop.f32.mrf.mxu1 }
 0xa67   :  { %v7376_v22 = vadd.f32 %v7375_v32, %v14097_v1 }
 0xa68   :  { %v7377_v59 = vpop.f32.mrf.mxu1 }
 0xa69   :  { %v7378_v3 = vadd.f32 %v7377_v59, %v14097_v1 }
 0xa6a   :  { %v7379_v30 = vpop.f32.mrf.mxu1 }
 0xa6b   :  { %v7380_v13 = vadd.f32 %v7379_v30, %v14105_v8 }
 0xa6c   :  { %v7381_v17 = vpop.f32.mrf.mxu1 }
 0xa6d   :  { %v7382_v33 = vadd.f32 %v7381_v17, %v14105_v8 }
 0xa6e   :  { %v7385_v61 = vpop.f32.mrf.mxu1 }
 0xa6f   :  { %v7386_v1 = vadd.f32 %v7385_v61, %v14124_v12 }
 0xa70   :  { %v7387_v5 = vpop.f32.mrf.mxu1 }
 0xa71   :  { %v7388_v58 = vadd.f32 %v7387_v5, %v14124_v12 }
 0xa72   :  { %v7389_v56 = vpop.f32.mrf.mxu1 }
 0xa73   :  { %v7390_v8 = vadd.f32 %v7389_v56, %v14140_v46 }
 0xa74   :  { %v14181_v31 = vpop.f32.mrf.mxu1 }
 0xa75   :  { %v7392_v61 = vadd.f32 %v14181_v31, %v14140_v46 }
 0xa76   :  { %v14183_v55 = vpop.f32.mrf.mxu1 }
 0xa77   :  { %v7396_v5 = vadd.f32 %v14183_v55, %v14150_v9 }
 0xa78   :  { %v14185_v45 = vpop.f32.mrf.mxu1  ;;  %v7438_v7 = vpop.f32.mrf.mxu0 }
 0xa79   :  { %v7439_v42 = vadd.f32 %v7438_v7, %v7366_v4 }
 0xa7a   :  { %v14187_v35 = vpop.f32.mrf.mxu1  ;;  %v7440_v60 = vpop.f32.mrf.mxu0 }
 0xa7b   :  { %v7441_v18 = vadd.f32 %v7440_v60, %v7368_v37  ;;  %v7400_v31 = vadd.f32 %v14187_v35, %v14160_v36 }
 0xa7c   :  { %v14190_v11 = vpop.f32.mrf.mxu1  ;;  %v7442_v49 = vpop.f32.mrf.mxu0 }
 0xa7d   :  { %v7443_v54 = vadd.f32 %v7442_v49, %v7370_v43 }
 0xa7e   :  { %v7444_v24 = vpop.f32.mrf.mxu0  ;;  %v7511_v44 = vpop.f32.mrf.mxu1 }
 0xa7f   :  { %v7512_v47 = vadd.f32 %v7511_v44, %v7439_v42  ;;  %v7445_v2 = vadd.f32 %v7444_v24, %v7372_v0  ;;  %v7398_v44 = vadd.f32 %v14185_v45, %v14150_v9  ;;  %v7402_v0 = vadd.f32 %v14190_v11, %v14160_v36 }
 0xa80   :  { %v7448_v48 = vpop.f32.mrf.mxu0  ;;  %v7513_v63 = vpop.f32.mrf.mxu1 }
 0xa81   :  { %7567 = vst [vmem:[#allocation10 + $0x80] sm:$0xff] %v7512_v47  ;;  %v7514_v41 = vadd.f32 %v7513_v63, %v7441_v18  ;;  %v7449_v38 = vadd.f32 %v7448_v48, %v7376_v22 }
 0xa82   :  { %v7450_v27 = vpop.f32.mrf.mxu0  ;;  %v7515_v19 = vpop.f32.mrf.mxu1 }
 0xa83   :  { %7568 = vst [vmem:[#allocation10 + $0x88] sm:$0xff] %v7514_v41  ;;  %v7516_v28 = vadd.f32 %v7515_v19, %v7443_v54  ;;  %v7451_v23 = vadd.f32 %v7450_v27, %v7378_v3 }
 0xa84   :  { %v7452_v16 = vpop.f32.mrf.mxu0  ;;  %v7517_v21 = vpop.f32.mrf.mxu1 }
 0xa85   :  { %7569 = vst [vmem:[#allocation10 + $0x90] sm:$0xff] %v7516_v28  ;;  %v7518_v25 = vadd.f32 %v7517_v21, %v7445_v2  ;;  %v7453_v53 = vadd.f32 %v7452_v16, %v7380_v13 }
 0xa86   :  { %v7454_v50 = vpop.f32.mrf.mxu0  ;;  %v7521_v29 = vpop.f32.mrf.mxu1 }
 0xa87   :  { %7570 = vst [vmem:[#allocation10 + $0x98] sm:$0xff] %v7518_v25  ;;  %v7522_v10 = vadd.f32 %v7521_v29, %v7449_v38  ;;  %v7455_v62 = vadd.f32 %v7454_v50, %v7382_v33 }
 0xa88   :  { %v7458_v39 = vpop.f32.mrf.mxu0  ;;  %v7523_v51 = vpop.f32.mrf.mxu1 }
 0xa89   :  { %7571 = vst [vmem:[#allocation10 + $0xa0] sm:$0xff] %v7522_v10  ;;  %v7524_v26 = vadd.f32 %v7523_v51, %v7451_v23  ;;  %v7459_v34 = vadd.f32 %v7458_v39, %v7386_v1 }
 0xa8a   :  { %v7460_v15 = vpop.f32.mrf.mxu0  ;;  %v7525_v52 = vpop.f32.mrf.mxu1 }
 0xa8b   :  { %7572 = vst [vmem:[#allocation10 + $0xa8] sm:$0xff] %v7524_v26  ;;  %v7526_v14 = vadd.f32 %v7525_v52, %v7453_v53  ;;  %v7461_v59 = vadd.f32 %v7460_v15, %v7388_v58 }
 0xa8c   :  { %v7462_v20 = vpop.f32.mrf.mxu0  ;;  %v7527_v57 = vpop.f32.mrf.mxu1 }
 0xa8d   :  { %7573 = vst [vmem:[#allocation10 + $0xb0] sm:$0xff] %v7526_v14  ;;  %v7528_v40 = vadd.f32 %v7527_v57, %v7455_v62  ;;  %v7463_v60 = vadd.f32 %v7462_v20, %v7390_v8 }
 0xa8e   :  { %v7464_v6 = vpop.f32.mrf.mxu0  ;;  %v7531_v32 = vpop.f32.mrf.mxu1 }
 0xa8f   :  { %7574 = vst [vmem:[#allocation10 + $0xb8] sm:$0xff] %v7528_v40  ;;  %v7532_v30 = vadd.f32 %v7531_v32, %v7459_v34  ;;  %v7465_v37 = vadd.f32 %v7464_v6, %v7392_v61 }
 0xa90   :  { %v7468_v17 = vpop.f32.mrf.mxu0  ;;  %v7533_v7 = vpop.f32.mrf.mxu1 }
 0xa91   :  { %7575 = vst [vmem:[#allocation10 + $0xc0] sm:$0xff] %v7532_v30  ;;  %v7534_v4 = vadd.f32 %v7533_v7, %v7461_v59  ;;  %v7469_v43 = vadd.f32 %v7468_v17, %v7396_v5 }
 0xa92   :  { %v7470_v49 = vpop.f32.mrf.mxu0  ;;  %v7535_v12 = vpop.f32.mrf.mxu1 }
 0xa93   :  { %7576 = vst [vmem:[#allocation10 + $0xc8] sm:$0xff] %v7534_v4  ;;  %v7536_v42 = vadd.f32 %v7535_v12, %v7463_v60  ;;  %v7471_v47 = vadd.f32 %v7470_v49, %v7398_v44 }
 0xa94   :  { %v7472_v56 = vpop.f32.mrf.mxu0  ;;  %v7537_v24 = vpop.f32.mrf.mxu1 }
 0xa95   :  { %7577 = vst [vmem:[#allocation10 + $0xd0] sm:$0xff] %v7536_v42  ;;  %v7538_v18 = vadd.f32 %v7537_v24, %v7465_v37  ;;  %v7473_v54 = vadd.f32 %v7472_v56, %v7400_v31 }
 0xa96   :  { %v7541_v46 = vpop.f32.mrf.mxu1  ;;  %v7474_v63 = vpop.f32.mrf.mxu0 }
 0xa97   :  { %7578 = vst [vmem:[#allocation10 + $0xd8] sm:$0xff] %v7538_v18  ;;  %v7542_v48 = vadd.f32 %v7541_v46, %v7469_v43  ;;  %v7475_v9 = vadd.f32 %v7474_v63, %v7402_v0 }
 0xa98   :  { %v7543_v55 = vpop.f32.mrf.mxu1 }
 0xa99   :  { %7579 = vst [vmem:[#allocation10 + $0xe0] sm:$0xff] %v7542_v48  ;;  %v7544_v41 = vadd.f32 %v7543_v55, %v7471_v47 }
 0xa9a   :  { %v7545_v27 = vpop.f32.mrf.mxu1 }
 0xa9b   :  { %7580 = vst [vmem:[#allocation10 + $0xe8] sm:$0xff] %v7544_v41  ;;  %v7546_v45 = vadd.f32 %v7545_v27, %v7473_v54 }
 0xa9c   :  { %v7547_v19 = vpop.f32.mrf.mxu1 }
 0xa9d   :  { %7581 = vst [vmem:[#allocation10 + $0xf0] sm:$0xff] %v7546_v45  ;;  %v7548_v35 = vadd.f32 %v7547_v19, %v7475_v9 }
 0xa9f   :  { %7582 = vst [vmem:[#allocation10 + $0xf8] sm:$0xff] %v7548_v35 }
 0xaa0   :  { %9180 = shalt.err (!%p9177_p5)
}
 0xaa1   :  { %7594 = dma.vmem_to_hbm [thread:$0]  %s7589_s6, 4096, %s14230_s12, [#allocation6], %s9199_s13, %s9199_s13, %s9200_s14  }
 0xaa2   :  { %9193 = dma.done.wait [#allocation6], 4096  }
 0xaa3   :  { %9194 = vsyncadd [#allocation6], 4294963200 }
 0xaa4   :  { %7598 = vsyncpa [#allocation5], 1 }
 0xaa5   :  { %7599 = vsyncpa [#allocation8], 1 }
 0xaa6   :  { %7600 = vsyncpa [#allocation6], 1 }

</bundles_post_ra>
